<compile_context>
chip_gen: v5e
topology: v5e:2x2
jax: 0.10.0
libtpu: 0.0.40
codegen_flags: <defaults>
</compile_context>

<pallas_src>
import functools

import jax
import jax.numpy as jnp
from jax import lax
from jax.experimental import pallas as pl
from jax.experimental.pallas import tpu as pltpu

EPS = 1e-5
NUM_GROUPS = 16
OFF = 8   # sublane-aligned start column of the interior inside the pad scratch


# ----------------------------- kernel --------------------------------------

def _head_kernel(x_ref,
                 w1_ref, b1_ref, gm1_ref, bt1_ref,
                 w2_ref, b2_ref, gm2_ref, bt2_ref,
                 wh_ref, bh_ref, gpool_ref, gscat_ref,
                 out_ref, pad_ref, *, NB, H, W, C):
    HW = H * W
    M = NB * HW
    WPAD = pad_ref.shape[2]

    # ---- zero only the halo border (interior is fully overwritten each step) ----
    zrow = jnp.zeros((NB, 1, WPAD, C), jnp.float32)
    pad_ref[:, 0:1, :, :] = zrow
    pad_ref[:, H + 1:H + 2, :, :] = zrow
    zcol = jnp.zeros((NB, H + 2, 1, C), jnp.float32)
    pad_ref[:, :, OFF - 1:OFF, :] = zcol
    pad_ref[:, :, OFF + W:OFF + W + 1, :] = zcol

    # ---- copy the unpadded input into the sublane-aligned interior ----
    pad_ref[:, 1:H + 1, OFF:OFF + W, :] = x_ref[...]

    def conv3x3(w_ref, b_ref, cout):
        """3x3 conv as 3 matmuls with K = 3*C (per-dy tap fusion)."""
        acc = jnp.zeros((M, cout), jnp.float32)
        for dy in range(3):
            slab = pad_ref[:, dy:dy + H, OFF - 1:OFF + W + 1, :]   # (NB,H,W+2,C)
            cat = jnp.concatenate(
                [slab[:, :, dx:dx + W, :] for dx in range(3)], axis=-1)  # (NB,H,W,3C)
            acc = acc + jnp.dot(cat.reshape(M, 3 * C), w_ref[dy],
                                preferred_element_type=jnp.float32)
        return acc + b_ref[...]

    def gn_relu(y, gamma_ref, beta_ref):
        """Per-image GroupNorm(16) + ReLU applied as y*scale + shift; y: (M, C)."""
        y3 = y.reshape(NB, HW, C)
        s1 = jnp.sum(y3, axis=1)                                    # (NB, C)
        s2 = jnp.sum(y3 * y3, axis=1)                               # (NB, C)
        grp = jnp.dot(jnp.concatenate([s1, s2], axis=0), gpool_ref[...],
                      preferred_element_type=jnp.float32)           # (2NB, 16) group means
        back = jnp.dot(grp, gscat_ref[...],
                       preferred_element_type=jnp.float32)          # (2NB, C)
        mean = back[:NB]
        var = back[NB:] - mean * mean
        scale = lax.rsqrt(var + EPS) * gamma_ref[...]               # (NB, C)
        shift = beta_ref[...] - mean * scale                        # (NB, C)
        out = jnp.maximum(y3 * scale[:, None, :] + shift[:, None, :], 0.0)
        return out.reshape(NB, H, W, C)

    # conv block 1: conv3x3 -> GroupNorm(16) -> ReLU
    y = gn_relu(conv3x3(w1_ref, b1_ref, C), gm1_ref, bt1_ref)
    pad_ref[:, 1:H + 1, OFF:OFF + W, :] = y
    # conv block 2
    y = gn_relu(conv3x3(w2_ref, b2_ref, C), gm2_ref, bt2_ref)
    pad_ref[:, 1:H + 1, OFF:OFF + W, :] = y

    # fused heads: lanes 0..3 = bbox-reg (ReLU), lane 4 = center-ness (linear)
    head = conv3x3(wh_ref, bh_ref, 8)                               # (M, 8)
    lane = lax.broadcasted_iota(jnp.int32, (1, 8), 1)
    head = jnp.where(lane < 4, jnp.maximum(head, 0.0), head)
    out_ref[...] = head.reshape(NB, H, W, 8)


# ----------------------------- wrapper --------------------------------------

def _pack_w3(w_oihw):
    """PyTorch (Cout, Cin, 3, 3) -> (3, 3*Cin, Cout); K order = dx-major, cin-minor."""
    cout, cin = w_oihw.shape[0], w_oihw.shape[1]
    return (jnp.transpose(w_oihw, (2, 3, 1, 0))
            .reshape(3, 3 * cin, cout).astype(jnp.float32))


def _pick_nb(N, H, W, C):
    """Fold images per grid step so matmul M reaches ~256 (VMEM permitting)."""
    budget = 20 * 1024 * 1024
    best = 1
    for d in range(1, N + 1):
        if N % d:
            continue
        need = (d * (H + 2) * (W + OFF + 1) * C * 4      # pad scratch
                + 2 * d * H * W * C * 4                  # double-buffered input
                + 2 * d * H * W * 8 * 4)                 # double-buffered output
        if need > budget:
            break
        best = d
        if d * H * W >= 256:
            break
    return best


def fcos_regression_head_level(x_nchw, pt):
    """x_nchw: (N, C, H, W) f32. Returns (reg (N,4,H,W), ctr (N,1,H,W))."""
    N, C, H, W = x_nchw.shape
    assert C % NUM_GROUPS == 0
    cg = C // NUM_GROUPS
    NB = _pick_nb(N, H, W, C)
    WPAD = OFF + W + 1

    x = jnp.transpose(x_nchw, (0, 2, 3, 1)).astype(jnp.float32)     # NHWC, no host pad

    # packed parameters
    w1 = _pack_w3(pt['w1'])
    w2 = _pack_w3(pt['w2'])
    wh_oihw = jnp.concatenate(
        [pt['wr'], pt['wc'], jnp.zeros((3, C, 3, 3), jnp.float32)], axis=0)  # (8,C,3,3)
    wh = _pack_w3(wh_oihw)
    bh = jnp.concatenate([pt['br'], pt['bc'], jnp.zeros((3,), jnp.float32)])
    row = lambda v: v.reshape(1, -1).astype(jnp.float32)

    onehot = (jnp.arange(C)[:, None] // cg ==
              jnp.arange(NUM_GROUPS)[None, :]).astype(jnp.float32)  # (C, 16)
    gpool = onehot / float(H * W * cg)   # channel-sums -> group means
    gscat = onehot.T                     # group means -> per-channel

    kernel = functools.partial(_head_kernel, NB=NB, H=H, W=W, C=C)

    def full(shape):
        return pl.BlockSpec(shape, lambda n, _r=len(shape): (0,) * _r)

    in_specs = [
        pl.BlockSpec((NB, H, W, C), lambda n: (n, 0, 0, 0)),
        full((3, 3 * C, C)), full((1, C)), full((1, C)), full((1, C)),
        full((3, 3 * C, C)), full((1, C)), full((1, C)), full((1, C)),
        full((3, 3 * C, 8)), full((1, 8)),
        full((C, NUM_GROUPS)), full((NUM_GROUPS, C)),
    ]
    out_specs = pl.BlockSpec((NB, H, W, 8), lambda n: (n, 0, 0, 0))

    out = pl.pallas_call(
        kernel,
        out_shape=jax.ShapeDtypeStruct((N, H, W, 8), jnp.float32),
        grid_spec=pltpu.PrefetchScalarGridSpec(
            num_scalar_prefetch=0,
            grid=(N // NB,),
            in_specs=in_specs,
            out_specs=out_specs,
            scratch_shapes=[pltpu.VMEM((NB, H + 2, WPAD, C), jnp.float32)]),
        compiler_params=pltpu.CompilerParams(
            dimension_semantics=("parallel",)),
    )(x,
      w1, row(pt['b1']), row(pt['gm1']), row(pt['bt1']),
      w2, row(pt['b2']), row(pt['gm2']), row(pt['bt2']),
      wh, row(bh), gpool, gscat)

    reg = jnp.transpose(out[..., 0:4], (0, 3, 1, 2))
    ctr = jnp.transpose(out[..., 4:5], (0, 3, 1, 2))
    return reg, ctr


def fcos_regression_head(features, pt):
    """features: list of NCHW tensors (one per pyramid level)."""
    out_regress, out_centerness = [], []
    for f in features:
        r, c = fcos_regression_head_level(f, pt)
        out_regress.append(r)
        out_centerness.append(c)
    return out_regress, out_centerness


# ----------------------------- pure-JAX reference ---------------------------

def _ref_forward(x_nchw, pt):
    def conv(x, w, b):
        y = lax.conv_general_dilated(
            x, w, (1, 1), 'SAME',
            dimension_numbers=('NCHW', 'OIHW', 'NCHW'))
        return y + b[None, :, None, None]

    def gn(x, gamma, beta):
        N, C, H, W = x.shape
        xg = x.reshape(N, NUM_GROUPS, C // NUM_GROUPS, H, W)
        mean = xg.mean(axis=(2, 3, 4), keepdims=True)
        var = xg.var(axis=(2, 3, 4), keepdims=True)
        xn = ((xg - mean) / jnp.sqrt(var + EPS)).reshape(N, C, H, W)
        return xn * gamma[None, :, None, None] + beta[None, :, None, None]

    y = jax.nn.relu(gn(conv(x_nchw, pt['w1'], pt['b1']), pt['gm1'], pt['bt1']))
    y = jax.nn.relu(gn(conv(y, pt['w2'], pt['b2']), pt['gm2'], pt['bt2']))
    reg = jax.nn.relu(conv(y, pt['wr'], pt['br']))
    ctr = conv(y, pt['wc'], pt['bc'])
    return reg, ctr


# ----------------------------- main ------------------------------------------

if __name__ == "__main__":
    key = jax.random.PRNGKey(0)
    C = 32                                   # in_channels (divisible by 16 groups)
    N = 2

    # deterministic parameter init matching the PyTorch module:
    #   Conv2d: weight ~ N(0, 0.01), bias = 0 ; GroupNorm: weight = 1, bias = 0
    k = jax.random.split(key, 8)
    pt = {
        'w1': 0.01 * jax.random.normal(k[0], (C, C, 3, 3), jnp.float32),
        'b1': jnp.zeros((C,), jnp.float32),
        'gm1': jnp.ones((C,), jnp.float32),
        'bt1': jnp.zeros((C,), jnp.float32),
        'w2': 0.01 * jax.random.normal(k[1], (C, C, 3, 3), jnp.float32),
        'b2': jnp.zeros((C,), jnp.float32),
        'gm2': jnp.ones((C,), jnp.float32),
        'bt2': jnp.zeros((C,), jnp.float32),
        'wr': 0.01 * jax.random.normal(k[2], (4, C, 3, 3), jnp.float32),
        'br': jnp.zeros((4,), jnp.float32),
        'wc': 0.01 * jax.random.normal(k[3], (1, C, 3, 3), jnp.float32),
        'bc': jnp.zeros((1,), jnp.float32),
    }

    # two pyramid levels (NCHW), increasing depth order
    feats = [
        jax.random.normal(k[4], (N, C, 16, 16), jnp.float32),
        jax.random.normal(k[5], (N, C, 8, 8), jnp.float32),
    ]

    out_reg, out_ctr = fcos_regression_head(feats, pt)
    jax.block_until_ready(out_reg)
    jax.block_until_ready(out_ctr)

    # correctness check against pure-JAX reference
    for f, r, c in zip(feats, out_reg, out_ctr):
        r_ref, c_ref = _ref_forward(f, pt)
        assert r.shape == r_ref.shape and c.shape == c_ref.shape
        assert jnp.allclose(r, r_ref, rtol=1e-4, atol=1e-5), "bbox_reg mismatch"
        assert jnp.allclose(c, c_ref, rtol=1e-4, atol=1e-5), "ctrness mismatch"

    print("KERNEL_OK")
</pallas_src>

<mosaic_0001>
module attributes {stable_mosaic.version = 11 : i64} {
  func.func @_head_kernel(%arg0: i32, %arg1: memref<1x16x16x32xf32, #tpu.memory_space<vmem>>, %arg2: memref<3x96x32xf32, #tpu.memory_space<vmem>>, %arg3: memref<1x32xf32, #tpu.memory_space<vmem>>, %arg4: memref<1x32xf32, #tpu.memory_space<vmem>>, %arg5: memref<1x32xf32, #tpu.memory_space<vmem>>, %arg6: memref<3x96x32xf32, #tpu.memory_space<vmem>>, %arg7: memref<1x32xf32, #tpu.memory_space<vmem>>, %arg8: memref<1x32xf32, #tpu.memory_space<vmem>>, %arg9: memref<1x32xf32, #tpu.memory_space<vmem>>, %arg10: memref<3x96x8xf32, #tpu.memory_space<vmem>>, %arg11: memref<1x8xf32, #tpu.memory_space<vmem>>, %arg12: memref<32x16xf32, #tpu.memory_space<vmem>>, %arg13: memref<16x32xf32, #tpu.memory_space<vmem>>, %arg14: memref<1x16x16x8xf32, #tpu.memory_space<vmem>>, %arg15: memref<1x18x25x32xf32, #tpu.memory_space<vmem>>) attributes {dimension_semantics = [#tpu.dimension_semantics<parallel>], iteration_bounds = array<i64: 2>, scalar_prefetch = 0 : i64, scratch_operands = 1 : i64, tpu.core_type = #tpu.core_type<tc>, window_params = [{transform_indices = @transform_0, window_bounds = array<i64: 1, 16, 16, 32>}, {pipeline_mode = #tpu.pipeline_mode<synchronous>, transform_indices = @transform_1, window_bounds = array<i64: 3, 96, 32>}, {pipeline_mode = #tpu.pipeline_mode<synchronous>, transform_indices = @transform_2, window_bounds = array<i64: 1, 32>}, {pipeline_mode = #tpu.pipeline_mode<synchronous>, transform_indices = @transform_3, window_bounds = array<i64: 1, 32>}, {pipeline_mode = #tpu.pipeline_mode<synchronous>, transform_indices = @transform_4, window_bounds = array<i64: 1, 32>}, {pipeline_mode = #tpu.pipeline_mode<synchronous>, transform_indices = @transform_5, window_bounds = array<i64: 3, 96, 32>}, {pipeline_mode = #tpu.pipeline_mode<synchronous>, transform_indices = @transform_6, window_bounds = array<i64: 1, 32>}, {pipeline_mode = #tpu.pipeline_mode<synchronous>, transform_indices = @transform_7, window_bounds = array<i64: 1, 32>}, {pipeline_mode = #tpu.pipeline_mode<synchronous>, transform_indices = @transform_8, window_bounds = array<i64: 1, 32>}, {pipeline_mode = #tpu.pipeline_mode<synchronous>, transform_indices = @transform_9, window_bounds = array<i64: 3, 96, 8>}, {pipeline_mode = #tpu.pipeline_mode<synchronous>, transform_indices = @transform_10, window_bounds = array<i64: 1, 8>}, {pipeline_mode = #tpu.pipeline_mode<synchronous>, transform_indices = @transform_11, window_bounds = array<i64: 32, 16>}, {pipeline_mode = #tpu.pipeline_mode<synchronous>, transform_indices = @transform_12, window_bounds = array<i64: 16, 32>}, {transform_indices = @transform_13, window_bounds = array<i64: 1, 16, 16, 8>}]} {
    %cst = arith.constant 0.000000e+00 : f32
    %0 = vector.broadcast %cst : f32 to vector<1x1x25x32xf32>
    %c0 = arith.constant 0 : index
    %c0_0 = arith.constant 0 : index
    %c0_1 = arith.constant 0 : index
    %c0_2 = arith.constant 0 : index
    %1 = vector.load %arg15[%c0, %c0_0, %c0_1, %c0_2] : memref<1x18x25x32xf32, #tpu.memory_space<vmem>>, vector<1x1x25x32xf32>
    tpu.vector_store %arg15[%c0, %c0_0, %c0_1, %c0_2], %0 {strides = array<i32>} : memref<1x18x25x32xf32, #tpu.memory_space<vmem>>, vector<1x1x25x32xf32>,
    %c0_3 = arith.constant 0 : index
    %c17 = arith.constant 17 : index
    %c0_4 = arith.constant 0 : index
    %c0_5 = arith.constant 0 : index
    %2 = vector.load %arg15[%c0_3, %c17, %c0_4, %c0_5] : memref<1x18x25x32xf32, #tpu.memory_space<vmem>>, vector<1x1x25x32xf32>
    tpu.vector_store %arg15[%c0_3, %c17, %c0_4, %c0_5], %0 {strides = array<i32>} : memref<1x18x25x32xf32, #tpu.memory_space<vmem>>, vector<1x1x25x32xf32>,
    %cst_6 = arith.constant 0.000000e+00 : f32
    %3 = vector.broadcast %cst_6 : f32 to vector<1x18x1x32xf32>
    %c0_7 = arith.constant 0 : index
    %c0_8 = arith.constant 0 : index
    %c7 = arith.constant 7 : index
    %c0_9 = arith.constant 0 : index
    %4 = vector.load %arg15[%c0_7, %c0_8, %c7, %c0_9] : memref<1x18x25x32xf32, #tpu.memory_space<vmem>>, vector<1x18x1x32xf32>
    tpu.vector_store %arg15[%c0_7, %c0_8, %c7, %c0_9], %3 {strides = array<i32>} : memref<1x18x25x32xf32, #tpu.memory_space<vmem>>, vector<1x18x1x32xf32>,
    %c0_10 = arith.constant 0 : index
    %c0_11 = arith.constant 0 : index
    %c24 = arith.constant 24 : index
    %c0_12 = arith.constant 0 : index
    %5 = vector.load %arg15[%c0_10, %c0_11, %c24, %c0_12] : memref<1x18x25x32xf32, #tpu.memory_space<vmem>>, vector<1x18x1x32xf32>
    tpu.vector_store %arg15[%c0_10, %c0_11, %c24, %c0_12], %3 {strides = array<i32>} : memref<1x18x25x32xf32, #tpu.memory_space<vmem>>, vector<1x18x1x32xf32>,
    %c0_13 = arith.constant 0 : index
    %c0_14 = arith.constant 0 : index
    %c0_15 = arith.constant 0 : index
    %c0_16 = arith.constant 0 : index
    %6 = vector.load %arg1[%c0_13, %c0_14, %c0_15, %c0_16] : memref<1x16x16x32xf32, #tpu.memory_space<vmem>>, vector<1x16x16x32xf32>
    %c0_17 = arith.constant 0 : index
    %c1 = arith.constant 1 : index
    %c8 = arith.constant 8 : index
    %c0_18 = arith.constant 0 : index
    %7 = vector.load %arg15[%c0_17, %c1, %c8, %c0_18] : memref<1x18x25x32xf32, #tpu.memory_space<vmem>>, vector<1x16x16x32xf32>
    tpu.vector_store %arg15[%c0_17, %c1, %c8, %c0_18], %6 {strides = array<i32>} : memref<1x18x25x32xf32, #tpu.memory_space<vmem>>, vector<1x16x16x32xf32>,
    %cst_19 = arith.constant 0.000000e+00 : f32
    %8 = vector.broadcast %cst_19 : f32 to vector<256x32xf32>
    %c0_20 = arith.constant 0 : index
    %c0_21 = arith.constant 0 : index
    %c7_22 = arith.constant 7 : index
    %c0_23 = arith.constant 0 : index
    %9 = vector.load %arg15[%c0_20, %c0_21, %c7_22, %c0_23] : memref<1x18x25x32xf32, #tpu.memory_space<vmem>>, vector<1x16x18x32xf32>
    %10 = vector.extract_strided_slice %9 {offsets = [0, 0, 0, 0], sizes = [1, 16, 16, 32], strides = [1, 1, 1, 1]} : vector<1x16x18x32xf32> to vector<1x16x16x32xf32>
    %11 = vector.extract_strided_slice %9 {offsets = [0, 0, 1, 0], sizes = [1, 16, 16, 32], strides = [1, 1, 1, 1]} : vector<1x16x18x32xf32> to vector<1x16x16x32xf32>
    %12 = vector.extract_strided_slice %9 {offsets = [0, 0, 2, 0], sizes = [1, 16, 16, 32], strides = [1, 1, 1, 1]} : vector<1x16x18x32xf32> to vector<1x16x16x32xf32>
    %13 = tpu.concatenate %10, %11, %12 in 3 : vector<1x16x16x32xf32>, vector<1x16x16x32xf32>, vector<1x16x16x32xf32> -> vector<1x16x16x96xf32>
    %14 = vector.shape_cast %13 : vector<1x16x16x96xf32> to vector<256x96xf32>
    %c0_24 = arith.constant 0 : index
    %c0_25 = arith.constant 0 : index
    %c0_26 = arith.constant 0 : index
    %15 = vector.load %arg2[%c0_24, %c0_25, %c0_26] : memref<3x96x32xf32, #tpu.memory_space<vmem>>, vector<1x96x32xf32>
    %16 = vector.shape_cast %15 : vector<1x96x32xf32> to vector<96x32xf32>
    %cst_27 = arith.constant dense<0.000000e+00> : vector<256x32xf32>
    %17 = tpu.matmul %14, %16, %cst_27 {dimension_numbers = #tpu.dot_dimension_numbers<[1], [0], [0], [1], [0, 0, 1, 1], [], []>} : vector<256x96xf32>, vector<96x32xf32>, vector<256x32xf32> -> vector<256x32xf32>
    %18 = arith.addf %8, %17 : vector<256x32xf32>
    %c0_28 = arith.constant 0 : index
    %c1_29 = arith.constant 1 : index
    %c7_30 = arith.constant 7 : index
    %c0_31 = arith.constant 0 : index
    %19 = vector.load %arg15[%c0_28, %c1_29, %c7_30, %c0_31] : memref<1x18x25x32xf32, #tpu.memory_space<vmem>>, vector<1x16x18x32xf32>
    %20 = vector.extract_strided_slice %19 {offsets = [0, 0, 0, 0], sizes = [1, 16, 16, 32], strides = [1, 1, 1, 1]} : vector<1x16x18x32xf32> to vector<1x16x16x32xf32>
    %21 = vector.extract_strided_slice %19 {offsets = [0, 0, 1, 0], sizes = [1, 16, 16, 32], strides = [1, 1, 1, 1]} : vector<1x16x18x32xf32> to vector<1x16x16x32xf32>
    %22 = vector.extract_strided_slice %19 {offsets = [0, 0, 2, 0], sizes = [1, 16, 16, 32], strides = [1, 1, 1, 1]} : vector<1x16x18x32xf32> to vector<1x16x16x32xf32>
    %23 = tpu.concatenate %20, %21, %22 in 3 : vector<1x16x16x32xf32>, vector<1x16x16x32xf32>, vector<1x16x16x32xf32> -> vector<1x16x16x96xf32>
    %24 = vector.shape_cast %23 : vector<1x16x16x96xf32> to vector<256x96xf32>
    %c1_32 = arith.constant 1 : index
    %c0_33 = arith.constant 0 : index
    %c0_34 = arith.constant 0 : index
    %25 = vector.load %arg2[%c1_32, %c0_33, %c0_34] : memref<3x96x32xf32, #tpu.memory_space<vmem>>, vector<1x96x32xf32>
    %26 = vector.shape_cast %25 : vector<1x96x32xf32> to vector<96x32xf32>
    %cst_35 = arith.constant dense<0.000000e+00> : vector<256x32xf32>
    %27 = tpu.matmul %24, %26, %cst_35 {dimension_numbers = #tpu.dot_dimension_numbers<[1], [0], [0], [1], [0, 0, 1, 1], [], []>} : vector<256x96xf32>, vector<96x32xf32>, vector<256x32xf32> -> vector<256x32xf32>
    %28 = arith.addf %18, %27 : vector<256x32xf32>
    %c0_36 = arith.constant 0 : index
    %c2 = arith.constant 2 : index
    %c7_37 = arith.constant 7 : index
    %c0_38 = arith.constant 0 : index
    %29 = vector.load %arg15[%c0_36, %c2, %c7_37, %c0_38] : memref<1x18x25x32xf32, #tpu.memory_space<vmem>>, vector<1x16x18x32xf32>
    %30 = vector.extract_strided_slice %29 {offsets = [0, 0, 0, 0], sizes = [1, 16, 16, 32], strides = [1, 1, 1, 1]} : vector<1x16x18x32xf32> to vector<1x16x16x32xf32>
    %31 = vector.extract_strided_slice %29 {offsets = [0, 0, 1, 0], sizes = [1, 16, 16, 32], strides = [1, 1, 1, 1]} : vector<1x16x18x32xf32> to vector<1x16x16x32xf32>
    %32 = vector.extract_strided_slice %29 {offsets = [0, 0, 2, 0], sizes = [1, 16, 16, 32], strides = [1, 1, 1, 1]} : vector<1x16x18x32xf32> to vector<1x16x16x32xf32>
    %33 = tpu.concatenate %30, %31, %32 in 3 : vector<1x16x16x32xf32>, vector<1x16x16x32xf32>, vector<1x16x16x32xf32> -> vector<1x16x16x96xf32>
    %34 = vector.shape_cast %33 : vector<1x16x16x96xf32> to vector<256x96xf32>
    %c2_39 = arith.constant 2 : index
    %c0_40 = arith.constant 0 : index
    %c0_41 = arith.constant 0 : index
    %35 = vector.load %arg2[%c2_39, %c0_40, %c0_41] : memref<3x96x32xf32, #tpu.memory_space<vmem>>, vector<1x96x32xf32>
    %36 = vector.shape_cast %35 : vector<1x96x32xf32> to vector<96x32xf32>
    %cst_42 = arith.constant dense<0.000000e+00> : vector<256x32xf32>
    %37 = tpu.matmul %34, %36, %cst_42 {dimension_numbers = #tpu.dot_dimension_numbers<[1], [0], [0], [1], [0, 0, 1, 1], [], []>} : vector<256x96xf32>, vector<96x32xf32>, vector<256x32xf32> -> vector<256x32xf32>
    %38 = arith.addf %28, %37 : vector<256x32xf32>
    %c0_43 = arith.constant 0 : index
    %c0_44 = arith.constant 0 : index
    %39 = vector.load %arg3[%c0_43, %c0_44] : memref<1x32xf32, #tpu.memory_space<vmem>>, vector<1x32xf32>
    %40 = vector.broadcast %39 : vector<1x32xf32> to vector<256x32xf32>
    %41 = arith.addf %38, %40 : vector<256x32xf32>
    %42 = vector.shape_cast %41 : vector<256x32xf32> to vector<1x256x32xf32>
    %cst_45 = arith.constant dense<0.000000e+00> : vector<1x32xf32>
    %43 = vector.multi_reduction <add>, %42, %cst_45 [1] : vector<1x256x32xf32> to vector<1x32xf32>
    %44 = arith.mulf %42, %42 : vector<1x256x32xf32>
    %cst_46 = arith.constant dense<0.000000e+00> : vector<1x32xf32>
    %45 = vector.multi_reduction <add>, %44, %cst_46 [1] : vector<1x256x32xf32> to vector<1x32xf32>
    %46 = tpu.concatenate %43, %45 in 0 : vector<1x32xf32>, vector<1x32xf32> -> vector<2x32xf32>
    %c0_47 = arith.constant 0 : index
    %c0_48 = arith.constant 0 : index
    %47 = vector.load %arg12[%c0_47, %c0_48] : memref<32x16xf32, #tpu.memory_space<vmem>>, vector<32x16xf32>
    %cst_49 = arith.constant dense<0.000000e+00> : vector<2x16xf32>
    %48 = tpu.matmul %46, %47, %cst_49 {dimension_numbers = #tpu.dot_dimension_numbers<[1], [0], [0], [1], [0, 0, 1, 1], [], []>} : vector<2x32xf32>, vector<32x16xf32>, vector<2x16xf32> -> vector<2x16xf32>
    %c0_50 = arith.constant 0 : index
    %c0_51 = arith.constant 0 : index
    %49 = vector.load %arg13[%c0_50, %c0_51] : memref<16x32xf32, #tpu.memory_space<vmem>>, vector<16x32xf32>
    %cst_52 = arith.constant dense<0.000000e+00> : vector<2x32xf32>
    %50 = tpu.matmul %48, %49, %cst_52 {dimension_numbers = #tpu.dot_dimension_numbers<[1], [0], [0], [1], [0, 0, 1, 1], [], []>} : vector<2x16xf32>, vector<16x32xf32>, vector<2x32xf32> -> vector<2x32xf32>
    %51 = vector.extract_strided_slice %50 {offsets = [0, 0], sizes = [1, 32], strides = [1, 1]} : vector<2x32xf32> to vector<1x32xf32>
    %52 = vector.extract_strided_slice %50 {offsets = [1, 0], sizes = [1, 32], strides = [1, 1]} : vector<2x32xf32> to vector<1x32xf32>
    %53 = arith.mulf %51, %51 : vector<1x32xf32>
    %54 = arith.subf %52, %53 : vector<1x32xf32>
    %cst_53 = arith.constant 9.99999974E-6 : f32
    %55 = vector.broadcast %cst_53 : f32 to vector<1x32xf32>
    %56 = arith.addf %54, %55 : vector<1x32xf32>
    %57 = math.rsqrt %56 : vector<1x32xf32>
    %c0_54 = arith.constant 0 : index
    %c0_55 = arith.constant 0 : index
    %58 = vector.load %arg4[%c0_54, %c0_55] : memref<1x32xf32, #tpu.memory_space<vmem>>, vector<1x32xf32>
    %59 = arith.mulf %57, %58 : vector<1x32xf32>
    %c0_56 = arith.constant 0 : index
    %c0_57 = arith.constant 0 : index
    %60 = vector.load %arg5[%c0_56, %c0_57] : memref<1x32xf32, #tpu.memory_space<vmem>>, vector<1x32xf32>
    %61 = arith.mulf %51, %59 : vector<1x32xf32>
    %62 = arith.subf %60, %61 : vector<1x32xf32>
    %63 = vector.shape_cast %59 : vector<1x32xf32> to vector<1x1x32xf32>
    %64 = vector.broadcast %63 : vector<1x1x32xf32> to vector<1x256x32xf32>
    %65 = arith.mulf %42, %64 : vector<1x256x32xf32>
    %66 = vector.shape_cast %62 : vector<1x32xf32> to vector<1x1x32xf32>
    %67 = vector.broadcast %66 : vector<1x1x32xf32> to vector<1x256x32xf32>
    %68 = arith.addf %65, %67 : vector<1x256x32xf32>
    %cst_58 = arith.constant 0.000000e+00 : f32
    %69 = vector.broadcast %cst_58 : f32 to vector<1x256x32xf32>
    %70 = arith.maximumf %68, %69 : vector<1x256x32xf32>
    %71 = vector.shape_cast %70 : vector<1x256x32xf32> to vector<1x16x16x32xf32>
    %c0_59 = arith.constant 0 : index
    %c1_60 = arith.constant 1 : index
    %c8_61 = arith.constant 8 : index
    %c0_62 = arith.constant 0 : index
    %72 = vector.load %arg15[%c0_59, %c1_60, %c8_61, %c0_62] : memref<1x18x25x32xf32, #tpu.memory_space<vmem>>, vector<1x16x16x32xf32>
    tpu.vector_store %arg15[%c0_59, %c1_60, %c8_61, %c0_62], %71 {strides = array<i32>} : memref<1x18x25x32xf32, #tpu.memory_space<vmem>>, vector<1x16x16x32xf32>,
    %cst_63 = arith.constant 0.000000e+00 : f32
    %73 = vector.broadcast %cst_63 : f32 to vector<256x32xf32>
    %c0_64 = arith.constant 0 : index
    %c0_65 = arith.constant 0 : index
    %c7_66 = arith.constant 7 : index
    %c0_67 = arith.constant 0 : index
    %74 = vector.load %arg15[%c0_64, %c0_65, %c7_66, %c0_67] : memref<1x18x25x32xf32, #tpu.memory_space<vmem>>, vector<1x16x18x32xf32>
    %75 = vector.extract_strided_slice %74 {offsets = [0, 0, 0, 0], sizes = [1, 16, 16, 32], strides = [1, 1, 1, 1]} : vector<1x16x18x32xf32> to vector<1x16x16x32xf32>
    %76 = vector.extract_strided_slice %74 {offsets = [0, 0, 1, 0], sizes = [1, 16, 16, 32], strides = [1, 1, 1, 1]} : vector<1x16x18x32xf32> to vector<1x16x16x32xf32>
    %77 = vector.extract_strided_slice %74 {offsets = [0, 0, 2, 0], sizes = [1, 16, 16, 32], strides = [1, 1, 1, 1]} : vector<1x16x18x32xf32> to vector<1x16x16x32xf32>
    %78 = tpu.concatenate %75, %76, %77 in 3 : vector<1x16x16x32xf32>, vector<1x16x16x32xf32>, vector<1x16x16x32xf32> -> vector<1x16x16x96xf32>
    %79 = vector.shape_cast %78 : vector<1x16x16x96xf32> to vector<256x96xf32>
    %c0_68 = arith.constant 0 : index
    %c0_69 = arith.constant 0 : index
    %c0_70 = arith.constant 0 : index
    %80 = vector.load %arg6[%c0_68, %c0_69, %c0_70] : memref<3x96x32xf32, #tpu.memory_space<vmem>>, vector<1x96x32xf32>
    %81 = vector.shape_cast %80 : vector<1x96x32xf32> to vector<96x32xf32>
    %cst_71 = arith.constant dense<0.000000e+00> : vector<256x32xf32>
    %82 = tpu.matmul %79, %81, %cst_71 {dimension_numbers = #tpu.dot_dimension_numbers<[1], [0], [0], [1], [0, 0, 1, 1], [], []>} : vector<256x96xf32>, vector<96x32xf32>, vector<256x32xf32> -> vector<256x32xf32>
    %83 = arith.addf %73, %82 : vector<256x32xf32>
    %c0_72 = arith.constant 0 : index
    %c1_73 = arith.constant 1 : index
    %c7_74 = arith.constant 7 : index
    %c0_75 = arith.constant 0 : index
    %84 = vector.load %arg15[%c0_72, %c1_73, %c7_74, %c0_75] : memref<1x18x25x32xf32, #tpu.memory_space<vmem>>, vector<1x16x18x32xf32>
    %85 = vector.extract_strided_slice %84 {offsets = [0, 0, 0, 0], sizes = [1, 16, 16, 32], strides = [1, 1, 1, 1]} : vector<1x16x18x32xf32> to vector<1x16x16x32xf32>
    %86 = vector.extract_strided_slice %84 {offsets = [0, 0, 1, 0], sizes = [1, 16, 16, 32], strides = [1, 1, 1, 1]} : vector<1x16x18x32xf32> to vector<1x16x16x32xf32>
    %87 = vector.extract_strided_slice %84 {offsets = [0, 0, 2, 0], sizes = [1, 16, 16, 32], strides = [1, 1, 1, 1]} : vector<1x16x18x32xf32> to vector<1x16x16x32xf32>
    %88 = tpu.concatenate %85, %86, %87 in 3 : vector<1x16x16x32xf32>, vector<1x16x16x32xf32>, vector<1x16x16x32xf32> -> vector<1x16x16x96xf32>
    %89 = vector.shape_cast %88 : vector<1x16x16x96xf32> to vector<256x96xf32>
    %c1_76 = arith.constant 1 : index
    %c0_77 = arith.constant 0 : index
    %c0_78 = arith.constant 0 : index
    %90 = vector.load %arg6[%c1_76, %c0_77, %c0_78] : memref<3x96x32xf32, #tpu.memory_space<vmem>>, vector<1x96x32xf32>
    %91 = vector.shape_cast %90 : vector<1x96x32xf32> to vector<96x32xf32>
    %cst_79 = arith.constant dense<0.000000e+00> : vector<256x32xf32>
    %92 = tpu.matmul %89, %91, %cst_79 {dimension_numbers = #tpu.dot_dimension_numbers<[1], [0], [0], [1], [0, 0, 1, 1], [], []>} : vector<256x96xf32>, vector<96x32xf32>, vector<256x32xf32> -> vector<256x32xf32>
    %93 = arith.addf %83, %92 : vector<256x32xf32>
    %c0_80 = arith.constant 0 : index
    %c2_81 = arith.constant 2 : index
    %c7_82 = arith.constant 7 : index
    %c0_83 = arith.constant 0 : index
    %94 = vector.load %arg15[%c0_80, %c2_81, %c7_82, %c0_83] : memref<1x18x25x32xf32, #tpu.memory_space<vmem>>, vector<1x16x18x32xf32>
    %95 = vector.extract_strided_slice %94 {offsets = [0, 0, 0, 0], sizes = [1, 16, 16, 32], strides = [1, 1, 1, 1]} : vector<1x16x18x32xf32> to vector<1x16x16x32xf32>
    %96 = vector.extract_strided_slice %94 {offsets = [0, 0, 1, 0], sizes = [1, 16, 16, 32], strides = [1, 1, 1, 1]} : vector<1x16x18x32xf32> to vector<1x16x16x32xf32>
    %97 = vector.extract_strided_slice %94 {offsets = [0, 0, 2, 0], sizes = [1, 16, 16, 32], strides = [1, 1, 1, 1]} : vector<1x16x18x32xf32> to vector<1x16x16x32xf32>
    %98 = tpu.concatenate %95, %96, %97 in 3 : vector<1x16x16x32xf32>, vector<1x16x16x32xf32>, vector<1x16x16x32xf32> -> vector<1x16x16x96xf32>
    %99 = vector.shape_cast %98 : vector<1x16x16x96xf32> to vector<256x96xf32>
    %c2_84 = arith.constant 2 : index
    %c0_85 = arith.constant 0 : index
    %c0_86 = arith.constant 0 : index
    %100 = vector.load %arg6[%c2_84, %c0_85, %c0_86] : memref<3x96x32xf32, #tpu.memory_space<vmem>>, vector<1x96x32xf32>
    %101 = vector.shape_cast %100 : vector<1x96x32xf32> to vector<96x32xf32>
    %cst_87 = arith.constant dense<0.000000e+00> : vector<256x32xf32>
    %102 = tpu.matmul %99, %101, %cst_87 {dimension_numbers = #tpu.dot_dimension_numbers<[1], [0], [0], [1], [0, 0, 1, 1], [], []>} : vector<256x96xf32>, vector<96x32xf32>, vector<256x32xf32> -> vector<256x32xf32>
    %103 = arith.addf %93, %102 : vector<256x32xf32>
    %c0_88 = arith.constant 0 : index
    %c0_89 = arith.constant 0 : index
    %104 = vector.load %arg7[%c0_88, %c0_89] : memref<1x32xf32, #tpu.memory_space<vmem>>, vector<1x32xf32>
    %105 = vector.broadcast %104 : vector<1x32xf32> to vector<256x32xf32>
    %106 = arith.addf %103, %105 : vector<256x32xf32>
    %107 = vector.shape_cast %106 : vector<256x32xf32> to vector<1x256x32xf32>
    %cst_90 = arith.constant dense<0.000000e+00> : vector<1x32xf32>
    %108 = vector.multi_reduction <add>, %107, %cst_90 [1] : vector<1x256x32xf32> to vector<1x32xf32>
    %109 = arith.mulf %107, %107 : vector<1x256x32xf32>
    %cst_91 = arith.constant dense<0.000000e+00> : vector<1x32xf32>
    %110 = vector.multi_reduction <add>, %109, %cst_91 [1] : vector<1x256x32xf32> to vector<1x32xf32>
    %111 = tpu.concatenate %108, %110 in 0 : vector<1x32xf32>, vector<1x32xf32> -> vector<2x32xf32>
    %c0_92 = arith.constant 0 : index
    %c0_93 = arith.constant 0 : index
    %112 = vector.load %arg12[%c0_92, %c0_93] : memref<32x16xf32, #tpu.memory_space<vmem>>, vector<32x16xf32>
    %cst_94 = arith.constant dense<0.000000e+00> : vector<2x16xf32>
    %113 = tpu.matmul %111, %112, %cst_94 {dimension_numbers = #tpu.dot_dimension_numbers<[1], [0], [0], [1], [0, 0, 1, 1], [], []>} : vector<2x32xf32>, vector<32x16xf32>, vector<2x16xf32> -> vector<2x16xf32>
    %c0_95 = arith.constant 0 : index
    %c0_96 = arith.constant 0 : index
    %114 = vector.load %arg13[%c0_95, %c0_96] : memref<16x32xf32, #tpu.memory_space<vmem>>, vector<16x32xf32>
    %cst_97 = arith.constant dense<0.000000e+00> : vector<2x32xf32>
    %115 = tpu.matmul %113, %114, %cst_97 {dimension_numbers = #tpu.dot_dimension_numbers<[1], [0], [0], [1], [0, 0, 1, 1], [], []>} : vector<2x16xf32>, vector<16x32xf32>, vector<2x32xf32> -> vector<2x32xf32>
    %116 = vector.extract_strided_slice %115 {offsets = [0, 0], sizes = [1, 32], strides = [1, 1]} : vector<2x32xf32> to vector<1x32xf32>
    %117 = vector.extract_strided_slice %115 {offsets = [1, 0], sizes = [1, 32], strides = [1, 1]} : vector<2x32xf32> to vector<1x32xf32>
    %118 = arith.mulf %116, %116 : vector<1x32xf32>
    %119 = arith.subf %117, %118 : vector<1x32xf32>
    %cst_98 = arith.constant 9.99999974E-6 : f32
    %120 = vector.broadcast %cst_98 : f32 to vector<1x32xf32>
    %121 = arith.addf %119, %120 : vector<1x32xf32>
    %122 = math.rsqrt %121 : vector<1x32xf32>
    %c0_99 = arith.constant 0 : index
    %c0_100 = arith.constant 0 : index
    %123 = vector.load %arg8[%c0_99, %c0_100] : memref<1x32xf32, #tpu.memory_space<vmem>>, vector<1x32xf32>
    %124 = arith.mulf %122, %123 : vector<1x32xf32>
    %c0_101 = arith.constant 0 : index
    %c0_102 = arith.constant 0 : index
    %125 = vector.load %arg9[%c0_101, %c0_102] : memref<1x32xf32, #tpu.memory_space<vmem>>, vector<1x32xf32>
    %126 = arith.mulf %116, %124 : vector<1x32xf32>
    %127 = arith.subf %125, %126 : vector<1x32xf32>
    %128 = vector.shape_cast %124 : vector<1x32xf32> to vector<1x1x32xf32>
    %129 = vector.broadcast %128 : vector<1x1x32xf32> to vector<1x256x32xf32>
    %130 = arith.mulf %107, %129 : vector<1x256x32xf32>
    %131 = vector.shape_cast %127 : vector<1x32xf32> to vector<1x1x32xf32>
    %132 = vector.broadcast %131 : vector<1x1x32xf32> to vector<1x256x32xf32>
    %133 = arith.addf %130, %132 : vector<1x256x32xf32>
    %cst_103 = arith.constant 0.000000e+00 : f32
    %134 = vector.broadcast %cst_103 : f32 to vector<1x256x32xf32>
    %135 = arith.maximumf %133, %134 : vector<1x256x32xf32>
    %136 = vector.shape_cast %135 : vector<1x256x32xf32> to vector<1x16x16x32xf32>
    %c0_104 = arith.constant 0 : index
    %c1_105 = arith.constant 1 : index
    %c8_106 = arith.constant 8 : index
    %c0_107 = arith.constant 0 : index
    %137 = vector.load %arg15[%c0_104, %c1_105, %c8_106, %c0_107] : memref<1x18x25x32xf32, #tpu.memory_space<vmem>>, vector<1x16x16x32xf32>
    tpu.vector_store %arg15[%c0_104, %c1_105, %c8_106, %c0_107], %136 {strides = array<i32>} : memref<1x18x25x32xf32, #tpu.memory_space<vmem>>, vector<1x16x16x32xf32>,
    %cst_108 = arith.constant 0.000000e+00 : f32
    %138 = vector.broadcast %cst_108 : f32 to vector<256x8xf32>
    %c0_109 = arith.constant 0 : index
    %c0_110 = arith.constant 0 : index
    %c7_111 = arith.constant 7 : index
    %c0_112 = arith.constant 0 : index
    %139 = vector.load %arg15[%c0_109, %c0_110, %c7_111, %c0_112] : memref<1x18x25x32xf32, #tpu.memory_space<vmem>>, vector<1x16x18x32xf32>
    %140 = vector.extract_strided_slice %139 {offsets = [0, 0, 0, 0], sizes = [1, 16, 16, 32], strides = [1, 1, 1, 1]} : vector<1x16x18x32xf32> to vector<1x16x16x32xf32>
    %141 = vector.extract_strided_slice %139 {offsets = [0, 0, 1, 0], sizes = [1, 16, 16, 32], strides = [1, 1, 1, 1]} : vector<1x16x18x32xf32> to vector<1x16x16x32xf32>
    %142 = vector.extract_strided_slice %139 {offsets = [0, 0, 2, 0], sizes = [1, 16, 16, 32], strides = [1, 1, 1, 1]} : vector<1x16x18x32xf32> to vector<1x16x16x32xf32>
    %143 = tpu.concatenate %140, %141, %142 in 3 : vector<1x16x16x32xf32>, vector<1x16x16x32xf32>, vector<1x16x16x32xf32> -> vector<1x16x16x96xf32>
    %144 = vector.shape_cast %143 : vector<1x16x16x96xf32> to vector<256x96xf32>
    %c0_113 = arith.constant 0 : index
    %c0_114 = arith.constant 0 : index
    %c0_115 = arith.constant 0 : index
    %145 = vector.load %arg10[%c0_113, %c0_114, %c0_115] : memref<3x96x8xf32, #tpu.memory_space<vmem>>, vector<1x96x8xf32>
    %146 = vector.shape_cast %145 : vector<1x96x8xf32> to vector<96x8xf32>
    %cst_116 = arith.constant dense<0.000000e+00> : vector<256x8xf32>
    %147 = tpu.matmul %144, %146, %cst_116 {dimension_numbers = #tpu.dot_dimension_numbers<[1], [0], [0], [1], [0, 0, 1, 1], [], []>} : vector<256x96xf32>, vector<96x8xf32>, vector<256x8xf32> -> vector<256x8xf32>
    %148 = arith.addf %138, %147 : vector<256x8xf32>
    %c0_117 = arith.constant 0 : index
    %c1_118 = arith.constant 1 : index
    %c7_119 = arith.constant 7 : index
    %c0_120 = arith.constant 0 : index
    %149 = vector.load %arg15[%c0_117, %c1_118, %c7_119, %c0_120] : memref<1x18x25x32xf32, #tpu.memory_space<vmem>>, vector<1x16x18x32xf32>
    %150 = vector.extract_strided_slice %149 {offsets = [0, 0, 0, 0], sizes = [1, 16, 16, 32], strides = [1, 1, 1, 1]} : vector<1x16x18x32xf32> to vector<1x16x16x32xf32>
    %151 = vector.extract_strided_slice %149 {offsets = [0, 0, 1, 0], sizes = [1, 16, 16, 32], strides = [1, 1, 1, 1]} : vector<1x16x18x32xf32> to vector<1x16x16x32xf32>
    %152 = vector.extract_strided_slice %149 {offsets = [0, 0, 2, 0], sizes = [1, 16, 16, 32], strides = [1, 1, 1, 1]} : vector<1x16x18x32xf32> to vector<1x16x16x32xf32>
    %153 = tpu.concatenate %150, %151, %152 in 3 : vector<1x16x16x32xf32>, vector<1x16x16x32xf32>, vector<1x16x16x32xf32> -> vector<1x16x16x96xf32>
    %154 = vector.shape_cast %153 : vector<1x16x16x96xf32> to vector<256x96xf32>
    %c1_121 = arith.constant 1 : index
    %c0_122 = arith.constant 0 : index
    %c0_123 = arith.constant 0 : index
    %155 = vector.load %arg10[%c1_121, %c0_122, %c0_123] : memref<3x96x8xf32, #tpu.memory_space<vmem>>, vector<1x96x8xf32>
    %156 = vector.shape_cast %155 : vector<1x96x8xf32> to vector<96x8xf32>
    %cst_124 = arith.constant dense<0.000000e+00> : vector<256x8xf32>
    %157 = tpu.matmul %154, %156, %cst_124 {dimension_numbers = #tpu.dot_dimension_numbers<[1], [0], [0], [1], [0, 0, 1, 1], [], []>} : vector<256x96xf32>, vector<96x8xf32>, vector<256x8xf32> -> vector<256x8xf32>
    %158 = arith.addf %148, %157 : vector<256x8xf32>
    %c0_125 = arith.constant 0 : index
    %c2_126 = arith.constant 2 : index
    %c7_127 = arith.constant 7 : index
    %c0_128 = arith.constant 0 : index
    %159 = vector.load %arg15[%c0_125, %c2_126, %c7_127, %c0_128] : memref<1x18x25x32xf32, #tpu.memory_space<vmem>>, vector<1x16x18x32xf32>
    %160 = vector.extract_strided_slice %159 {offsets = [0, 0, 0, 0], sizes = [1, 16, 16, 32], strides = [1, 1, 1, 1]} : vector<1x16x18x32xf32> to vector<1x16x16x32xf32>
    %161 = vector.extract_strided_slice %159 {offsets = [0, 0, 1, 0], sizes = [1, 16, 16, 32], strides = [1, 1, 1, 1]} : vector<1x16x18x32xf32> to vector<1x16x16x32xf32>
    %162 = vector.extract_strided_slice %159 {offsets = [0, 0, 2, 0], sizes = [1, 16, 16, 32], strides = [1, 1, 1, 1]} : vector<1x16x18x32xf32> to vector<1x16x16x32xf32>
    %163 = tpu.concatenate %160, %161, %162 in 3 : vector<1x16x16x32xf32>, vector<1x16x16x32xf32>, vector<1x16x16x32xf32> -> vector<1x16x16x96xf32>
    %164 = vector.shape_cast %163 : vector<1x16x16x96xf32> to vector<256x96xf32>
    %c2_129 = arith.constant 2 : index
    %c0_130 = arith.constant 0 : index
    %c0_131 = arith.constant 0 : index
    %165 = vector.load %arg10[%c2_129, %c0_130, %c0_131] : memref<3x96x8xf32, #tpu.memory_space<vmem>>, vector<1x96x8xf32>
    %166 = vector.shape_cast %165 : vector<1x96x8xf32> to vector<96x8xf32>
    %cst_132 = arith.constant dense<0.000000e+00> : vector<256x8xf32>
    %167 = tpu.matmul %164, %166, %cst_132 {dimension_numbers = #tpu.dot_dimension_numbers<[1], [0], [0], [1], [0, 0, 1, 1], [], []>} : vector<256x96xf32>, vector<96x8xf32>, vector<256x8xf32> -> vector<256x8xf32>
    %168 = arith.addf %158, %167 : vector<256x8xf32>
    %c0_133 = arith.constant 0 : index
    %c0_134 = arith.constant 0 : index
    %169 = vector.load %arg11[%c0_133, %c0_134] : memref<1x8xf32, #tpu.memory_space<vmem>>, vector<1x8xf32>
    %170 = vector.broadcast %169 : vector<1x8xf32> to vector<256x8xf32>
    %171 = arith.addf %168, %170 : vector<256x8xf32>
    %172 = tpu.iota {dimensions = array<i32: 1>} : vector<1x8xi32>
    %c4_i32 = arith.constant 4 : i32
    %173 = vector.broadcast %c4_i32 : i32 to vector<1x8xi32>
    %174 = arith.cmpi slt, %172, %173 : vector<1x8xi32>
    %cst_135 = arith.constant 0.000000e+00 : f32
    %175 = vector.broadcast %cst_135 : f32 to vector<256x8xf32>
    %176 = arith.maximumf %171, %175 : vector<256x8xf32>
    %177 = vector.shape_cast %174 : vector<1x8xi1> to vector<1x8xi1>
    %178 = vector.broadcast %177 : vector<1x8xi1> to vector<256x8xi1>
    %179 = arith.select %178, %176, %171 : vector<256x8xi1>, vector<256x8xf32>
    %180 = vector.shape_cast %179 : vector<256x8xf32> to vector<1x16x16x8xf32>
    %c0_136 = arith.constant 0 : index
    %c0_137 = arith.constant 0 : index
    %c0_138 = arith.constant 0 : index
    %c0_139 = arith.constant 0 : index
    %181 = vector.load %arg14[%c0_136, %c0_137, %c0_138, %c0_139] : memref<1x16x16x8xf32, #tpu.memory_space<vmem>>, vector<1x16x16x8xf32>
    tpu.vector_store %arg14[%c0_136, %c0_137, %c0_138, %c0_139], %180 {strides = array<i32>} : memref<1x16x16x8xf32, #tpu.memory_space<vmem>>, vector<1x16x16x8xf32>,
    return
  }
  func.func @transform_0(%arg0: i32) -> (i32, i32, i32, i32) {
    %c0_i32 = arith.constant 0 : i32
    %c0_i32_0 = arith.constant 0 : i32
    %c0_i32_1 = arith.constant 0 : i32
    %c0_i32_2 = arith.constant 0 : i32
    return %arg0, %c0_i32, %c0_i32_0, %c0_i32_1 : i32, i32, i32, i32
  }
  func.func @transform_1(%arg0: i32) -> (i32, i32, i32) {
    %c0_i32 = arith.constant 0 : i32
    %c0_i32_0 = arith.constant 0 : i32
    %c0_i32_1 = arith.constant 0 : i32
    %c0_i32_2 = arith.constant 0 : i32
    return %c0_i32, %c0_i32_0, %c0_i32_1 : i32, i32, i32
  }
  func.func @transform_2(%arg0: i32) -> (i32, i32) {
    %c0_i32 = arith.constant 0 : i32
    %c0_i32_0 = arith.constant 0 : i32
    %c0_i32_1 = arith.constant 0 : i32
    return %c0_i32, %c0_i32_0 : i32, i32
  }
  func.func @transform_3(%arg0: i32) -> (i32, i32) {
    %c0_i32 = arith.constant 0 : i32
    %c0_i32_0 = arith.constant 0 : i32
    %c0_i32_1 = arith.constant 0 : i32
    return %c0_i32, %c0_i32_0 : i32, i32
  }
  func.func @transform_4(%arg0: i32) -> (i32, i32) {
    %c0_i32 = arith.constant 0 : i32
    %c0_i32_0 = arith.constant 0 : i32
    %c0_i32_1 = arith.constant 0 : i32
    return %c0_i32, %c0_i32_0 : i32, i32
  }
  func.func @transform_5(%arg0: i32) -> (i32, i32, i32) {
    %c0_i32 = arith.constant 0 : i32
    %c0_i32_0 = arith.constant 0 : i32
    %c0_i32_1 = arith.constant 0 : i32
    %c0_i32_2 = arith.constant 0 : i32
    return %c0_i32, %c0_i32_0, %c0_i32_1 : i32, i32, i32
  }
  func.func @transform_6(%arg0: i32) -> (i32, i32) {
    %c0_i32 = arith.constant 0 : i32
    %c0_i32_0 = arith.constant 0 : i32
    %c0_i32_1 = arith.constant 0 : i32
    return %c0_i32, %c0_i32_0 : i32, i32
  }
  func.func @transform_7(%arg0: i32) -> (i32, i32) {
    %c0_i32 = arith.constant 0 : i32
    %c0_i32_0 = arith.constant 0 : i32
    %c0_i32_1 = arith.constant 0 : i32
    return %c0_i32, %c0_i32_0 : i32, i32
  }
  func.func @transform_8(%arg0: i32) -> (i32, i32) {
    %c0_i32 = arith.constant 0 : i32
    %c0_i32_0 = arith.constant 0 : i32
    %c0_i32_1 = arith.constant 0 : i32
    return %c0_i32, %c0_i32_0 : i32, i32
  }
  func.func @transform_9(%arg0: i32) -> (i32, i32, i32) {
    %c0_i32 = arith.constant 0 : i32
    %c0_i32_0 = arith.constant 0 : i32
    %c0_i32_1 = arith.constant 0 : i32
    %c0_i32_2 = arith.constant 0 : i32
    return %c0_i32, %c0_i32_0, %c0_i32_1 : i32, i32, i32
  }
  func.func @transform_10(%arg0: i32) -> (i32, i32) {
    %c0_i32 = arith.constant 0 : i32
    %c0_i32_0 = arith.constant 0 : i32
    %c0_i32_1 = arith.constant 0 : i32
    return %c0_i32, %c0_i32_0 : i32, i32
  }
  func.func @transform_11(%arg0: i32) -> (i32, i32) {
    %c0_i32 = arith.constant 0 : i32
    %c0_i32_0 = arith.constant 0 : i32
    %c0_i32_1 = arith.constant 0 : i32
    return %c0_i32, %c0_i32_0 : i32, i32
  }
  func.func @transform_12(%arg0: i32) -> (i32, i32) {
    %c0_i32 = arith.constant 0 : i32
    %c0_i32_0 = arith.constant 0 : i32
    %c0_i32_1 = arith.constant 0 : i32
    return %c0_i32, %c0_i32_0 : i32, i32
  }
  func.func @transform_13(%arg0: i32) -> (i32, i32, i32, i32) {
    %c0_i32 = arith.constant 0 : i32
    %c0_i32_0 = arith.constant 0 : i32
    %c0_i32_1 = arith.constant 0 : i32
    %c0_i32_2 = arith.constant 0 : i32
    return %arg0, %c0_i32, %c0_i32_0, %c0_i32_1 : i32, i32, i32, i32
  }
}

</mosaic_0001>

<bundles_post_ra>
// kernel: tpu_custom_call.1
= control target key start
LH: loop header
LB: loop body
LE: loop exit
PB: predicated region body
PF: predicated region fallthrough
CT: control target
= control target key end

     0   :  { %s8864_s25 = smov 0   ;;  %s14993_s0 = inlined_call_operand.vmem [shape: f32[2,16,16,32], index: 0, kind: input, shape index: {}]   ;;  %s14994_s1 = inlined_call_operand.vmem [shape: f32[3,96,32], index: 1, kind: input, shape index: {}]   ;;  %s14995_s2 = inlined_call_operand.vmem [shape: f32[1,32], index: 2, kind: input, shape index: {}]   ;;  %s14996_s3 = inlined_call_operand.vmem [shape: f32[1,32], index: 3, kind: input, shape index: {}]   ;;  %s14997_s4 = inlined_call_operand.vmem [shape: f32[1,32], index: 4, kind: input, shape index: {}]   ;;  %s14998_s5 = inlined_call_operand.vmem [shape: f32[3,96,32], index: 5, kind: input, shape index: {}]   ;;  %s14999_s6 = inlined_call_operand.vmem [shape: f32[1,32], index: 6, kind: input, shape index: {}]   ;;  %s15000_s7 = inlined_call_operand.vmem [shape: f32[1,32], index: 7, kind: input, shape index: {}]   ;;  %s15001_s8 = inlined_call_operand.vmem [shape: f32[1,32], index: 8, kind: input, shape index: {}]   ;;  %s15002_s9 = inlined_call_operand.vmem [shape: f32[3,96,8], index: 9, kind: input, shape index: {}]   ;;  %s15003_s10 = inlined_call_operand.vmem [shape: f32[1,8], index: 10, kind: input, shape index: {}]   ;;  %s15004_s11 = inlined_call_operand.vmem [shape: f32[32,16], index: 11, kind: input, shape index: {}]   ;;  %s15005_s12 = inlined_call_operand.vmem [shape: f32[16,32], index: 12, kind: input, shape index: {}]   ;;  %s15006_s13 = inlined_call_operand.vmem [shape: f32[2,16,16,8], index: 13, kind: output, shape index: {}]  }
   0x1 LB: > { %s8288_s26 = sadd.s32 4294967295, %s8789_s25   ;;  %p8292_p0 = scmp.ge.s32.totalorder %s8789_s25, 1  ;;  %s8789_s25 = sphi %s8864_s25, %s23_s25  }
   0x2   : > { %p387_p1 = scmp.lt.s32.totalorder %s8789_s25, 3 }
   0x4   : > { %p388_p2 = pnand %p8292_p0, %p387_p1 }
   0x6   : > { %391 = sbr.rel (%p388_p2) target bundleno = 2979 (0xba3), region = 72 }
   0xb   : > { %p431_p3 = scmp.lt.s32.totalorder %s8288_s26, 1  ;;  %vm445_vm0 = vcmask 253952   ;;  %vm441_vm1 = vcmask 261120   ;;  %v8791_v0 = vmov 0.0   ;;  %vm649_vm2 = vcmask 1046528   ;;  %s8792_s14 = smov 32  }
   0xc   : > { %476 = vst.msk [vmem:[#allocation2 + $0xd8] sm:$0x1] %vm445_vm0, %v8791_v0  ;;  %vm826_vm3 = vcmask 1045504   ;;  %s8793_s15 = smov 64   ;;  %vm1605_vm4 = vcmask 785408   ;;  %vm1035_vm5 = vcmask 523264  }
   0xd   : > { %s15087_s26 = smov (!%p431_p3, %s8288_s26), 1  ;;  %442 = vst.msk [vmem:[#allocation2] sm:$0xff] %vm441_vm1, %v8791_v0  ;;  %vm2997_vm6 = vcmask 1040384   ;;  %vm3028_vm7 = vcmask 130048   ;;  %vm8200_vm15 = vcmask 64512  }
   0xe   : > { %443 = vst.msk [vmem:[#allocation2 + $0x8] sm:$0xff] %vm441_vm1, %v8791_v0  ;;  %s8663_s27 = sshll.u32 %s15087_s26, 8 }
   0xf   : > { %444 = vst.msk [vmem:[#allocation2 + $0x10] sm:$0xff] %vm441_vm1, %v8791_v0  ;;  %s8888_s30 = scalar_lea.vmem %s14993_s0, %s8663_s27  ;;  %s14413_s21 = scalar_lea.vmem %s15006_s13, %s8663_s27 }
  0x10   : > { %446 = vst.msk [vmem:[#allocation2 + $0x18] sm:$0x1] %vm445_vm0, %v8791_v0  ;;  %v498_v1 = vld [vmem:[%s8888_s30 + $0x50] sm:$0xff]  ;;  %v499_v2 = vld [vmem:[%s8888_s30 + $0x58] sm:$0xff]  ;;  %v500_v16 = vld [vmem:[%s8888_s30 + $0x60] sm:$0xff] }
  0x11   : > { %448 = vst.msk [vmem:[#allocation2 + $0x220] sm:$0xff] %vm441_vm1, %v8791_v0  ;;  %v501_v17 = vld [vmem:[%s8888_s30 + $0x68] sm:$0xff]  ;;  %v502_v18 = vld [vmem:[%s8888_s30 + $0x70] sm:$0xff]  ;;  %v503_v19 = vld [vmem:[%s8888_s30 + $0x78] sm:$0xff] }
  0x12   : > { %531 = vst.msk [vmem:[#allocation2 + $0xc8] sm:$0xff] %vm441_vm1, %v498_v1  ;;  %v504_v20 = vld [vmem:[%s8888_s30 + $0x80] sm:$0xff]  ;;  %v505_v21 = vld [vmem:[%s8888_s30 + $0x88] sm:$0xff]  ;;  %v506_v22 = vld [vmem:[%s8888_s30 + $0x90] sm:$0xff] }
  0x13   : > { %532 = vst.msk [vmem:[#allocation2 + $0xd0] sm:$0xff] %vm441_vm1, %v499_v2  ;;  %v507_v23 = vld [vmem:[%s8888_s30 + $0x98] sm:$0xff]  ;;  %v508_v28 = vld [vmem:[%s8888_s30 + $0xa0] sm:$0xff]  ;;  %v509_v33 = vld [vmem:[%s8888_s30 + $0xa8] sm:$0xff] }
  0x14   : > { %449 = vst.msk [vmem:[#allocation2 + $0x228] sm:$0xff] %vm441_vm1, %v8791_v0  ;;  %v510_v45 = vld [vmem:[%s8888_s30 + $0xb0] sm:$0xff]  ;;  %v511_v46 = vld [vmem:[%s8888_s30 + $0xb8] sm:$0xff]  ;;  %v512_v57 = vld [vmem:[%s8888_s30 + $0xc0] sm:$0xff] }
  0x15   : > { %450 = vst.msk [vmem:[#allocation2 + $0x230] sm:$0xff] %vm441_vm1, %v8791_v0  ;;  %v513_v58 = vld [vmem:[%s8888_s30 + $0xc8] sm:$0xff] }
  0x16   : > { %451 = vst.msk [vmem:[#allocation2 + $0x238] sm:$0x1] %vm445_vm0, %v8791_v0 }
  0x17   : > { %453 = vst.msk [vmem:[#allocation2 + $0x27] sm:$0x1] %vm445_vm0, %v8791_v0 }
  0x18   : > { %454 = vst.msk [vmem:[#allocation2 + $0x47] sm:$0x1] %vm445_vm0, %v8791_v0 }
  0x19   : > { %455 = vst.msk [vmem:[#allocation2 + $0x67] sm:$0x1] %vm445_vm0, %v8791_v0 }
  0x1a   : > { %v8910_v3 = vld [vmem:[#allocation2 + $0xcf] sm:$0xff]  ;;  %v1097_v4 = vld [vmem:[#allocation2 + $0xd7] sm:$0x3]  ;;  %456 = vst.msk [vmem:[#allocation2 + $0x87] sm:$0x1] %vm445_vm0, %v8791_v0 }
  0x1b   : > { %v1202_v5 = vrot.slane %v8910_v3, 1  ;;  %v1204_v6 = vrot.slane %v1097_v4, 1  ;;  %457 = vst.msk [vmem:[#allocation2 + $0xa7] sm:$0x1] %vm445_vm0, %v8791_v0  ;;  %v1378_v8 = vrot.slane %v8910_v3, 2  ;;  %v1380_v9 = vrot.slane %v1097_v4, 2 }
  0x1c   : > { %458 = vst.msk [vmem:[#allocation2 + $0xc7] sm:$0x1] %vm445_vm0, %v8791_v0 }
  0x1d   : > { %v1205_v7 = vsel %vm649_vm2, %v1202_v5, %v1204_v6  ;;  %459 = vst.msk [vmem:[#allocation2 + $0xe7] sm:$0x1] %vm445_vm0, %v8791_v0  ;;  %v1381_v11 = vsel %vm826_vm3, %v1378_v8, %v1380_v9 }
  0x1e   : > { %1278 = vrot.lane.b32.xlu1 %v1205_v7, %s8792_s14  ;;  %460 = vst.msk [vmem:[#allocation2 + $0x107] sm:$0x1] %vm445_vm0, %v8791_v0 }
  0x1f   : > { %461 = vst.msk [vmem:[#allocation2 + $0x127] sm:$0x1] %vm445_vm0, %v8791_v0 }
  0x20   : > { %462 = vst.msk [vmem:[#allocation2 + $0x147] sm:$0x1] %vm445_vm0, %v8791_v0 }
  0x21   : > { %463 = vst.msk [vmem:[#allocation2 + $0x167] sm:$0x1] %vm445_vm0, %v8791_v0 }
  0x22   : > { %464 = vst.msk [vmem:[#allocation2 + $0x187] sm:$0x1] %vm445_vm0, %v8791_v0 }
  0x23   : > { %465 = vst.msk [vmem:[#allocation2 + $0x1a7] sm:$0x1] %vm445_vm0, %v8791_v0  ;;  %v8936_v10 = vld [vmem:[#allocation2 + $0xc7] sm:$0xff] }
  0x24   : > { %466 = vst.msk [vmem:[#allocation2 + $0x1c7] sm:$0x1] %vm445_vm0, %v8791_v0  ;;  %v1201_v12 = vrot.slane %v8936_v10, 1  ;;  %v1377_v14 = vrot.slane %v8936_v10, 2 }
  0x25   : > { %467 = vst.msk [vmem:[#allocation2 + $0x1e7] sm:$0x1] %vm445_vm0, %v8791_v0 }
  0x26   : > { %468 = vst.msk [vmem:[#allocation2 + $0x207] sm:$0x1] %vm445_vm0, %v8791_v0  ;;  %v1203_v13 = vsel %vm649_vm2, %v1201_v12, %v1202_v5  ;;  %1454 = vrot.lane.b32.xlu1 %v1381_v11, %s8793_s15  ;;  %v1379_v15 = vsel %vm826_vm3, %v1377_v14, %v1378_v8 }
  0x27   : > { %471 = vst.msk [vmem:[#allocation2 + $0x38] sm:$0x1] %vm445_vm0, %v8791_v0  ;;  %1276 = vrot.lane.b32.xlu0 %v1203_v13, %s8792_s14 }
  0x28   : > { %472 = vst.msk [vmem:[#allocation2 + $0x58] sm:$0x1] %vm445_vm0, %v8791_v0 }
  0x29   : > { %473 = vst.msk [vmem:[#allocation2 + $0x78] sm:$0x1] %vm445_vm0, %v8791_v0 }
  0x2a   : > { %474 = vst.msk [vmem:[#allocation2 + $0x98] sm:$0x1] %vm445_vm0, %v8791_v0 }
  0x2b   : > { %475 = vst.msk [vmem:[#allocation2 + $0xb8] sm:$0x1] %vm445_vm0, %v8791_v0 }
  0x2c   : > { %477 = vst.msk [vmem:[#allocation2 + $0xf8] sm:$0x1] %vm445_vm0, %v8791_v0 }
  0x2d   : > { %478 = vst.msk [vmem:[#allocation2 + $0x118] sm:$0x1] %vm445_vm0, %v8791_v0 }
  0x2e   : > { %479 = vst.msk [vmem:[#allocation2 + $0x138] sm:$0x1] %vm445_vm0, %v8791_v0 }
  0x2f   : > { %480 = vst.msk [vmem:[#allocation2 + $0x158] sm:$0x1] %vm445_vm0, %v8791_v0  ;;  %1452 = vrot.lane.b32.xlu0 %v1379_v15, %s8793_s15 }
  0x30   : > { %481 = vst.msk [vmem:[#allocation2 + $0x178] sm:$0x1] %vm445_vm0, %v8791_v0 }
  0x31   : > { %482 = vst.msk [vmem:[#allocation2 + $0x198] sm:$0x1] %vm445_vm0, %v8791_v0 }
  0x32   : > { %483 = vst.msk [vmem:[#allocation2 + $0x1b8] sm:$0x1] %vm445_vm0, %v8791_v0 }
  0x33   : > { %484 = vst.msk [vmem:[#allocation2 + $0x1d8] sm:$0x1] %vm445_vm0, %v8791_v0 }
  0x34   : > { %485 = vst.msk [vmem:[#allocation2 + $0x1f8] sm:$0x1] %vm445_vm0, %v8791_v0 }
  0x35   : > { %486 = vst.msk [vmem:[#allocation2 + $0x218] sm:$0x1] %vm445_vm0, %v8791_v0 }
  0x36   : > { %452 = vst.msk [vmem:[#allocation2 + $0x7] sm:$0x1] %vm445_vm0, %v8791_v0 }
  0x37   : > { %469 = vst.msk [vmem:[#allocation2 + $0x227] sm:$0x1] %vm445_vm0, %v8791_v0 }
  0x38   : > { %470 = vst.msk [vmem:[#allocation2 + $0x18] sm:$0x1] %vm445_vm0, %v8791_v0 }
  0x39   : > { %487 = vst.msk [vmem:[#allocation2 + $0x238] sm:$0x1] %vm445_vm0, %v8791_v0 }
  0x3a   : > { %533 = vst.msk [vmem:[#allocation2 + $0xe8] sm:$0xff] %vm441_vm1, %v500_v16  ;;  %v514_v16 = vld [vmem:[%s8888_s30 + $0xd0] sm:$0xff] }
  0x3b   : > { %534 = vst.msk [vmem:[#allocation2 + $0xf0] sm:$0xff] %vm441_vm1, %v501_v17  ;;  %v515_v17 = vld [vmem:[%s8888_s30 + $0xd8] sm:$0xff] }
  0x3c   : > { %535 = vst.msk [vmem:[#allocation2 + $0x108] sm:$0xff] %vm441_vm1, %v502_v18 }
  0x3d   : > { %536 = vst.msk [vmem:[#allocation2 + $0x110] sm:$0xff] %vm441_vm1, %v503_v19 }
  0x3e   : > { %537 = vst.msk [vmem:[#allocation2 + $0x128] sm:$0xff] %vm441_vm1, %v504_v20 }
  0x3f   : > { %538 = vst.msk [vmem:[#allocation2 + $0x130] sm:$0xff] %vm441_vm1, %v505_v21 }
  0x40   : > { %539 = vst.msk [vmem:[#allocation2 + $0x148] sm:$0xff] %vm441_vm1, %v506_v22 }
  0x41   : > { %v9007_v24 = vld [vmem:[#allocation2 + $0xe7] sm:$0xff]  ;;  %540 = vst.msk [vmem:[#allocation2 + $0x150] sm:$0xff] %vm441_vm1, %v507_v23 }
  0x42   : > { %v9010_v25 = vld [vmem:[#allocation2 + $0xef] sm:$0xff]  ;;  %v1100_v26 = vld [vmem:[#allocation2 + $0xf7] sm:$0x3]  ;;  %v1206_v27 = vrot.slane %v9007_v24, 1  ;;  %541 = vst.msk [vmem:[#allocation2 + $0x168] sm:$0xff] %vm441_vm1, %v508_v28  ;;  %v1382_v44 = vrot.slane %v9007_v24, 2 }
  0x43   : > { %v1383_v29 = vrot.slane %v9010_v25, 2  ;;  %v1385_v30 = vrot.slane %v1100_v26, 2  ;;  %v1207_v31 = vrot.slane %v9010_v25, 1  ;;  %v1209_v32 = vrot.slane %v1100_v26, 1  ;;  %v9019_v36 = vld [vmem:[#allocation2 + $0x107] sm:$0xff]  ;;  %542 = vst.msk [vmem:[#allocation2 + $0x170] sm:$0xff] %vm441_vm1, %v509_v33 }
  0x44   : > { %v9017_v34 = vld [vmem:[#allocation2 + $0x10f] sm:$0xff]  ;;  %v1103_v35 = vld [vmem:[#allocation2 + $0x117] sm:$0x3]  ;;  %v1387_v42 = vrot.slane %v9019_v36, 2  ;;  %543 = vst.msk [vmem:[#allocation2 + $0x188] sm:$0xff] %vm441_vm1, %v510_v45  ;;  %v1211_v56 = vrot.slane %v9019_v36, 1 }
  0x45   : > { %v1386_v37 = vsel %vm826_vm3, %v1383_v29, %v1385_v30  ;;  %v1210_v38 = vsel %vm649_vm2, %v1207_v31, %v1209_v32  ;;  %v1208_v39 = vsel %vm649_vm2, %v1206_v27, %v1207_v31  ;;  %v1212_v40 = vrot.slane %v9017_v34, 1  ;;  %v9043_v50 = vld [vmem:[#allocation2 + $0x127] sm:$0xff]  ;;  %544 = vst.msk [vmem:[#allocation2 + $0x190] sm:$0xff] %vm441_vm1, %v511_v46 }
  0x46   : > { %1458 = vrot.lane.b32.xlu1 %v1386_v37, %s8793_s15  ;;  %1282 = vrot.lane.b32.xlu0 %v1210_v38, %s8792_s14  ;;  %v1214_v41 = vrot.slane %v1103_v35, 1  ;;  %v1388_v43 = vrot.slane %v9017_v34, 2  ;;  %v1384_v49 = vsel %vm826_vm3, %v1382_v44, %v1383_v29  ;;  %v9045_v51 = vld [vmem:[#allocation2 + $0x12f] sm:$0xff]  ;;  %v1392_v52 = vrot.slane %v9043_v50, 2  ;;  %545 = vst.msk [vmem:[#allocation2 + $0x1a8] sm:$0xff] %vm441_vm1, %v512_v57  ;;  %v516_v32 = vld [vmem:[%s8888_s30 + $0xe0] sm:$0xff] }
  0x47   : > { %1280 = vrot.lane.b32.xlu2 %v1208_v39, %s8792_s14  ;;  %v1393_v53 = vrot.slane %v9045_v51, 2  ;;  %v1216_v54 = vrot.slane %v9043_v50, 1  ;;  %v1217_v55 = vrot.slane %v9045_v51, 1  ;;  %v9061_v61 = vld [vmem:[#allocation2 + $0x147] sm:$0xff]  ;;  %v1106_v63 = vld [vmem:[#allocation2 + $0x137] sm:$0x3]  ;;  %v1213_v0 = vsel %vm649_vm2, %v1211_v56, %v1212_v40 }
  0x48   : > { %v1215_v47 = vsel %vm649_vm2, %v1212_v40, %v1214_v41  ;;  %v1389_v48 = vsel %vm826_vm3, %v1387_v42, %v1388_v43  ;;  %v9063_v62 = vld [vmem:[#allocation2 + $0x14f] sm:$0xff]  ;;  %546 = vst.msk [vmem:[#allocation2 + $0x1b0] sm:$0xff] %vm441_vm1, %v513_v58  ;;  %v1221_v1 = vrot.slane %v9061_v61, 1  ;;  %v1395_v4 = vrot.slane %v1106_v63, 2  ;;  %v1109_v8 = vld [vmem:[#allocation2 + $0x157] sm:$0x3] }
  0x49   : > { %v1394_v59 = vsel %vm826_vm3, %v1392_v52, %v1393_v53  ;;  %v1218_v60 = vsel %vm649_vm2, %v1216_v54, %v1217_v55  ;;  %v1222_v2 = vrot.slane %v9063_v62, 1  ;;  %v1390_v5 = vrot.slane %v1103_v35, 2  ;;  %547 = vst.msk [vmem:[#allocation2 + $0x1c8] sm:$0xff] %vm441_vm1, %v514_v16  ;;  %v9086_v22 = vld [vmem:[#allocation2 + $0x167] sm:$0xff]  ;;  %v8308_v57 = vld [vmem:[%s14994_s1 + $0xb8] sm:$0xff]  ;;  %v8307_v58 = vld [vmem:[%s14994_s1 + $0xb0] sm:$0xff] }
  0x4a   : > { %v1396_v7 = vsel %vm826_vm3, %v1393_v53, %v1395_v4  ;;  %v1398_v11 = vrot.slane %v9063_v62, 2  ;;  %v1400_v13 = vrot.slane %v1109_v8, 2  ;;  %v1224_v14 = vrot.slane %v1109_v8, 1  ;;  %v9084_v20 = vld [vmem:[#allocation2 + $0x16f] sm:$0xff]  ;;  %v1112_v21 = vld [vmem:[#allocation2 + $0x177] sm:$0x3]  ;;  %8665 = vmatpush.msra.mxu1 %v8308_v57  ;;  %1706 = vmatpush.msra.mxu0 %v8308_v57 }
  0x4b   : > { %v1223_v6 = vsel %vm649_vm2, %v1221_v1, %v1222_v2  ;;  %v1391_v9 = vsel %vm826_vm3, %v1388_v43, %v1390_v5  ;;  %v1219_v15 = vrot.slane %v1106_v63, 1  ;;  %548 = vst.msk [vmem:[#allocation2 + $0x1d0] sm:$0xff] %vm441_vm1, %v515_v17  ;;  %v1227_v26 = vrot.slane %v9084_v20, 1  ;;  %v517_v33 = vld [vmem:[%s8888_s30 + $0xe8] sm:$0xff]  ;;  %v490_v16 = vld [vmem:[%s8888_s30 + $0x10] sm:$0xff]  ;;  %v491_v17 = vld [vmem:[%s8888_s30 + $0x18] sm:$0xff] }
  0x4c   : > { %v1401_v18 = vsel %vm826_vm3, %v1398_v11, %v1400_v13  ;;  %v1225_v19 = vsel %vm649_vm2, %v1222_v2, %v1224_v14  ;;  %v1229_v28 = vrot.slane %v1112_v21, 1  ;;  %v1402_v29 = vrot.slane %v9086_v22, 2  ;;  %549 = vst.msk [vmem:[#allocation2 + $0x1e8] sm:$0xff] %vm441_vm1, %v516_v32  ;;  %v9102_v38 = vld [vmem:[#allocation2 + $0x187] sm:$0xff]  ;;  %v9104_v39 = vld [vmem:[#allocation2 + $0x18f] sm:$0xff]  ;;  %8666 = vmatpush.msra.mxu1 %v8307_v58  ;;  %1707 = vmatpush.msra.mxu0 %v8307_v58  ;;  %v8304_v14 = vld [vmem:[%s14994_s1 + $0x98] sm:$0xff] }
  0x4d   : > { %v1220_v23 = vsel %vm649_vm2, %v1217_v55, %v1219_v15  ;;  %v1403_v30 = vrot.slane %v9084_v20, 2  ;;  %v1397_v31 = vrot.slane %v9061_v61, 2  ;;  %550 = vst.msk [vmem:[#allocation2 + $0x1f0] sm:$0xff] %vm441_vm1, %v517_v33  ;;  %v1407_v41 = vrot.slane %v9102_v38, 2  ;;  %v9121_v53 = vld [vmem:[#allocation2 + $0x1a7] sm:$0xff]  ;;  %v8303_v15 = vld [vmem:[%s14994_s1 + $0x90] sm:$0xff] }
  0x4e   : > { %1286 = vrot.lane.b32.xlu1 %v1215_v47, %s8792_s14  ;;  %1460 = vrot.lane.b32.xlu0 %v1389_v48, %s8793_s15  ;;  %v1230_v35 = vsel %vm649_vm2, %v1227_v26, %v1229_v28  ;;  %v1408_v42 = vrot.slane %v9104_v39, 2  ;;  %v1231_v43 = vrot.slane %v9102_v38, 1  ;;  %v1232_v45 = vrot.slane %v9104_v39, 1  ;;  %v518_v47 = vld [vmem:[%s8888_s30 + $0xf0] sm:$0xff]  ;;  %v519_v48 = vld [vmem:[%s8888_s30 + $0xf8] sm:$0xff]  ;;  %523 = vst.msk [vmem:[#allocation2 + $0x48] sm:$0xff] %vm441_vm1, %v490_v16 }
  0x4f   : > { %1456 = vrot.lane.b32.xlu2 %v1384_v49, %s8793_s15  ;;  %v1404_v37 = vsel %vm826_vm3, %v1402_v29, %v1403_v30  ;;  %v1399_v40 = vsel %vm826_vm3, %v1397_v31, %v1398_v11  ;;  %v1226_v46 = vrot.slane %v9086_v22, 1  ;;  %551 = vst.msk [vmem:[#allocation2 + $0x208] sm:$0xff] %vm441_vm1, %v518_v47  ;;  %v9123_v54 = vld [vmem:[#allocation2 + $0x1af] sm:$0xff]  ;;  %v1115_v55 = vld [vmem:[#allocation2 + $0x197] sm:$0x3] }
  0x50   : > { %v1409_v49 = vsel %vm826_vm3, %v1407_v41, %v1408_v42  ;;  %v1233_v52 = vsel %vm649_vm2, %v1231_v43, %v1232_v45  ;;  %552 = vst.msk [vmem:[#allocation2 + $0x210] sm:$0xff] %vm441_vm1, %v519_v48  ;;  %v1410_v63 = vrot.slane %v1115_v55, 2  ;;  %v1118_v4 = vld [vmem:[#allocation2 + $0x1b7] sm:$0x3]  ;;  %v1413_v8 = vrot.slane %v9123_v54, 2  ;;  %v8302_v29 = vld [vmem:[%s14994_s1 + $0x88] sm:$0xff] }
  0x51   : > { %v1228_v56 = vsel %vm649_vm2, %v1226_v46, %v1227_v26  ;;  %v1239_v11 = vrot.slane %v1118_v4, 1  ;;  %v1234_v13 = vrot.slane %v1115_v55, 1  ;;  %v9166_v26 = vld [vmem:[#allocation2 + $0x1c7] sm:$0xff]  ;;  %524 = vst.msk [vmem:[#allocation2 + $0x50] sm:$0xff] %vm441_vm1, %v491_v17  ;;  %v8299_v41 = vld [vmem:[%s14994_s1 + $0x70] sm:$0xff] }
  0x52   : > { %v1411_v2 = vsel %vm826_vm3, %v1408_v42, %v1410_v63  ;;  %v1417_v33 = vrot.slane %v9166_v26, 2  ;;  %v8298_v48 = vld [vmem:[%s14994_s1 + $0x68] sm:$0xff]  ;;  %v1241_v58 = vrot.slane %v9166_v26, 1 }
  0x53   : > { %v1235_v28 = vsel %vm649_vm2, %v1232_v45, %v1234_v13  ;;  %v9192_v45 = vld [vmem:[#allocation2 + $0x1e7] sm:$0xff] }
  0x54   : > { %v9194_v46 = vld [vmem:[#allocation2 + $0x1ef] sm:$0xff]  ;;  %v488_v13 = vld [vmem:[%s8888_s30] sm:$0xff] }
  0x55   : > { %v1423_v55 = vrot.slane %v9194_v46, 2  ;;  %v1247_v57 = vrot.slane %v9194_v46, 1  ;;  %v489_v16 = vld [vmem:[%s8888_s30 + $0x8] sm:$0xff]  ;;  %521 = vst.msk [vmem:[#allocation2 + $0x28] sm:$0xff] %vm441_vm1, %v488_v13 }
  0x56   : > { %1464 = vrot.lane.b32.xlu1 %v1394_v59, %s8793_s15  ;;  %1288 = vrot.lane.b32.xlu0 %v1218_v60, %s8792_s14  ;;  %v1236_v59 = vrot.slane %v9121_v53, 1  ;;  %v1237_v60 = vrot.slane %v9123_v54, 1  ;;  %522 = vst.msk [vmem:[#allocation2 + $0x30] sm:$0xff] %vm441_vm1, %v489_v16 }
  0x57   : > { %1284 = vrot.lane.b32.xlu2 %v1213_v0, %s8792_s14  ;;  %v1405_v0 = vrot.slane %v1112_v21, 2  ;;  %v9162_v21 = vld [vmem:[#allocation2 + $0x1cf] sm:$0xff]  ;;  %v1127_v17 = vld [vmem:[#allocation2 + $0x217] sm:$0x3] }
  0x58   : > { %v1238_v1 = vsel %vm649_vm2, %v1236_v59, %v1237_v60  ;;  %v1242_v31 = vrot.slane %v9162_v21, 1  ;;  %v492_v59 = vld [vmem:[%s8888_s30 + $0x20] sm:$0xff] }
  0x59   : > { %v1406_v5 = vsel %vm826_vm3, %v1403_v30, %v1405_v0  ;;  %v8301_v30 = vld [vmem:[%s14994_s1 + $0x80] sm:$0xff]  ;;  %525 = vst.msk [vmem:[#allocation2 + $0x68] sm:$0xff] %vm441_vm1, %v492_v59 }
  0x5e   : > { %1292 = vrot.lane.b32.xlu1 %v1223_v6, %s8792_s14  ;;  %1466 = vrot.lane.b32.xlu0 %v1396_v7, %s8793_s15  ;;  %v8306_v6 = vld [vmem:[%s14994_s1 + $0xa8] sm:$0xff]  ;;  %v8305_v7 = vld [vmem:[%s14994_s1 + $0xa0] sm:$0xff] }
  0x5f   : > { %1462 = vrot.lane.b32.xlu2 %v1391_v9, %s8793_s15  ;;  %v1415_v9 = vrot.slane %v1118_v4, 2  ;;  %8667 = vmatpush.msra.mxu1 %v8306_v6  ;;  %v1124_v4 = vld [vmem:[#allocation2 + $0x1f7] sm:$0x3] }
  0x60   : > { %1708 = vmatpush.msra.mxu0 %v8306_v6 }
  0x61   : > { %8668 = vmatpush.msra.mxu1 %v8305_v7 }
  0x62   : > { %1709 = vmatpush.msra.mxu0 %v8305_v7 }
  0x63   : > { %8669 = vmatpush.msra.mxu1 %v8304_v14 }
  0x64   : > { %1710 = vmatpush.msra.mxu0 %v8304_v14 }
  0x65   : > { %8670 = vmatpush.msra.mxu1 %v8303_v15 }
  0x66   : > { %1470 = vrot.lane.b32.xlu1 %v1401_v18, %s8793_s15  ;;  %1294 = vrot.lane.b32.xlu0 %v1225_v19, %s8792_s14  ;;  %v1416_v18 = vsel %vm826_vm3, %v1413_v8, %v1415_v9  ;;  %v1240_v19 = vsel %vm649_vm2, %v1237_v60, %v1239_v11  ;;  %v493_v60 = vld [vmem:[%s8888_s30 + $0x28] sm:$0xff] }
  0x67   : > { %1290 = vrot.lane.b32.xlu2 %v1220_v23, %s8792_s14  ;;  %v9164_v23 = vld [vmem:[#allocation2 + $0x1d7] sm:$0x3]  ;;  %8671 = vmatpush.msra.mxu1 %v8302_v29  ;;  %526 = vst.msk [vmem:[#allocation2 + $0x70] sm:$0xff] %vm441_vm1, %v493_v60 }
  0x68   : > { %v1244_v32 = vrot.slane %v9164_v23, 1  ;;  %1711 = vmatpush.msra.mxu0 %v8303_v15  ;;  %v1420_v9 = vrot.slane %v9164_v23, 2 }
  0x69   : > { %8672 = vmatpush.msra.mxu1 %v8301_v30 }
  0x6a   : > { %1712 = vmatpush.msra.mxu0 %v8302_v29  ;;  %v1245_v42 = vsel %vm649_vm2, %v1242_v31, %v1244_v32  ;;  %v1254_v29 = vrot.slane %v1127_v17, 1 }
  0x6c   : > { %1713 = vmatpush.msra.mxu0 %v8301_v30  ;;  %v1249_v30 = vrot.slane %v1124_v4, 1 }
  0x6e   : > { %1298 = vrot.lane.b32.xlu1 %v1230_v35, %s8792_s14  ;;  %1472 = vrot.lane.b32.xlu0 %v1404_v37, %s8793_s15  ;;  %v1418_v35 = vrot.slane %v9162_v21, 2  ;;  %v1412_v37 = vrot.slane %v9121_v53, 2 }
  0x6f   : > { %1468 = vrot.lane.b32.xlu2 %v1399_v40, %s8793_s15  ;;  %v8300_v40 = vld [vmem:[%s14994_s1 + $0x78] sm:$0xff] }
  0x70   : > { %v1419_v43 = vsel %vm826_vm3, %v1417_v33, %v1418_v35  ;;  %8673 = vmatpush.msra.mxu1 %v8300_v40  ;;  %v1414_v47 = vsel %vm826_vm3, %v1412_v37, %v1413_v8  ;;  %1714 = vmatpush.msra.mxu0 %v8300_v40  ;;  %v1425_v8 = vrot.slane %v1124_v4, 2  ;;  %v495_v4 = vld [vmem:[%s8888_s30 + $0x38] sm:$0xff] }
  0x71   : > { %528 = vst.msk [vmem:[#allocation2 + $0x90] sm:$0xff] %vm441_vm1, %v495_v4 }
  0x72   : > { %8674 = vmatpush.msra.mxu1 %v8299_v41  ;;  %1715 = vmatpush.msra.mxu0 %v8299_v41  ;;  %v1426_v15 = vsel %vm826_vm3, %v1423_v55, %v1425_v8  ;;  %v9244_v41 = vld [vmem:[#allocation2 + $0x7] sm:$0xff] }
  0x74   : > { %8675 = vmatpush.msra.mxu1 %v8298_v48  ;;  %1716 = vmatpush.msra.mxu0 %v8298_v48  ;;  %v1250_v48 = vsel %vm649_vm2, %v1247_v57, %v1249_v30 }
  0x76   : > { %1476 = vrot.lane.b32.xlu1 %v1409_v49, %s8793_s15  ;;  %1300 = vrot.lane.b32.xlu0 %v1233_v52, %s8792_s14  ;;  %v8297_v49 = vld [vmem:[%s14994_s1 + $0x60] sm:$0xff]  ;;  %v1422_v52 = vrot.slane %v9192_v45, 2 }
  0x77   : > { %1296 = vrot.lane.b32.xlu2 %v1228_v56, %s8792_s14  ;;  %v1246_v56 = vrot.slane %v9192_v45, 1  ;;  %8676 = vmatpush.msra.mxu1 %v8297_v49 }
  0x78   : > { %v1424_v63 = vsel %vm826_vm3, %v1422_v52, %v1423_v55  ;;  %1717 = vmatpush.msra.mxu0 %v8297_v49  ;;  %v650_v49 = vrot.slane %v9244_v41, 1 }
  0x79   : > { %v1248_v0 = vsel %vm649_vm2, %v1246_v56, %v1247_v57 }
  0x7e   : > { %1304 = vrot.lane.b32.xlu1 %v1238_v1, %s8792_s14  ;;  %1478 = vrot.lane.b32.xlu0 %v1411_v2, %s8793_s15  ;;  %v9216_v1 = vld [vmem:[#allocation2 + $0x207] sm:$0xff]  ;;  %v9218_v2 = vld [vmem:[#allocation2 + $0x20f] sm:$0xff] }
  0x7f   : > { %1474 = vrot.lane.b32.xlu2 %v1406_v5, %s8793_s15  ;;  %v1243_v5 = vsel %vm649_vm2, %v1241_v58, %v1242_v31  ;;  %v1251_v6 = vrot.slane %v9216_v1, 1  ;;  %v1252_v7 = vrot.slane %v9218_v2, 1  ;;  %v1428_v23 = vrot.slane %v9218_v2, 2 }
  0x80   : > { %v1427_v59 = vrot.slane %v9216_v1, 2 }
  0x81   : > { %v1253_v14 = vsel %vm649_vm2, %v1251_v6, %v1252_v7  ;;  %v1255_v40 = vsel %vm649_vm2, %v1252_v7, %v1254_v29  ;;  %v2027_v7 = vld [vmem:[#allocation2 + $0x57] sm:$0x3] }
  0x82   : > { %v2124_v13 = vrot.slane %v2027_v7, 1 }
  0x86   : > { %1482 = vrot.lane.b32.xlu1 %v1416_v18, %s8793_s15  ;;  %1306 = vrot.lane.b32.xlu0 %v1240_v19, %s8792_s14  ;;  %v1421_v18 = vsel %vm826_vm3, %v1418_v35, %v1420_v9  ;;  %v2300_v9 = vrot.slane %v2027_v7, 2 }
  0x87   : > { %1302 = vrot.lane.b32.xlu2 %v1235_v28, %s8792_s14  ;;  %v1430_v28 = vrot.slane %v1127_v17, 2 }
  0x89   : > { %v1431_v37 = vsel %vm826_vm3, %v1428_v23, %v1430_v28  ;;  %v555_v28 = vld [vmem:[#allocation2 + $0x17] sm:$0x3] }
  0x8e   : > { %1310 = vrot.lane.b32.xlu1 %v1245_v42, %s8792_s14  ;;  %1484 = vrot.lane.b32.xlu0 %v1419_v43, %s8793_s15  ;;  %v9247_v42 = vld [vmem:[#allocation2 + $0xf] sm:$0xff]  ;;  %v9249_v43 = vld [vmem:[#allocation2 + $0x47] sm:$0xff] }
  0x8f   : > { %1480 = vrot.lane.b32.xlu2 %v1414_v47, %s8793_s15  ;;  %v9251_v47 = vld [vmem:[#allocation2 + $0x4f] sm:$0xff]  ;;  %v651_v52 = vrot.slane %v9247_v42, 1  ;;  %v2297_v55 = vrot.slane %v9249_v43, 2 }
  0x90   : > { %v1279_v19 = vpop.permute.xlu1 %1278  ;;  %v9260_v56 = vrot.slane %v9251_v47, 2 }
  0x91   : > { %v1539_v57 = vsel %vm441_vm1, %v8910_v3, %v1279_v19  ;;  %v1429_v3 = vsel %vm826_vm3, %v1427_v59, %v1428_v23  ;;  %v9296_v19 = vld [vmem:[#allocation2 + $0x67] sm:$0xff]  ;;  %v9298_v23 = vld [vmem:[#allocation2 + $0x6f] sm:$0xff] }
  0x92   : > { %v9274_v6 = vsel %vm826_vm3, %v2297_v55, %v9260_v56  ;;  %v2301_v17 = vsel %vm826_vm3, %v9260_v56, %v2300_v9  ;;  %v2126_v30 = vrot.slane %v9296_v19, 1 }
  0x96   : > { %1488 = vrot.lane.b32.xlu1 %v1424_v63, %s8793_s15  ;;  %1312 = vrot.lane.b32.xlu0 %v1248_v0, %s8792_s14  ;;  %v494_v0 = vld [vmem:[%s8888_s30 + $0x30] sm:$0xff] }
  0x97   : > { %1308 = vrot.lane.b32.xlu2 %v1243_v5, %s8792_s14  ;;  %v652_v5 = vsel %vm649_vm2, %v650_v49, %v651_v52  ;;  %527 = vst.msk [vmem:[#allocation2 + $0x88] sm:$0xff] %vm441_vm1, %v494_v0 }
  0x98   : > { %v1455_v58 = vpop.permute.xlu1 %1454 }
  0x99   : > { %v1277_v11 = vpop.permute.xlu0 %1276  ;;  %v1571_v63 = vsel %vm1035_vm5, %v1539_v57, %v1455_v58  ;;  %v9323_v57 = vld [vmem:[#allocation2 + $0x27] sm:$0xff] }
  0x9a   : > { %v1538_v32 = vsel %vm441_vm1, %v8936_v10, %v1277_v11  ;;  %v9286_v11 = vrot.slane %v9251_v47, 1  ;;  %v655_v4 = vrot.slane %v9323_v57, 1 }
  0x9e   : > { %1316 = vrot.lane.b32.xlu1 %v1253_v14, %s8792_s14  ;;  %1490 = vrot.lane.b32.xlu0 %v1426_v15, %s8793_s15  ;;  %v2121_v14 = vrot.slane %v9249_v43, 1 }
  0x9f   : > { %1486 = vrot.lane.b32.xlu2 %v1421_v18, %s8793_s15  ;;  %v2125_v18 = vsel %vm649_vm2, %v9286_v11, %v2124_v13 }
  0xa0   : > { %v9302_v29 = vsel %vm649_vm2, %v2121_v14, %v9286_v11 }
  0xa1   : > { %v1281_v31 = vpop.permute.xlu2 %1280  ;;  %v1453_v33 = vpop.permute.xlu0 %1452 }
  0xa2   : > { %v1570_v35 = vsel %vm1035_vm5, %v1538_v32, %v1453_v33  ;;  %v1540_v8 = vsel %vm441_vm1, %v9007_v24, %v1281_v31  ;;  %v9308_v31 = vrot.slane %v9298_v23, 1  ;;  %v828_v32 = vrot.slane %v9247_v42, 2 }
  0xa3   : > { %8319 = vmatmul.msk.f32.vlgmr.msra.gmra.mxu1 %vm1605_vm4, %v1570_v35  ;;  %v830_v33 = vrot.slane %v555_v28, 2 }
  0xa4   : > { %v9319_v58 = vsel %vm649_vm2, %v2126_v30, %v9308_v31 }
  0xa5   : > { %v831_v59 = vsel %vm826_vm3, %v828_v32, %v830_v33 }
  0xa6   : > { %1494 = vrot.lane.b32.xlu1 %v1431_v37, %s8793_s15  ;;  %1318 = vrot.lane.b32.xlu0 %v1255_v40, %s8792_s14  ;;  %v827_v40 = vrot.slane %v9244_v41, 2 }
  0xa7   : > { %1314 = vrot.lane.b32.xlu2 %v1250_v48, %s8792_s14 }
  0xa9   : > { %v1457_v60 = vpop.permute.xlu2 %1456 }
  0xaa   : > { %v1572_v16 = vsel %vm1035_vm5, %v1540_v8, %v1457_v60  ;;  %v9325_v60 = vld [vmem:[#allocation2 + $0x2f] sm:$0xff]  ;;  %v653_v8 = vrot.slane %v555_v28, 1  ;;  %v558_v28 = vld [vmem:[#allocation2 + $0x37] sm:$0x3] }
  0xab   : > { %8320 = vmatmul.msk.f32.gmra.mxu1 %vm1605_vm4, %v1571_v63  ;;  %v829_v63 = vsel %vm826_vm3, %v827_v40, %v828_v32  ;;  %v9333_v0 = vrot.slane %v9325_v60, 2  ;;  %v2030_v32 = vld [vmem:[#allocation2 + $0x77] sm:$0x3]  ;;  %v658_v33 = vrot.slane %v558_v28, 1 }
  0xae   : > { %730 = vrot.lane.b32.xlu1 %v652_v5, %s8792_s14  ;;  %2377 = vrot.lane.b32.xlu0 %v9274_v6, %s8793_s15  ;;  %v9337_v5 = vrot.slane %v9325_v60, 1 }
  0xaf   : > { %1492 = vrot.lane.b32.xlu2 %v1429_v3, %s8793_s15 }
  0xb0   : > { %v9351_v30 = vsel %vm649_vm2, %v655_v4, %v9337_v5  ;;  %v9378_v4 = vld [vmem:[#allocation2 + $0x8f] sm:$0xff] }
  0xb1   : > { %v1285_v15 = vpop.permute.xlu2 %1284 }
  0xb2   : > { %v1542_v9 = vsel %vm441_vm1, %v9019_v36, %v1285_v15  ;;  %v654_v36 = vsel %vm649_vm2, %v651_v52, %v653_v8  ;;  %v9390_v8 = vrot.slane %v9378_v4, 2 }
  0xb3   : > { %8321 = vmatmul.msk.f32.gmra.mxu1 %vm1605_vm4, %v1572_v16  ;;  %v496_v16 = vld [vmem:[%s8888_s30 + $0x40] sm:$0xff] }
  0xb4   : > { %529 = vst.msk [vmem:[#allocation2 + $0xa8] sm:$0xff] %vm441_vm1, %v496_v16 }
  0xb6   : > { %2379 = vrot.lane.b32.xlu1 %v2301_v17, %s8793_s15  ;;  %2203 = vrot.lane.b32.xlu0 %v2125_v18, %s8792_s14  ;;  %v497_v17 = vld [vmem:[%s8888_s30 + $0x48] sm:$0xff] }
  0xb7   : > { %2201 = vrot.lane.b32.xlu2 %v9302_v29, %s8792_s14  ;;  %530 = vst.msk [vmem:[#allocation2 + $0xb0] sm:$0xff] %vm441_vm1, %v497_v17 }
  0xb8   : > { %v1459_v35 = vpop.permute.xlu1 %1458  ;;  %v1283_v37 = vpop.permute.xlu0 %1282 }
  0xb9   : > { %v1541_v48 = vsel %vm441_vm1, %v9010_v25, %v1283_v37  ;;  %v1463_v49 = vpop.permute.xlu2 %1462  ;;  %v832_v25 = vrot.slane %v9323_v57, 2  ;;  %v2305_v37 = vrot.slane %v2030_v32, 2 }
  0xba   : > { %v1573_v55 = vsel %vm1035_vm5, %v1541_v48, %v1459_v35  ;;  %v9366_v35 = vrot.slane %v9298_v23, 2  ;;  %v2302_v48 = vrot.slane %v9296_v19, 2 }
  0xbb   : > { %8322 = vmatmul.msk.f32.gmra.mxu1 %vm1605_vm4, %v1573_v55  ;;  %v9347_v18 = vsel %vm826_vm3, %v832_v25, %v9333_v0  ;;  %v9375_v25 = vld [vmem:[#allocation2 + $0x87] sm:$0xff] }
  0xbe   : > { %2205 = vrot.lane.b32.xlu1 %v9319_v58, %s8792_s14  ;;  %909 = vrot.lane.b32.xlu0 %v831_v59, %s8793_s15 }
  0xbf   : > { %907 = vrot.lane.b32.xlu2 %v829_v63, %s8793_s15  ;;  %v659_v63 = vsel %vm649_vm2, %v9337_v5, %v658_v33 }
  0xc0   : > { %v1287_v7 = vpop.permute.xlu1 %1286  ;;  %v1461_v3 = vpop.permute.xlu0 %1460 }
  0xc1   : > { %v1291_v13 = vpop.permute.xlu2 %1290  ;;  %v1574_v14 = vsel %vm1035_vm5, %v1542_v9, %v1461_v3  ;;  %v1543_v15 = vsel %vm441_vm1, %v9017_v34, %v1287_v7  ;;  %v2306_v34 = vsel %vm826_vm3, %v9366_v35, %v2305_v37  ;;  %v9382_v7 = vsel %vm826_vm3, %v2302_v48, %v9366_v35 }
  0xc2   : > { %v1575_v59 = vsel %vm1035_vm5, %v1543_v15, %v1463_v49  ;;  %v2307_v49 = vrot.slane %v9375_v25, 2  ;;  %v2131_v9 = vrot.slane %v9375_v25, 1 }
  0xc3   : > { %8323 = vmatmul.msk.f32.gmra.mxu1 %vm1605_vm4, %v1574_v14  ;;  %v9394_v14 = vrot.slane %v9378_v4, 1 }
  0xc5   : > { %v9407_v37 = vsel %vm649_vm2, %v2131_v9, %v9394_v14 }
  0xc6   : > { %911 = vrot.lane.b32.xlu1 %v9347_v18, %s8793_s15  ;;  %734 = vrot.lane.b32.xlu0 %v9351_v30, %s8792_s14 }
  0xc7   : > { %732 = vrot.lane.b32.xlu2 %v654_v36, %s8792_s14  ;;  %v2129_v36 = vrot.slane %v2030_v32, 1 }
  0xc8   : > { %v1465_v40 = vpop.permute.xlu1 %1464  ;;  %v1289_v52 = vpop.permute.xlu0 %1288 }
  0xc9   : > { %v1469_v55 = vpop.permute.xlu2 %1468  ;;  %v1544_v3 = vsel %vm441_vm1, %v9043_v50, %v1289_v52  ;;  %v9403_v50 = vsel %vm826_vm3, %v2307_v49, %v9390_v8  ;;  %v2033_v52 = vld [vmem:[#allocation2 + $0x97] sm:$0x3]  ;;  %v2130_v48 = vsel %vm649_vm2, %v9308_v31, %v2129_v36 }
  0xca   : > { %v1576_v33 = vsel %vm1035_vm5, %v1544_v3, %v1465_v40  ;;  %v2134_v32 = vrot.slane %v2033_v52, 1  ;;  %v1079_v3 = vld [vmem:[%s14994_s1 + $0x58] sm:$0xff] }
  0xcb   : > { %8324 = vmatmul.msk.f32.gmra.mxu1 %vm1605_vm4, %v1575_v59 }
  0xcc   : > { %1915 = vmatpush.msrb.mxu1 %v1079_v3  ;;  %v2135_v36 = vsel %vm649_vm2, %v9394_v14, %v2134_v32 }
  0xce   : > { %736 = vrot.lane.b32.xlu1 %v659_v63, %s8792_s14  ;;  %2383 = vrot.lane.b32.xlu0 %v2306_v34, %s8793_s15  ;;  %v835_v63 = vrot.slane %v558_v28, 2  ;;  %v1545_v34 = vsel %vm441_vm1, %v9045_v51, %v1291_v13 }
  0xcf   : > { %2381 = vrot.lane.b32.xlu2 %v9382_v7, %s8793_s15 }
  0xd0   : > { %v1293_v16 = vpop.permute.xlu1 %1292  ;;  %v1467_v17 = vpop.permute.xlu0 %1466  ;;  %v836_v28 = vsel %vm826_vm3, %v9333_v0, %v835_v63 }
  0xd1   : > { %v9398_v15 = vpop.permute.xlu2 %1296  ;;  %v1577_v9 = vsel %vm1035_vm5, %v1545_v34, %v1467_v17  ;;  %v1546_v51 = vsel %vm441_vm1, %v9061_v61, %v1293_v16  ;;  %v9446_v61 = vld [vmem:[#allocation2 + $0xaf] sm:$0xff] }
  0xd2   : > { %v1578_v3 = vsel %vm1035_vm5, %v1546_v51, %v1469_v55  ;;  %v8384_v51 = vld [vmem:[%s14994_s1 + $0x118] sm:$0xff] }
  0xd3   : > { %8325 = vmatmul.msk.f32.gmra.mxu1 %vm1605_vm4, %v1576_v33  ;;  %v561_v33 = vld [vmem:[#allocation2 + $0x57] sm:$0x3]  ;;  %2650 = vmatpush.msra.mxu2 %v8384_v51  ;;  %v1548_v51 = vsel %vm441_vm1, %v9086_v22, %v9398_v15  ;;  %v9517_v22 = vld [vmem:[#allocation2 + $0xcf] sm:$0xff] }
  0xd4   : > { %v840_v13 = vrot.slane %v561_v33, 2  ;;  %v663_v17 = vrot.slane %v561_v33, 1  ;;  %v2310_v33 = vrot.slane %v2033_v52, 2  ;;  %v564_v15 = vld [vmem:[#allocation2 + $0x77] sm:$0x3] }
  0xd6   : > { %2385 = vrot.lane.b32.xlu1 %v9403_v50, %s8793_s15  ;;  %2209 = vrot.lane.b32.xlu0 %v9407_v37, %s8792_s14  ;;  %v841_v63 = vsel %vm826_vm3, %v9260_v56, %v840_v13  ;;  %v9454_v56 = vrot.slane %v9446_v61, 2  ;;  %v2036_v13 = vld [vmem:[#allocation2 + $0xb7] sm:$0x3] }
  0xd7   : > { %2207 = vrot.lane.b32.xlu2 %v2130_v48, %s8792_s14 }
  0xd8   : > { %v1471_v40 = vpop.permute.xlu1 %1470  ;;  %v1295_v59 = vpop.permute.xlu0 %1294 }
  0xd9   : > { %v9419_v49 = vpop.permute.xlu2 %1474  ;;  %v1547_v16 = vsel %vm441_vm1, %v9063_v62, %v1295_v59  ;;  %v1078_v62 = vld [vmem:[%s14994_s1 + $0x50] sm:$0xff] }
  0xda   : > { %v8383_v59 = vld [vmem:[%s14994_s1 + $0x110] sm:$0xff]  ;;  %1916 = vmatpush.msrb.mxu1 %v1078_v62 }
  0xdb   : > { %8326 = vmatmul.msk.f32.gmra.mxu1 %vm1605_vm4, %v1577_v9  ;;  %v664_v9 = vsel %vm649_vm2, %v9286_v11, %v663_v17  ;;  %v2311_v17 = vsel %vm826_vm3, %v9390_v8, %v2310_v33  ;;  %2651 = vmatpush.msra.mxu2 %v8383_v59  ;;  %v8381_v33 = vld [vmem:[%s14994_s1 + $0x100] sm:$0xff]  ;;  %v8380_v59 = vld [vmem:[%s14994_s1 + $0xf8] sm:$0xff] }
  0xde   : > { %2211 = vrot.lane.b32.xlu1 %v2135_v36, %s8792_s14  ;;  %915 = vrot.lane.b32.xlu0 %v9274_v6, %s8793_s15  ;;  %v9444_v6 = vld [vmem:[#allocation2 + $0xa7] sm:$0xff] }
  0xdf   : > { %913 = vrot.lane.b32.xlu2 %v836_v28, %s8793_s15  ;;  %v2312_v55 = vrot.slane %v9444_v6, 2 }
  0xe0   : > { %v1299_v48 = vpop.permute.xlu1 %1298  ;;  %v1473_v32 = vpop.permute.xlu0 %1472 }
  0xe1   : > { %v9436_v34 = vpop.permute.xlu2 %1302  ;;  %v9476_v52 = vsel %vm826_vm3, %v2312_v55, %v9454_v56 }
  0xe3   : > { %8327 = vmatmul.msk.f32.gmra.mxu1 %vm1605_vm4, %v1578_v3  ;;  %v2315_v3 = vrot.slane %v2036_v13, 2 }
  0xe6   : > { %917 = vrot.lane.b32.xlu1 %v841_v63, %s8793_s15  ;;  %740 = vrot.lane.b32.xlu0 %v664_v9, %s8792_s14  ;;  %v9489_v63 = vrot.slane %v9446_v61, 1  ;;  %v2139_v9 = vrot.slane %v2036_v13, 1  ;;  %v8379_v13 = vld [vmem:[%s14994_s1 + $0xf0] sm:$0xff] }
  0xe7   : > { %738 = vrot.lane.b32.xlu2 %v9302_v29, %s8792_s14  ;;  %v1579_v29 = vsel %vm1035_vm5, %v1547_v16, %v1471_v40  ;;  %v8382_v40 = vld [vmem:[%s14994_s1 + $0x108] sm:$0xff] }
  0xe8   : > { %v9458_v11 = vpop.permute.xlu1 %1476  ;;  %v9460_v36 = vpop.permute.xlu0 %1300  ;;  %2652 = vmatpush.msra.mxu2 %v8382_v40  ;;  %v2140_v40 = vsel %vm649_vm2, %v9489_v63, %v2139_v9  ;;  %v9531_v9 = vrot.slane %v9517_v22, 1 }
  0xe9   : > { %v9462_v28 = vpop.permute.xlu2 %1480  ;;  %v1550_v10 = vsel %vm441_vm1, %v9102_v38, %v9460_v36  ;;  %v567_v38 = vld [vmem:[#allocation2 + $0x97] sm:$0x3] }
  0xea   : > { %2653 = vmatpush.msra.mxu2 %v8381_v33 }
  0xeb   : > { %8328 = vmatmul.msk.f32.gmra.mxu1 %vm1605_vm4, %v1579_v29  ;;  %v1580_v29 = vsel %vm1035_vm5, %v1548_v51, %v1473_v32  ;;  %v8378_v32 = vld [vmem:[%s14994_s1 + $0xe8] sm:$0xff]  ;;  %v845_v51 = vrot.slane %v564_v15, 2 }
  0xec   : > { %2654 = vmatpush.msra.mxu2 %v8380_v59 }
  0xee   : > { %742 = vrot.lane.b32.xlu1 %v9319_v58, %s8792_s14  ;;  %2389 = vrot.lane.b32.xlu0 %v9476_v52, %s8793_s15  ;;  %v2136_v58 = vrot.slane %v9444_v6, 1 }
  0xef   : > { %2387 = vrot.lane.b32.xlu2 %v2311_v17, %s8793_s15  ;;  %v2316_v17 = vsel %vm826_vm3, %v9454_v56, %v2315_v3  ;;  %2655 = vmatpush.msra.mxu2 %v8379_v13  ;;  %v1549_v3 = vsel %vm441_vm1, %v9084_v20, %v1299_v48  ;;  %v8376_v20 = vld [vmem:[%s14994_s1 + $0xd8] sm:$0xff]  ;;  %v1077_v48 = vld [vmem:[%s14994_s1 + $0x48] sm:$0xff] }
  0xf0   : > { %v9492_v16 = vpop.permute.xlu1 %1304  ;;  %v9494_v55 = vpop.permute.xlu0 %1478  ;;  %v9521_v33 = vsel %vm649_vm2, %v2136_v58, %v9489_v63  ;;  %1917 = vmatpush.msrb.mxu1 %v1077_v48  ;;  %v1582_v48 = vsel %vm1035_vm5, %v1550_v10, %v9458_v11 }
  0xf1   : > { %v9503_v62 = vpop.permute.xlu2 %1308  ;;  %2656 = vmatpush.msra.mxu2 %v8378_v32  ;;  %v2143_v32 = vsel %vm649_vm2, %v1201_v12, %v9531_v9 }
  0xf3   : > { %8329 = vmatmul.msk.f32.gmra.mxu1 %vm1605_vm4, %v1580_v29  ;;  %v8377_v29 = vld [vmem:[%s14994_s1 + $0xe0] sm:$0xff] }
  0xf4   : > { %2657 = vmatpush.msra.mxu2 %v8377_v29  ;;  %v846_v29 = vsel %vm826_vm3, %v9366_v35, %v845_v51  ;;  %v8373_v51 = vld [vmem:[%s14994_s1 + $0xc0] sm:$0xff] }
  0xf6   : > { %2391 = vrot.lane.b32.xlu1 %v2316_v17, %s8793_s15  ;;  %2215 = vrot.lane.b32.xlu0 %v2140_v40, %s8792_s14  ;;  %v1581_v17 = vsel %vm1035_vm5, %v1549_v3, %v9419_v49  ;;  %v8375_v40 = vld [vmem:[%s14994_s1 + $0xd0] sm:$0xff]  ;;  %v8374_v49 = vld [vmem:[%s14994_s1 + $0xc8] sm:$0xff]  ;;  %v668_v3 = vrot.slane %v564_v15, 1  ;;  %v673_v15 = vrot.slane %v567_v38, 1 }
  0xf7   : > { %2213 = vrot.lane.b32.xlu2 %v9521_v33, %s8792_s14  ;;  %2658 = vmatpush.msra.mxu2 %v8376_v20 }
  0xf8   : > { %v9535_v58 = vpop.permute.xlu1 %1482  ;;  %v9537_v59 = vpop.permute.xlu0 %1306  ;;  %v669_v36 = vsel %vm649_vm2, %v9308_v31, %v668_v3  ;;  %v674_v3 = vsel %vm649_vm2, %v9394_v14, %v673_v15 }
  0xf9   : > { %v9542_v13 = vpop.permute.xlu2 %1486  ;;  %2659 = vmatpush.msra.mxu2 %v8375_v40 }
  0xfb   : > { %8330 = vmatmul.msk.f32.gmra.mxu1 %vm1605_vm4, %v1581_v17  ;;  %2660 = vmatpush.msra.mxu2 %v8374_v49  ;;  %v9591_v17 = vrot.slane %v9517_v22, 2  ;;  %v1076_v49 = vld [vmem:[%s14994_s1 + $0x40] sm:$0xff] }
  0xfc   : > { %1918 = vmatpush.msrb.mxu1 %v1076_v49  ;;  %v2042_v49 = vld [vmem:[#allocation2 + $0xf7] sm:$0x3] }
  0xfd   : > { %2661 = vmatpush.msra.mxu2 %v8373_v51 }
  0xfe   : > { %2217 = vrot.lane.b32.xlu1 %v2143_v32, %s8792_s14  ;;  %921 = vrot.lane.b32.xlu0 %v846_v29, %s8793_s15  ;;  %v9598_v29 = vld [vmem:[#allocation2 + $0xc7] sm:$0xff] }
  0xff   : > { %919 = vrot.lane.b32.xlu2 %v9382_v7, %s8793_s15  ;;  %v2039_v7 = vld [vmem:[#allocation2 + $0xd7] sm:$0x3]  ;;  %v2317_v31 = vrot.slane %v9598_v29, 2 }
 0x100   : > { %v9572_v12 = vpop.permute.xlu1 %1310  ;;  %v9574_v35 = vpop.permute.xlu0 %1484  ;;  %v2320_v40 = vrot.slane %v2039_v7, 2 }
 0x101   : > { %v9579_v20 = vpop.permute.xlu2 %1314 }
 0x102   : > { %v2321_v51 = vsel %vm826_vm3, %v9591_v17, %v2320_v40  ;;  %v2144_v40 = vrot.slane %v2039_v7, 1 }
 0x103   : > { %8331 = vmatmul.msk.f32.gmra.mxu1 %vm1605_vm4, %v1582_v48  ;;  %v9616_v48 = vld [vmem:[#allocation2 + $0xef] sm:$0xff] }
 0x104   : > { %v9626_v14 = vrot.slane %v9616_v48, 2  ;;  %v2145_v7 = vsel %vm649_vm2, %v9531_v9, %v2144_v40 }
 0x106   : > { %923 = vrot.lane.b32.xlu1 %v9403_v50, %s8793_s15  ;;  %746 = vrot.lane.b32.xlu0 %v9407_v37, %s8792_s14  ;;  %v1551_v50 = vsel %vm441_vm1, %v9104_v39, %v9436_v34  ;;  %v2319_v39 = vsel %vm826_vm3, %v2317_v31, %v9591_v17  ;;  %v1552_v34 = vsel %vm441_vm1, %v9121_v53, %v9492_v16 }
 0x107   : > { %744 = vrot.lane.b32.xlu2 %v669_v36, %s8792_s14  ;;  %v1583_v10 = vsel %vm1035_vm5, %v1551_v50, %v9494_v55  ;;  %v9629_v55 = vrot.slane %v9616_v48, 1  ;;  %v1584_v50 = vsel %vm1035_vm5, %v1552_v34, %v9462_v28  ;;  %v2324_v53 = vsel %vm826_vm3, %v1382_v44, %v9626_v14 }
 0x108   : > { %v9594_v11 = vpop.permute.xlu1 %1488  ;;  %v9596_v32 = vpop.permute.xlu0 %1312  ;;  %v1553_v28 = vsel %vm441_vm1, %v9123_v54, %v9537_v59  ;;  %v2149_v44 = vrot.slane %v2042_v49, 1  ;;  %v570_v59 = vld [vmem:[#allocation2 + $0xb7] sm:$0x3] }
 0x109   : > { %v9604_v37 = vpop.permute.xlu2 %1492  ;;  %v2148_v16 = vsel %vm649_vm2, %v1206_v27, %v9629_v55  ;;  %v678_v40 = vrot.slane %v570_v59, 1 }
 0x10a   : > { %v2150_v54 = vsel %vm649_vm2, %v9629_v55, %v2149_v44 }
 0x10b   : > { %8332 = vmatmul.msk.f32.gmra.mxu1 %vm1605_vm4, %v1583_v10  ;;  %v850_v10 = vrot.slane %v567_v38, 2  ;;  %v855_v38 = vrot.slane %v570_v59, 2 }
 0x10d   : > { %v851_v34 = vsel %vm826_vm3, %v9390_v8, %v850_v10  ;;  %v9699_v10 = vld [vmem:[#allocation2 + $0x10f] sm:$0xff] }
 0x10e   : > { %748 = vrot.lane.b32.xlu1 %v674_v3, %s8792_s14  ;;  %2395 = vrot.lane.b32.xlu0 %v2321_v51, %s8793_s15  ;;  %v1075_v51 = vld [vmem:[%s14994_s1 + $0x38] sm:$0xff] }
 0x10f   : > { %2393 = vrot.lane.b32.xlu2 %v2319_v39, %s8793_s15  ;;  %v1585_v39 = vsel %vm1035_vm5, %v1553_v28, %v9535_v58  ;;  %1919 = vmatpush.msrb.mxu1 %v1075_v51  ;;  %v856_v28 = vsel %vm826_vm3, %v9454_v56, %v855_v38  ;;  %v1074_v56 = vld [vmem:[%s14994_s1 + $0x30] sm:$0xff] }
 0x110   : > { %v9632_v36 = vpop.permute.xlu1 %1316  ;;  %v9634_v15 = vpop.permute.xlu0 %1490 }
 0x111   : > { %v2202_v31 = vpop.permute.xlu2 %2201  ;;  %1920 = vmatpush.msrb.mxu1 %v1074_v56 }
 0x112   : > { %v2473_v58 = vsel %vm441_vm1, %v9249_v43, %v2202_v31  ;;  %v679_v31 = vsel %vm649_vm2, %v9489_v63, %v678_v40  ;;  %v1555_v63 = vsel %vm441_vm1, %v9162_v21, %v9572_v12 }
 0x113   : > { %8333 = vmatmul.msk.f32.gmra.mxu1 %vm1605_vm4, %v1584_v50  ;;  %v1587_v12 = vsel %vm1035_vm5, %v1555_v63, %v9542_v13  ;;  %v1556_v13 = vsel %vm441_vm1, %v9192_v45, %v9596_v32  ;;  %v1073_v45 = vld [vmem:[%s14994_s1 + $0x28] sm:$0xff] }
 0x114   : > { %1921 = vmatpush.msrb.mxu1 %v1073_v45 }
 0x116   : > { %2397 = vrot.lane.b32.xlu1 %v2324_v53, %s8793_s15  ;;  %2221 = vrot.lane.b32.xlu0 %v2148_v16, %s8792_s14  ;;  %v1554_v16 = vsel %vm441_vm1, %v9166_v26, %v9503_v62  ;;  %v9695_v26 = vld [vmem:[#allocation2 + $0xc7] sm:$0xff] }
 0x117   : > { %2219 = vrot.lane.b32.xlu2 %v2145_v7, %s8792_s14  ;;  %v9697_v62 = vld [vmem:[#allocation2 + $0x107] sm:$0xff] }
 0x118   : > { %v9655_v24 = vpop.permute.xlu1 %1494  ;;  %v9657_v27 = vpop.permute.xlu0 %1318  ;;  %v2327_v51 = vrot.slane %v9697_v62, 2  ;;  %v2151_v56 = vrot.slane %v9697_v62, 1 }
 0x119   : > { %v9659_v3 = vpop.permute.xlu2 %907 }
 0x11b   : > { %8334 = vmatmul.msk.f32.gmra.mxu1 %vm1605_vm4, %v1585_v39  ;;  %v9712_v39 = vrot.slane %v9699_v10, 2 }
 0x11e   : > { %2223 = vrot.lane.b32.xlu1 %v2150_v54, %s8792_s14  ;;  %927 = vrot.lane.b32.xlu0 %v9476_v52, %s8793_s15  ;;  %v1586_v52 = vsel %vm1035_vm5, %v1554_v16, %v9574_v35  ;;  %v680_v35 = vrot.slane %v9695_v26, 1 }
 0x11f   : > { %925 = vrot.lane.b32.xlu2 %v851_v34, %s8793_s15  ;;  %v2325_v34 = vrot.slane %v2042_v49, 2  ;;  %v2045_v49 = vld [vmem:[#allocation2 + $0x117] sm:$0x3] }
 0x120   : > { %v9677_v50 = vpop.permute.xlu1 %730  ;;  %v2378_v53 = vpop.permute.xlu0 %2377  ;;  %v2330_v16 = vrot.slane %v2045_v49, 2 }
 0x121   : > { %v2505_v8 = vsel %vm1035_vm5, %v2473_v58, %v2378_v53  ;;  %v9683_v7 = vpop.permute.xlu2 %732  ;;  %v9692_v44 = vpop.f32.mrf.mxu1  ;;  %v682_v58 = vsel %vm649_vm2, %v680_v35, %v9531_v9 }
 0x122   : > { %8385 = vmatmul.msk.f32.vlgmr.msra.gmra.mxu2 %vm1605_vm4, %v2505_v8  ;;  %v9740_v8 = vrot.slane %v9699_v10, 1 }
 0x123   : > { %8335 = vmatmul.msk.f32.gmra.mxu1 %vm1605_vm4, %v1586_v52  ;;  %v2154_v52 = vrot.slane %v2045_v49, 1 }
 0x126   : > { %929 = vrot.lane.b32.xlu1 %v856_v28, %s8793_s15  ;;  %752 = vrot.lane.b32.xlu0 %v679_v31, %s8792_s14 }
 0x127   : > { %750 = vrot.lane.b32.xlu2 %v9521_v33, %s8792_s14  ;;  %v9726_v33 = vsel %vm826_vm3, %v2327_v51, %v9712_v39  ;;  %v1588_v51 = vsel %vm1035_vm5, %v1556_v13, %v9594_v11 }
 0x128   : > { %v2380_v54 = vpop.permute.xlu1 %2379  ;;  %v2204_v59 = vpop.permute.xlu0 %2203 }
 0x129   : > { %v2474_v38 = vsel %vm441_vm1, %v9251_v47, %v2204_v59  ;;  %v2382_v40 = vpop.permute.xlu2 %2381  ;;  %v2326_v47 = vsel %vm826_vm3, %v9626_v14, %v2325_v34  ;;  %v9731_v53 = vpop.f32.mrf.mxu1  ;;  %v2155_v59 = vsel %vm649_vm2, %v9740_v8, %v2154_v52  ;;  %v9760_v34 = vld [vmem:[#allocation2 + $0x127] sm:$0xff] }
 0x12a   : > { %v2506_v21 = vsel %vm1035_vm5, %v2474_v38, %v2380_v54  ;;  %v2331_v54 = vsel %vm826_vm3, %v9712_v39, %v2330_v16  ;;  %v9762_v38 = vld [vmem:[#allocation2 + $0x12f] sm:$0xff]  ;;  %v2156_v11 = vrot.slane %v9760_v34, 1  ;;  %v857_v16 = vrot.slane %v9695_v26, 2  ;;  %v1072_v52 = vld [vmem:[%s14994_s1 + $0x20] sm:$0xff] }
 0x12b   : > { %8386 = vmatmul.msk.f32.gmra.mxu2 %vm1605_vm4, %v2506_v21  ;;  %8336 = vmatmul.msk.f32.gmra.mxu1 %vm1605_vm4, %v1587_v12  ;;  %v573_v21 = vld [vmem:[#allocation2 + $0xd7] sm:$0x3]  ;;  %v9772_v12 = vrot.slane %v9762_v38, 1 }
 0x12c   : > { %1922 = vmatpush.msrb.mxu1 %v1072_v52 }
 0x12e   : > { %754 = vrot.lane.b32.xlu1 %v682_v58, %s8792_s14  ;;  %2401 = vrot.lane.b32.xlu0 %v9726_v33, %s8793_s15  ;;  %v860_v58 = vrot.slane %v573_v21, 2 }
 0x12f   : > { %2399 = vrot.lane.b32.xlu2 %v2326_v47, %s8793_s15 }
 0x130   : > { %v2206_v28 = vpop.permute.xlu1 %2205  ;;  %v9743_v31 = vpop.permute.xlu0 %909 }
 0x131   : > { %v2475_v63 = vsel %vm441_vm1, %v9296_v19, %v2206_v28  ;;  %v2208_v35 = vpop.permute.xlu2 %2207  ;;  %v9774_v49 = vpop.f32.mrf.mxu1  ;;  %v1557_v28 = vsel %vm441_vm1, %v9194_v46, %v9579_v20  ;;  %v9803_v46 = vld [vmem:[#allocation2 + $0xe7] sm:$0xff]  ;;  %v859_v20 = vsel %vm826_vm3, %v857_v16, %v9591_v17 }
 0x132   : > { %v2507_v32 = vsel %vm1035_vm5, %v2475_v63, %v2382_v40  ;;  %v9766_v40 = vsel %vm649_vm2, %v2151_v56, %v9740_v8  ;;  %v1071_v63 = vld [vmem:[%s14994_s1 + $0x18] sm:$0xff]  ;;  %v1589_v45 = vsel %vm1035_vm5, %v1557_v28, %v9634_v15  ;;  %v1069_v15 = vld [vmem:[%s14994_s1 + $0x8] sm:$0xff]  ;;  %v683_v28 = vrot.slane %v573_v21, 1 }
 0x133   : > { %8387 = vmatmul.msk.f32.gmra.mxu2 %vm1605_vm4, %v2507_v32  ;;  %8337 = vmatmul.msk.f32.gmra.mxu1 %vm1605_vm4, %v1588_v51  ;;  %v9798_v32 = vsel %vm649_vm2, %v2156_v11, %v9772_v12  ;;  %v861_v51 = vsel %vm826_vm3, %v9591_v17, %v860_v58  ;;  %v862_v17 = vrot.slane %v9803_v46, 2  ;;  %v685_v11 = vrot.slane %v9803_v46, 1  ;;  %v576_v21 = vld [vmem:[#allocation2 + $0xf7] sm:$0x3] }
 0x134   : > { %1923 = vmatpush.msrb.mxu1 %v1071_v63  ;;  %v2476_v58 = vsel %vm441_vm1, %v9298_v23, %v2208_v35 }
 0x135   : > { %v687_v35 = vsel %vm649_vm2, %v685_v11, %v9629_v55 }
 0x136   : > { %2403 = vrot.lane.b32.xlu1 %v2331_v54, %s8793_s15  ;;  %2227 = vrot.lane.b32.xlu0 %v2155_v59, %s8792_s14  ;;  %v1070_v54 = vld [vmem:[%s14994_s1 + $0x10] sm:$0xff]  ;;  %v1558_v59 = vsel %vm441_vm1, %v9216_v1, %v9632_v36  ;;  %v1068_v1 = vld [vmem:[%s14994_s1] sm:$0xff]  ;;  %v864_v36 = vsel %vm826_vm3, %v862_v17, %v9626_v14 }
 0x137   : > { %2225 = vrot.lane.b32.xlu2 %v9766_v40, %s8792_s14  ;;  %1924 = vmatpush.msrb.mxu1 %v1070_v54  ;;  %v1590_v23 = vsel %vm1035_vm5, %v1558_v59, %v9604_v37  ;;  %v684_v54 = vsel %vm649_vm2, %v9531_v9, %v683_v28  ;;  %v1559_v37 = vsel %vm441_vm1, %v9218_v2, %v9657_v27  ;;  %v9850_v59 = vrot.slane %v9762_v38, 2 }
 0x138   : > { %v9778_v47 = vpop.permute.xlu1 %911  ;;  %v9780_v13 = vpop.permute.xlu0 %734  ;;  %v2332_v9 = vrot.slane %v9760_v34, 2  ;;  %v1591_v2 = vsel %vm1035_vm5, %v1559_v37, %v9655_v24  ;;  %v1003_v24 = vsel %vm441_vm1, %v9244_v41, %v9677_v50 }
 0x139   : > { %v9789_v56 = vpop.permute.xlu2 %913  ;;  %1925 = vmatpush.msrb.mxu1 %v1069_v15  ;;  %v688_v15 = vrot.slane %v576_v21, 1 }
 0x13b   : > { %8338 = vmatmul.msk.f32.gmra.mxu1 %vm1605_vm4, %v1589_v45  ;;  %v9827_v45 = vpop.f32.mrf.mxu1  ;;  %v689_v27 = vsel %vm649_vm2, %v9629_v55, %v688_v15 }
 0x13c   : > { %1926 = vmatpush.msrb.mxu1 %v1068_v1 }
 0x13e   : > { %2229 = vrot.lane.b32.xlu1 %v9798_v32, %s8792_s14  ;;  %933 = vrot.lane.b32.xlu0 %v861_v51, %s8793_s15 }
 0x13f   : > { %931 = vrot.lane.b32.xlu2 %v859_v20, %s8793_s15  ;;  %v2048_v20 = vld [vmem:[#allocation2 + $0x137] sm:$0x3] }
 0x140   : > { %v9824_v16 = vpop.permute.xlu1 %736  ;;  %v2384_v52 = vpop.permute.xlu0 %2383  ;;  %v2335_v17 = vrot.slane %v2048_v20, 2  ;;  %v2159_v41 = vrot.slane %v2048_v20, 1 }
 0x141   : > { %v2508_v63 = vsel %vm1035_vm5, %v2476_v58, %v2384_v52  ;;  %v9829_v51 = vpop.permute.xlu2 %738 }
 0x142   : > { %8388 = vmatmul.msk.f32.gmra.mxu2 %vm1605_vm4, %v2508_v63  ;;  %v2336_v1 = vsel %vm826_vm3, %v9850_v59, %v2335_v17  ;;  %v2160_v20 = vsel %vm649_vm2, %v9772_v12, %v2159_v41  ;;  %v2051_v41 = vld [vmem:[#allocation2 + $0x157] sm:$0x3] }
 0x143   : > { %8339 = vmatmul.msk.f32.gmra.mxu1 %vm1605_vm4, %v1590_v23  ;;  %v9864_v23 = vpop.f32.mrf.mxu1 }
 0x146   : > { %935 = vrot.lane.b32.xlu1 %v864_v36, %s8793_s15  ;;  %758 = vrot.lane.b32.xlu0 %v687_v35, %s8792_s14  ;;  %v9867_v36 = vld [vmem:[#allocation2 + $0x147] sm:$0xff]  ;;  %v9869_v35 = vld [vmem:[#allocation2 + $0x14f] sm:$0xff] }
 0x147   : > { %756 = vrot.lane.b32.xlu2 %v684_v54, %s8792_s14  ;;  %v9873_v54 = vsel %vm826_vm3, %v2332_v9, %v9850_v59  ;;  %v2337_v55 = vrot.slane %v9867_v36, 2  ;;  %v9882_v37 = vrot.slane %v9869_v35, 2  ;;  %v2161_v15 = vrot.slane %v9867_v36, 1 }
 0x148   : > { %v2386_v11 = vpop.permute.xlu1 %2385  ;;  %v2210_v58 = vpop.permute.xlu0 %2209  ;;  %v9886_v17 = vrot.slane %v9869_v35, 1 }
 0x149   : > { %v2477_v52 = vsel %vm441_vm1, %v9375_v25, %v2210_v58  ;;  %v2388_v28 = vpop.permute.xlu2 %2387 }
 0x14a   : > { %v2509_v63 = vsel %vm1035_vm5, %v2477_v52, %v2386_v11  ;;  %v1036_v52 = vsel %vm1035_vm5, %v1003_v24, %v9659_v3  ;;  %v865_v24 = vrot.slane %v576_v21, 2  ;;  %v2340_v21 = vrot.slane %v2051_v41, 2 }
 0x14b   : > { %8389 = vmatmul.msk.f32.gmra.mxu2 %vm1605_vm4, %v2509_v63  ;;  %8340 = vmatmul.msk.f32.gmra.mxu1 %vm1605_vm4, %v1591_v2  ;;  %v9899_v2 = vsel %vm826_vm3, %v2337_v55, %v9882_v37  ;;  %v1004_v55 = vsel %vm441_vm1, %v9247_v42, %v9683_v7  ;;  %v1005_v42 = vsel %vm441_vm1, %v9323_v57, %v9780_v13  ;;  %v1082_v13 = vld [vmem:[#allocation2 + $0x37] sm:$0x3] }
 0x14c   : > { %v1038_v57 = vsel %vm1035_vm5, %v1005_v42, %v9778_v47 }
 0x14e   : > { %760 = vrot.lane.b32.xlu1 %v689_v27, %s8792_s14  ;;  %2407 = vrot.lane.b32.xlu0 %v2336_v1, %s8793_s15  ;;  %v9903_v27 = vsel %vm649_vm2, %v2161_v15, %v9886_v17  ;;  %v9909_v1 = vpop.f32.mrf.mxu1 }
 0x14f   : > { %2405 = vrot.lane.b32.xlu2 %v9873_v54, %s8793_s15 }
 0x150   : > { %v2212_v11 = vpop.permute.xlu1 %2211  ;;  %v9890_v58 = vpop.permute.xlu0 %915 }
 0x151   : > { %v2478_v50 = vsel %vm441_vm1, %v9378_v4, %v2212_v11  ;;  %v2214_v9 = vpop.permute.xlu2 %2213  ;;  %v1037_v11 = vsel %vm1035_vm5, %v1004_v55, %v9743_v31 }
 0x152   : > { %v2510_v63 = vsel %vm1035_vm5, %v2478_v50, %v2388_v28  ;;  %v866_v50 = vsel %vm826_vm3, %v9626_v14, %v865_v24  ;;  %v2479_v31 = vsel %vm441_vm1, %v9444_v6, %v2214_v9  ;;  %v1006_v9 = vsel %vm441_vm1, %v9325_v60, %v9824_v16  ;;  %v9974_v16 = vld [vmem:[#allocation2 + $0x167] sm:$0xff] }
 0x153   : > { %8390 = vmatmul.msk.f32.gmra.mxu2 %vm1605_vm4, %v2510_v63  ;;  %8341 = vmatmul.msk.f32.vlgmr.msrb.gmra.mxu1 %vm1605_vm4, %v1036_v52  ;;  %v1179_v24 = vrot.slane %v1082_v13, 1 }
 0x155   : > { %v1180_v60 = vsel %vm649_vm2, %v9337_v5, %v1179_v24  ;;  %v1007_v24 = vsel %vm441_vm1, %v9249_v43, %v9829_v51  ;;  %v10007_v43 = vld [vmem:[#allocation2 + $0x47] sm:$0xff] }
 0x156   : > { %2409 = vrot.lane.b32.xlu1 %v9899_v2, %s8793_s15  ;;  %2233 = vrot.lane.b32.xlu0 %v9903_v27, %s8792_s14  ;;  %v9937_v7 = vpop.f32.mrf.mxu1 }
 0x157   : > { %2231 = vrot.lane.b32.xlu2 %v2160_v20, %s8792_s14  ;;  %v579_v20 = vld [vmem:[#allocation2 + $0x117] sm:$0x3] }
 0x158   : > { %v9916_v3 = vpop.permute.xlu1 %917  ;;  %v9918_v28 = vpop.permute.xlu0 %740  ;;  %v870_v55 = vrot.slane %v579_v20, 2 }
 0x159   : > { %v9923_v15 = vpop.permute.xlu2 %919 }
 0x15b   : > { %8342 = vmatmul.msk.f32.gmra.mxu1 %vm1605_vm4, %v1037_v11 }
 0x15e   : > { %1256 = vrot.lane.b32.xlu1 %v9351_v30, %s8792_s14  ;;  %939 = vrot.lane.b32.xlu0 %v9726_v33, %s8793_s15  ;;  %v2341_v33 = vsel %vm826_vm3, %v9882_v37, %v2340_v21  ;;  %v9961_v42 = vpop.f32.mrf.mxu1 }
 0x15f   : > { %937 = vrot.lane.b32.xlu2 %v866_v50, %s8793_s15  ;;  %v2164_v50 = vrot.slane %v2051_v41, 1  ;;  %v9976_v41 = vld [vmem:[#allocation2 + $0x16f] sm:$0xff] }
 0x160   : > { %v9942_v52 = vpop.permute.xlu1 %742  ;;  %v2390_v14 = vpop.permute.xlu0 %2389  ;;  %v9984_v5 = vrot.slane %v9976_v41, 2 }
 0x161   : > { %v2511_v30 = vsel %vm1035_vm5, %v2479_v31, %v2390_v14  ;;  %v9945_v63 = vpop.permute.xlu2 %744 }
 0x162   : > { %8391 = vmatmul.msk.f32.gmra.mxu2 %vm1605_vm4, %v2511_v30  ;;  %v2165_v30 = vsel %vm649_vm2, %v9886_v17, %v2164_v50 }
 0x163   : > { %8343 = vmatmul.msk.f32.gmra.mxu1 %vm1605_vm4, %v1038_v57  ;;  %v1355_v57 = vrot.slane %v1082_v13, 2 }
 0x166   : > { %2411 = vrot.lane.b32.xlu1 %v2341_v33, %s8793_s15  ;;  %1432 = vrot.lane.b32.xlu0 %v9347_v18, %s8793_s15  ;;  %v1039_v18 = vsel %vm1035_vm5, %v1006_v9, %v9789_v56  ;;  %v2342_v56 = vrot.slane %v9974_v16, 2  ;;  %v693_v9 = vrot.slane %v579_v20, 1  ;;  %v9997_v13 = vpop.f32.mrf.mxu1  ;;  %v1356_v20 = vsel %vm826_vm3, %v9333_v0, %v1355_v57  ;;  %v2054_v57 = vld [vmem:[#allocation2 + $0x177] sm:$0x3] }
 0x167   : > { %762 = vrot.lane.b32.xlu2 %v9766_v40, %s8792_s14  ;;  %v871_v40 = vsel %vm826_vm3, %v9712_v39, %v870_v55 }
 0x168   : > { %v2392_v47 = vpop.permute.xlu1 %2391  ;;  %v2216_v11 = vpop.permute.xlu0 %2215  ;;  %v694_v51 = vsel %vm649_vm2, %v9740_v8, %v693_v9  ;;  %v2166_v8 = vrot.slane %v9974_v16, 1 }
 0x169   : > { %v2480_v21 = vsel %vm441_vm1, %v9446_v61, %v2216_v11  ;;  %v2394_v31 = vpop.permute.xlu2 %2393  ;;  %v1040_v11 = vsel %vm1035_vm5, %v1007_v24, %v9890_v58  ;;  %v8722_v58 = vld [vmem:[#allocation2 + $0x4f] sm:$0xff]  ;;  %v2345_v24 = vrot.slane %v2054_v57, 2 }
 0x16a   : > { %v2512_v14 = vsel %vm1035_vm5, %v2480_v21, %v2392_v47  ;;  %v10001_v21 = vsel %vm826_vm3, %v2342_v56, %v9984_v5  ;;  %v1008_v0 = vsel %vm441_vm1, %v8722_v58, %v9918_v28 }
 0x16b   : > { %8392 = vmatmul.msk.f32.gmra.mxu2 %vm1605_vm4, %v2512_v14  ;;  %8344 = vmatmul.msk.f32.gmra.mxu1 %vm1605_vm4, %v1039_v18  ;;  %v1041_v56 = vsel %vm1035_vm5, %v1008_v0, %v9916_v3  ;;  %v1009_v3 = vsel %vm441_vm1, %v9296_v19, %v9942_v52  ;;  %v2346_v52 = vsel %vm826_vm3, %v9984_v5, %v2345_v24  ;;  %v2169_v24 = vrot.slane %v2054_v57, 1 }
 0x16c   : > { %v1042_v19 = vsel %vm1035_vm5, %v1009_v3, %v9923_v15 }
 0x16e   : > { %1258 = vrot.lane.b32.xlu1 %v1180_v60, %s8792_s14  ;;  %941 = vrot.lane.b32.xlu0 %v871_v40, %s8793_s15  ;;  %v10025_v40 = vrot.slane %v9976_v41, 1  ;;  %v10037_v9 = vpop.f32.mrf.mxu1 }
 0x16f   : > { %2235 = vrot.lane.b32.xlu2 %v2165_v30, %s8792_s14 }
 0x170   : > { %v2218_v39 = vpop.permute.xlu1 %2217  ;;  %v9987_v33 = vpop.permute.xlu0 %921 }
 0x171   : > { %v2481_v55 = vsel %vm441_vm1, %v9598_v29, %v2218_v39  ;;  %v2220_v47 = vpop.permute.xlu2 %2219  ;;  %v10009_v29 = vld [vmem:[#allocation2 + $0x4f] sm:$0xff]  ;;  %v10035_v39 = vsel %vm649_vm2, %v2166_v8, %v10025_v40 }
 0x172   : > { %v2513_v50 = vsel %vm1035_vm5, %v2481_v55, %v2394_v31  ;;  %v1181_v31 = vrot.slane %v10007_v43, 1  ;;  %v1182_v18 = vrot.slane %v10009_v29, 1  ;;  %v1357_v55 = vrot.slane %v10007_v43, 2 }
 0x173   : > { %8393 = vmatmul.msk.f32.gmra.mxu2 %vm1605_vm4, %v2513_v50  ;;  %8345 = vmatmul.msk.f32.gmra.mxu1 %vm1605_vm4, %v1040_v11  ;;  %v1358_v11 = vrot.slane %v10009_v29, 2  ;;  %v2482_v50 = vsel %vm441_vm1, %v9517_v22, %v2220_v47  ;;  %v582_v47 = vld [vmem:[#allocation2 + $0x137] sm:$0x3] }
 0x174   : > { %v1183_v28 = vsel %vm649_vm2, %v1181_v31, %v1182_v18  ;;  %v1085_v31 = vld [vmem:[#allocation2 + $0x57] sm:$0x3] }
 0x175   : > { %v1359_v0 = vsel %vm826_vm3, %v1357_v55, %v1358_v11 }
 0x176   : > { %2413 = vrot.lane.b32.xlu1 %v10001_v21, %s8793_s15  ;;  %1434 = vrot.lane.b32.xlu0 %v1356_v20, %s8793_s15  ;;  %v10063_v8 = vpop.f32.mrf.mxu1 }
 0x177   : > { %764 = vrot.lane.b32.xlu2 %v694_v51, %s8792_s14  ;;  %15017 = vst [vmem:[#allocation3_spill] sm:$0xff] %v10063_v8  ;;  %v10078_v8 = vld [vmem:[#allocation2 + $0x187] sm:$0xff] }
 0x178   : > { %v10021_v14 = vpop.permute.xlu1 %923  ;;  %v747_v60 = vpop.permute.xlu0 %746 }
 0x179   : > { %v10027_v30 = vpop.permute.xlu2 %925 }
 0x17b   : > { %8346 = vmatmul.msk.f32.gmra.mxu1 %vm1605_vm4, %v1041_v56  ;;  %v1184_v56 = vrot.slane %v1085_v31, 1 }
 0x17e   : > { %1260 = vrot.lane.b32.xlu1 %v1183_v28, %s8792_s14  ;;  %943 = vrot.lane.b32.xlu0 %v9873_v54, %s8793_s15  ;;  %v875_v28 = vrot.slane %v582_v47, 2 }
 0x17f   : > { %2237 = vrot.lane.b32.xlu2 %v10035_v39, %s8792_s14 }
 0x180   : > { %v749_v20 = vpop.permute.xlu1 %748  ;;  %v2396_v51 = vpop.permute.xlu0 %2395  ;;  %v876_v57 = vsel %vm826_vm3, %v9850_v59, %v875_v28 }
 0x181   : > { %v2514_v58 = vsel %vm1035_vm5, %v2482_v50, %v2396_v51  ;;  %v10052_v54 = vpop.permute.xlu2 %750  ;;  %v8723_v50 = vld [vmem:[#allocation2 + $0x6f] sm:$0xff]  ;;  %v8724_v51 = vld [vmem:[#allocation2 + $0xe7] sm:$0xff] }
 0x182   : > { %8394 = vmatmul.msk.f32.gmra.mxu2 %vm1605_vm4, %v2514_v58  ;;  %v1010_v55 = vsel %vm441_vm1, %v8723_v50, %v9945_v63  ;;  %v10080_v63 = vld [vmem:[#allocation2 + $0x18f] sm:$0xff]  ;;  %v698_v50 = vrot.slane %v582_v47, 1  ;;  %v10107_v47 = vld [vmem:[#allocation2 + $0x67] sm:$0xff] }
 0x183   : > { %8347 = vmatmul.msk.f32.gmra.mxu1 %vm1605_vm4, %v1042_v19  ;;  %v10090_v59 = vrot.slane %v10080_v63, 2 }
 0x186   : > { %2415 = vrot.lane.b32.xlu1 %v2346_v52, %s8793_s15  ;;  %1436 = vrot.lane.b32.xlu0 %v1359_v0, %s8793_s15  ;;  %v1043_v52 = vsel %vm1035_vm5, %v1010_v55, %v9987_v33  ;;  %v1011_v33 = vsel %vm441_vm1, %v9375_v25, %v747_v60  ;;  %v10093_v55 = vpop.f32.mrf.mxu1 }
 0x187   : > { %766 = vrot.lane.b32.xlu2 %v9798_v32, %s8792_s14  ;;  %v1185_v32 = vsel %vm649_vm2, %v1182_v18, %v1184_v56  ;;  %v2347_v18 = vrot.slane %v10078_v8, 2  ;;  %v1360_v56 = vrot.slane %v1085_v31, 2  ;;  %15018 = vst [vmem:[#allocation4_spill] sm:$0xff] %v10093_v55  ;;  %v1044_v25 = vsel %vm1035_vm5, %v1011_v33, %v10021_v14 }
 0x188   : > { %v2398_v15 = vpop.permute.xlu1 %2397  ;;  %v2222_v3 = vpop.permute.xlu0 %2221  ;;  %v1012_v14 = vsel %vm441_vm1, %v9378_v4, %v749_v20  ;;  %v2057_v20 = vld [vmem:[#allocation2 + $0x197] sm:$0x3] }
 0x189   : > { %v2483_v58 = vsel %vm441_vm1, %v8724_v51, %v2222_v3  ;;  %v2400_v19 = vpop.permute.xlu2 %2399  ;;  %v2170_v3 = vsel %vm649_vm2, %v10025_v40, %v2169_v24  ;;  %v10102_v60 = vsel %vm826_vm3, %v2347_v18, %v10090_v59  ;;  %v1361_v31 = vsel %vm826_vm3, %v1358_v11, %v1360_v56 }
 0x18a   : > { %v2515_v0 = vsel %vm1035_vm5, %v2483_v58, %v2398_v15  ;;  %v1186_v11 = vrot.slane %v10107_v47, 1  ;;  %v1045_v18 = vsel %vm1035_vm5, %v1012_v14, %v10027_v30 }
 0x18b   : > { %8395 = vmatmul.msk.f32.gmra.mxu2 %vm1605_vm4, %v2515_v0  ;;  %8348 = vmatmul.msk.f32.gmra.mxu1 %vm1605_vm4, %v1043_v52  ;;  %v10109_v52 = vld [vmem:[#allocation2 + $0x6f] sm:$0xff] }
 0x18c   : > { %v1187_v0 = vrot.slane %v10109_v52, 1  ;;  %v1363_v30 = vrot.slane %v10109_v52, 2 }
 0x18e   : > { %1262 = vrot.lane.b32.xlu1 %v1185_v32, %s8792_s14  ;;  %945 = vrot.lane.b32.xlu0 %v876_v57, %s8793_s15  ;;  %v10127_v56 = vpop.f32.mrf.mxu1  ;;  %v1188_v4 = vsel %vm649_vm2, %v1186_v11, %v1187_v0 }
 0x18f   : > { %2239 = vrot.lane.b32.xlu2 %v2170_v3, %s8792_s14  ;;  %v2171_v3 = vrot.slane %v10078_v8, 1  ;;  %15019 = vst [vmem:[#allocation5_spill] sm:$0xff] %v10127_v56 }
 0x190   : > { %v2224_v28 = vpop.permute.xlu1 %2223  ;;  %v928_v15 = vpop.permute.xlu0 %927 }
 0x191   : > { %v2484_v24 = vsel %vm441_vm1, %v9616_v48, %v2224_v28  ;;  %v2226_v51 = vpop.permute.xlu2 %2225 }
 0x192   : > { %v2516_v58 = vsel %vm1035_vm5, %v2484_v24, %v2400_v19  ;;  %v699_v19 = vsel %vm649_vm2, %v9772_v12, %v698_v50  ;;  %v10123_v12 = vrot.slane %v10080_v63, 1  ;;  %v2350_v50 = vrot.slane %v2057_v20, 2 }
 0x193   : > { %8396 = vmatmul.msk.f32.gmra.mxu2 %vm1605_vm4, %v2516_v58  ;;  %8349 = vmatmul.msk.f32.gmra.mxu1 %vm1605_vm4, %v1044_v25  ;;  %v1362_v24 = vrot.slane %v10107_v47, 2  ;;  %v2485_v58 = vsel %vm441_vm1, %v9697_v62, %v2226_v51  ;;  %v1088_v51 = vld [vmem:[#allocation2 + $0x77] sm:$0x3] }
 0x194   : > { %v10133_v28 = vsel %vm649_vm2, %v2171_v3, %v10123_v12  ;;  %v2351_v3 = vsel %vm826_vm3, %v10090_v59, %v2350_v50 }
 0x196   : > { %2417 = vrot.lane.b32.xlu1 %v10102_v60, %s8793_s15  ;;  %1438 = vrot.lane.b32.xlu0 %v1361_v31, %s8793_s15  ;;  %v10154_v56 = vpop.f32.mrf.mxu1 }
 0x197   : > { %768 = vrot.lane.b32.xlu2 %v699_v19, %s8792_s14  ;;  %v1013_v19 = vsel %vm441_vm1, %v9444_v6, %v10052_v54  ;;  %15020 = vst [vmem:[#allocation6_spill] sm:$0xff] %v10154_v56  ;;  %v1189_v54 = vrot.slane %v1088_v51, 1 }
 0x198   : > { %v930_v32 = vpop.permute.xlu1 %929  ;;  %v753_v57 = vpop.permute.xlu0 %752  ;;  %v1046_v11 = vsel %vm1035_vm5, %v1013_v19, %v928_v15 }
 0x199   : > { %v932_v33 = vpop.permute.xlu2 %931  ;;  %v1014_v6 = vsel %vm441_vm1, %v9446_v61, %v753_v57  ;;  %v1190_v61 = vsel %vm649_vm2, %v1187_v0, %v1189_v54 }
 0x19b   : > { %8350 = vmatmul.msk.f32.gmra.mxu1 %vm1605_vm4, %v1045_v18  ;;  %v1364_v18 = vsel %vm826_vm3, %v1362_v24, %v1363_v30 }
 0x19e   : > { %1264 = vrot.lane.b32.xlu1 %v1188_v4, %s8792_s14  ;;  %947 = vrot.lane.b32.xlu0 %v9899_v2, %s8793_s15  ;;  %v585_v4 = vld [vmem:[#allocation2 + $0x157] sm:$0x3] }
 0x19f   : > { %2241 = vrot.lane.b32.xlu2 %v10133_v28, %s8792_s14  ;;  %v880_v15 = vrot.slane %v585_v4, 2 }
 0x1a0   : > { %v755_v25 = vpop.permute.xlu1 %754  ;;  %v2402_v31 = vpop.permute.xlu0 %2401 }
 0x1a1   : > { %v2517_v14 = vsel %vm1035_vm5, %v2485_v58, %v2402_v31  ;;  %v757_v2 = vpop.permute.xlu2 %756  ;;  %v2174_v58 = vrot.slane %v2057_v20, 1  ;;  %v881_v57 = vsel %vm826_vm3, %v9882_v37, %v880_v15  ;;  %v10173_v20 = vld [vmem:[#allocation2 + $0x1af] sm:$0xff]  ;;  %v1015_v0 = vsel %vm441_vm1, %v9695_v26, %v755_v25 }
 0x1a2   : > { %8397 = vmatmul.msk.f32.gmra.mxu2 %vm1605_vm4, %v2517_v14 }
 0x1a3   : > { %8351 = vmatmul.msk.f32.gmra.mxu1 %vm1605_vm4, %v1046_v11  ;;  %v1047_v11 = vsel %vm1035_vm5, %v1014_v6, %v930_v32  ;;  %v10179_v32 = vpop.f32.mrf.mxu1  ;;  %v1365_v6 = vrot.slane %v1088_v51, 2  ;;  %v10199_v51 = vld [vmem:[#allocation2 + $0x87] sm:$0xff] }
 0x1a4   : > { %15021 = vst [vmem:[#allocation7_spill] sm:$0xff] %v10179_v32 }
 0x1a5   : > { %v1366_v25 = vsel %vm826_vm3, %v1363_v30, %v1365_v6 }
 0x1a6   : > { %2419 = vrot.lane.b32.xlu1 %v2351_v3, %s8793_s15  ;;  %1440 = vrot.lane.b32.xlu0 %v1364_v18, %s8793_s15  ;;  %v2175_v3 = vsel %vm649_vm2, %v10123_v12, %v2174_v58  ;;  %v10185_v18 = vrot.slane %v10173_v20, 2 }
 0x1a7   : > { %770 = vrot.lane.b32.xlu2 %v9903_v27, %s8792_s14  ;;  %v10171_v27 = vld [vmem:[#allocation2 + $0x1a7] sm:$0xff] }
 0x1a8   : > { %v2404_v50 = vpop.permute.xlu1 %2403  ;;  %v2228_v24 = vpop.permute.xlu0 %2227  ;;  %v2352_v37 = vrot.slane %v10171_v27, 2 }
 0x1a9   : > { %v2486_v31 = vsel %vm441_vm1, %v9699_v10, %v2228_v24  ;;  %v2406_v19 = vpop.permute.xlu2 %2405 }
 0x1aa   : > { %v2518_v14 = vsel %vm1035_vm5, %v2486_v31, %v2404_v50  ;;  %v703_v50 = vrot.slane %v585_v4, 1  ;;  %v1048_v31 = vsel %vm1035_vm5, %v1015_v0, %v932_v33  ;;  %v10194_v26 = vsel %vm826_vm3, %v2352_v37, %v10185_v18  ;;  %v10201_v4 = vld [vmem:[#allocation2 + $0x8f] sm:$0xff] }
 0x1ab   : > { %8398 = vmatmul.msk.f32.gmra.mxu2 %vm1605_vm4, %v2518_v14  ;;  %8352 = vmatmul.msk.f32.gmra.mxu1 %vm1605_vm4, %v1047_v11  ;;  %v1191_v33 = vrot.slane %v10199_v51, 1  ;;  %v1192_v30 = vrot.slane %v10201_v4, 1  ;;  %v10215_v0 = vpop.f32.mrf.mxu1 }
 0x1ac   : > { %v704_v11 = vsel %vm649_vm2, %v9886_v17, %v703_v50  ;;  %15022 = vst [vmem:[#allocation8_spill] sm:$0xff] %v10215_v0  ;;  %v1016_v17 = vsel %vm441_vm1, %v9517_v22, %v757_v2  ;;  %v2060_v50 = vld [vmem:[#allocation2 + $0x1b7] sm:$0x3] }
 0x1ad   : > { %v2355_v2 = vrot.slane %v2060_v50, 2 }
 0x1ae   : > { %1266 = vrot.lane.b32.xlu1 %v1190_v61, %s8792_s14  ;;  %949 = vrot.lane.b32.xlu0 %v881_v57, %s8793_s15  ;;  %v2176_v57 = vrot.slane %v10171_v27, 1 }
 0x1af   : > { %2243 = vrot.lane.b32.xlu2 %v2175_v3, %s8792_s14  ;;  %v10213_v3 = vrot.slane %v10173_v20, 1 }
 0x1b0   : > { %v2230_v54 = vpop.permute.xlu1 %2229  ;;  %v934_v15 = vpop.permute.xlu0 %933 }
 0x1b1   : > { %v2487_v24 = vsel %vm441_vm1, %v9760_v34, %v2230_v54  ;;  %v2232_v58 = vpop.permute.xlu2 %2231  ;;  %v1049_v6 = vsel %vm1035_vm5, %v1016_v17, %v934_v15  ;;  %v1193_v54 = vsel %vm649_vm2, %v1191_v33, %v1192_v30  ;;  %v1367_v15 = vrot.slane %v10199_v51, 2 }
 0x1b2   : > { %v2519_v14 = vsel %vm1035_vm5, %v2487_v24, %v2406_v19  ;;  %v10224_v24 = vsel %vm649_vm2, %v2176_v57, %v10213_v3 }
 0x1b3   : > { %8399 = vmatmul.msk.f32.gmra.mxu2 %vm1605_vm4, %v2519_v14  ;;  %8353 = vmatmul.msk.f32.gmra.mxu1 %vm1605_vm4, %v1048_v31  ;;  %v1368_v31 = vrot.slane %v10201_v4, 2  ;;  %v2488_v14 = vsel %vm441_vm1, %v9762_v38, %v2232_v58  ;;  %v588_v58 = vld [vmem:[#allocation2 + $0x177] sm:$0x3] }
 0x1b5   : > { %v1369_v17 = vsel %vm826_vm3, %v1367_v15, %v1368_v31 }
 0x1b6   : > { %2421 = vrot.lane.b32.xlu1 %v10194_v26, %s8793_s15  ;;  %1442 = vrot.lane.b32.xlu0 %v1366_v25, %s8793_s15 }
 0x1b7   : > { %772 = vrot.lane.b32.xlu2 %v704_v11, %s8792_s14 }
 0x1b8   : > { %v936_v19 = vpop.permute.xlu1 %935  ;;  %v759_v61 = vpop.permute.xlu0 %758 }
 0x1b9   : > { %v938_v37 = vpop.permute.xlu2 %937  ;;  %v1017_v22 = vsel %vm441_vm1, %v9803_v46, %v759_v61  ;;  %v2356_v61 = vsel %vm826_vm3, %v10185_v18, %v2355_v2 }
 0x1ba   : > { %v1050_v46 = vsel %vm1035_vm5, %v1017_v22, %v936_v19  ;;  %v885_v19 = vrot.slane %v588_v58, 2 }
 0x1bb   : > { %8354 = vmatmul.msk.f32.gmra.mxu1 %vm1605_vm4, %v1049_v6  ;;  %v1091_v6 = vld [vmem:[#allocation2 + $0x97] sm:$0x3] }
 0x1be   : > { %1268 = vrot.lane.b32.xlu1 %v1193_v54, %s8792_s14  ;;  %951 = vrot.lane.b32.xlu0 %v10001_v21, %s8793_s15  ;;  %v10240_v21 = vpop.f32.mrf.mxu1 }
 0x1bf   : > { %2245 = vrot.lane.b32.xlu2 %v10224_v24, %s8792_s14  ;;  %15023 = vst [vmem:[#allocation9_spill] sm:$0xff] %v10240_v21 }
 0x1c0   : > { %v761_v25 = vpop.permute.xlu1 %760  ;;  %v2408_v11 = vpop.permute.xlu0 %2407 }
 0x1c1   : > { %v2520_v33 = vsel %vm1035_vm5, %v2488_v14, %v2408_v11  ;;  %v763_v57 = vpop.permute.xlu2 %762  ;;  %v1018_v54 = vsel %vm441_vm1, %v9616_v48, %v761_v25  ;;  %v1194_v14 = vrot.slane %v1091_v6, 1  ;;  %v2179_v11 = vrot.slane %v2060_v50, 1  ;;  %v10263_v50 = vld [vmem:[#allocation2 + $0x1cf] sm:$0xff] }
 0x1c2   : > { %8400 = vmatmul.msk.f32.gmra.mxu2 %vm1605_vm4, %v2520_v33  ;;  %v886_v25 = vsel %vm826_vm3, %v9984_v5, %v885_v19  ;;  %v1370_v5 = vrot.slane %v1091_v6, 2  ;;  %v708_v19 = vrot.slane %v588_v58, 1  ;;  %v10285_v6 = vld [vmem:[#allocation2 + $0xa7] sm:$0xff] }
 0x1c3   : > { %8355 = vmatmul.msk.f32.gmra.mxu1 %vm1605_vm4, %v1050_v46  ;;  %v1051_v46 = vsel %vm1035_vm5, %v1018_v54, %v938_v37  ;;  %v1195_v48 = vsel %vm649_vm2, %v1192_v30, %v1194_v14  ;;  %v10273_v37 = vrot.slane %v10263_v50, 2 }
 0x1c4   : > { %v709_v58 = vsel %vm649_vm2, %v10025_v40, %v708_v19  ;;  %v10304_v19 = vrot.slane %v10263_v50, 1 }
 0x1c6   : > { %2423 = vrot.lane.b32.xlu1 %v2356_v61, %s8793_s15  ;;  %1444 = vrot.lane.b32.xlu0 %v1369_v17, %s8793_s15  ;;  %v2180_v17 = vsel %vm649_vm2, %v10213_v3, %v2179_v11 }
 0x1c7   : > { %774 = vrot.lane.b32.xlu2 %v10035_v39, %s8792_s14  ;;  %v10261_v39 = vld [vmem:[#allocation2 + $0x1c7] sm:$0xff] }
 0x1c8   : > { %v2410_v22 = vpop.permute.xlu1 %2409  ;;  %v2234_v2 = vpop.permute.xlu0 %2233  ;;  %v2357_v30 = vrot.slane %v10261_v39, 2 }
 0x1c9   : > { %v2489_v15 = vsel %vm441_vm1, %v9867_v36, %v2234_v2  ;;  %v2236_v33 = vpop.permute.xlu2 %2235  ;;  %v10267_v2 = vpop.f32.mrf.mxu1 }
 0x1ca   : > { %v2521_v61 = vsel %vm1035_vm5, %v2489_v15, %v2410_v22  ;;  %15024 = vst [vmem:[#allocation10_spill] sm:$0xff] %v10267_v2  ;;  %v1019_v22 = vsel %vm441_vm1, %v9697_v62, %v763_v57  ;;  %v1196_v57 = vrot.slane %v10285_v6, 1  ;;  %v591_v2 = vld [vmem:[#allocation2 + $0x197] sm:$0x3] }
 0x1cb   : > { %8401 = vmatmul.msk.f32.gmra.mxu2 %vm1605_vm4, %v2521_v61  ;;  %8356 = vmatmul.msk.f32.gmra.mxu1 %vm1605_vm4, %v1051_v46  ;;  %v10281_v46 = vsel %vm826_vm3, %v2357_v30, %v10273_v37  ;;  %v1371_v61 = vsel %vm826_vm3, %v1368_v31, %v1370_v5  ;;  %v2490_v30 = vsel %vm441_vm1, %v9869_v35, %v2236_v33 }
 0x1ce   : > { %1270 = vrot.lane.b32.xlu1 %v1195_v48, %s8792_s14  ;;  %953 = vrot.lane.b32.xlu0 %v886_v25, %s8793_s15  ;;  %v10287_v48 = vld [vmem:[#allocation2 + $0xaf] sm:$0xff]  ;;  %v8725_v25 = vld [vmem:[#allocation2 + $0x27] sm:$0xff] }
 0x1cf   : > { %2247 = vrot.lane.b32.xlu2 %v2180_v17, %s8792_s14  ;;  %v1197_v31 = vrot.slane %v10287_v48, 1 }
 0x1d0   : > { %v1257_v54 = vpop.permute.xlu1 %1256  ;;  %v940_v14 = vpop.permute.xlu0 %939 }
 0x1d1   : > { %v765_v11 = vpop.permute.xlu2 %764  ;;  %v1052_v15 = vsel %vm1035_vm5, %v1019_v22, %v940_v14  ;;  %v10294_v62 = vpop.f32.mrf.mxu1  ;;  %v1528_v17 = vsel %vm441_vm1, %v8725_v25, %v1257_v54  ;;  %v2181_v14 = vrot.slane %v10261_v39, 1  ;;  %v1198_v54 = vsel %vm649_vm2, %v1196_v57, %v1197_v31 }
 0x1d2   : > { %15025 = vst [vmem:[#allocation11_spill] sm:$0xff] %v10294_v62  ;;  %v1020_v57 = vsel %vm441_vm1, %v9699_v10, %v765_v11  ;;  %v1094_v62 = vld [vmem:[#allocation2 + $0xb7] sm:$0x3]  ;;  %v890_v11 = vrot.slane %v591_v2, 2 }
 0x1d3   : > { %8357 = vmatmul.msk.f32.gmra.mxu1 %vm1605_vm4, %v1052_v15  ;;  %v10313_v33 = vsel %vm649_vm2, %v2181_v14, %v10304_v19  ;;  %v1199_v10 = vrot.slane %v1094_v62, 1 }
 0x1d6   : > { %2425 = vrot.lane.b32.xlu1 %v10281_v46, %s8793_s15  ;;  %1446 = vrot.lane.b32.xlu0 %v1371_v61, %s8793_s15 }
 0x1d7   : > { %776 = vrot.lane.b32.xlu2 %v709_v58, %s8792_s14  ;;  %v2063_v58 = vld [vmem:[#allocation2 + $0x1d7] sm:$0x3] }
 0x1d8   : > { %v2412_v40 = vpop.permute.xlu1 %2411  ;;  %v1433_v5 = vpop.permute.xlu0 %1432  ;;  %v2360_v25 = vrot.slane %v2063_v58, 2 }
 0x1d9   : > { %v1560_v22 = vsel %vm1035_vm5, %v1528_v17, %v1433_v5  ;;  %v2522_v15 = vsel %vm1035_vm5, %v2490_v30, %v2412_v40  ;;  %v2238_v61 = vpop.permute.xlu2 %2237  ;;  %v1372_v17 = vrot.slane %v10285_v6, 2  ;;  %v1373_v30 = vrot.slane %v10287_v48, 2  ;;  %v10324_v14 = vpop.f32.mrf.mxu1 }
 0x1da   : > { %8309 = vmatmul.msk.f32.vlgmr.msra.gmra.mxu0 %vm1605_vm4, %v1560_v22  ;;  %8402 = vmatmul.msk.f32.gmra.mxu2 %vm1605_vm4, %v2522_v15  ;;  %15026 = vst [vmem:[#allocation12_spill] sm:$0xff] %v10324_v14 }
 0x1de   : > { %1272 = vrot.lane.b32.xlu1 %v1198_v54, %s8792_s14  ;;  %955 = vrot.lane.b32.xlu0 %v10102_v60, %s8793_s15  ;;  %v2361_v60 = vsel %vm826_vm3, %v10273_v37, %v2360_v25  ;;  %v1374_v54 = vsel %vm826_vm3, %v1372_v17, %v1373_v30  ;;  %v2184_v17 = vrot.slane %v2063_v58, 1 }
 0x1df   : > { %2249 = vrot.lane.b32.xlu2 %v10313_v33, %s8792_s14 }
 0x1e0   : > { %v1259_v40 = vpop.permute.xlu1 %1258  ;;  %v942_v5 = vpop.permute.xlu0 %941  ;;  %v2185_v58 = vsel %vm649_vm2, %v10304_v19, %v2184_v17 }
 0x1e1   : > { %v1053_v22 = vsel %vm1035_vm5, %v1020_v57, %v942_v5  ;;  %v767_v15 = vpop.permute.xlu2 %766  ;;  %v8726_v57 = vld [vmem:[#allocation2 + $0x2f] sm:$0xff] }
 0x1e2   : > { %8358 = vmatmul.msk.f32.gmra.mxu1 %vm1605_vm4, %v1053_v22  ;;  %v1529_v5 = vsel %vm441_vm1, %v8726_v57, %v1259_v40  ;;  %v2491_v22 = vsel %vm441_vm1, %v9974_v16, %v2238_v61  ;;  %v891_v40 = vsel %vm826_vm3, %v10090_v59, %v890_v11  ;;  %v10347_v61 = vld [vmem:[#allocation2 + $0x1e7] sm:$0xff]  ;;  %v10349_v57 = vld [vmem:[#allocation2 + $0x1ef] sm:$0xff]  ;;  %v1021_v59 = vsel %vm441_vm1, %v9760_v34, %v767_v15 }
 0x1e3   : > { %v10377_v34 = vrot.slane %v10349_v57, 1 }
 0x1e6   : > { %2427 = vrot.lane.b32.xlu1 %v2361_v60, %s8793_s15  ;;  %1448 = vrot.lane.b32.xlu0 %v1374_v54, %s8793_s15  ;;  %v10342_v54 = vpop.f32.mrf.mxu1 }
 0x1e7   : > { %778 = vrot.lane.b32.xlu2 %v10133_v28, %s8792_s14  ;;  %15027 = vst [vmem:[#allocation13_spill] sm:$0xff] %v10342_v54  ;;  %v1200_v28 = vsel %vm649_vm2, %v1197_v31, %v1199_v10  ;;  %v1375_v31 = vrot.slane %v1094_v62, 2  ;;  %v2066_v62 = vld [vmem:[#allocation2 + $0x1f7] sm:$0x3] }
 0x1e8   : > { %v2414_v25 = vpop.permute.xlu1 %2413  ;;  %v1435_v14 = vpop.permute.xlu0 %1434 }
 0x1e9   : > { %v1561_v21 = vsel %vm1035_vm5, %v1529_v5, %v1435_v14  ;;  %v2523_v60 = vsel %vm1035_vm5, %v2491_v22, %v2414_v25  ;;  %v2240_v0 = vpop.permute.xlu2 %2239  ;;  %v10357_v14 = vrot.slane %v10349_v57, 2  ;;  %v713_v5 = vrot.slane %v591_v2, 1 }
 0x1ea   : > { %8310 = vmatmul.msk.f32.gmra.mxu0 %vm1605_vm4, %v1561_v21  ;;  %8403 = vmatmul.msk.f32.gmra.mxu2 %vm1605_vm4, %v2523_v60  ;;  %v2362_v21 = vrot.slane %v10347_v61, 2  ;;  %v1376_v60 = vsel %vm826_vm3, %v1373_v30, %v1375_v31  ;;  %v2189_v2 = vrot.slane %v2066_v62, 1  ;;  %v2492_v15 = vsel %vm441_vm1, %v9976_v41, %v2240_v0 }
 0x1ec   : > { %v10366_v17 = vsel %vm826_vm3, %v2362_v21, %v10357_v14  ;;  %v2186_v21 = vrot.slane %v10347_v61, 1 }
 0x1ee   : > { %1274 = vrot.lane.b32.xlu1 %v1200_v28, %s8792_s14  ;;  %957 = vrot.lane.b32.xlu0 %v891_v40, %s8793_s15  ;;  %v714_v28 = vsel %vm649_vm2, %v10123_v12, %v713_v5  ;;  %v10371_v40 = vpop.f32.mrf.mxu1  ;;  %v2190_v5 = vsel %vm649_vm2, %v10377_v34, %v2189_v2  ;;  %v10393_v0 = vsel %vm649_vm2, %v2186_v21, %v10377_v34  ;;  %v10410_v21 = vld [vmem:[#allocation2 + $0x207] sm:$0xff] }
 0x1ef   : > { %2251 = vrot.lane.b32.xlu2 %v2185_v58, %s8792_s14  ;;  %15028 = vst [vmem:[#allocation14_spill] sm:$0xff] %v10371_v40 }
 0x1f0   : > { %v1261_v10 = vpop.permute.xlu1 %1260  ;;  %v944_v11 = vpop.permute.xlu0 %943 }
 0x1f1   : > { %v1054_v22 = vsel %vm1035_vm5, %v1021_v59, %v944_v11  ;;  %v769_v25 = vpop.permute.xlu2 %768  ;;  %v1530_v30 = vsel %vm441_vm1, %v10007_v43, %v1261_v10  ;;  %v594_v43 = vld [vmem:[#allocation2 + $0x1b7] sm:$0x3] }
 0x1f2   : > { %8359 = vmatmul.msk.f32.gmra.mxu1 %vm1605_vm4, %v1054_v22  ;;  %v895_v22 = vrot.slane %v594_v43, 2 }
 0x1f6   : > { %2429 = vrot.lane.b32.xlu1 %v10366_v17, %s8793_s15  ;;  %1450 = vrot.lane.b32.xlu0 %v1376_v60, %s8793_s15  ;;  %v10398_v10 = vpop.f32.mrf.mxu1  ;;  %v718_v60 = vrot.slane %v594_v43, 1  ;;  %v2365_v43 = vrot.slane %v2066_v62, 2 }
 0x1f7   : > { %780 = vrot.lane.b32.xlu2 %v714_v28, %s8792_s14  ;;  %v1022_v28 = vsel %vm441_vm1, %v9762_v38, %v769_v25  ;;  %v2367_v38 = vrot.slane %v10410_v21, 2 }
 0x1f8   : > { %v2416_v12 = vpop.permute.xlu1 %2415  ;;  %v1437_v58 = vpop.permute.xlu0 %1436 }
 0x1f9   : > { %v1562_v31 = vsel %vm1035_vm5, %v1530_v30, %v1437_v58  ;;  %v2524_v59 = vsel %vm1035_vm5, %v2492_v15, %v2416_v12  ;;  %v2242_v11 = vpop.permute.xlu2 %2241  ;;  %v719_v58 = vsel %vm649_vm2, %v10213_v3, %v718_v60 }
 0x1fa   : > { %8311 = vmatmul.msk.f32.gmra.mxu0 %vm1605_vm4, %v1562_v31  ;;  %8404 = vmatmul.msk.f32.gmra.mxu2 %vm1605_vm4, %v2524_v59  ;;  %v10412_v31 = vld [vmem:[#allocation2 + $0x20f] sm:$0xff]  ;;  %v2493_v3 = vsel %vm441_vm1, %v10078_v8, %v2242_v11  ;;  %v2366_v11 = vsel %vm826_vm3, %v10357_v14, %v2365_v43 }
 0x1fb   : > { %v2368_v25 = vrot.slane %v10412_v31, 2 }
 0x1fe   : > { %2255 = vrot.lane.b32.xlu1 %v2190_v5, %s8792_s14  ;;  %959 = vrot.lane.b32.xlu0 %v10194_v26, %s8793_s15  ;;  %v896_v26 = vsel %vm826_vm3, %v10185_v18, %v895_v22  ;;  %v10424_v22 = vpop.f32.mrf.mxu1 }
 0x1ff   : > { %2253 = vrot.lane.b32.xlu2 %v10393_v0, %s8792_s14 }
 0x200   : > { %v1263_v2 = vpop.permute.xlu1 %1262  ;;  %v946_v30 = vpop.permute.xlu0 %945 }
 0x201   : > { %v1055_v15 = vsel %vm1035_vm5, %v1022_v28, %v946_v30  ;;  %v771_v12 = vpop.permute.xlu2 %770  ;;  %v1531_v18 = vsel %vm441_vm1, %v10009_v29, %v1263_v2  ;;  %v2069_v29 = vld [vmem:[#allocation2 + $0x217] sm:$0x3]  ;;  %v2192_v2 = vrot.slane %v10412_v31, 1 }
 0x202   : > { %8360 = vmatmul.msk.f32.gmra.mxu1 %vm1605_vm4, %v1055_v15  ;;  %v2370_v62 = vrot.slane %v2069_v29, 2  ;;  %v2194_v15 = vrot.slane %v2069_v29, 1 }
 0x204   : > { %v2195_v43 = vsel %vm649_vm2, %v2192_v2, %v2194_v15 }
 0x206   : > { %961 = vrot.lane.b32.xlu1 %v896_v26, %s8793_s15  ;;  %784 = vrot.lane.b32.xlu0 %v719_v58, %s8792_s14  ;;  %v1023_v26 = vsel %vm441_vm1, %v9867_v36, %v771_v12  ;;  %v597_v36 = vld [vmem:[#allocation2 + $0x1d7] sm:$0x3] }
 0x207   : > { %782 = vrot.lane.b32.xlu2 %v10224_v24, %s8792_s14  ;;  %v2369_v24 = vsel %vm826_vm3, %v2367_v38, %v2368_v25 }
 0x208   : > { %v2418_v59 = vpop.permute.xlu1 %2417  ;;  %v1439_v5 = vpop.permute.xlu0 %1438 }
 0x209   : > { %v1563_v60 = vsel %vm1035_vm5, %v1531_v18, %v1439_v5  ;;  %v2525_v28 = vsel %vm1035_vm5, %v2493_v3, %v2418_v59  ;;  %v2244_v30 = vpop.permute.xlu2 %2243  ;;  %v2191_v18 = vrot.slane %v10410_v21, 1  ;;  %v2371_v5 = vsel %vm826_vm3, %v2368_v25, %v2370_v62 }
 0x20a   : > { %8312 = vmatmul.msk.f32.gmra.mxu0 %vm1605_vm4, %v1563_v60  ;;  %8405 = vmatmul.msk.f32.gmra.mxu2 %vm1605_vm4, %v2525_v28  ;;  %v10447_v60 = vld [vmem:[#allocation2 + $0x227] sm:$0xff]  ;;  %v10449_v28 = vld [vmem:[#allocation2 + $0x22f] sm:$0xff]  ;;  %v2494_v62 = vsel %vm441_vm1, %v10080_v63, %v2244_v30 }
 0x20b   : > { %v2193_v12 = vsel %vm649_vm2, %v2191_v18, %v2192_v2  ;;  %v2197_v29 = vrot.slane %v10449_v28, 1  ;;  %v10461_v2 = vpop.f32.mrf.mxu2 }
 0x20e   : > { %786 = vrot.lane.b32.xlu1 %v10313_v33, %s8792_s14  ;;  %2433 = vrot.lane.b32.xlu0 %v2369_v24, %s8793_s15  ;;  %v10443_v33 = vpop.f32.mrf.mxu1  ;;  %v2196_v24 = vrot.slane %v10447_v60, 1 }
 0x20f   : > { %2431 = vrot.lane.b32.xlu2 %v2366_v11, %s8793_s15  ;;  %v900_v11 = vrot.slane %v597_v36, 2 }
 0x210   : > { %v1265_v58 = vpop.permute.xlu1 %1264  ;;  %v948_v38 = vpop.permute.xlu0 %947 }
 0x211   : > { %v1056_v3 = vsel %vm1035_vm5, %v1023_v26, %v948_v38  ;;  %v773_v59 = vpop.permute.xlu2 %772  ;;  %v1532_v25 = vsel %vm441_vm1, %v10107_v47, %v1265_v58  ;;  %v2198_v47 = vsel %vm649_vm2, %v2196_v24, %v2197_v29  ;;  %v901_v30 = vsel %vm826_vm3, %v10273_v37, %v900_v11  ;;  %v600_v11 = vld [vmem:[#allocation2 + $0x1f7] sm:$0x3] }
 0x212   : > { %8361 = vmatmul.msk.f32.gmra.mxu1 %vm1605_vm4, %v1056_v3 }
 0x213   : > { %v10482_v37 = vpop.f32.mrf.mxu2 }
 0x216   : > { %2435 = vrot.lane.b32.xlu1 %v2371_v5, %s8793_s15  ;;  %2259 = vrot.lane.b32.xlu0 %v2195_v43, %s8792_s14  ;;  %v10472_v58 = vpop.f32.mrf.mxu1  ;;  %v1024_v5 = vsel %vm441_vm1, %v9869_v35, %v773_v59  ;;  %v2373_v59 = vrot.slane %v10449_v28, 2 }
 0x217   : > { %2257 = vrot.lane.b32.xlu2 %v2193_v12, %s8792_s14 }
 0x218   : > { %v2420_v15 = vpop.permute.xlu1 %2419  ;;  %v1441_v26 = vpop.permute.xlu0 %1440 }
 0x219   : > { %v1564_v38 = vsel %vm1035_vm5, %v1532_v25, %v1441_v26  ;;  %v2526_v18 = vsel %vm1035_vm5, %v2494_v62, %v2420_v15  ;;  %v2246_v3 = vpop.permute.xlu2 %2245  ;;  %v723_v25 = vrot.slane %v597_v36, 1  ;;  %v2072_v15 = vld [vmem:[#allocation2 + $0x237] sm:$0x3] }
 0x21a   : > { %8313 = vmatmul.msk.f32.gmra.mxu0 %vm1605_vm4, %v1564_v38  ;;  %8406 = vmatmul.msk.f32.gmra.mxu2 %vm1605_vm4, %v2526_v18  ;;  %v2375_v36 = vrot.slane %v2072_v15, 2 }
 0x21b   : > { %v724_v26 = vsel %vm649_vm2, %v10304_v19, %v723_v25  ;;  %v2495_v19 = vsel %vm441_vm1, %v10171_v27, %v2246_v3 }
 0x21c   : > { %v2376_v3 = vsel %vm826_vm3, %v2373_v59, %v2375_v36 }
 0x21e   : > { %2261 = vrot.lane.b32.xlu1 %v2198_v47, %s8792_s14  ;;  %965 = vrot.lane.b32.xlu0 %v901_v30, %s8793_s15  ;;  %v10490_v35 = vpop.f32.mrf.mxu1 }
 0x21f   : > { %963 = vrot.lane.b32.xlu2 %v10281_v46, %s8793_s15  ;;  %v728_v46 = vrot.slane %v600_v11, 1 }
 0x220   : > { %v1267_v43 = vpop.permute.xlu1 %1266  ;;  %v950_v12 = vpop.permute.xlu0 %949 }
 0x221   : > { %v1057_v24 = vsel %vm1035_vm5, %v1024_v5, %v950_v12  ;;  %v775_v62 = vpop.permute.xlu2 %774  ;;  %v1533_v38 = vsel %vm441_vm1, %v10109_v52, %v1267_v43  ;;  %v10503_v12 = vpop.f32.mrf.mxu2  ;;  %v729_v52 = vsel %vm649_vm2, %v10377_v34, %v728_v46 }
 0x222   : > { %8362 = vmatmul.msk.f32.gmra.mxu1 %vm1605_vm4, %v1057_v24  ;;  %v1025_v25 = vsel %vm441_vm1, %v9974_v16, %v775_v62 }
 0x226   : > { %967 = vrot.lane.b32.xlu1 %v10366_v17, %s8793_s15  ;;  %790 = vrot.lane.b32.xlu0 %v10393_v0, %s8792_s14  ;;  %v2372_v17 = vrot.slane %v10447_v60, 2 }
 0x227   : > { %788 = vrot.lane.b32.xlu2 %v724_v26, %s8792_s14 }
 0x228   : > { %v2422_v18 = vpop.permute.xlu1 %2421  ;;  %v1443_v47 = vpop.permute.xlu0 %1442  ;;  %v2374_v43 = vsel %vm826_vm3, %v2372_v17, %v2373_v59 }
 0x229   : > { %v1565_v0 = vsel %vm1035_vm5, %v1533_v38, %v1443_v47  ;;  %v2527_v30 = vsel %vm1035_vm5, %v2495_v19, %v2422_v18  ;;  %v2248_v5 = vpop.permute.xlu2 %2247  ;;  %v2199_v38 = vrot.slane %v2072_v15, 1  ;;  %v10514_v19 = vpop.f32.mrf.mxu1  ;;  %v905_v47 = vrot.slane %v600_v11, 2 }
 0x22a   : > { %8314 = vmatmul.msk.f32.gmra.mxu0 %vm1605_vm4, %v1565_v0  ;;  %8407 = vmatmul.msk.f32.gmra.mxu2 %vm1605_vm4, %v2527_v30  ;;  %v10518_v59 = vpop.f32.mrf.mxu2  ;;  %v2496_v62 = vsel %vm441_vm1, %v10173_v20, %v2248_v5 }
 0x22b   : > { %v2200_v36 = vsel %vm649_vm2, %v2197_v29, %v2199_v38 }
 0x22e   : > { %792 = vrot.lane.b32.xlu1 %v729_v52, %s8792_s14  ;;  %2439 = vrot.lane.b32.xlu0 %v2376_v3, %s8793_s15 }
 0x22f   : > { %2437 = vrot.lane.b32.xlu2 %v2374_v43, %s8793_s15 }
 0x230   : > { %v1269_v24 = vpop.permute.xlu1 %1268  ;;  %v952_v26 = vpop.permute.xlu0 %951 }
 0x231   : > { %v1058_v34 = vsel %vm1035_vm5, %v1025_v25, %v952_v26  ;;  %v777_v46 = vpop.permute.xlu2 %776  ;;  %v1534_v16 = vsel %vm441_vm1, %v10199_v51, %v1269_v24  ;;  %v10532_v29 = vpop.f32.mrf.mxu1  ;;  %v906_v51 = vsel %vm826_vm3, %v10357_v14, %v905_v47 }
 0x232   : > { %8363 = vmatmul.msk.f32.gmra.mxu1 %vm1605_vm4, %v1058_v34  ;;  %v10536_v52 = vpop.f32.mrf.mxu2  ;;  %v1026_v11 = vsel %vm441_vm1, %v9976_v41, %v777_v46 }
 0x237   : > { %2263 = vrot.lane.b32.xlu2 %v2200_v36, %s8792_s14 }
 0x238   : > { %v2424_v15 = vpop.permute.xlu1 %2423  ;;  %v1445_v18 = vpop.permute.xlu0 %1444 }
 0x239   : > { %v1566_v17 = vsel %vm1035_vm5, %v1534_v16, %v1445_v18  ;;  %v2528_v0 = vsel %vm1035_vm5, %v2496_v62, %v2424_v15  ;;  %v2250_v30 = vpop.permute.xlu2 %2249  ;;  %v10545_v26 = vpop.f32.mrf.mxu1 }
 0x23a   : > { %8315 = vmatmul.msk.f32.gmra.mxu0 %vm1605_vm4, %v1566_v17  ;;  %8408 = vmatmul.msk.f32.gmra.mxu2 %vm1605_vm4, %v2528_v0  ;;  %v10543_v24 = vpop.f32.mrf.mxu2  ;;  %v2497_v38 = vsel %vm441_vm1, %v10261_v39, %v2250_v30 }
 0x23f   : > { %969 = vrot.lane.b32.xlu2 %v906_v51, %s8793_s15 }
 0x240   : > { %v1271_v5 = vpop.permute.xlu1 %1270  ;;  %v954_v3 = vpop.permute.xlu0 %953 }
 0x241   : > { %v1059_v43 = vsel %vm1035_vm5, %v1026_v11, %v954_v3  ;;  %v779_v25 = vpop.permute.xlu2 %778  ;;  %v1535_v14 = vsel %vm441_vm1, %v10201_v4, %v1271_v5  ;;  %v10557_v15 = vpop.f32.mrf.mxu1 }
 0x242   : > { %8364 = vmatmul.msk.f32.gmra.mxu1 %vm1605_vm4, %v1059_v43  ;;  %v10555_v62 = vpop.f32.mrf.mxu2  ;;  %v1027_v4 = vsel %vm441_vm1, %v10078_v8, %v779_v25 }
 0x248   : > { %v2426_v34 = vpop.permute.xlu1 %2425  ;;  %v1447_v36 = vpop.permute.xlu0 %1446 }
 0x249   : > { %v2529_v41 = vsel %vm1035_vm5, %v2497_v38, %v2426_v34  ;;  %v1567_v46 = vsel %vm1035_vm5, %v1535_v14, %v1447_v36  ;;  %v2252_v16 = vpop.permute.xlu2 %2251  ;;  %v10569_v43 = vpop.f32.mrf.mxu1 }
 0x24a   : > { %8316 = vmatmul.msk.f32.gmra.mxu0 %vm1605_vm4, %v1567_v46  ;;  %8409 = vmatmul.msk.f32.gmra.mxu2 %vm1605_vm4, %v2529_v41  ;;  %v10563_v30 = vpop.f32.mrf.mxu2  ;;  %v2498_v11 = vsel %vm441_vm1, %v10263_v50, %v2252_v16 }
 0x250   : > { %v1273_v18 = vpop.permute.xlu1 %1272  ;;  %v956_v47 = vpop.permute.xlu0 %955 }
 0x251   : > { %v1060_v17 = vsel %vm1035_vm5, %v1027_v4, %v956_v47  ;;  %v781_v0 = vpop.permute.xlu2 %780  ;;  %v1536_v51 = vsel %vm441_vm1, %v10285_v6, %v1273_v18  ;;  %v10581_v16 = vpop.f32.mrf.mxu1 }
 0x252   : > { %8365 = vmatmul.msk.f32.gmra.mxu1 %vm1605_vm4, %v1060_v17  ;;  %v10575_v38 = vpop.f32.mrf.mxu2  ;;  %v1028_v6 = vsel %vm441_vm1, %v10080_v63, %v781_v0 }
 0x258   : > { %v2428_v5 = vpop.permute.xlu1 %2427  ;;  %v1449_v3 = vpop.permute.xlu0 %1448 }
 0x259   : > { %v2530_v8 = vsel %vm1035_vm5, %v2498_v11, %v2428_v5  ;;  %v1568_v25 = vsel %vm1035_vm5, %v1536_v51, %v1449_v3  ;;  %v2254_v14 = vpop.permute.xlu2 %2253  ;;  %v10593_v5 = vpop.f32.mrf.mxu1 }
 0x25a   : > { %8317 = vmatmul.msk.f32.gmra.mxu0 %vm1605_vm4, %v1568_v25  ;;  %8410 = vmatmul.msk.f32.gmra.mxu2 %vm1605_vm4, %v2530_v8  ;;  %v10583_v4 = vpop.f32.mrf.mxu2  ;;  %v2499_v47 = vsel %vm441_vm1, %v10347_v61, %v2254_v14 }
 0x260   : > { %v1275_v34 = vpop.permute.xlu1 %1274  ;;  %v958_v36 = vpop.permute.xlu0 %957 }
 0x261   : > { %v1061_v41 = vsel %vm1035_vm5, %v1028_v6, %v958_v36  ;;  %v783_v46 = vpop.permute.xlu2 %782  ;;  %v1537_v18 = vsel %vm441_vm1, %v10287_v48, %v1275_v34 }
 0x262   : > { %8366 = vmatmul.msk.f32.gmra.mxu1 %vm1605_vm4, %v1061_v41  ;;  %v1029_v3 = vsel %vm441_vm1, %v10171_v27, %v783_v46  ;;  %v10600_v34 = vpop.f32.mrf.mxu2  ;;  %v10605_v41 = vpop.f32.mrf.mxu1 }
 0x268   : > { %v2430_v17 = vpop.permute.xlu1 %2429  ;;  %v1451_v51 = vpop.permute.xlu0 %1450 }
 0x269   : > { %v2531_v63 = vsel %vm1035_vm5, %v2499_v47, %v2430_v17  ;;  %v1569_v0 = vsel %vm1035_vm5, %v1537_v18, %v1451_v51  ;;  %v2432_v11 = vpop.permute.xlu2 %2431 }
 0x26a   : > { %8318 = vmatmul.msk.f32.gmra.mxu0 %vm1605_vm4, %v1569_v0  ;;  %8411 = vmatmul.msk.f32.gmra.mxu2 %vm1605_vm4, %v2531_v63  ;;  %v10609_v17 = vpop.f32.mrf.mxu2 }
 0x270   : > { %v2256_v48 = vpop.permute.xlu1 %2255  ;;  %v960_v8 = vpop.permute.xlu0 %959 }
 0x271   : > { %v2500_v25 = vsel %vm441_vm1, %v10349_v57, %v2256_v48  ;;  %v1062_v14 = vsel %vm1035_vm5, %v1029_v3, %v960_v8  ;;  %v2258_v6 = vpop.permute.xlu2 %2257  ;;  %v10615_v3 = vpop.f32.mrf.mxu1 }
 0x272   : > { %v2532_v36 = vsel %vm1035_vm5, %v2500_v25, %v2432_v11  ;;  %8367 = vmatmul.msk.f32.gmra.mxu1 %vm1605_vm4, %v1062_v14  ;;  %v2501_v63 = vsel %vm441_vm1, %v10410_v21, %v2258_v6  ;;  %v10620_v25 = vpop.f32.mrf.mxu2 }
 0x273   : > { %8412 = vmatmul.msk.f32.gmra.mxu2 %vm1605_vm4, %v2532_v36 }
 0x278   : > { %v962_v18 = vpop.permute.xlu1 %961  ;;  %v785_v27 = vpop.permute.xlu0 %784 }
 0x279   : > { %v1030_v46 = vsel %vm441_vm1, %v10173_v20, %v785_v27  ;;  %v964_v47 = vpop.permute.xlu2 %963  ;;  %v10628_v27 = vpop.f32.mrf.mxu1 }
 0x27a   : > { %v1063_v51 = vsel %vm1035_vm5, %v1030_v46, %v962_v18  ;;  %v10631_v46 = vpop.f32.mrf.mxu2 }
 0x27b   : > { %8368 = vmatmul.msk.f32.gmra.mxu1 %vm1605_vm4, %v1063_v51 }
 0x280   : > { %v787_v0 = vpop.permute.xlu1 %786  ;;  %v2434_v11 = vpop.permute.xlu0 %2433 }
 0x281   : > { %v1031_v48 = vsel %vm441_vm1, %v10261_v39, %v787_v0  ;;  %v2533_v8 = vsel %vm1035_vm5, %v2501_v63, %v2434_v11  ;;  %v789_v20 = vpop.permute.xlu2 %788 }
 0x282   : > { %v1064_v14 = vsel %vm1035_vm5, %v1031_v48, %v964_v47  ;;  %8413 = vmatmul.msk.f32.gmra.mxu2 %vm1605_vm4, %v2533_v8  ;;  %v1032_v47 = vsel %vm441_vm1, %v10263_v50, %v789_v20  ;;  %v10641_v48 = vpop.f32.mrf.mxu2  ;;  %v10643_v8 = vpop.f32.mrf.mxu1 }
 0x283   : > { %8369 = vmatmul.msk.f32.gmra.mxu1 %vm1605_vm4, %v1064_v14  ;;  %v1719_v20 = vpop.f32.mrf.mxu0 }
 0x284   : > { %v1929_v32 = vadd.f32 %v10398_v10, %v1719_v20 }
 0x288   : > { %v2436_v36 = vpop.permute.xlu1 %2435  ;;  %v2260_v21 = vpop.permute.xlu0 %2259 }
 0x289   : > { %v2502_v6 = vsel %vm441_vm1, %v10412_v31, %v2260_v21  ;;  %v2438_v39 = vpop.permute.xlu2 %2437 }
 0x28a   : > { %v2534_v18 = vsel %vm1035_vm5, %v2502_v6, %v2436_v36  ;;  %v10649_v6 = vpop.f32.mrf.mxu2 }
 0x28b   : > { %8414 = vmatmul.msk.f32.gmra.mxu2 %vm1605_vm4, %v2534_v18  ;;  %v10651_v18 = vpop.f32.mrf.mxu1 }
 0x290   : > { %v2262_v51 = vpop.permute.xlu1 %2261  ;;  %v966_v63 = vpop.permute.xlu0 %965 }
 0x291   : > { %v2503_v0 = vsel %vm441_vm1, %v10447_v60, %v2262_v51  ;;  %v1065_v11 = vsel %vm1035_vm5, %v1032_v47, %v966_v63  ;;  %v2264_v14 = vpop.permute.xlu2 %2263 }
 0x292   : > { %v2535_v31 = vsel %vm1035_vm5, %v2503_v0, %v2438_v39  ;;  %8370 = vmatmul.msk.f32.gmra.mxu1 %vm1605_vm4, %v1065_v11  ;;  %v2504_v47 = vsel %vm441_vm1, %v10449_v28, %v2264_v14  ;;  %v1722_v0 = vpop.f32.mrf.mxu0 }
 0x293   : > { %8415 = vmatmul.msk.f32.gmra.mxu2 %vm1605_vm4, %v2535_v31  ;;  %v1932_v54 = vadd.f32 %v10424_v22, %v1722_v0 }
 0x298   : > { %v968_v36 = vpop.permute.xlu1 %967  ;;  %v791_v50 = vpop.permute.xlu0 %790 }
 0x299   : > { %v1033_v21 = vsel %vm441_vm1, %v10347_v61, %v791_v50  ;;  %v970_v39 = vpop.permute.xlu2 %969  ;;  %v10663_v50 = vpop.f32.mrf.mxu1 }
 0x29a   : > { %v1066_v60 = vsel %vm1035_vm5, %v1033_v21, %v968_v36  ;;  %v10661_v36 = vpop.f32.mrf.mxu2  ;;  %v1725_v21 = vpop.f32.mrf.mxu0 }
 0x29b   : > { %8371 = vmatmul.msk.f32.gmra.mxu1 %vm1605_vm4, %v1066_v60  ;;  %v1935_v56 = vadd.f32 %v10443_v33, %v1725_v21 }
 0x29d   : > { %v2761_v22 = vadd.f32 %v10503_v12, %v1935_v56 }
 0x2a0   : > { %v793_v51 = vpop.permute.xlu1 %792  ;;  %v2440_v63 = vpop.permute.xlu0 %2439 }
 0x2a1   : > { %v1034_v11 = vsel %vm441_vm1, %v10349_v57, %v793_v51  ;;  %v2536_v61 = vsel %vm1035_vm5, %v2504_v47, %v2440_v63  ;;  %v10667_v60 = vpop.f32.mrf.mxu1 }
 0x2a2   : > { %v1067_v31 = vsel %vm1035_vm5, %v1034_v11, %v970_v39  ;;  %8416 = vmatmul.msk.f32.gmra.mxu2 %vm1605_vm4, %v2536_v61  ;;  %v10665_v28 = vpop.f32.mrf.mxu2  ;;  %v1728_v14 = vpop.f32.mrf.mxu0 }
 0x2a3   : > { %8372 = vmatmul.msk.f32.gmra.mxu1 %vm1605_vm4, %v1067_v31  ;;  %15029 = vst [vmem:[#allocation15_spill] sm:$0xff] %v10665_v28 }
 0x2a9   : > { %v10671_v47 = vpop.f32.mrf.mxu1 }
 0x2aa   : > { %v10669_v40 = vpop.f32.mrf.mxu2  ;;  %v1731_v57 = vpop.f32.mrf.mxu0 }
 0x2ab   : > { %15030 = vst [vmem:[#allocation16_spill] sm:$0xff] %v10669_v40  ;;  %v2760_v40 = vadd.f32 %v10482_v37, %v1932_v54  ;;  %v1941_v10 = vadd.f32 %v10490_v35, %v1731_v57 }
 0x2ad   : > { %v2763_v56 = vadd.f32 %v10536_v52, %v1941_v10 }
 0x2b1   : > { %v10675_v63 = vpop.f32.mrf.mxu1 }
 0x2b2   : > { %v10673_v39 = vpop.f32.mrf.mxu2  ;;  %v1734_v51 = vpop.f32.mrf.mxu0 }
 0x2b3   : > { %15031 = vst [vmem:[#allocation17_spill] sm:$0xff] %v10673_v39  ;;  %v1938_v39 = vadd.f32 %v10472_v58, %v1728_v14  ;;  %v1944_v58 = vadd.f32 %v10514_v19, %v1734_v51 }
 0x2b5   : > { %v2762_v54 = vadd.f32 %v10518_v59, %v1938_v39  ;;  %v2764_v19 = vadd.f32 %v10543_v24, %v1944_v58 }
 0x2b9   : > { %v10679_v31 = vpop.f32.mrf.mxu1 }
 0x2ba   : > { %v10677_v11 = vpop.f32.mrf.mxu2  ;;  %v1737_v61 = vpop.f32.mrf.mxu0  ;;  %15033 = vst [vmem:[#allocation19_spill] sm:$0xff] %v10679_v31  ;;  %v2759_v31 = vadd.f32 %v10461_v2, %v1929_v32 }
 0x2bb   : > { %15032 = vst [vmem:[#allocation18_spill] sm:$0xff] %v10677_v11  ;;  %v10691_v11 = vld [vmem:[%s14995_s2] ss:$0 sm:$0xff]  ;;  %v1947_v2 = vadd.f32 %v10532_v29, %v1737_v61 }
 0x2bc   : > { %v10699_v33 = vadd.f32 %v10691_v11, %v2760_v40  ;;  %v10704_v37 = vadd.f32 %v10691_v11, %v2759_v31  ;;  %v10707_v20 = vadd.f32 %v10691_v11, %v2761_v22  ;;  %v10716_v12 = vadd.f32 %v10691_v11, %v2762_v54 }
 0x2bd   : > { %v10729_v57 = vadd.f32 %v10691_v11, %v2763_v56  ;;  %v2765_v39 = vadd.f32 %v10555_v62, %v1947_v2  ;;  %v10741_v31 = vadd.f32 %v10691_v11, %v2764_v19 }
 0x2be   : > { %v2897_v40 = vmul.f32 %v10699_v33, %v10699_v33  ;;  %v2896_v21 = vmul.f32 %v10704_v37, %v10704_v37  ;;  %v2898_v14 = vmul.f32 %v10707_v20, %v10707_v20  ;;  %v2828_v29 = vsel %vm441_vm1, %v10699_v33, 0.0 }
 0x2bf   : > { %v2830_v51 = vsel %vm441_vm1, %v10707_v20, 0.0  ;;  %v2899_v61 = vmul.f32 %v10716_v12, %v10716_v12  ;;  %v2832_v58 = vsel %vm441_vm1, %v10716_v12, 0.0  ;;  %v2900_v56 = vmul.f32 %v10729_v57, %v10729_v57 }
 0x2c0   : > { %v2928_v62 = vsel %vm441_vm1, %v2896_v21, 0.0  ;;  %v10753_v2 = vadd.f32 %v10691_v11, %v2765_v39  ;;  %v2834_v21 = vsel %vm441_vm1, %v10729_v57, 0.0  ;;  %v1962_v39 = vadd.f32 %v10593_v5, %v9731_v53 }
 0x2c1   : > { %v10695_v0 = vpop.f32.mrf.mxu1 }
 0x2c2   : > { %v10684_v55 = vpop.f32.mrf.mxu2 }
 0x2c7   : > { %v1740_v28 = vpop.f32.mrf.mxu0 }
 0x2c8   : > { %v1950_v59 = vadd.f32 %v10545_v26, %v1740_v28  ;;  %v2827_v26 = vsel %vm441_vm1, %v10704_v37, 0.0  ;;  %v2929_v28 = vsel %vm441_vm1, %v2897_v40, 0.0 }
 0x2c9   : > { %v10724_v52 = vpop.f32.mrf.mxu1  ;;  %v2829_v10 = vadd.f32 %v2828_v29, %v2827_v26 }
 0x2ca   : > { %v10709_v32 = vpop.f32.mrf.mxu2  ;;  %v2766_v22 = vadd.f32 %v10563_v30, %v1950_v59  ;;  %v1959_v30 = vadd.f32 %v10581_v16, %v9692_v44  ;;  %v2933_v59 = vsel %vm441_vm1, %v2899_v61, 0.0  ;;  %v2935_v44 = vsel %vm441_vm1, %v2900_v56, 0.0 }
 0x2cb   : > { %v2831_v19 = vadd.f32 %v2830_v51, %v2829_v10  ;;  %v2836_v16 = vsel %vm441_vm1, %v10741_v31, 0.0  ;;  %v1965_v61 = vadd.f32 %v10605_v41, %v9774_v49  ;;  %v2838_v10 = vsel %vm441_vm1, %v10753_v2, 0.0 }
 0x2cc   : > { %v10764_v29 = vadd.f32 %v10691_v11, %v2766_v22  ;;  %v2769_v5 = vadd.f32 %v10600_v34, %v1959_v30  ;;  %v1968_v56 = vadd.f32 %v10615_v3, %v9827_v45  ;;  %v1971_v45 = vadd.f32 %v10628_v27, %v9864_v23 }
 0x2ce   : > { %v2840_v30 = vsel %vm441_vm1, %v10764_v29, 0.0  ;;  %v2772_v27 = vadd.f32 %v10631_v46, %v1968_v56 }
 0x2d1   : > { %v10768_v26 = vpop.f32.mrf.mxu1 }
 0x2d2   : > { %v10746_v54 = vpop.f32.mrf.mxu2 }
 0x2d7   : > { %v1743_v35 = vpop.f32.mrf.mxu0 }
 0x2d8   : > { %v1953_v24 = vadd.f32 %v10557_v15, %v1743_v35  ;;  %v2931_v15 = vsel %vm441_vm1, %v2898_v14, 0.0  ;;  %v2930_v35 = vadd.f32 %v2929_v28, %v2928_v62  ;;  %v2901_v14 = vmul.f32 %v10741_v31, %v10741_v31 }
 0x2d9   : > { %v2902_v28 = vmul.f32 %v10753_v2, %v10753_v2 }
 0x2da   : > { %v2767_v40 = vadd.f32 %v10575_v38, %v1953_v24  ;;  %v2932_v38 = vadd.f32 %v2931_v15, %v2930_v35  ;;  %v2833_v24 = vadd.f32 %v2832_v58, %v2831_v19  ;;  %v2937_v62 = vsel %vm441_vm1, %v2901_v14, 0.0  ;;  %v10789_v49 = vpop.f32.mrf.mxu2 }
 0x2db   : > { %v2903_v15 = vmul.f32 %v10764_v29, %v10764_v29  ;;  %v2770_v58 = vadd.f32 %v10609_v17, %v1962_v39  ;;  %v2939_v34 = vsel %vm441_vm1, %v2902_v28, 0.0  ;;  %v2771_v17 = vadd.f32 %v10620_v25, %v1965_v61 }
 0x2dc   : > { %v10776_v51 = vadd.f32 %v10691_v11, %v2767_v40  ;;  %v2934_v22 = vadd.f32 %v2933_v59, %v2932_v38  ;;  %v2835_v53 = vadd.f32 %v2834_v21, %v2833_v24  ;;  %v10801_v14 = vadd.f32 %v10691_v11, %v2769_v5 }
 0x2dd   : > { %v2941_v39 = vsel %vm441_vm1, %v2903_v15, 0.0  ;;  %v10812_v23 = vadd.f32 %v10691_v11, %v2770_v58  ;;  %v1977_v5 = vadd.f32 %v10651_v18, %v9937_v7  ;;  %v10839_v7 = vadd.f32 %v10691_v11, %v2772_v27 }
 0x2de   : > { %v2936_v40 = vadd.f32 %v2935_v44, %v2934_v22  ;;  %v2837_v35 = vadd.f32 %v2836_v16, %v2835_v53  ;;  %v2904_v19 = vmul.f32 %v10776_v51, %v10776_v51  ;;  %v2842_v38 = vsel %vm441_vm1, %v10776_v51, 0.0 }
 0x2df   : > { %v10809_v16 = vpop.f32.mrf.mxu1  ;;  %v10820_v22 = vadd.f32 %v10691_v11, %v2771_v17  ;;  %v2906_v53 = vmul.f32 %v10801_v14, %v10801_v14  ;;  %v1980_v18 = vadd.f32 %v10663_v50, %v9961_v42  ;;  %v2775_v17 = vadd.f32 %v10661_v36, %v1977_v5  ;;  %v15037_v5 = vld [vmem:[#allocation17_spill] sm:$0xff] }
 0x2e0   : > { %v2938_v3 = vadd.f32 %v2937_v62, %v2936_v40  ;;  %v2839_v21 = vadd.f32 %v2838_v10, %v2837_v35  ;;  %v2943_v28 = vsel %vm441_vm1, %v2904_v19, 0.0  ;;  %v2846_v10 = vsel %vm441_vm1, %v10801_v14, 0.0 }
 0x2e1   : > { %v2907_v40 = vmul.f32 %v10812_v23, %v10812_v23  ;;  %v2947_v19 = vsel %vm441_vm1, %v2906_v53, 0.0  ;;  %v1983_v42 = vadd.f32 %v10667_v60, %v9997_v13  ;;  %v2909_v36 = vmul.f32 %v10839_v7, %v10839_v7 }
 0x2e2   : > { %v2940_v44 = vadd.f32 %v2939_v34, %v2938_v3  ;;  %v2841_v25 = vadd.f32 %v2840_v30, %v2839_v21  ;;  %v10834_v58 = vpop.f32.mrf.mxu2  ;;  %v10874_v27 = vadd.f32 %v10691_v11, %v2775_v17 }
 0x2e7   : > { %v1746_v41 = vpop.f32.mrf.mxu0 }
 0x2e8   : > { %v1956_v59 = vadd.f32 %v10569_v43, %v1746_v41  ;;  %v1974_v43 = vadd.f32 %v10643_v8, %v9909_v1  ;;  %v2942_v1 = vadd.f32 %v2941_v39, %v2940_v44  ;;  %v2843_v8 = vadd.f32 %v2842_v38, %v2841_v25 }
 0x2e9   : > { %v2908_v41 = vmul.f32 %v10820_v22, %v10820_v22  ;;  %v2949_v38 = vsel %vm441_vm1, %v2907_v40, 0.0  ;;  %v2852_v25 = vsel %vm441_vm1, %v10839_v7, 0.0 }
 0x2ea   : > { %v2768_v24 = vadd.f32 %v10583_v4, %v1956_v59  ;;  %v2773_v4 = vadd.f32 %v10641_v48, %v1971_v45  ;;  %v2774_v15 = vadd.f32 %v10649_v6, %v1974_v43  ;;  %v2944_v48 = vadd.f32 %v2943_v28, %v2942_v1  ;;  %v15034_v43 = vld [vmem:[#allocation15_spill] sm:$0xff]  ;;  %v15035_v28 = vld [vmem:[#allocation16_spill] sm:$0xff] }
 0x2eb   : > { %v2848_v59 = vsel %vm441_vm1, %v10812_v23, 0.0  ;;  %v1986_v45 = vadd.f32 %v10671_v47, %v10037_v9  ;;  %v2776_v13 = vadd.f32 %v15034_v43, %v1980_v18  ;;  %v2951_v60 = vsel %vm441_vm1, %v2908_v41, 0.0  ;;  %v15036_v1 = vld [vmem:[#allocation3_spill] sm:$0xff]  ;;  %v15038_v18 = vld [vmem:[#allocation4_spill] sm:$0xff] }
 0x2ec   : > { %v10817_v61 = vadd.f32 %v10691_v11, %v2768_v24  ;;  %v10847_v6 = vadd.f32 %v10691_v11, %v2773_v4  ;;  %v10856_v50 = vadd.f32 %v10691_v11, %v2774_v15  ;;  %v2850_v24 = vsel %vm441_vm1, %v10820_v22, 0.0 }
 0x2ed   : > { %v2777_v4 = vadd.f32 %v15035_v28, %v1983_v42  ;;  %v10882_v15 = vpop.f32.mrf.mxu2  ;;  %v10888_v40 = vadd.f32 %v10691_v11, %v2776_v13  ;;  %v15040_v42 = vld [vmem:[#allocation18_spill] sm:$0xff] }
 0x2ee   : > { %v2844_v46 = vsel %vm441_vm1, %v10817_v61, 0.0  ;;  %v2905_v62 = vmul.f32 %v10817_v61, %v10817_v61  ;;  %v2910_v44 = vmul.f32 %v10847_v6, %v10847_v6  ;;  %v2911_v53 = vmul.f32 %v10856_v50, %v10856_v50 }
 0x2ef   : > { %v2845_v56 = vadd.f32 %v2844_v46, %v2843_v8  ;;  %v10860_v39 = vpop.f32.mrf.mxu1  ;;  %v1989_v8 = vadd.f32 %v10675_v63, %v15036_v1  ;;  %v2778_v46 = vadd.f32 %v15037_v5, %v1986_v45  ;;  %v10898_v17 = vadd.f32 %v10691_v11, %v2777_v4 }
 0x2f0   : > { %v2945_v35 = vsel %vm441_vm1, %v2905_v62, 0.0  ;;  %v2955_v41 = vsel %vm441_vm1, %v2910_v44, 0.0  ;;  %v2913_v43 = vmul.f32 %v10888_v40, %v10888_v40  ;;  %v2860_v4 = vsel %vm441_vm1, %v10888_v40, 0.0 }
 0x2f1   : > { %v2847_v34 = vadd.f32 %v2846_v10, %v2845_v56  ;;  %v2946_v30 = vadd.f32 %v2945_v35, %v2944_v48  ;;  %v2953_v48 = vsel %vm441_vm1, %v2909_v36, 0.0  ;;  %v2854_v56 = vsel %vm441_vm1, %v10847_v6, 0.0  ;;  %v15039_v35 = vld [vmem:[#allocation19_spill] sm:$0xff] }
 0x2f2   : > { %v1992_v63 = vadd.f32 %v15039_v35, %v15038_v18  ;;  %v2779_v45 = vadd.f32 %v15040_v42, %v1989_v8  ;;  %v2858_v36 = vsel %vm441_vm1, %v10874_v27, 0.0  ;;  %v2914_v1 = vmul.f32 %v10898_v17, %v10898_v17 }
 0x2f3   : > { %v2849_v3 = vadd.f32 %v2848_v59, %v2847_v34  ;;  %v2948_v21 = vadd.f32 %v2947_v19, %v2946_v30  ;;  %v2856_v19 = vsel %vm441_vm1, %v10856_v50, 0.0  ;;  %v2912_v59 = vmul.f32 %v10874_v27, %v10874_v27 }
 0x2f4   : > { %v2780_v13 = vadd.f32 %v10684_v55, %v1992_v63  ;;  %v10918_v8 = vadd.f32 %v10691_v11, %v2779_v45 }
 0x2f5   : > { %v2851_v9 = vadd.f32 %v2850_v24, %v2849_v3  ;;  %v2950_v47 = vadd.f32 %v2949_v38, %v2948_v21  ;;  %v2957_v3 = vsel %vm441_vm1, %v2911_v53, 0.0  ;;  %v10903_v21 = vadd.f32 %v10691_v11, %v2778_v46  ;;  %v15042_v53 = vld [vmem:[#allocation6_spill] sm:$0xff] }
 0x2f6   : > { %v2959_v28 = vsel %vm441_vm1, %v2912_v59, 0.0  ;;  %v2866_v45 = vsel %vm441_vm1, %v10918_v8, 0.0 }
 0x2f7   : > { %v2853_v62 = vadd.f32 %v2852_v25, %v2851_v9  ;;  %v2952_v10 = vadd.f32 %v2951_v60, %v2950_v47  ;;  %v15041_v60 = vld [vmem:[#allocation5_spill] sm:$0xff]  ;;  %v2915_v55 = vmul.f32 %v10903_v21, %v10903_v21 }
 0x2f8   : > { %v1995_v44 = vadd.f32 %v10695_v0, %v15041_v60  ;;  %v2009_v25 = vpop.f32.mrf.mxu1  ;;  %v1998_v0 = vadd.f32 %v10724_v52, %v15042_v53  ;;  %v2864_v52 = vsel %vm441_vm1, %v10903_v21, 0.0 }
 0x2f9   : > { %v2855_v34 = vadd.f32 %v2854_v56, %v2853_v62  ;;  %v2954_v30 = vadd.f32 %v2953_v48, %v2952_v10  ;;  %v2744_v62 = vpop.f32.mrf.mxu2  ;;  %v2961_v10 = vsel %vm441_vm1, %v2913_v43, 0.0  ;;  %v2862_v48 = vsel %vm441_vm1, %v10898_v17, 0.0 }
 0x2fa   : > { %v10928_v56 = vadd.f32 %v10691_v11, %v2780_v13  ;;  %v2781_v18 = vadd.f32 %v10709_v32, %v1995_v44 }
 0x2fb   : > { %v2857_v38 = vadd.f32 %v2856_v19, %v2855_v34  ;;  %v2956_v24 = vadd.f32 %v2955_v41, %v2954_v30  ;;  %v2963_v41 = vsel %vm441_vm1, %v2914_v1, 0.0  ;;  %v2916_v34 = vmul.f32 %v10918_v8, %v10918_v8 }
 0x2fc   : > { %v2965_v30 = vsel %vm441_vm1, %v2915_v55, 0.0  ;;  %v2782_v19 = vadd.f32 %v10746_v54, %v1998_v0  ;;  %v2917_v32 = vmul.f32 %v10928_v56, %v10928_v56  ;;  %v2868_v54 = vsel %vm441_vm1, %v10928_v56, 0.0  ;;  %v15044_v55 = vld [vmem:[#allocation8_spill] sm:$0xff] }
 0x2fd   : > { %v2859_v9 = vadd.f32 %v2858_v36, %v2857_v38  ;;  %v2958_v47 = vadd.f32 %v2957_v3, %v2956_v24  ;;  %v10943_v3 = vadd.f32 %v10691_v11, %v2781_v18  ;;  %v15043_v38 = vld [vmem:[#allocation7_spill] sm:$0xff]  ;;  %v2967_v13 = vsel %vm441_vm1, %v2916_v34, 0.0 }
 0x2fe   : > { %v2001_v24 = vadd.f32 %v10768_v26, %v15043_v38  ;;  %v10951_v60 = vadd.f32 %v10691_v11, %v2782_v19  ;;  %v2004_v53 = vadd.f32 %v10809_v16, %v15044_v55  ;;  %v3002_v16 = vld [vmem:[%s15004_s11 + $0x18] sm:$0xff] }
 0x2ff   : > { %v2861_v5 = vadd.f32 %v2860_v4, %v2859_v9  ;;  %v2960_v46 = vadd.f32 %v2959_v28, %v2958_v47  ;;  %v2969_v4 = vsel %vm441_vm1, %v2917_v32, 0.0  ;;  %v2918_v1 = vmul.f32 %v10943_v3, %v10943_v3  ;;  %3018 = vmatpush.msra.mxu3 %v3002_v16  ;;  %v15046_v32 = vld [vmem:[#allocation10_spill] sm:$0xff] }
 0x300   : > { %v2012_v47 = vpop.f32.mrf.mxu1  ;;  %v2783_v26 = vadd.f32 %v10789_v49, %v2001_v24  ;;  %v2872_v34 = vsel %vm441_vm1, %v10951_v60, 0.0  ;;  %v2010_v38 = vadd.f32 %v2009_v25, %v15046_v32 }
 0x301   : > { %v2962_v35 = vadd.f32 %v2961_v10, %v2960_v46  ;;  %v2863_v63 = vadd.f32 %v2862_v48, %v2861_v5  ;;  %v2870_v5 = vsel %vm441_vm1, %v10943_v3, 0.0  ;;  %v2919_v46 = vmul.f32 %v10951_v60, %v10951_v60 }
 0x302   : > { %v2971_v48 = vsel %vm441_vm1, %v2918_v1, 0.0  ;;  %v10965_v18 = vadd.f32 %v10691_v11, %v2783_v26  ;;  %v2786_v25 = vadd.f32 %v2744_v62, %v2010_v38  ;;  %v15047_v26 = vld [vmem:[#allocation11_spill] sm:$0xff] }
 0x303   : > { %v2865_v59 = vadd.f32 %v2864_v52, %v2863_v63  ;;  %v2964_v42 = vadd.f32 %v2963_v41, %v2962_v35  ;;  %v2784_v35 = vadd.f32 %v10834_v58, %v2004_v53  ;;  %v15045_v63 = vld [vmem:[#allocation9_spill] sm:$0xff]  ;;  %v2013_v55 = vadd.f32 %v2012_v47, %v15047_v26  ;;  %v15048_v53 = vld [vmem:[#allocation12_spill] sm:$0xff] }
 0x304   : > { %v2007_v49 = vadd.f32 %v10860_v39, %v15045_v63  ;;  %v3001_v52 = vld [vmem:[%s15004_s11 + $0x10] sm:$0xff]  ;;  %v3000_v39 = vld [vmem:[%s15004_s11 + $0x8] sm:$0xff] }
 0x305   : > { %v2867_v36 = vadd.f32 %v2866_v45, %v2865_v59  ;;  %v2966_v43 = vadd.f32 %v2965_v30, %v2964_v42  ;;  %v2747_v28 = vpop.f32.mrf.mxu2  ;;  %v2973_v30 = vsel %vm441_vm1, %v2919_v46, 0.0  ;;  %v2920_v59 = vmul.f32 %v10965_v18, %v10965_v18  ;;  %3019 = vmatpush.msra.mxu3 %v3001_v52 }
 0x306   : > { %v10985_v42 = vadd.f32 %v10691_v11, %v2784_v35  ;;  %v2785_v45 = vadd.f32 %v10882_v15, %v2007_v49  ;;  %v2787_v35 = vadd.f32 %v2747_v28, %v2013_v55  ;;  %v15049_v49 = vld [vmem:[#allocation13_spill] sm:$0xff]  ;;  %v3027_v28 = vld [vmem:[%s15005_s12 + $0x8] sm:$0xff] }
 0x307   : > { %v2869_v44 = vadd.f32 %v2868_v54, %v2867_v36  ;;  %v2968_v9 = vadd.f32 %v2967_v13, %v2966_v43  ;;  %v2999_v43 = vld [vmem:[%s15004_s11] sm:$0xff]  ;;  %v2874_v13 = vsel %vm441_vm1, %v10965_v18, 0.0  ;;  %3020 = vmatpush.msra.mxu3 %v3000_v39 }
 0x308   : > { %v10998_v15 = vadd.f32 %v10691_v11, %v2785_v45  ;;  %v2876_v1 = vsel %vm441_vm1, %v10985_v42, 0.0 }
 0x309   : > { %v2970_v0 = vadd.f32 %v2969_v4, %v2968_v9  ;;  %v2871_v10 = vadd.f32 %v2870_v5, %v2869_v44  ;;  %v2975_v44 = vsel %vm441_vm1, %v2920_v59, 0.0  ;;  %v2921_v9 = vmul.f32 %v10985_v42, %v10985_v42  ;;  %3021 = vmatpush.msra.mxu3 %v2999_v43  ;;  %v3026_v59 = vld [vmem:[%s15005_s12] sm:$0xff] }
 0x30a   : > { %v2878_v47 = vsel %vm441_vm1, %v10998_v15, 0.0 }
 0x30b   : > { %v2972_v41 = vadd.f32 %v2971_v48, %v2970_v0  ;;  %v2873_v19 = vadd.f32 %v2872_v34, %v2871_v10  ;;  %v2977_v46 = vsel %vm441_vm1, %v2921_v9, 0.0  ;;  %v2922_v10 = vmul.f32 %v10998_v15, %v10998_v15  ;;  %3046 = vmatpush.msrb.mxu3 %v3027_v28 }
 0x30c   : > { %v11008_v48 = vadd.f32 %v10691_v11, %v2786_v25 }
 0x30d   : > { %v2974_v24 = vadd.f32 %v2973_v30, %v2972_v41  ;;  %v2875_v54 = vadd.f32 %v2874_v13, %v2873_v19  ;;  %v2979_v30 = vsel %vm441_vm1, %v2922_v10, 0.0  ;;  %3047 = vmatpush.msrb.mxu3 %v3026_v59 }
 0x30e   : > { %v2750_v36 = vpop.f32.mrf.mxu2  ;;  %v2923_v19 = vmul.f32 %v11008_v48, %v11008_v48  ;;  %v2880_v32 = vsel %vm441_vm1, %v11008_v48, 0.0 }
 0x30f   : > { %v2015_v58 = vpop.f32.mrf.mxu1  ;;  %v2976_v4 = vadd.f32 %v2975_v44, %v2974_v24  ;;  %v2877_v5 = vadd.f32 %v2876_v1, %v2875_v54 }
 0x310   : > { %v2016_v0 = vadd.f32 %v2015_v58, %v15048_v53  ;;  %v11017_v58 = vadd.f32 %v10691_v11, %v2787_v35  ;;  %v15050_v53 = vld [vmem:[#allocation14_spill] sm:$0xff] }
 0x311   : > { %v2978_v63 = vadd.f32 %v2977_v46, %v2976_v4  ;;  %v2879_v34 = vadd.f32 %v2878_v47, %v2877_v5 }
 0x312   : > { %v2788_v52 = vadd.f32 %v2750_v36, %v2016_v0  ;;  %v2981_v36 = vsel %vm441_vm1, %v2923_v19, 0.0  ;;  %v2924_v43 = vmul.f32 %v11017_v58, %v11017_v58  ;;  %v2882_v9 = vsel %vm441_vm1, %v11017_v58, 0.0 }
 0x313   : > { %v2980_v45 = vadd.f32 %v2979_v30, %v2978_v63  ;;  %v2881_v24 = vadd.f32 %v2880_v32, %v2879_v34 }
 0x314   : > { %v11028_v38 = vadd.f32 %v10691_v11, %v2788_v52  ;;  %v2983_v1 = vsel %vm441_vm1, %v2924_v43, 0.0 }
 0x315   : > { %v2982_v54 = vadd.f32 %v2981_v36, %v2980_v45  ;;  %v2883_v4 = vadd.f32 %v2882_v9, %v2881_v24 }
 0x316   : > { %v2753_v16 = vpop.f32.mrf.mxu2  ;;  %v2925_v25 = vmul.f32 %v11028_v38, %v11028_v38  ;;  %v2884_v26 = vsel %vm441_vm1, %v11028_v38, 0.0 }
 0x317   : > { %v2984_v5 = vadd.f32 %v2983_v1, %v2982_v54  ;;  %v2885_v63 = vadd.f32 %v2884_v26, %v2883_v4 }
 0x318   : > { %v2018_v62 = vpop.f32.mrf.mxu1  ;;  %v2985_v10 = vsel %vm441_vm1, %v2925_v25, 0.0 }
 0x319   : > { %v2019_v41 = vadd.f32 %v2018_v62, %v15049_v49 }
 0x31b   : > { %v2789_v39 = vadd.f32 %v2753_v16, %v2019_v41  ;;  %v2986_v16 = vadd.f32 %v2985_v10, %v2984_v5  ;;  %v11061_v10 = vld [vmem:[#allocation2 + $0x7] sm:$0xff] }
 0x31d   : > { %v11034_v13 = vadd.f32 %v10691_v11, %v2789_v39 }
 0x31f   : > { %v2926_v55 = vmul.f32 %v11034_v13, %v11034_v13  ;;  %v2886_v35 = vsel %vm441_vm1, %v11034_v13, 0.0 }
 0x320   : > { %v2021_v44 = vpop.f32.mrf.mxu1  ;;  %v2887_v47 = vadd.f32 %v2886_v35, %v2885_v63  ;;  %v11063_v35 = vld [vmem:[#allocation2 + $0xf] sm:$0xff] }
 0x321   : > { %v2022_v0 = vadd.f32 %v2021_v44, %v15050_v53  ;;  %v2987_v49 = vsel %vm441_vm1, %v2926_v55, 0.0  ;;  %v3484_v63 = vrot.slane %v11063_v35, 2 }
 0x322   : > { %v2988_v30 = vadd.f32 %v2987_v49, %v2986_v16  ;;  %v3307_v16 = vrot.slane %v11061_v10, 1 }
 0x325   : > { %v2756_v46 = vpop.f32.mrf.mxu2 }
 0x326   : > { %v2790_v62 = vadd.f32 %v2756_v46, %v2022_v0 }
 0x328   : > { %v11051_v41 = vadd.f32 %v10691_v11, %v2790_v62  ;;  %v3483_v62 = vrot.slane %v11061_v10, 2 }
 0x32a   : > { %v2888_v52 = vsel %vm441_vm1, %v11051_v41, 0.0  ;;  %v2927_v34 = vmul.f32 %v11051_v41, %v11051_v41  ;;  %v3485_v49 = vsel %vm826_vm3, %v3483_v62, %v3484_v63 }
 0x32b   : > { %v2889_v19 = vadd.f32 %v2888_v52, %v2887_v47  ;;  %3563 = vrot.lane.b32.xlu1 %v3485_v49, %s8793_s15  ;;  %v3308_v47 = vrot.slane %v11063_v35, 1 }
 0x32c   : > { %v2989_v39 = vsel %vm441_vm1, %v2927_v34, 0.0 }
 0x32d   : > { %v2890_v28 = vrot.slane %v2889_v19, 4  ;;  %v2990_v59 = vadd.f32 %v2989_v39, %v2988_v30  ;;  %v3309_v30 = vsel %vm649_vm2, %v3307_v16, %v3308_v47 }
 0x32e   : > { %3387 = vrot.lane.b32.xlu0 %v3309_v30, %s8792_s14 }
 0x32f   : > { %v2891_v45 = vadd.f32 %v2890_v28, %v2889_v19  ;;  %v2991_v32 = vrot.slane %v2990_v59, 4 }
 0x331   : > { %v2892_v24 = vrot.slane %v2891_v45, 2  ;;  %v2992_v36 = vadd.f32 %v2991_v32, %v2990_v59  ;;  %v8713_v59 = vld [vmem:[%s14996_s3] ss:$0 sm:$0xff] }
 0x333   : > { %v2893_v11 = vadd.f32 %v2892_v24, %v2891_v45  ;;  %v2993_v43 = vrot.slane %v2992_v36, 2  ;;  %v11078_v45 = vld [vmem:[#allocation2 + $0x17] sm:$0x3] }
 0x334   : > { %v3486_v24 = vrot.slane %v11078_v45, 2 }
 0x335   : > { %v2894_v54 = vrot.slane %v2893_v11, 1  ;;  %v2994_v44 = vadd.f32 %v2993_v43, %v2992_v36 }
 0x337   : > { %v2995_v9 = vrot.slane %v2994_v44, 1  ;;  %v2895_v25 = vadd.f32 %v2894_v54, %v2893_v11  ;;  %v3487_v11 = vsel %vm826_vm3, %v3484_v63, %v3486_v24 }
 0x338   : > { %3565 = vrot.lane.b32.xlu2 %v3487_v11, %s8793_s15 }
 0x339   : > { %v2996_v4 = vadd.f32 %v2995_v9, %v2994_v44  ;;  %v3073_v9 = vld [vmem:[%s14997_s4] sm:$0x1] }
 0x33b   : > { %v2998_v1 = vsel %vm2997_vm6, %v2895_v25, %v2996_v4 }
 0x33c   : > { %8417 = vmatmul.msk.f32.vlgmr.msra.gmra.mxu3 %vm441_vm1, %v2998_v1 }
 0x3bf   : > { %v3023_v26 = vpop.f32.mrf.mxu3 }
 0x3c0   : > { %8418 = vmatmul.msk.f32.vlgmr.msrb.gmra.mxu3 %vm3028_vm7, %v3023_v26 }
 0x443   : > { %v3049_v55 = vpop.f32.mrf.mxu3 }
 0x444   : > { %v3052_v53 = vmul.f32 %v3049_v55, %v3049_v55 }
 0x446   : > { %v3054_v0 = vrot.slane %v3052_v53, 7 }
 0x448   : > { %v3056_v5 = vsub.f32 %v3049_v55, %v3054_v0 }
 0x44a   : > { %v3057_v46 = vadd.f32 1e-05, %v3056_v5 }
 0x44c   : > { %8717 = vrsqrt.f32 %v3057_v46  ;;  %vm3064_vm9 = vweird.f32 %v3057_v46 }
 0x452   : > { %v8718_v52 = vpop.eup %8717 }
 0x453   : > { %v3059_v34 = vmul.f32 %v8718_v52, %v3057_v46  ;;  %vm3065_vm8 = vweird.f32 %v8718_v52 }
 0x454   : > { %vm3066_vm10 = vmor %vm3064_vm9, %vm3065_vm8 }
 0x455   : > { %v3060_v19 = vmul.f32 %v8718_v52, %v3059_v34 }
 0x457   : > { %v3061_v39 = vmul.f32 0.5, %v3060_v19 }
 0x459   : > { %v3062_v28 = vsub.f32 1.5, %v3061_v39 }
 0x45b   : > { %v3063_v32 = vmul.f32 %v8718_v52, %v3062_v28 }
 0x45d   : > { %v3067_v36 = vsel %vm3066_vm10, %v8718_v52, %v3063_v32 }
 0x45e   : > { %v3072_v43 = vmul.f32 %v8713_v59, %v3067_v36 }
 0x460   : > { %v3075_v54 = vrot.slane %v3072_v43, 1  ;;  %v11086_v4 = vperm.slane %v3072_v43, 1 }
 0x462   : > { %v3077_v44 = vmul.f32 %v3075_v54, %v3049_v55  ;;  %v3080_v26 = vmul.f32 %v11086_v4, %v10704_v37  ;;  %v3081_v53 = vmul.f32 %v11086_v4, %v10699_v33  ;;  %v3082_v0 = vmul.f32 %v11086_v4, %v10707_v20 }
 0x463   : > { %v3083_v55 = vmul.f32 %v11086_v4, %v10716_v12  ;;  %v3084_v5 = vmul.f32 %v11086_v4, %v10729_v57  ;;  %v3085_v62 = vmul.f32 %v11086_v4, %v10741_v31  ;;  %v3086_v20 = vmul.f32 %v11086_v4, %v10753_v2 }
 0x464   : > { %v3078_v25 = vsub.f32 %v3073_v9, %v3077_v44  ;;  %v3087_v12 = vmul.f32 %v11086_v4, %v10764_v29  ;;  %v3088_v16 = vmul.f32 %v11086_v4, %v10776_v51  ;;  %v3089_v31 = vmul.f32 %v11086_v4, %v10817_v61 }
 0x465   : > { %v3090_v28 = vmul.f32 %v11086_v4, %v10801_v14  ;;  %v3091_v51 = vmul.f32 %v11086_v4, %v10812_v23  ;;  %v3092_v24 = vmul.f32 %v11086_v4, %v10820_v22  ;;  %v3093_v14 = vmul.f32 %v11086_v4, %v10839_v7 }
 0x466   : > { %v11088_v1 = vperm.slane %v3078_v25, 0  ;;  %v3094_v23 = vmul.f32 %v11086_v4, %v10847_v6  ;;  %v3095_v22 = vmul.f32 %v11086_v4, %v10856_v50  ;;  %v3096_v25 = vmul.f32 %v11086_v4, %v10874_v27 }
 0x467   : > { %v3098_v50 = vmul.f32 %v11086_v4, %v10898_v17 }
 0x468   : > { %v3115_v46 = vadd.f32 %v11088_v1, %v3080_v26  ;;  %v3116_v63 = vadd.f32 %v11088_v1, %v3081_v53  ;;  %v3117_v37 = vadd.f32 %v11088_v1, %v3082_v0  ;;  %v3118_v33 = vadd.f32 %v11088_v1, %v3083_v55 }
 0x469   : > { %v3119_v49 = vadd.f32 %v11088_v1, %v3084_v5  ;;  %v3120_v57 = vadd.f32 %v11088_v1, %v3085_v62  ;;  %v3121_v52 = vadd.f32 %v11088_v1, %v3086_v20  ;;  %v3122_v30 = vadd.f32 %v11088_v1, %v3087_v12 }
 0x46a   : > { %v3147_v34 = vmax.f32 %v3115_v46, 0.0  ;;  %v3148_v19 = vmax.f32 %v3116_v63, 0.0  ;;  %v3149_v2 = vmax.f32 %v3117_v37, 0.0  ;;  %v3150_v39 = vmax.f32 %v3118_v33, 0.0 }
 0x46b   : > { %v3123_v29 = vadd.f32 %v11088_v1, %v3088_v16  ;;  %v3151_v59 = vmax.f32 %v3119_v49, 0.0  ;;  %v3124_v61 = vadd.f32 %v11088_v1, %v3089_v31  ;;  %v3152_v32 = vmax.f32 %v3120_v57, 0.0 }
 0x46c   : > { %3179 = vst.msk [vmem:[#allocation2 + $0x28] sm:$0xff] %vm441_vm1, %v3147_v34  ;;  %v3125_v36 = vadd.f32 %v11088_v1, %v3090_v28  ;;  %v3153_v11 = vmax.f32 %v3121_v52, 0.0  ;;  %v3126_v43 = vadd.f32 %v11088_v1, %v3091_v51  ;;  %v3154_v54 = vmax.f32 %v3122_v30, 0.0 }
 0x46d   : > { %3180 = vst.msk [vmem:[#allocation2 + $0x30] sm:$0xff] %vm441_vm1, %v3148_v19  ;;  %v3127_v44 = vadd.f32 %v11088_v1, %v3092_v24  ;;  %v3155_v9 = vmax.f32 %v3123_v29, 0.0  ;;  %v3128_v7 = vadd.f32 %v11088_v1, %v3093_v14  ;;  %v3156_v26 = vmax.f32 %v3124_v61, 0.0 }
 0x46e   : > { %3181 = vst.msk [vmem:[#allocation2 + $0x48] sm:$0xff] %vm441_vm1, %v3149_v2  ;;  %v3097_v53 = vmul.f32 %v11086_v4, %v10888_v40  ;;  %v3129_v6 = vadd.f32 %v11088_v1, %v3094_v23  ;;  %v3157_v0 = vmax.f32 %v3125_v36, 0.0  ;;  %v3310_v55 = vrot.slane %v11078_v45, 1 }
 0x46f   : > { %3182 = vst.msk [vmem:[#allocation2 + $0x50] sm:$0xff] %vm441_vm1, %v3150_v39  ;;  %v3130_v27 = vadd.f32 %v11088_v1, %v3095_v22  ;;  %v3131_v5 = vadd.f32 %v11088_v1, %v3096_v25  ;;  %v3158_v46 = vmax.f32 %v3126_v43, 0.0  ;;  %v3099_v40 = vmul.f32 %v11086_v4, %v10903_v21 }
 0x470   : > { %3183 = vst.msk [vmem:[#allocation2 + $0x68] sm:$0xff] %vm441_vm1, %v3151_v59  ;;  %v3100_v62 = vmul.f32 %v11086_v4, %v10918_v8  ;;  %v3159_v63 = vmax.f32 %v3127_v44, 0.0  ;;  %v3311_v17 = vsel %vm649_vm2, %v3308_v47, %v3310_v55  ;;  %v3101_v45 = vmul.f32 %v11086_v4, %v10928_v56 }
 0x471   : > { %3184 = vst.msk [vmem:[#allocation2 + $0x70] sm:$0xff] %vm441_vm1, %v3152_v32  ;;  %v3102_v37 = vmul.f32 %v11086_v4, %v10943_v3  ;;  %v3132_v33 = vadd.f32 %v11088_v1, %v3097_v53  ;;  %v3160_v20 = vmax.f32 %v3128_v7, 0.0  ;;  %3389 = vrot.lane.b32.xlu1 %v3311_v17, %s8792_s14  ;;  %v3103_v21 = vmul.f32 %v11086_v4, %v10951_v60 }
 0x472   : > { %3185 = vst.msk [vmem:[#allocation2 + $0x88] sm:$0xff] %vm441_vm1, %v3153_v11  ;;  %v3104_v8 = vmul.f32 %v11086_v4, %v10965_v18  ;;  %v3133_v47 = vadd.f32 %v11088_v1, %v3098_v50  ;;  %v3161_v49 = vmax.f32 %v3129_v6, 0.0  ;;  %v3105_v56 = vmul.f32 %v11086_v4, %v10985_v42 }
 0x473   : > { %3186 = vst.msk [vmem:[#allocation2 + $0x90] sm:$0xff] %vm441_vm1, %v3154_v54  ;;  %v3134_v3 = vadd.f32 %v11088_v1, %v3099_v40  ;;  %v3162_v12 = vmax.f32 %v3130_v27, 0.0  ;;  %v3163_v57 = vmax.f32 %v3131_v5, 0.0  ;;  %v3135_v60 = vadd.f32 %v11088_v1, %v3100_v62 }
 0x474   : > { %3187 = vst.msk [vmem:[#allocation2 + $0xa8] sm:$0xff] %vm441_vm1, %v3155_v9  ;;  %v3136_v18 = vadd.f32 %v11088_v1, %v3101_v45  ;;  %v3164_v30 = vmax.f32 %v3132_v33, 0.0  ;;  %v3106_v28 = vmul.f32 %v11086_v4, %v10998_v15  ;;  %v3137_v29 = vadd.f32 %v11088_v1, %v3102_v37 }
 0x475   : > { %3188 = vst.msk [vmem:[#allocation2 + $0xb0] sm:$0xff] %vm441_vm1, %v3156_v26  ;;  %v3138_v59 = vadd.f32 %v11088_v1, %v3103_v21  ;;  %v3165_v51 = vmax.f32 %v3133_v47, 0.0  ;;  %v3166_v61 = vmax.f32 %v3134_v3, 0.0  ;;  %v3107_v36 = vmul.f32 %v11086_v4, %v11008_v48 }
 0x476   : > { %3189 = vst.msk [vmem:[#allocation2 + $0xc8] sm:$0xff] %vm441_vm1, %v3157_v0  ;;  %v3139_v11 = vadd.f32 %v11088_v1, %v3104_v8  ;;  %v3167_v14 = vmax.f32 %v3135_v60, 0.0  ;;  %v3108_v23 = vmul.f32 %v11086_v4, %v11017_v58  ;;  %v3109_v48 = vmul.f32 %v11086_v4, %v11028_v38 }
 0x477   : > { %3190 = vst.msk [vmem:[#allocation2 + $0xd0] sm:$0xff] %vm441_vm1, %v3158_v46  ;;  %v11179_v16 = vld [vmem:[#allocation2 + $0x67] sm:$0xff]  ;;  %v3140_v44 = vadd.f32 %v11088_v1, %v3105_v56  ;;  %v3168_v9 = vmax.f32 %v3136_v18, 0.0  ;;  %v3110_v22 = vmul.f32 %v11086_v4, %v11034_v13  ;;  %v3141_v25 = vadd.f32 %v11088_v1, %v3106_v28 }
 0x478   : > { %3191 = vst.msk [vmem:[#allocation2 + $0xe8] sm:$0xff] %vm441_vm1, %v3159_v63  ;;  %v11184_v31 = vld [vmem:[#allocation2 + $0x6f] sm:$0xff]  ;;  %v3743_v52 = vld [vmem:[#allocation2 + $0x77] sm:$0x3]  ;;  %v4017_v34 = vrot.slane %v11179_v16, 2  ;;  %v3841_v42 = vrot.slane %v11179_v16, 1  ;;  %v3142_v7 = vadd.f32 %v11088_v1, %v3107_v36  ;;  %v3143_v0 = vadd.f32 %v11088_v1, %v3108_v23 }
 0x479   : > { %3192 = vst.msk [vmem:[#allocation2 + $0xf0] sm:$0xff] %vm441_vm1, %v3160_v20  ;;  %v11190_v19 = vrot.slane %v11184_v31, 1  ;;  %v3844_v2 = vrot.slane %v3743_v52, 1  ;;  %v11193_v39 = vrot.slane %v11184_v31, 2  ;;  %v11218_v43 = vld [vmem:[#allocation2 + $0x87] sm:$0xff]  ;;  %v3169_v26 = vmax.f32 %v3137_v29, 0.0 }
 0x47a   : > { %3193 = vst.msk [vmem:[#allocation2 + $0x108] sm:$0xff] %vm441_vm1, %v3161_v49  ;;  %v11220_v54 = vld [vmem:[#allocation2 + $0x8f] sm:$0xff]  ;;  %v3170_v58 = vmax.f32 %v3138_v59, 0.0  ;;  %v4022_v38 = vrot.slane %v11218_v43, 2  ;;  %v4020_v6 = vrot.slane %v3743_v52, 2  ;;  %v3171_v55 = vmax.f32 %v3139_v11, 0.0 }
 0x47b   : > { %3194 = vst.msk [vmem:[#allocation2 + $0x110] sm:$0xff] %vm441_vm1, %v3162_v12  ;;  %v3845_v32 = vsel %vm649_vm2, %v11190_v19, %v3844_v2  ;;  %v11205_v24 = vsel %vm826_vm3, %v4017_v34, %v11193_v39  ;;  %v11209_v15 = vsel %vm649_vm2, %v3841_v42, %v11190_v19  ;;  %v11238_v53 = vrot.slane %v11220_v54, 2  ;;  %v3746_v20 = vld [vmem:[#allocation2 + $0x97] sm:$0x3] }
 0x47c   : > { %3195 = vst.msk [vmem:[#allocation2 + $0x128] sm:$0xff] %vm441_vm1, %v3163_v57  ;;  %3921 = vrot.lane.b32.xlu2 %v3845_v32, %s8792_s14  ;;  %3919 = vrot.lane.b32.xlu0 %v11209_v15, %s8792_s14  ;;  %v3846_v13 = vrot.slane %v11218_v43, 1  ;;  %v11244_v50 = vrot.slane %v11220_v54, 1  ;;  %v3111_v27 = vmul.f32 %v11086_v4, %v11051_v41  ;;  %v3144_v5 = vadd.f32 %v11088_v1, %v3109_v48  ;;  %v11270_v33 = vld [vmem:[#allocation2 + $0xaf] sm:$0xff]  ;;  %v3749_v52 = vld [vmem:[#allocation2 + $0xb7] sm:$0x3] }
 0x47d   : > { %3196 = vst.msk [vmem:[#allocation2 + $0x130] sm:$0xff] %vm441_vm1, %v3164_v30  ;;  %4095 = vrot.lane.b32.xlu1 %v11205_v24, %s8793_s15  ;;  %v3172_v46 = vmax.f32 %v3140_v44, 0.0  ;;  %v3145_v40 = vadd.f32 %v11088_v1, %v3110_v22  ;;  %v3173_v62 = vmax.f32 %v3141_v25, 0.0  ;;  %v3174_v17 = vmax.f32 %v3142_v7, 0.0  ;;  %v11314_v32 = vld [vmem:[#allocation2 + $0xc7] sm:$0xff] }
 0x47e   : > { %3197 = vst.msk [vmem:[#allocation2 + $0x148] sm:$0xff] %vm441_vm1, %v3165_v51  ;;  %v3146_v63 = vadd.f32 %v11088_v1, %v3111_v27  ;;  %v11256_v45 = vsel %vm826_vm3, %v4022_v38, %v11238_v53  ;;  %v4021_v41 = vsel %vm826_vm3, %v11193_v39, %v4020_v6  ;;  %v3175_v4 = vmax.f32 %v3143_v0, 0.0  ;;  %v11268_v1 = vld [vmem:[#allocation2 + $0xa7] sm:$0xff]  ;;  %v11312_v51 = vld [vmem:[#allocation2 + $0xcf] sm:$0xff] }
 0x47f   : > { %3198 = vst.msk [vmem:[#allocation2 + $0x150] sm:$0xff] %vm441_vm1, %v3166_v61  ;;  %v11265_v37 = vsel %vm649_vm2, %v3846_v13, %v11244_v50  ;;  %v3176_v21 = vmax.f32 %v3144_v5, 0.0  ;;  %v3177_v8 = vmax.f32 %v3145_v40, 0.0  ;;  %v3851_v49 = vrot.slane %v11268_v1, 1  ;;  %v3752_v61 = vld [vmem:[#allocation2 + $0xd7] sm:$0x3] }
 0x480   : > { %3199 = vst.msk [vmem:[#allocation2 + $0x168] sm:$0xff] %vm441_vm1, %v3167_v14  ;;  %v3178_v47 = vmax.f32 %v3146_v63, 0.0  ;;  %v11279_v56 = vrot.slane %v11270_v33, 1  ;;  %v3849_v3 = vrot.slane %v3746_v20, 1  ;;  %v4025_v12 = vrot.slane %v3746_v20, 2  ;;  %v11338_v25 = vld [vmem:[#allocation2 + $0xe7] sm:$0xff] }
 0x481   : > { %3200 = vst.msk [vmem:[#allocation2 + $0x170] sm:$0xff] %vm441_vm1, %v3168_v9  ;;  %v11298_v34 = vrot.slane %v11270_v33, 2  ;;  %v4030_v42 = vrot.slane %v3749_v52, 2  ;;  %v4027_v30 = vrot.slane %v11268_v1, 2  ;;  %v3854_v2 = vrot.slane %v3749_v52, 1  ;;  %v11340_v7 = vld [vmem:[#allocation2 + $0xef] sm:$0xff] }
 0x482   : > { %3201 = vst.msk [vmem:[#allocation2 + $0x188] sm:$0xff] %vm441_vm1, %v3169_v26  ;;  %v11287_v57 = vsel %vm649_vm2, %v3851_v49, %v11279_v56  ;;  %v3850_v60 = vsel %vm649_vm2, %v11244_v50, %v3849_v3  ;;  %v4026_v18 = vsel %vm826_vm3, %v11238_v53, %v4025_v12  ;;  %v11318_v36 = vrot.slane %v11312_v51, 1  ;;  %v3755_v5 = vld [vmem:[#allocation2 + $0xf7] sm:$0x3]  ;;  %v11369_v40 = vld [vmem:[#allocation2 + $0x10f] sm:$0xff] }
 0x483   : > { %3202 = vst.msk [vmem:[#allocation2 + $0x190] sm:$0xff] %vm441_vm1, %v3170_v58  ;;  %v4031_v28 = vsel %vm826_vm3, %v11298_v34, %v4030_v42  ;;  %v11305_v29 = vsel %vm826_vm3, %v4027_v30, %v11298_v34  ;;  %v3855_v59 = vsel %vm649_vm2, %v11279_v56, %v3854_v2  ;;  %v3859_v11 = vrot.slane %v3752_v61, 1  ;;  %v3758_v49 = vld [vmem:[#allocation2 + $0x117] sm:$0x3]  ;;  %v3732_v30 = vld [vmem:[%s14998_s5 + $0x48] sm:$0xff] }
 0x484   : > { %3203 = vst.msk [vmem:[#allocation2 + $0x1a8] sm:$0xff] %vm441_vm1, %v3171_v55  ;;  %4099 = vrot.lane.b32.xlu2 %v11256_v45, %s8793_s15  ;;  %4097 = vrot.lane.b32.xlu0 %v4021_v41, %s8793_s15  ;;  %v3856_v14 = vrot.slane %v11314_v32, 1  ;;  %v4032_v23 = vrot.slane %v11314_v32, 2  ;;  %v11323_v48 = vrot.slane %v11312_v51, 2  ;;  %v4037_v26 = vrot.slane %v11338_v25, 2  ;;  %v3734_v3 = vld [vmem:[%s14998_s5 + $0x58] sm:$0xff] }
 0x485   : > { %3204 = vst.msk [vmem:[#allocation2 + $0x1b0] sm:$0xff] %vm441_vm1, %v3172_v46  ;;  %3923 = vrot.lane.b32.xlu1 %v11265_v37, %s8792_s14  ;;  %v3860_v44 = vsel %vm649_vm2, %v11318_v36, %v3859_v11  ;;  %v11346_v58 = vrot.slane %v11340_v7, 2  ;;  %v4035_v38 = vrot.slane %v3752_v61, 2  ;;  %v3861_v6 = vrot.slane %v11338_v25, 1  ;;  %v11367_v46 = vld [vmem:[#allocation2 + $0x107] sm:$0xff]  ;;  %v3733_v12 = vld [vmem:[%s14998_s5 + $0x50] sm:$0xff]  ;;  %4569 = vmatpush.msrb.mxu0 %v3734_v3 }
 0x486   : > { %3205 = vst.msk [vmem:[#allocation2 + $0x1c8] sm:$0xff] %vm441_vm1, %v3173_v62  ;;  %v11329_v9 = vsel %vm649_vm2, %v3856_v14, %v11318_v36  ;;  %v11334_v22 = vsel %vm826_vm3, %v4032_v23, %v11323_v48  ;;  %v11350_v0 = vrot.slane %v11340_v7, 1  ;;  %v3864_v62 = vrot.slane %v3755_v5, 1  ;;  %v3216_v14 = vld [vmem:[#allocation2 + $0x37] sm:$0x3]  ;;  %v11448_v3 = vld [vmem:[#allocation2 + $0x47] sm:$0xff] }
 0x487   : > { %3206 = vst.msk [vmem:[#allocation2 + $0x1d0] sm:$0xff] %vm441_vm1, %v3174_v17  ;;  %v11354_v55 = vsel %vm826_vm3, %v4037_v26, %v11346_v58  ;;  %v4036_v13 = vsel %vm826_vm3, %v11323_v48, %v4035_v38  ;;  %v4040_v63 = vrot.slane %v3755_v5, 2  ;;  %v4042_v17 = vrot.slane %v11367_v46, 2  ;;  %4570 = vmatpush.msrb.mxu0 %v3733_v12  ;;  %v3730_v23 = vld [vmem:[%s14998_s5 + $0x38] sm:$0xff]  ;;  %v11450_v12 = vld [vmem:[#allocation2 + $0x127] sm:$0xff] }
 0x488   : > { %3207 = vst.msk [vmem:[#allocation2 + $0x1e8] sm:$0xff] %vm441_vm1, %v3175_v4  ;;  %v11362_v27 = vsel %vm649_vm2, %v3861_v6, %v11350_v0  ;;  %v11373_v41 = vrot.slane %v11369_v40, 2  ;;  %v3865_v4 = vsel %vm649_vm2, %v11350_v0, %v3864_v62  ;;  %v3869_v2 = vrot.slane %v3758_v49, 1  ;;  %v3729_v6 = vld [vmem:[%s14998_s5 + $0x30] sm:$0xff]  ;;  %v3728_v62 = vld [vmem:[%s14998_s5 + $0x28] sm:$0xff] }
 0x489   : > { %3208 = vst.msk [vmem:[#allocation2 + $0x1f0] sm:$0xff] %vm441_vm1, %v3176_v21  ;;  %v4041_v20 = vsel %vm826_vm3, %v11346_v58, %v4040_v63  ;;  %4571 = vmatpush.msrb.mxu0 %v3732_v30  ;;  %v4045_v38 = vrot.slane %v3758_v49, 2  ;;  %v3491_v5 = vrot.slane %v3216_v14, 2  ;;  %v8429_v63 = vld [vmem:[%s14998_s5 + $0xb0] sm:$0xff]  ;;  %v3726_v30 = vld [vmem:[%s14998_s5 + $0x18] sm:$0xff] }
 0x48a   : > { %3209 = vst.msk [vmem:[#allocation2 + $0x208] sm:$0xff] %vm441_vm1, %v3177_v8  ;;  %v11382_v21 = vsel %vm826_vm3, %v4042_v17, %v11373_v41  ;;  %v11385_v8 = vld [vmem:[#allocation2 + $0x27] sm:$0xff] }
 0x48b   : > { %3210 = vst.msk [vmem:[#allocation2 + $0x210] sm:$0xff] %vm441_vm1, %v3178_v47  ;;  %v11387_v47 = vld [vmem:[#allocation2 + $0x2f] sm:$0xff]  ;;  %v3312_v52 = vrot.slane %v11385_v8, 1  ;;  %v3488_v26 = vrot.slane %v11385_v8, 2  ;;  %v3727_v17 = vld [vmem:[%s14998_s5 + $0x20] sm:$0xff] }
 0x48c   : > { %3927 = vrot.lane.b32.xlu2 %v11287_v57, %s8792_s14  ;;  %3925 = vrot.lane.b32.xlu0 %v3850_v60, %s8792_s14  ;;  %15051 = vst [vmem:[#allocation15_spill] sm:$0xff] %v11373_v41  ;;  %v11398_v60 = vrot.slane %v11369_v40, 1  ;;  %v3313_v42 = vrot.slane %v11387_v47, 1 }
 0x48d   : > { %4101 = vrot.lane.b32.xlu1 %v4026_v18, %s8793_s15  ;;  %15052 = vst [vmem:[#allocation16_spill] sm:$0xff] %v11382_v21  ;;  %v3866_v18 = vrot.slane %v11367_v46, 1 }
 0x48e   : > { %15053 = vst [vmem:[#allocation3_spill] sm:$0xff] %v11398_v60  ;;  %v3314_v61 = vsel %vm649_vm2, %v3312_v52, %v3313_v42  ;;  %v3870_v11 = vsel %vm649_vm2, %v11398_v60, %v3869_v2  ;;  %v11455_v52 = vld [vmem:[#allocation2 + $0x4f] sm:$0xff] }
 0x48f   : > { %v8428_v2 = vld [vmem:[%s14998_s5 + $0xa8] sm:$0xff] }
 0x494   : > { %4105 = vrot.lane.b32.xlu2 %v4031_v28, %s8793_s15  ;;  %4103 = vrot.lane.b32.xlu0 %v11305_v29, %s8793_s15  ;;  %v3731_v28 = vld [vmem:[%s14998_s5 + $0x40] sm:$0xff] }
 0x495   : > { %3929 = vrot.lane.b32.xlu1 %v3855_v59, %s8792_s14  ;;  %v11411_v59 = vsel %vm649_vm2, %v3866_v18, %v11398_v60  ;;  %4572 = vmatpush.msrb.mxu0 %v3731_v28  ;;  %v11452_v18 = vld [vmem:[#allocation2 + $0x12f] sm:$0xff] }
 0x496   : > { %15054 = vst [vmem:[#allocation17_spill] sm:$0xff] %v11411_v59  ;;  %v3725_v28 = vld [vmem:[%s14998_s5 + $0x10] sm:$0xff] }
 0x497   : > { %4573 = vmatpush.msrb.mxu0 %v3730_v23  ;;  %v3871_v23 = vrot.slane %v11450_v12, 1 }
 0x499   : > { %4574 = vmatpush.msrb.mxu0 %v3729_v6  ;;  %v3317_v6 = vrot.slane %v11448_v3, 1 }
 0x49b   : > { %4575 = vmatpush.msrb.mxu0 %v3728_v62  ;;  %v3723_v62 = vld [vmem:[%s14998_s5] sm:$0xff] }
 0x49c   : > { %3933 = vrot.lane.b32.xlu2 %v3860_v44, %s8792_s14  ;;  %3931 = vrot.lane.b32.xlu0 %v11329_v9, %s8792_s14  ;;  %v3489_v44 = vrot.slane %v11387_v47, 2 }
 0x49d   : > { %4107 = vrot.lane.b32.xlu1 %v11334_v22, %s8793_s15  ;;  %4576 = vmatpush.msrb.mxu0 %v3727_v17 }
 0x49e   : > { %v3492_v49 = vsel %vm826_vm3, %v3489_v44, %v3491_v5 }
 0x49f   : > { %4577 = vmatpush.msrb.mxu0 %v3726_v30  ;;  %v4048_v30 = vrot.slane %v11452_v18, 2 }
 0x4a1   : > { %4578 = vmatpush.msrb.mxu0 %v3725_v28  ;;  %v3493_v28 = vrot.slane %v11448_v3, 2 }
 0x4a4   : > { %4111 = vrot.lane.b32.xlu2 %v11354_v55, %s8793_s15  ;;  %4109 = vrot.lane.b32.xlu0 %v4036_v13, %s8793_s15  ;;  %v8430_v13 = vld [vmem:[%s14998_s5 + $0xb8] sm:$0xff] }
 0x4a5   : > { %3935 = vrot.lane.b32.xlu1 %v11362_v27, %s8792_s14  ;;  %8677 = vmatpush.msra.mxu3 %v8430_v13 }
 0x4a6   : > { %4360 = vmatpush.msrb.mxu2 %v8430_v13  ;;  %v11476_v13 = vrot.slane %v11455_v52, 1 }
 0x4a7   : > { %8678 = vmatpush.msra.mxu3 %v8429_v63 }
 0x4a8   : > { %4361 = vmatpush.msrb.mxu2 %v8429_v63 }
 0x4a9   : > { %8679 = vmatpush.msra.mxu3 %v8428_v2 }
 0x4aa   : > { %4362 = vmatpush.msrb.mxu2 %v8428_v2  ;;  %v4047_v2 = vrot.slane %v11450_v12, 2 }
 0x4ac   : > { %3937 = vrot.lane.b32.xlu2 %v3865_v4, %s8792_s14  ;;  %4113 = vrot.lane.b32.xlu0 %v4041_v20, %s8793_s15  ;;  %v3490_v4 = vsel %vm826_vm3, %v3488_v26, %v3489_v44  ;;  %v4046_v20 = vsel %vm826_vm3, %v11373_v41, %v4045_v38  ;;  %v3872_v44 = vrot.slane %v11452_v18, 1  ;;  %v3388_v26 = vpop.permute.xlu0 %3387  ;;  %v8426_v38 = vld [vmem:[%s14998_s5 + $0x98] sm:$0xff] }
 0x4ad   : > { %4115 = vrot.lane.b32.xlu1 %v11382_v21, %s8793_s15  ;;  %v3659_v5 = vsel %vm441_vm1, %v11061_v10, %v3388_v26  ;;  %v11497_v10 = vsel %vm649_vm2, %v3317_v6, %v11476_v13  ;;  %v8423_v26 = vld [vmem:[%s14998_s5 + $0x80] sm:$0xff]  ;;  %v4049_v6 = vsel %vm826_vm3, %v4047_v2, %v4048_v30 }
 0x4ae   : > { %v3873_v17 = vsel %vm649_vm2, %v3871_v23, %v3872_v44  ;;  %v8424_v23 = vld [vmem:[%s14998_s5 + $0x88] sm:$0xff] }
 0x4b4   : > { %3939 = vrot.lane.b32.xlu0 %v11411_v59, %s8792_s14  ;;  %3391 = vrot.lane.b32.xlu2 %v3314_v61, %s8792_s14  ;;  %v8427_v61 = vld [vmem:[%s14998_s5 + $0xa0] sm:$0xff] }
 0x4b5   : > { %3941 = vrot.lane.b32.xlu1 %v3870_v11, %s8792_s14  ;;  %v3315_v11 = vrot.slane %v3216_v14, 1  ;;  %8680 = vmatpush.msra.mxu3 %v8427_v61  ;;  %v3724_v14 = vld [vmem:[%s14998_s5 + $0x8] sm:$0xff] }
 0x4b6   : > { %4363 = vmatpush.msrb.mxu2 %v8427_v61  ;;  %4579 = vmatpush.msrb.mxu0 %v3724_v14  ;;  %v11509_v61 = vrot.slane %v11455_v52, 2 }
 0x4b7   : > { %8681 = vmatpush.msra.mxu3 %v8426_v38  ;;  %v3316_v63 = vsel %vm649_vm2, %v3313_v42, %v3315_v11  ;;  %v3761_v42 = vld [vmem:[#allocation2 + $0x137] sm:$0x3] }
 0x4b8   : > { %4364 = vmatpush.msrb.mxu2 %v8426_v38  ;;  %4580 = vmatpush.msrb.mxu0 %v3723_v62  ;;  %v4050_v11 = vrot.slane %v3761_v42, 2  ;;  %v8422_v38 = vld [vmem:[%s14998_s5 + $0x78] sm:$0xff]  ;;  %v11523_v14 = vsel %vm826_vm3, %v3493_v28, %v11509_v61  ;;  %v3566_v62 = vpop.permute.xlu2 %3565 }
 0x4bc   : > { %3567 = vrot.lane.b32.xlu0 %v3490_v4, %s8793_s15  ;;  %4117 = vrot.lane.b32.xlu2 %v4046_v20, %s8793_s15  ;;  %v8425_v4 = vld [vmem:[%s14998_s5 + $0x90] sm:$0xff]  ;;  %v3564_v20 = vpop.permute.xlu1 %3563 }
 0x4bd   : > { %3569 = vrot.lane.b32.xlu1 %v3492_v49, %s8793_s15  ;;  %v3691_v49 = vsel %vm1035_vm5, %v3659_v5, %v3564_v20  ;;  %8682 = vmatpush.msra.mxu3 %v8425_v4  ;;  %v4051_v5 = vsel %vm826_vm3, %v4048_v30, %v4050_v11  ;;  %v11535_v20 = vld [vmem:[#allocation2 + $0x14f] sm:$0xff]  ;;  %v3874_v30 = vrot.slane %v3761_v42, 1 }
 0x4be   : > { %8463 = vmatmul.msk.f32.vlgmr.msrb.gmra.mxu0 %vm1605_vm4, %v3691_v49  ;;  %4365 = vmatpush.msrb.mxu2 %v8425_v4  ;;  %v11533_v4 = vld [vmem:[#allocation2 + $0x147] sm:$0xff]  ;;  %v3877_v11 = vrot.slane %v11535_v20, 1 }
 0x4bf   : > { %8683 = vmatpush.msra.mxu3 %v8424_v23  ;;  %v8420_v49 = vld [vmem:[%s14998_s5 + $0x68] sm:$0xff]  ;;  %v3876_v28 = vrot.slane %v11533_v4, 1 }
 0x4c0   : > { %4366 = vmatpush.msrb.mxu2 %v8424_v23  ;;  %v8419_v23 = vld [vmem:[%s14998_s5 + $0x60] sm:$0xff] }
 0x4c1   : > { %8684 = vmatpush.msra.mxu3 %v8423_v26 }
 0x4c2   : > { %4367 = vmatpush.msrb.mxu2 %v8423_v26  ;;  %v3875_v26 = vsel %vm649_vm2, %v3872_v44, %v3874_v30 }
 0x4c3   : > { %8685 = vmatpush.msra.mxu3 %v8422_v38 }
 0x4c4   : > { %3393 = vrot.lane.b32.xlu0 %v3316_v63, %s8792_s14  ;;  %3943 = vrot.lane.b32.xlu2 %v3873_v17, %s8792_s14  ;;  %v3219_v63 = vld [vmem:[#allocation2 + $0x57] sm:$0x3] }
 0x4c5   : > { %3395 = vrot.lane.b32.xlu1 %v11497_v10, %s8792_s14  ;;  %v8421_v17 = vld [vmem:[%s14998_s5 + $0x70] sm:$0xff]  ;;  %4368 = vmatpush.msrb.mxu2 %v8422_v38  ;;  %v3320_v2 = vrot.slane %v3219_v63, 1  ;;  %v3878_v38 = vsel %vm649_vm2, %v3876_v28, %v3877_v11 }
 0x4c6   : > { %8686 = vmatpush.msra.mxu3 %v8421_v17  ;;  %v3222_v28 = vld [vmem:[#allocation2 + $0x77] sm:$0x3] }
 0x4c7   : > { %4369 = vmatpush.msrb.mxu2 %v8421_v17  ;;  %v3321_v42 = vsel %vm649_vm2, %v11476_v13, %v3320_v2  ;;  %v4052_v17 = vrot.slane %v11533_v4, 2  ;;  %v3764_v2 = vld [vmem:[#allocation2 + $0x157] sm:$0x3]  ;;  %v3501_v41 = vrot.slane %v3222_v28, 2 }
 0x4c8   : > { %8687 = vmatpush.msra.mxu3 %v8420_v49  ;;  %v4055_v60 = vrot.slane %v3764_v2, 2 }
 0x4c9   : > { %4370 = vmatpush.msrb.mxu2 %v8420_v49  ;;  %v4053_v49 = vrot.slane %v11535_v20, 2  ;;  %v3502_v59 = vsel %vm826_vm3, %v11193_v39, %v3501_v41 }
 0x4ca   : > { %8688 = vmatpush.msra.mxu3 %v8419_v23 }
 0x4cb   : > { %4371 = vmatpush.msrb.mxu2 %v8419_v23  ;;  %v4054_v30 = vsel %vm826_vm3, %v4052_v17, %v4053_v49  ;;  %v11572_v17 = vld [vmem:[#allocation2 + $0x16f] sm:$0xff] }
 0x4cc   : > { %4119 = vrot.lane.b32.xlu0 %v4049_v6, %s8793_s15  ;;  %3571 = vrot.lane.b32.xlu2 %v11523_v14, %s8793_s15 }
 0x4cd   : > { %4121 = vrot.lane.b32.xlu1 %v4051_v5, %s8793_s15  ;;  %v3496_v5 = vrot.slane %v3219_v63, 2  ;;  %v3879_v63 = vrot.slane %v3764_v2, 1 }
 0x4cf   : > { %v3497_v44 = vsel %vm826_vm3, %v11509_v61, %v3496_v5  ;;  %v11570_v5 = vld [vmem:[#allocation2 + $0x167] sm:$0xff] }
 0x4d0   : > { %v3881_v41 = vrot.slane %v11570_v5, 1 }
 0x4d4   : > { %3945 = vrot.lane.b32.xlu0 %v3875_v26, %s8792_s14  ;;  %3397 = vrot.lane.b32.xlu2 %v3321_v42, %s8792_s14  ;;  %v3325_v26 = vrot.slane %v3222_v28, 1  ;;  %v3880_v42 = vsel %vm649_vm2, %v3877_v11, %v3879_v63  ;;  %v4057_v63 = vrot.slane %v11570_v5, 2 }
 0x4d5   : > { %3947 = vrot.lane.b32.xlu1 %v3878_v38, %s8792_s14 }
 0x4d6   : > { %v3922_v6 = vpop.permute.xlu2 %3921  ;;  %v3326_v38 = vsel %vm649_vm2, %v11190_v19, %v3325_v26  ;;  %v4058_v26 = vrot.slane %v11572_v17, 2 }
 0x4d8   : > { %v4059_v21 = vsel %vm826_vm3, %v4057_v63, %v4058_v26  ;;  %v4188_v63 = vsel %vm441_vm1, %v11184_v31, %v3922_v6  ;;  %v11618_v6 = vld [vmem:[#allocation2 + $0x187] sm:$0xff] }
 0x4dc   : > { %3573 = vrot.lane.b32.xlu0 %v3497_v44, %s8793_s15  ;;  %4123 = vrot.lane.b32.xlu2 %v4054_v30, %s8793_s15 }
 0x4dd   : > { %3575 = vrot.lane.b32.xlu1 %v11205_v24, %s8793_s15 }
 0x4de   : > { %v4100_v23 = vpop.permute.xlu2 %4099 }
 0x4e3   : > { %v3390_v30 = vpop.permute.xlu1 %3389 }
 0x4e4   : > { %3399 = vrot.lane.b32.xlu0 %v11209_v15, %s8792_s14  ;;  %3949 = vrot.lane.b32.xlu2 %v3880_v42, %s8792_s14  ;;  %v3660_v11 = vsel %vm441_vm1, %v11063_v35, %v3390_v30  ;;  %v3767_v35 = vld [vmem:[#allocation2 + $0x177] sm:$0x3] }
 0x4e5   : > { %3401 = vrot.lane.b32.xlu1 %v3326_v38, %s8792_s14  ;;  %v3692_v42 = vsel %vm1035_vm5, %v3660_v11, %v3566_v62  ;;  %v4056_v38 = vsel %vm826_vm3, %v4053_v49, %v4055_v60  ;;  %v3882_v60 = vrot.slane %v11572_v17, 1  ;;  %v3884_v11 = vrot.slane %v3767_v35, 1 }
 0x4e6   : > { %v11574_v44 = vpop.permute.xlu2 %3927  ;;  %8464 = vmatmul.msk.f32.gmra.mxu0 %vm1605_vm4, %v3692_v42 }
 0x4ec   : > { %4125 = vrot.lane.b32.xlu0 %v4056_v38, %s8793_s15  ;;  %3577 = vrot.lane.b32.xlu2 %v3502_v59, %s8793_s15  ;;  %v3883_v59 = vsel %vm649_vm2, %v3881_v41, %v3882_v60 }
 0x4ed   : > { %4127 = vrot.lane.b32.xlu1 %v4059_v21, %s8793_s15  ;;  %v3885_v21 = vsel %vm649_vm2, %v3882_v60, %v3884_v11 }
 0x4ee   : > { %v11589_v2 = vpop.permute.xlu2 %4105  ;;  %v3920_v28 = vpop.permute.xlu0 %3919 }
 0x4ef   : > { %v4096_v62 = vpop.permute.xlu1 %4095  ;;  %v4187_v30 = vsel %vm441_vm1, %v11179_v16, %v3920_v28  ;;  %v3225_v16 = vld [vmem:[#allocation2 + $0x97] sm:$0x3] }
 0x4f0   : > { %v4219_v49 = vsel %vm1035_vm5, %v4187_v30, %v4096_v62  ;;  %v4060_v30 = vrot.slane %v3767_v35, 2  ;;  %v3506_v41 = vrot.slane %v3225_v16, 2  ;;  %v11620_v35 = vld [vmem:[#allocation2 + $0x18f] sm:$0xff] }
 0x4f1   : > { %8435 = vmatmul.msk.f32.vlgmr.msra.gmra.mxu3 %vm1605_vm4, %v4219_v49 }
 0x4f2   : > { %v4061_v60 = vsel %vm826_vm3, %v4058_v26, %v4060_v30  ;;  %v3507_v49 = vsel %vm826_vm3, %v11238_v53, %v3506_v41 }
 0x4f4   : > { %3951 = vrot.lane.b32.xlu0 %v3883_v59, %s8792_s14  ;;  %3403 = vrot.lane.b32.xlu2 %v11265_v37, %s8792_s14 }
 0x4f5   : > { %3953 = vrot.lane.b32.xlu1 %v3885_v21, %s8792_s14  ;;  %v3330_v21 = vrot.slane %v3225_v16, 1 }
 0x4f6   : > { %v11605_v42 = vpop.permute.xlu2 %3933  ;;  %v4098_v38 = vpop.permute.xlu0 %4097 }
 0x4f7   : > { %v3924_v28 = vpop.permute.xlu1 %3923  ;;  %v4220_v62 = vsel %vm1035_vm5, %v4188_v63, %v4098_v38  ;;  %v3886_v38 = vrot.slane %v11618_v6, 1 }
 0x4f8   : > { %v4189_v31 = vsel %vm441_vm1, %v11218_v43, %v3924_v28  ;;  %v3331_v43 = vsel %vm649_vm2, %v11244_v50, %v3330_v21 }
 0x4f9   : > { %8436 = vmatmul.msk.f32.gmra.mxu3 %vm1605_vm4, %v4220_v62  ;;  %v4221_v63 = vsel %vm1035_vm5, %v4189_v31, %v4100_v23  ;;  %v11627_v62 = vrot.slane %v11620_v35, 1 }
 0x4fb   : > { %v11634_v28 = vsel %vm649_vm2, %v3886_v38, %v11627_v62 }
 0x4fc   : > { %3579 = vrot.lane.b32.xlu0 %v11256_v45, %s8793_s15  ;;  %4129 = vrot.lane.b32.xlu2 %v4061_v60, %s8793_s15  ;;  %v4062_v60 = vrot.slane %v11618_v6, 2 }
 0x4fd   : > { %3581 = vrot.lane.b32.xlu1 %v3507_v49, %s8793_s15  ;;  %v11647_v49 = vrot.slane %v11620_v35, 2 }
 0x4fe   : > { %v11622_v11 = vpop.permute.xlu2 %4111  ;;  %v3926_v26 = vpop.permute.xlu0 %3925 }
 0x4ff   : > { %v4102_v59 = vpop.permute.xlu1 %4101  ;;  %v4190_v23 = vsel %vm441_vm1, %v11220_v54, %v3926_v26  ;;  %v4680_v54 = vld [vmem:[#allocation2 + $0x57] sm:$0x3] }
 0x500   : > { %v4222_v31 = vsel %vm1035_vm5, %v4190_v23, %v4102_v59  ;;  %v3770_v26 = vld [vmem:[#allocation2 + $0x197] sm:$0x3] }
 0x501   : > { %8437 = vmatmul.msk.f32.gmra.mxu3 %vm1605_vm4, %v4221_v63  ;;  %v4191_v63 = vsel %vm441_vm1, %v11268_v1, %v11574_v44  ;;  %v3228_v44 = vld [vmem:[#allocation2 + $0xb7] sm:$0x3] }
 0x504   : > { %3405 = vrot.lane.b32.xlu0 %v3331_v43, %s8792_s14  ;;  %4854 = vrot.lane.b32.xlu2 %v11497_v10, %s8792_s14  ;;  %v11653_v10 = vsel %vm826_vm3, %v4062_v60, %v11647_v49  ;;  %v4777_v43 = vrot.slane %v4680_v54, 1 }
 0x505   : > { %3955 = vrot.lane.b32.xlu1 %v11634_v28, %s8792_s14 }
 0x506   : > { %v11643_v16 = vpop.permute.xlu2 %3937  ;;  %v4104_v30 = vpop.permute.xlu0 %4103  ;;  %v4778_v60 = vsel %vm649_vm2, %v11476_v13, %v4777_v43  ;;  %v4953_v43 = vrot.slane %v4680_v54, 2 }
 0x507   : > { %v3930_v41 = vpop.permute.xlu1 %3929  ;;  %v4223_v23 = vsel %vm1035_vm5, %v4191_v63, %v4104_v30  ;;  %v8506_v30 = vld [vmem:[%s14998_s5 + $0x118] sm:$0xff] }
 0x508   : > { %v4192_v1 = vsel %vm441_vm1, %v11270_v33, %v3930_v41  ;;  %5303 = vmatpush.msra.mxu1 %v8506_v30  ;;  %8689 = vmatpush.msrb.mxu3 %v8506_v30  ;;  %v4954_v33 = vsel %vm826_vm3, %v11509_v61, %v4953_v43  ;;  %v3335_v30 = vrot.slane %v3228_v44, 1 }
 0x509   : > { %8438 = vmatmul.msk.f32.gmra.mxu3 %vm1605_vm4, %v4222_v31 }
 0x50c   : > { %5030 = vrot.lane.b32.xlu0 %v11523_v14, %s8793_s15  ;;  %4131 = vrot.lane.b32.xlu2 %v11653_v10, %s8793_s15  ;;  %v3889_v14 = vrot.slane %v3770_v26, 1 }
 0x50d   : > { %3583 = vrot.lane.b32.xlu1 %v11305_v29, %s8793_s15 }
 0x50e   : > { %v11661_v21 = vpop.permute.xlu2 %3391  ;;  %v3932_v59 = vpop.permute.xlu0 %3931  ;;  %v3890_v29 = vsel %vm649_vm2, %v11627_v62, %v3889_v14  ;;  %v3511_v14 = vrot.slane %v3228_v44, 2 }
 0x50f   : > { %v4108_v38 = vpop.permute.xlu1 %4107  ;;  %v4193_v54 = vsel %vm441_vm1, %v11314_v32, %v3932_v59  ;;  %v3336_v32 = vsel %vm649_vm2, %v11279_v56, %v3335_v30 }
 0x511   : > { %8439 = vmatmul.msk.f32.gmra.mxu3 %vm1605_vm4, %v4223_v23  ;;  %v4224_v23 = vsel %vm1035_vm5, %v4192_v1, %v11589_v2  ;;  %v11697_v2 = vld [vmem:[#allocation2 + $0x1a7] sm:$0xff] }
 0x512   : > { %v3891_v43 = vrot.slane %v11697_v2, 1 }
 0x514   : > { %3407 = vrot.lane.b32.xlu0 %v11287_v57, %s8792_s14  ;;  %4856 = vrot.lane.b32.xlu2 %v4778_v60, %s8792_s14  ;;  %v4065_v57 = vrot.slane %v3770_v26, 2  ;;  %v3512_v60 = vsel %vm826_vm3, %v11298_v34, %v3511_v14  ;;  %v11699_v26 = vld [vmem:[#allocation2 + $0x1af] sm:$0xff]  ;;  %v4225_v34 = vsel %vm1035_vm5, %v4193_v54, %v4108_v38  ;;  %v3661_v54 = vsel %vm441_vm1, %v11385_v8, %v11661_v21  ;;  %v3231_v21 = vld [vmem:[#allocation2 + $0xd7] sm:$0x3] }
 0x515   : > { %3957 = vrot.lane.b32.xlu1 %v3890_v29, %s8792_s14  ;;  %v4068_v56 = vrot.slane %v11699_v26, 2 }
 0x516   : > { %v11681_v31 = vpop.permute.xlu2 %4117  ;;  %v4110_v13 = vpop.permute.xlu0 %4109  ;;  %v4066_v41 = vsel %vm826_vm3, %v11647_v49, %v4065_v57  ;;  %v3892_v57 = vrot.slane %v11699_v26, 1 }
 0x517   : > { %v3936_v63 = vpop.permute.xlu1 %3935 }
 0x518   : > { %v3893_v59 = vsel %vm649_vm2, %v3891_v43, %v3892_v57 }
 0x519   : > { %8440 = vmatmul.msk.f32.gmra.mxu3 %vm1605_vm4, %v4224_v23  ;;  %v4194_v23 = vsel %vm441_vm1, %v11312_v51, %v11605_v42  ;;  %v4683_v51 = vld [vmem:[#allocation2 + $0x77] sm:$0x3]  ;;  %v4195_v42 = vsel %vm441_vm1, %v11338_v25, %v3936_v63 }
 0x51a   : > { %v4227_v25 = vsel %vm1035_vm5, %v4195_v42, %v11622_v11  ;;  %v4196_v11 = vsel %vm441_vm1, %v11340_v7, %v11643_v16 }
 0x51c   : > { %5032 = vrot.lane.b32.xlu0 %v4954_v33, %s8793_s15  ;;  %4133 = vrot.lane.b32.xlu2 %v4066_v41, %s8793_s15  ;;  %v4067_v33 = vrot.slane %v11697_v2, 2  ;;  %v4226_v41 = vsel %vm1035_vm5, %v4194_v23, %v4110_v13  ;;  %v3773_v13 = vld [vmem:[#allocation2 + $0x1b7] sm:$0x3] }
 0x51d   : > { %3585 = vrot.lane.b32.xlu1 %v3512_v60, %s8793_s15  ;;  %v3894_v63 = vrot.slane %v3773_v13, 1 }
 0x51e   : > { %v11701_v61 = vpop.permute.xlu2 %3943  ;;  %v4114_v29 = vpop.permute.xlu0 %4113  ;;  %v4069_v60 = vsel %vm826_vm3, %v4067_v33, %v4068_v56 }
 0x51f   : > { %v11703_v1 = vpop.permute.xlu1 %4115  ;;  %v3895_v8 = vsel %vm649_vm2, %v3892_v57, %v3894_v63  ;;  %v4958_v57 = vrot.slane %v4683_v51, 2 }
 0x521   : > { %8441 = vmatmul.msk.f32.gmra.mxu3 %vm1605_vm4, %v4225_v34  ;;  %v4959_v42 = vsel %vm826_vm3, %v11193_v39, %v4958_v57  ;;  %v11778_v39 = vld [vmem:[#allocation2 + $0x1cf] sm:$0xff] }
 0x524   : > { %3409 = vrot.lane.b32.xlu0 %v3336_v32, %s8792_s14  ;;  %4858 = vrot.lane.b32.xlu2 %v11209_v15, %s8792_s14  ;;  %v8505_v15 = vld [vmem:[%s14998_s5 + $0x110] sm:$0xff]  ;;  %v4782_v32 = vrot.slane %v4683_v51, 1  ;;  %v11776_v51 = vld [vmem:[#allocation2 + $0x1c7] sm:$0xff] }
 0x525   : > { %3959 = vrot.lane.b32.xlu1 %v3893_v59, %s8792_s14  ;;  %5304 = vmatpush.msra.mxu1 %v8505_v15 }
 0x526   : > { %v3572_v44 = vpop.permute.xlu2 %3571  ;;  %v3940_v38 = vpop.permute.xlu0 %3939  ;;  %8690 = vmatpush.msrb.mxu3 %v8505_v15 }
 0x527   : > { %v11719_v14 = vpop.permute.xlu1 %3941 }
 0x529   : > { %8442 = vmatmul.msk.f32.gmra.mxu3 %vm1605_vm4, %v4226_v41  ;;  %v4070_v41 = vrot.slane %v3773_v13, 2 }
 0x52b   : > { %v4071_v7 = vsel %vm826_vm3, %v4068_v56, %v4070_v41 }
 0x52c   : > { %5034 = vrot.lane.b32.xlu0 %v11205_v24, %s8793_s15  ;;  %4135 = vrot.lane.b32.xlu2 %v4069_v60, %s8793_s15  ;;  %v3516_v60 = vrot.slane %v3231_v21, 2 }
 0x52d   : > { %3587 = vrot.lane.b32.xlu1 %v11334_v22, %s8793_s15  ;;  %v4783_v22 = vsel %vm649_vm2, %v11190_v19, %v4782_v32 }
 0x52e   : > { %v11739_v30 = vpop.permute.xlu2 %3397  ;;  %v3568_v34 = vpop.permute.xlu0 %3567  ;;  %v3517_v16 = vsel %vm826_vm3, %v11323_v48, %v3516_v60 }
 0x52f   : > { %v3570_v43 = vpop.permute.xlu1 %3569  ;;  %v3693_v24 = vsel %vm1035_vm5, %v3661_v54, %v3568_v34  ;;  %v3340_v54 = vrot.slane %v3231_v21, 1 }
 0x530   : > { %8465 = vmatmul.msk.f32.gmra.mxu0 %vm1605_vm4, %v3693_v24  ;;  %v8504_v24 = vld [vmem:[%s14998_s5 + $0x108] sm:$0xff] }
 0x531   : > { %8443 = vmatmul.msk.f32.gmra.mxu3 %vm1605_vm4, %v4227_v25  ;;  %5305 = vmatpush.msra.mxu1 %v8504_v24  ;;  %v3341_v32 = vsel %vm649_vm2, %v11318_v36, %v3340_v54  ;;  %v4072_v36 = vrot.slane %v11776_v51, 2 }
 0x532   : > { %8691 = vmatpush.msrb.mxu3 %v8504_v24 }
 0x534   : > { %3411 = vrot.lane.b32.xlu0 %v11329_v9, %s8792_s14  ;;  %4860 = vrot.lane.b32.xlu2 %v4783_v22, %s8792_s14  ;;  %v4228_v9 = vsel %vm1035_vm5, %v4196_v11, %v4114_v29 }
 0x535   : > { %3961 = vrot.lane.b32.xlu1 %v3895_v8, %s8792_s14  ;;  %v4073_v8 = vrot.slane %v11778_v39, 2 }
 0x536   : > { %v11753_v59 = vpop.permute.xlu2 %4123  ;;  %v3394_v23 = vpop.permute.xlu0 %3393 }
 0x537   : > { %v3396_v33 = vpop.permute.xlu1 %3395  ;;  %v3662_v19 = vsel %vm441_vm1, %v11387_v47, %v3394_v23  ;;  %v4197_v47 = vsel %vm441_vm1, %v11367_v46, %v3940_v38  ;;  %v3896_v38 = vrot.slane %v11776_v51, 1  ;;  %v3664_v23 = vsel %vm441_vm1, %v11455_v52, %v11739_v30 }
 0x538   : > { %v3694_v15 = vsel %vm1035_vm5, %v3662_v19, %v3570_v43  ;;  %v3663_v29 = vsel %vm441_vm1, %v11448_v3, %v3396_v33  ;;  %v4229_v34 = vsel %vm1035_vm5, %v4197_v47, %v11703_v1  ;;  %v3897_v43 = vrot.slane %v11778_v39, 1 }
 0x539   : > { %8444 = vmatmul.msk.f32.gmra.mxu3 %vm1605_vm4, %v4228_v9  ;;  %8466 = vmatmul.msk.f32.gmra.mxu0 %vm1605_vm4, %v3694_v15  ;;  %v3695_v46 = vsel %vm1035_vm5, %v3663_v29, %v3572_v44  ;;  %v4198_v44 = vsel %vm441_vm1, %v11369_v40, %v11719_v14  ;;  %v4686_v40 = vld [vmem:[#allocation2 + $0x97] sm:$0x3]  ;;  %v4199_v33 = vsel %vm441_vm1, %v11450_v12, %v11701_v61  ;;  %v11854_v29 = vld [vmem:[#allocation2 + $0x67] sm:$0xff] }
 0x53a   : > { %v3898_v1 = vsel %vm649_vm2, %v3896_v38, %v3897_v43  ;;  %v4230_v21 = vsel %vm1035_vm5, %v4198_v44, %v11681_v31  ;;  %v3776_v14 = vld [vmem:[#allocation2 + $0x1d7] sm:$0x3]  ;;  %v4787_v57 = vrot.slane %v4686_v40, 1  ;;  %v8499_v38 = vld [vmem:[%s14998_s5 + $0xe0] sm:$0xff]  ;;  %v11878_v44 = vld [vmem:[#allocation2 + $0xaf] sm:$0xff] }
 0x53b   : > { %v3899_v30 = vrot.slane %v3776_v14, 1  ;;  %v8502_v12 = vld [vmem:[%s14998_s5 + $0xf8] sm:$0xff]  ;;  %v8501_v61 = vld [vmem:[%s14998_s5 + $0xf0] sm:$0xff] }
 0x53c   : > { %5036 = vrot.lane.b32.xlu0 %v4959_v42, %s8793_s15  ;;  %4137 = vrot.lane.b32.xlu2 %v4071_v7, %s8793_s15  ;;  %v4788_v9 = vsel %vm649_vm2, %v11244_v50, %v4787_v57  ;;  %v3234_v42 = vld [vmem:[#allocation2 + $0xf7] sm:$0x3]  ;;  %v8500_v7 = vld [vmem:[%s14998_s5 + $0xe8] sm:$0xff] }
 0x53d   : > { %3589 = vrot.lane.b32.xlu1 %v3517_v16, %s8793_s15  ;;  %v3900_v15 = vsel %vm649_vm2, %v3897_v43, %v3899_v30  ;;  %v8498_v43 = vld [vmem:[%s14998_s5 + $0xd8] sm:$0xff] }
 0x53e   : > { %v11780_v56 = vpop.permute.xlu2 %3949  ;;  %v4120_v13 = vpop.permute.xlu0 %4119 }
 0x53f   : > { %v11782_v48 = vpop.permute.xlu1 %4121  ;;  %v4231_v41 = vsel %vm1035_vm5, %v4199_v33, %v4120_v13  ;;  %v4963_v13 = vrot.slane %v4686_v40, 2 }
 0x541   : > { %8445 = vmatmul.msk.f32.gmra.mxu3 %vm1605_vm4, %v4229_v34  ;;  %8467 = vmatmul.msk.f32.gmra.mxu0 %vm1605_vm4, %v3695_v46  ;;  %v3521_v46 = vrot.slane %v3234_v42, 2 }
 0x544   : > { %3413 = vrot.lane.b32.xlu0 %v3341_v32, %s8792_s14  ;;  %4862 = vrot.lane.b32.xlu2 %v11265_v37, %s8792_s14  ;;  %v4074_v37 = vsel %vm826_vm3, %v4072_v36, %v4073_v8  ;;  %v3522_v32 = vsel %vm826_vm3, %v11346_v58, %v3521_v46  ;;  %v11886_v36 = vld [vmem:[#allocation2 + $0x6f] sm:$0xff] }
 0x545   : > { %3963 = vrot.lane.b32.xlu1 %v3898_v1, %s8792_s14  ;;  %v11876_v1 = vld [vmem:[#allocation2 + $0xa7] sm:$0xff] }
 0x546   : > { %v11804_v25 = vpop.permute.xlu2 %3577  ;;  %v3946_v63 = vpop.permute.xlu0 %3945 }
 0x547   : > { %v11806_v22 = vpop.permute.xlu1 %3947  ;;  %v4200_v60 = vsel %vm441_vm1, %v11452_v18, %v3946_v63  ;;  %v4075_v18 = vrot.slane %v3776_v14, 2  ;;  %v8497_v63 = vld [vmem:[%s14998_s5 + $0xd0] sm:$0xff] }
 0x548   : > { %v4232_v54 = vsel %vm1035_vm5, %v4200_v60, %v11782_v48  ;;  %v4964_v48 = vsel %vm826_vm3, %v11238_v53, %v4963_v13  ;;  %v4201_v53 = vsel %vm441_vm1, %v11533_v4, %v11806_v22  ;;  %v4789_v4 = vrot.slane %v11876_v1, 1  ;;  %v3779_v13 = vld [vmem:[#allocation2 + $0x1f7] sm:$0x3] }
 0x549   : > { %8446 = vmatmul.msk.f32.gmra.mxu3 %vm1605_vm4, %v4230_v21  ;;  %v4076_v24 = vsel %vm826_vm3, %v4073_v8, %v4075_v18  ;;  %v11891_v8 = vld [vmem:[#allocation2 + $0x1e7] sm:$0xff]  ;;  %v11893_v21 = vld [vmem:[#allocation2 + $0x1ef] sm:$0xff]  ;;  %v4790_v22 = vrot.slane %v11878_v44, 1  ;;  %v4233_v33 = vsel %vm1035_vm5, %v4201_v53, %v11753_v59 }
 0x54a   : > { %v3902_v57 = vrot.slane %v11893_v21, 1  ;;  %v4077_v60 = vrot.slane %v11891_v8, 2  ;;  %v11939_v18 = vld [vmem:[#allocation2 + $0x87] sm:$0xff] }
 0x54c   : > { %5038 = vrot.lane.b32.xlu0 %v11256_v45, %s8793_s15  ;;  %4139 = vrot.lane.b32.xlu2 %v4074_v37, %s8793_s15 }
 0x54d   : > { %3591 = vrot.lane.b32.xlu1 %v11354_v55, %s8793_s15  ;;  %v8503_v55 = vld [vmem:[%s14998_s5 + $0x100] sm:$0xff] }
 0x54e   : > { %v11822_v11 = vpop.permute.xlu2 %3403  ;;  %v3574_v31 = vpop.permute.xlu0 %3573  ;;  %5306 = vmatpush.msra.mxu1 %v8503_v55  ;;  %8692 = vmatpush.msrb.mxu3 %v8503_v55  ;;  %v8495_v55 = vld [vmem:[%s14998_s5 + $0xc0] sm:$0xff] }
 0x54f   : > { %v3576_v19 = vpop.permute.xlu1 %3575  ;;  %v3696_v45 = vsel %vm1035_vm5, %v3664_v23, %v3574_v31  ;;  %v3345_v23 = vrot.slane %v3234_v42, 1  ;;  %v8496_v31 = vld [vmem:[%s14998_s5 + $0xc8] sm:$0xff]  ;;  %v4078_v42 = vrot.slane %v11893_v21, 2 }
 0x550   : > { %8468 = vmatmul.msk.f32.gmra.mxu0 %vm1605_vm4, %v3696_v45  ;;  %5307 = vmatpush.msra.mxu1 %v8502_v12  ;;  %v3901_v45 = vrot.slane %v11891_v8, 1 }
 0x551   : > { %8447 = vmatmul.msk.f32.gmra.mxu3 %vm1605_vm4, %v4231_v41  ;;  %v3346_v59 = vsel %vm649_vm2, %v11350_v0, %v3345_v23  ;;  %v4202_v0 = vsel %vm441_vm1, %v11535_v20, %v11780_v56  ;;  %v4689_v20 = vld [vmem:[#allocation2 + $0xb7] sm:$0x3] }
 0x552   : > { %5308 = vmatpush.msra.mxu1 %v8501_v61  ;;  %8693 = vmatpush.msrb.mxu3 %v8502_v12  ;;  %v3903_v41 = vsel %vm649_vm2, %v3901_v45, %v3902_v57 }
 0x554   : > { %3415 = vrot.lane.b32.xlu0 %v11362_v27, %s8792_s14  ;;  %4864 = vrot.lane.b32.xlu2 %v4788_v9, %s8792_s14 }
 0x555   : > { %3965 = vrot.lane.b32.xlu1 %v3900_v15, %s8792_s14  ;;  %5309 = vmatpush.msra.mxu1 %v8500_v7  ;;  %v4966_v15 = vrot.slane %v11878_v44, 2 }
 0x556   : > { %v11852_v16 = vpop.permute.xlu2 %4129  ;;  %v3400_v50 = vpop.permute.xlu0 %3399  ;;  %8694 = vmatpush.msrb.mxu3 %v8501_v61  ;;  %v4965_v61 = vrot.slane %v11876_v1, 2 }
 0x557   : > { %v3402_v47 = vpop.permute.xlu1 %3401  ;;  %v3665_v27 = vsel %vm441_vm1, %v11854_v29, %v3400_v50  ;;  %5310 = vmatpush.msra.mxu1 %v8499_v38 }
 0x558   : > { %v3697_v34 = vsel %vm1035_vm5, %v3665_v27, %v3576_v19  ;;  %8695 = vmatpush.msrb.mxu3 %v8500_v7  ;;  %v3666_v58 = vsel %vm441_vm1, %v11886_v36, %v3402_v47  ;;  %v4967_v50 = vsel %vm826_vm3, %v4965_v61, %v4966_v15  ;;  %v4079_v47 = vsel %vm826_vm3, %v4077_v60, %v4078_v42  ;;  %v15055_v27 = vld [vmem:[#allocation16_spill] sm:$0xff] }
 0x559   : > { %8448 = vmatmul.msk.f32.gmra.mxu3 %vm1605_vm4, %v4232_v54  ;;  %8469 = vmatmul.msk.f32.gmra.mxu0 %vm1605_vm4, %v3697_v34  ;;  %v3698_v19 = vsel %vm1035_vm5, %v3666_v58, %v11804_v25  ;;  %v4791_v25 = vsel %vm649_vm2, %v4789_v4, %v4790_v22  ;;  %v3667_v54 = vsel %vm441_vm1, %v11939_v18, %v11822_v11  ;;  %v15056_v11 = vld [vmem:[#allocation17_spill] sm:$0xff]  ;;  %v11980_v61 = vld [vmem:[#allocation2 + $0x207] sm:$0xff] }
 0x55a   : > { %5311 = vmatpush.msra.mxu1 %v8498_v43  ;;  %8696 = vmatpush.msrb.mxu3 %v8499_v38  ;;  %v3237_v58 = vld [vmem:[#allocation2 + $0x117] sm:$0x3]  ;;  %v11958_v4 = vld [vmem:[#allocation2 + $0x8f] sm:$0xff] }
 0x55c   : > { %5040 = vrot.lane.b32.xlu0 %v4964_v48, %s8793_s15  ;;  %4141 = vrot.lane.b32.xlu2 %v4076_v24, %s8793_s15  ;;  %v4792_v48 = vrot.slane %v4689_v20, 1  ;;  %v3904_v24 = vrot.slane %v3779_v13, 1 }
 0x55d   : > { %3593 = vrot.lane.b32.xlu1 %v3522_v32, %s8793_s15  ;;  %5312 = vmatpush.msra.mxu1 %v8497_v63 }
 0x55e   : > { %v11895_v37 = vpop.permute.xlu2 %4854  ;;  %v4126_v40 = vpop.permute.xlu0 %4125  ;;  %8697 = vmatpush.msrb.mxu3 %v8498_v43  ;;  %v4793_v32 = vsel %vm649_vm2, %v4790_v22, %v4792_v48 }
 0x55f   : > { %v4128_v14 = vpop.permute.xlu1 %4127  ;;  %5313 = vmatpush.msra.mxu1 %v8496_v31  ;;  %v4234_v7 = vsel %vm1035_vm5, %v4202_v0, %v4126_v40  ;;  %v11982_v0 = vld [vmem:[#allocation2 + $0x20f] sm:$0xff] }
 0x560   : > { %8698 = vmatpush.msrb.mxu3 %v8497_v63  ;;  %v3905_v63 = vsel %vm649_vm2, %v3902_v57, %v3904_v24  ;;  %v3526_v57 = vrot.slane %v3237_v58, 2  ;;  %v8731_v24 = vld [vmem:[#allocation2 + $0xa7] sm:$0xff] }
 0x561   : > { %8449 = vmatmul.msk.f32.gmra.mxu3 %vm1605_vm4, %v4233_v33  ;;  %8470 = vmatmul.msk.f32.gmra.mxu0 %vm1605_vm4, %v3698_v19  ;;  %v4080_v33 = vrot.slane %v3779_v13, 2 }
 0x562   : > { %5314 = vmatpush.msra.mxu1 %v8495_v55  ;;  %8699 = vmatpush.msrb.mxu3 %v8496_v31  ;;  %v4968_v31 = vrot.slane %v4689_v20, 2 }
 0x564   : > { %3417 = vrot.lane.b32.xlu0 %v3346_v59, %s8792_s14  ;;  %4866 = vrot.lane.b32.xlu2 %v4791_v25, %s8792_s14  ;;  %v15057_v59 = vld [vmem:[#allocation15_spill] sm:$0xff] }
 0x565   : > { %3967 = vrot.lane.b32.xlu1 %v3903_v41, %s8792_s14  ;;  %8700 = vmatpush.msrb.mxu3 %v8495_v55  ;;  %v4081_v55 = vsel %vm826_vm3, %v4078_v42, %v4080_v33  ;;  %v3527_v25 = vsel %vm826_vm3, %v15057_v59, %v3526_v57  ;;  %v11973_v41 = vld [vmem:[#allocation2 + $0xc7] sm:$0xff] }
 0x566   : > { %v11920_v30 = vpop.permute.xlu2 %4131  ;;  %v3952_v12 = vpop.permute.xlu0 %3951  ;;  %v4970_v48 = vrot.slane %v11973_v41, 2 }
 0x567   : > { %v3954_v9 = vpop.permute.xlu1 %3953  ;;  %v4203_v56 = vsel %vm441_vm1, %v11570_v5, %v3952_v12 }
 0x568   : > { %v4235_v5 = vsel %vm1035_vm5, %v4203_v56, %v4128_v14  ;;  %v4204_v53 = vsel %vm441_vm1, %v11572_v17, %v3954_v9  ;;  %v4969_v17 = vsel %vm826_vm3, %v4966_v15, %v4968_v31  ;;  %v5126_v9 = vsel %vm441_vm1, %v11448_v3, %v11895_v37  ;;  %v15058_v37 = vld [vmem:[#allocation3_spill] sm:$0xff] }
 0x569   : > { %8450 = vmatmul.msk.f32.gmra.mxu3 %vm1605_vm4, %v4234_v7  ;;  %v4236_v19 = vsel %vm1035_vm5, %v4204_v53, %v11852_v16  ;;  %v11975_v16 = vld [vmem:[#allocation2 + $0xcf] sm:$0xff]  ;;  %v3906_v56 = vrot.slane %v11980_v61, 1  ;;  %v3907_v3 = vrot.slane %v11982_v0, 1  ;;  %v4083_v53 = vrot.slane %v11982_v0, 2 }
 0x56c   : > { %5042 = vrot.lane.b32.xlu0 %v4967_v50, %s8793_s15  ;;  %4143 = vrot.lane.b32.xlu2 %v4079_v47, %s8793_s15  ;;  %v3350_v50 = vrot.slane %v3237_v58, 1  ;;  %v4794_v47 = vrot.slane %v11973_v41, 1 }
 0x56d   : > { %3595 = vrot.lane.b32.xlu1 %v15055_v27, %s8793_s15 }
 0x56e   : > { %v11944_v34 = vpop.permute.xlu2 %4856  ;;  %v3580_v46 = vpop.permute.xlu0 %3579  ;;  %v3351_v27 = vsel %vm649_vm2, %v15058_v37, %v3350_v50  ;;  %v3240_v50 = vld [vmem:[#allocation2 + $0x137] sm:$0x3]  ;;  %v8732_v37 = vld [vmem:[#allocation2 + $0xaf] sm:$0xff] }
 0x56f   : > { %v3582_v38 = vpop.permute.xlu1 %3581  ;;  %v3699_v43 = vsel %vm1035_vm5, %v3667_v54, %v3580_v46  ;;  %v3908_v54 = vsel %vm649_vm2, %v3906_v56, %v3907_v3  ;;  %v12007_v46 = vld [vmem:[#allocation2 + $0x12f] sm:$0xff]  ;;  %v5127_v57 = vsel %vm441_vm1, %v11455_v52, %v11944_v34 }
 0x570   : > { %8471 = vmatmul.msk.f32.gmra.mxu0 %vm1605_vm4, %v3699_v43 }
 0x571   : > { %8451 = vmatmul.msk.f32.gmra.mxu3 %vm1605_vm4, %v4235_v5 }
 0x574   : > { %3419 = vrot.lane.b32.xlu0 %v15056_v11, %s8792_s14  ;;  %4868 = vrot.lane.b32.xlu2 %v4793_v32, %s8792_s14  ;;  %v4082_v11 = vrot.slane %v11980_v61, 2 }
 0x575   : > { %3969 = vrot.lane.b32.xlu1 %v3905_v63, %s8792_s14  ;;  %v4971_v63 = vrot.slane %v11975_v16, 2 }
 0x576   : > { %v4134_v40 = vpop.permute.xlu2 %4133  ;;  %v3406_v14 = vpop.permute.xlu0 %3405 }
 0x577   : > { %v3956_v23 = vpop.permute.xlu1 %3955  ;;  %v3668_v22 = vsel %vm441_vm1, %v11958_v4, %v3406_v14  ;;  %v4972_v33 = vsel %vm826_vm3, %v4970_v48, %v4971_v63 }
 0x578   : > { %v3700_v45 = vsel %vm1035_vm5, %v3668_v22, %v3582_v38  ;;  %v4205_v12 = vsel %vm441_vm1, %v11618_v6, %v3956_v23  ;;  %v4795_v6 = vrot.slane %v11975_v16, 1  ;;  %v12019_v22 = vrot.slane %v12007_v46, 2 }
 0x579   : > { %8452 = vmatmul.msk.f32.gmra.mxu3 %vm1605_vm4, %v4236_v19  ;;  %8472 = vmatmul.msk.f32.gmra.mxu0 %vm1605_vm4, %v3700_v45  ;;  %v4237_v20 = vsel %vm1035_vm5, %v4205_v12, %v11920_v30  ;;  %v12005_v30 = vld [vmem:[#allocation2 + $0x127] sm:$0xff]  ;;  %v4084_v19 = vsel %vm826_vm3, %v4082_v11, %v4083_v53  ;;  %v4692_v45 = vld [vmem:[#allocation2 + $0xd7] sm:$0x3]  ;;  %v12070_v11 = vld [vmem:[#allocation2 + $0xef] sm:$0xff] }
 0x57a   : > { %v4796_v13 = vsel %vm649_vm2, %v4794_v47, %v4795_v6  ;;  %v3528_v23 = vrot.slane %v12005_v30, 2  ;;  %v3352_v12 = vrot.slane %v12005_v30, 1 }
 0x57c   : > { %5044 = vrot.lane.b32.xlu0 %v4969_v17, %s8793_s15  ;;  %4145 = vrot.lane.b32.xlu2 %v4081_v55, %s8793_s15 }
 0x57d   : > { %3597 = vrot.lane.b32.xlu1 %v3527_v25, %s8793_s15 }
 0x57e   : > { %v11987_v15 = vpop.permute.xlu2 %4858  ;;  %v5031_v60 = vpop.permute.xlu0 %5030 }
 0x57f   : > { %v3584_v42 = vpop.permute.xlu1 %3583  ;;  %v5158_v7 = vsel %vm1035_vm5, %v5126_v9, %v5031_v60  ;;  %v12042_v9 = vrot.slane %v12007_v46, 1  ;;  %v4797_v60 = vrot.slane %v4692_v45, 1 }
 0x580   : > { %8507 = vmatmul.msk.f32.vlgmr.msra.gmra.mxu1 %vm1605_vm4, %v5158_v7 }
 0x581   : > { %8453 = vmatmul.msk.f32.gmra.mxu3 %vm1605_vm4, %v4237_v20  ;;  %v12047_v7 = vsel %vm649_vm2, %v3352_v12, %v12042_v9  ;;  %v4798_v52 = vsel %vm649_vm2, %v4795_v6, %v4797_v60  ;;  %v4976_v60 = vrot.slane %v12070_v11, 2 }
 0x584   : > { %3421 = vrot.lane.b32.xlu0 %v3351_v27, %s8792_s14  ;;  %4870 = vrot.lane.b32.xlu2 %v4796_v13, %s8792_s14  ;;  %v4973_v13 = vrot.slane %v4692_v45, 2  ;;  %v12093_v45 = vld [vmem:[#allocation2 + $0x14f] sm:$0xff] }
 0x585   : > { %3971 = vrot.lane.b32.xlu1 %v3908_v54, %s8792_s14 }
 0x586   : > { %v4136_v38 = vpop.permute.xlu2 %4135  ;;  %v3408_v43 = vpop.permute.xlu0 %3407 }
 0x587   : > { %v3958_v5 = vpop.permute.xlu1 %3957  ;;  %v3669_v32 = vsel %vm441_vm1, %v8731_v24, %v3408_v43  ;;  %v3531_v43 = vrot.slane %v3240_v50, 2 }
 0x588   : > { %v4206_v58 = vsel %vm441_vm1, %v11620_v35, %v3958_v5  ;;  %v3701_v14 = vsel %vm1035_vm5, %v3669_v32, %v3584_v42  ;;  %v12028_v35 = vsel %vm826_vm3, %v3528_v23, %v12019_v22  ;;  %v4974_v5 = vsel %vm826_vm3, %v4971_v63, %v4973_v13 }
 0x589   : > { %v4238_v31 = vsel %vm1035_vm5, %v4206_v58, %v4134_v40  ;;  %8473 = vmatmul.msk.f32.gmra.mxu0 %vm1605_vm4, %v3701_v14  ;;  %v3782_v40 = vld [vmem:[#allocation2 + $0x217] sm:$0x3]  ;;  %v3532_v32 = vsel %vm826_vm3, %v12019_v22, %v3531_v43  ;;  %v3355_v23 = vrot.slane %v3240_v50, 1 }
 0x58a   : > { %8454 = vmatmul.msk.f32.gmra.mxu3 %vm1605_vm4, %v4238_v31  ;;  %v3909_v42 = vrot.slane %v3782_v40, 1  ;;  %v4085_v54 = vrot.slane %v3782_v40, 2 }
 0x58c   : > { %5046 = vrot.lane.b32.xlu0 %v4972_v33, %s8793_s15  ;;  %4147 = vrot.lane.b32.xlu2 %v4084_v19, %s8793_s15  ;;  %v3910_v34 = vsel %vm649_vm2, %v3907_v3, %v3909_v42  ;;  %v4086_v24 = vsel %vm826_vm3, %v4083_v53, %v4085_v54  ;;  %v4800_v33 = vrot.slane %v12070_v11, 1  ;;  %v3356_v19 = vsel %vm649_vm2, %v12042_v9, %v3355_v23 }
 0x58d   : > { %3599 = vrot.lane.b32.xlu1 %v12028_v35, %s8793_s15 }
 0x58e   : > { %v12037_v17 = vpop.permute.xlu2 %4860  ;;  %v5033_v55 = vpop.permute.xlu0 %5032 }
 0x58f   : > { %v3586_v59 = vpop.permute.xlu1 %3585  ;;  %v5159_v25 = vsel %vm1035_vm5, %v5127_v57, %v5033_v55 }
 0x590   : > { %8508 = vmatmul.msk.f32.gmra.mxu1 %vm1605_vm4, %v5159_v25 }
 0x594   : > { %3423 = vrot.lane.b32.xlu0 %v12047_v7, %s8792_s14  ;;  %4872 = vrot.lane.b32.xlu2 %v4798_v52, %s8792_s14 }
 0x595   : > { %3973 = vrot.lane.b32.xlu1 %v3910_v34, %s8792_s14  ;;  %v12103_v34 = vrot.slane %v12093_v45, 2 }
 0x596   : > { %v4138_v47 = vpop.permute.xlu2 %4137  ;;  %v3410_v20 = vpop.permute.xlu0 %3409 }
 0x597   : > { %v3960_v56 = vpop.permute.xlu1 %3959  ;;  %v3670_v27 = vsel %vm441_vm1, %v8732_v37, %v3410_v20  ;;  %v12118_v37 = vld [vmem:[#allocation2 + $0x2f] sm:$0xff] }
 0x598   : > { %v4207_v6 = vsel %vm441_vm1, %v11697_v2, %v3960_v56  ;;  %v3702_v3 = vsel %vm1035_vm5, %v3670_v27, %v3586_v59  ;;  %v12068_v2 = vld [vmem:[#allocation2 + $0xe7] sm:$0xff] }
 0x599   : > { %v4239_v48 = vsel %vm1035_vm5, %v4207_v6, %v4136_v38  ;;  %8474 = vmatmul.msk.f32.gmra.mxu0 %vm1605_vm4, %v3702_v3  ;;  %v5128_v38 = vsel %vm441_vm1, %v11854_v29, %v11987_v15  ;;  %v4799_v31 = vrot.slane %v12068_v2, 1  ;;  %v12091_v15 = vld [vmem:[#allocation2 + $0x147] sm:$0xff]  ;;  %v4975_v12 = vrot.slane %v12068_v2, 2 }
 0x59a   : > { %8455 = vmatmul.msk.f32.gmra.mxu3 %vm1605_vm4, %v4239_v48  ;;  %v8733_v59 = vld [vmem:[#allocation2 + $0xc7] sm:$0xff]  ;;  %v3357_v54 = vrot.slane %v12091_v15, 1  ;;  %v3832_v48 = vrot.slane %v12118_v37, 1 }
 0x59b   : > { %v4801_v29 = vsel %vm649_vm2, %v4799_v31, %v4800_v33  ;;  %v4977_v20 = vsel %vm826_vm3, %v4975_v12, %v4976_v60 }
 0x59c   : > { %5048 = vrot.lane.b32.xlu0 %v4974_v5, %s8793_s15  ;;  %4149 = vrot.lane.b32.xlu2 %v4086_v24, %s8793_s15 }
 0x59d   : > { %3601 = vrot.lane.b32.xlu1 %v3532_v32, %s8793_s15 }
 0x59e   : > { %v12076_v63 = vpop.permute.xlu2 %4862  ;;  %v5035_v53 = vpop.permute.xlu0 %5034 }
 0x59f   : > { %v3588_v58 = vpop.permute.xlu1 %3587  ;;  %v5160_v14 = vsel %vm1035_vm5, %v5128_v38, %v5035_v53  ;;  %v4695_v38 = vld [vmem:[#allocation2 + $0xf7] sm:$0x3] }
 0x5a0   : > { %8509 = vmatmul.msk.f32.gmra.mxu1 %vm1605_vm4, %v5160_v14  ;;  %v4710_v53 = vld [vmem:[#allocation2 + $0x197] sm:$0x3]  ;;  %v4802_v31 = vrot.slane %v4695_v38, 1 }
 0x5a4   : > { %3425 = vrot.lane.b32.xlu0 %v3356_v19, %s8792_s14  ;;  %4874 = vrot.lane.b32.xlu2 %v4801_v29, %s8792_s14  ;;  %v4978_v19 = vrot.slane %v4695_v38, 2 }
 0x5a5   : > { %4894 = vrot.lane.b32.xlu1 %v11634_v28, %s8792_s14  ;;  %v3533_v28 = vrot.slane %v12091_v15, 2 }
 0x5a6   : > { %v4140_v40 = vpop.permute.xlu2 %4139  ;;  %v3412_v57 = vpop.permute.xlu0 %3411 }
 0x5a7   : > { %v3962_v55 = vpop.permute.xlu1 %3961  ;;  %v3671_v25 = vsel %vm441_vm1, %v8733_v59, %v3412_v57  ;;  %v12111_v56 = vsel %vm826_vm3, %v3533_v28, %v12103_v34  ;;  %v8734_v57 = vld [vmem:[#allocation2 + $0xcf] sm:$0xff]  ;;  %v5003_v59 = vrot.slane %v4710_v53, 2  ;;  %v3737_v28 = vld [vmem:[#allocation2 + $0x37] sm:$0x3] }
 0x5a8   : > { %v4208_v42 = vsel %vm441_vm1, %v11699_v26, %v3962_v55  ;;  %v3703_v52 = vsel %vm1035_vm5, %v3671_v25, %v3588_v58  ;;  %v12116_v26 = vld [vmem:[#allocation2 + $0x27] sm:$0xff] }
 0x5a9   : > { %v4240_v50 = vsel %vm1035_vm5, %v4208_v42, %v4138_v47  ;;  %8475 = vmatmul.msk.f32.gmra.mxu0 %vm1605_vm4, %v3703_v52  ;;  %v5129_v47 = vsel %vm441_vm1, %v11886_v36, %v12037_v17  ;;  %v3831_v43 = vrot.slane %v12116_v26, 1  ;;  %v4007_v5 = vrot.slane %v12116_v26, 2 }
 0x5aa   : > { %8456 = vmatmul.msk.f32.gmra.mxu3 %vm1605_vm4, %v4240_v50  ;;  %v4008_v36 = vrot.slane %v12118_v37, 2  ;;  %v4803_v42 = vsel %vm649_vm2, %v4800_v33, %v4802_v31  ;;  %v4979_v52 = vsel %vm826_vm3, %v4976_v60, %v4978_v19  ;;  %v4827_v60 = vrot.slane %v4710_v53, 1 }
 0x5ab   : > { %v3833_v24 = vsel %vm649_vm2, %v3831_v43, %v3832_v48 }
 0x5ac   : > { %5050 = vrot.lane.b32.xlu0 %v4977_v20, %s8793_s15  ;;  %5070 = vrot.lane.b32.xlu2 %v11653_v10, %s8793_s15  ;;  %v12130_v10 = vrot.slane %v12093_v45, 1  ;;  %v4009_v32 = vsel %vm826_vm3, %v4007_v5, %v4008_v36  ;;  %v5130_v20 = vsel %vm441_vm1, %v11939_v18, %v12076_v63  ;;  %v12179_v18 = vld [vmem:[#allocation2 + $0x107] sm:$0xff]  ;;  %v12181_v63 = vld [vmem:[#allocation2 + $0x10f] sm:$0xff] }
 0x5ad   : > { %3603 = vrot.lane.b32.xlu1 %v12111_v56, %s8793_s15  ;;  %v4805_v53 = vrot.slane %v12181_v63, 1  ;;  %v4980_v31 = vrot.slane %v12179_v18, 2  ;;  %v4981_v19 = vrot.slane %v12181_v63, 2 }
 0x5ae   : > { %v12125_v27 = vpop.permute.xlu2 %4864  ;;  %v5037_v13 = vpop.permute.xlu0 %5036  ;;  %v12139_v17 = vsel %vm649_vm2, %v3357_v54, %v12130_v10  ;;  %v3834_v54 = vrot.slane %v3737_v28, 1 }
 0x5af   : > { %v3590_v6 = vpop.permute.xlu1 %3589  ;;  %v5161_v3 = vsel %vm1035_vm5, %v5129_v47, %v5037_v13 }
 0x5b0   : > { %8510 = vmatmul.msk.f32.gmra.mxu1 %vm1605_vm4, %v5161_v3  ;;  %v3835_v43 = vsel %vm649_vm2, %v3832_v48, %v3834_v54 }
 0x5b4   : > { %3427 = vrot.lane.b32.xlu0 %v12139_v17, %s8792_s14  ;;  %3911 = vrot.lane.b32.xlu2 %v3833_v24, %s8792_s14 }
 0x5b5   : > { %4087 = vrot.lane.b32.xlu1 %v4009_v32, %s8793_s15 }
 0x5b6   : > { %v4142_v58 = vpop.permute.xlu2 %4141  ;;  %v3414_v23 = vpop.permute.xlu0 %3413 }
 0x5b7   : > { %v3964_v14 = vpop.permute.xlu1 %3963  ;;  %v3672_v55 = vsel %vm441_vm1, %v8734_v57, %v3414_v23 }
 0x5b8   : > { %v4209_v29 = vsel %vm441_vm1, %v11776_v51, %v3964_v14  ;;  %v3704_v12 = vsel %vm1035_vm5, %v3672_v55, %v3590_v6  ;;  %v5004_v51 = vsel %vm826_vm3, %v11647_v49, %v5003_v59  ;;  %v4828_v6 = vsel %vm649_vm2, %v11627_v62, %v4827_v60  ;;  %v8735_v14 = vld [vmem:[#allocation2 + $0xe7] sm:$0xff] }
 0x5b9   : > { %v4241_v25 = vsel %vm1035_vm5, %v4209_v29, %v4140_v40  ;;  %8476 = vmatmul.msk.f32.gmra.mxu0 %vm1605_vm4, %v3704_v12  ;;  %v3243_v40 = vld [vmem:[#allocation2 + $0x157] sm:$0x3]  ;;  %v4804_v62 = vrot.slane %v12179_v18, 1  ;;  %v4982_v59 = vsel %vm826_vm3, %v4980_v31, %v4981_v19  ;;  %v12208_v12 = vld [vmem:[#allocation2 + $0x167] sm:$0xff] }
 0x5ba   : > { %8457 = vmatmul.msk.f32.gmra.mxu3 %vm1605_vm4, %v4241_v25  ;;  %v3360_v13 = vrot.slane %v3243_v40, 1  ;;  %v3536_v38 = vrot.slane %v3243_v40, 2  ;;  %v12205_v25 = vld [vmem:[#allocation2 + $0x1af] sm:$0xff] }
 0x5bb   : > { %v12219_v60 = vrot.slane %v12205_v25, 1 }
 0x5bc   : > { %4876 = vrot.lane.b32.xlu0 %v4803_v42, %s8792_s14  ;;  %5052 = vrot.lane.b32.xlu2 %v4979_v52, %s8793_s15  ;;  %v3361_v3 = vsel %vm649_vm2, %v12130_v10, %v3360_v13  ;;  %v3537_v55 = vsel %vm826_vm3, %v12103_v34, %v3536_v38  ;;  %v12210_v42 = vld [vmem:[#allocation2 + $0x16f] sm:$0xff]  ;;  %v3538_v38 = vrot.slane %v12208_v12, 2 }
 0x5bd   : > { %5072 = vrot.lane.b32.xlu1 %v5004_v51, %s8793_s15  ;;  %v5131_v51 = vsel %vm441_vm1, %v11958_v4, %v12125_v27  ;;  %v12224_v54 = vrot.slane %v12210_v42, 1 }
 0x5be   : > { %v12165_v50 = vpop.permute.xlu2 %4866  ;;  %v5039_v47 = vpop.permute.xlu0 %5038 }
 0x5bf   : > { %v3592_v33 = vpop.permute.xlu1 %3591  ;;  %v5162_v49 = vsel %vm1035_vm5, %v5130_v20, %v5039_v47 }
 0x5c0   : > { %8511 = vmatmul.msk.f32.gmra.mxu1 %vm1605_vm4, %v5162_v49  ;;  %v3362_v49 = vrot.slane %v12208_v12, 1 }
 0x5c4   : > { %4896 = vrot.lane.b32.xlu0 %v4828_v6, %s8792_s14  ;;  %3429 = vrot.lane.b32.xlu2 %v3361_v3, %s8792_s14  ;;  %v4698_v6 = vld [vmem:[#allocation2 + $0x117] sm:$0x3] }
 0x5c5   : > { %3913 = vrot.lane.b32.xlu1 %v3835_v43, %s8792_s14  ;;  %v4807_v31 = vrot.slane %v4698_v6, 1 }
 0x5c6   : > { %v4144_v5 = vpop.permute.xlu2 %4143  ;;  %v3416_v32 = vpop.permute.xlu0 %3415 }
 0x5c7   : > { %v3966_v24 = vpop.permute.xlu1 %3965  ;;  %v3673_v23 = vsel %vm441_vm1, %v8735_v14, %v3416_v32  ;;  %v12245_v32 = vrot.slane %v12205_v25, 2  ;;  %v8736_v14 = vld [vmem:[#allocation2 + $0xef] sm:$0xff] }
 0x5c8   : > { %v4210_v48 = vsel %vm441_vm1, %v11778_v39, %v3966_v24  ;;  %v3705_v57 = vsel %vm1035_vm5, %v3673_v23, %v3592_v33  ;;  %v4806_v39 = vsel %vm649_vm2, %v4804_v62, %v4805_v53  ;;  %v4010_v33 = vrot.slane %v3737_v28, 2 }
 0x5c9   : > { %v4242_v29 = vsel %vm1035_vm5, %v4210_v48, %v4142_v58  ;;  %8477 = vmatmul.msk.f32.gmra.mxu0 %vm1605_vm4, %v3705_v57  ;;  %v12203_v58 = vld [vmem:[#allocation2 + $0x1a7] sm:$0xff]  ;;  %v12236_v28 = vsel %vm649_vm2, %v3362_v49, %v12224_v54  ;;  %v12249_v62 = vrot.slane %v12210_v42, 2 }
 0x5ca   : > { %8458 = vmatmul.msk.f32.gmra.mxu3 %vm1605_vm4, %v4242_v29  ;;  %v4829_v47 = vrot.slane %v12203_v58, 1  ;;  %v4011_v4 = vsel %vm826_vm3, %v4008_v36, %v4010_v33  ;;  %v5005_v24 = vrot.slane %v12203_v58, 2 }
 0x5cc   : > { %3605 = vrot.lane.b32.xlu0 %v3537_v55, %s8793_s15  ;;  %4878 = vrot.lane.b32.xlu2 %v4806_v39, %s8792_s14  ;;  %v12232_v27 = vsel %vm649_vm2, %v4829_v47, %v12219_v60  ;;  %v12256_v55 = vpop.f32.mrf.mxu3  ;;  %v12262_v39 = vsel %vm826_vm3, %v5005_v24, %v12245_v32  ;;  %v5132_v47 = vsel %vm441_vm1, %v11876_v1, %v12165_v50  ;;  %v3246_v50 = vld [vmem:[#allocation2 + $0x177] sm:$0x3] }
 0x5cd   : > { %5054 = vrot.lane.b32.xlu1 %v4982_v59, %s8793_s15  ;;  %v12268_v59 = vld [vmem:[#allocation2 + $0x47] sm:$0xff] }
 0x5ce   : > { %v12212_v52 = vpop.permute.xlu2 %4868  ;;  %v5041_v20 = vpop.permute.xlu0 %5040  ;;  %v3836_v33 = vrot.slane %v12268_v59, 1 }
 0x5cf   : > { %v3594_v40 = vpop.permute.xlu1 %3593  ;;  %v5163_v13 = vsel %vm1035_vm5, %v5131_v51, %v5041_v20  ;;  %v12275_v51 = vld [vmem:[#allocation2 + $0x4f] sm:$0xff] }
 0x5d0   : > { %8512 = vmatmul.msk.f32.gmra.mxu1 %vm1605_vm4, %v5163_v13  ;;  %v3837_v49 = vrot.slane %v12275_v51, 1 }
 0x5d4   : > { %4089 = vrot.lane.b32.xlu0 %v4011_v4, %s8793_s15  ;;  %4898 = vrot.lane.b32.xlu2 %v12232_v27, %s8792_s14  ;;  %v4012_v4 = vrot.slane %v12268_v59, 2 }
 0x5d5   : > { %3431 = vrot.lane.b32.xlu1 %v12236_v28, %s8792_s14 }
 0x5d6   : > { %v4146_v3 = vpop.permute.xlu2 %4145  ;;  %v3418_v36 = vpop.permute.xlu0 %3417 }
 0x5d7   : > { %v3968_v43 = vpop.permute.xlu1 %3967  ;;  %v3674_v23 = vsel %vm441_vm1, %v8736_v14, %v3418_v36 }
 0x5d8   : > { %v4211_v48 = vsel %vm441_vm1, %v11891_v8, %v3968_v43  ;;  %v3706_v57 = vsel %vm1035_vm5, %v3674_v23, %v3594_v40  ;;  %v12266_v8 = vsel %vm826_vm3, %v3538_v38, %v12249_v62  ;;  %v4713_v40 = vld [vmem:[#allocation2 + $0x1b7] sm:$0x3]  ;;  %v4013_v43 = vrot.slane %v12275_v51, 2 }
 0x5d9   : > { %v4243_v29 = vsel %vm1035_vm5, %v4211_v48, %v4144_v5  ;;  %8478 = vmatmul.msk.f32.gmra.mxu0 %vm1605_vm4, %v3706_v57  ;;  %v4808_v5 = vsel %vm649_vm2, %v4805_v53, %v4807_v31  ;;  %v4832_v24 = vrot.slane %v4713_v40, 1  ;;  %v3838_v38 = vsel %vm649_vm2, %v3836_v33, %v3837_v49  ;;  %v8737_v33 = vld [vmem:[#allocation2 + $0x107] sm:$0xff] }
 0x5da   : > { %8459 = vmatmul.msk.f32.gmra.mxu3 %vm1605_vm4, %v4243_v29  ;;  %v4014_v48 = vsel %vm826_vm3, %v4012_v4, %v4013_v43  ;;  %v4983_v29 = vrot.slane %v4698_v6, 2  ;;  %v5008_v57 = vrot.slane %v4713_v40, 2 }
 0x5db   : > { %v4833_v1 = vsel %vm649_vm2, %v12219_v60, %v4832_v24  ;;  %v12301_v24 = vpop.f32.mrf.mxu3 }
 0x5dc   : > { %5074 = vrot.lane.b32.xlu0 %v12262_v39, %s8793_s15  ;;  %3607 = vrot.lane.b32.xlu2 %v12266_v8, %s8793_s15  ;;  %v4984_v6 = vsel %vm826_vm3, %v4981_v19, %v4983_v29 }
 0x5dd   : > { %4880 = vrot.lane.b32.xlu1 %v4808_v5, %s8792_s14 }
 0x5de   : > { %v12278_v20 = vpop.permute.xlu2 %4870  ;;  %v5043_v13 = vpop.permute.xlu0 %5042 }
 0x5df   : > { %v3596_v53 = vpop.permute.xlu1 %3595  ;;  %v5164_v36 = vsel %vm1035_vm5, %v5132_v47, %v5043_v13  ;;  %v3541_v13 = vrot.slane %v3246_v50, 2 }
 0x5e0   : > { %8513 = vmatmul.msk.f32.gmra.mxu1 %vm1605_vm4, %v5164_v36 }
 0x5e1   : > { %v3542_v40 = vsel %vm826_vm3, %v12249_v62, %v3541_v13 }
 0x5e4   : > { %3915 = vrot.lane.b32.xlu0 %v3838_v38, %s8792_s14  ;;  %4091 = vrot.lane.b32.xlu2 %v4014_v48, %s8793_s15  ;;  %v5133_v38 = vsel %vm441_vm1, %v11878_v44, %v12212_v52  ;;  %v12329_v44 = vld [vmem:[#allocation2 + $0x1c7] sm:$0xff]  ;;  %v12331_v52 = vld [vmem:[#allocation2 + $0x1cf] sm:$0xff] }
 0x5e5   : > { %4900 = vrot.lane.b32.xlu1 %v4833_v1, %s8792_s14  ;;  %v3365_v1 = vrot.slane %v3246_v50, 1 }
 0x5e6   : > { %v4148_v14 = vpop.permute.xlu2 %4147  ;;  %v3420_v31 = vpop.permute.xlu0 %3419 }
 0x5e7   : > { %v3970_v23 = vpop.permute.xlu1 %3969  ;;  %v3675_v47 = vsel %vm441_vm1, %v8737_v33, %v3420_v31 }
 0x5e8   : > { %v4212_v5 = vsel %vm441_vm1, %v11893_v21, %v3970_v23  ;;  %v3707_v36 = vsel %vm1035_vm5, %v3675_v47, %v3596_v53  ;;  %v5009_v21 = vsel %vm826_vm3, %v12245_v32, %v5008_v57  ;;  %v3366_v57 = vsel %vm649_vm2, %v12224_v54, %v3365_v1 }
 0x5e9   : > { %v4244_v4 = vsel %vm1035_vm5, %v4212_v5, %v4146_v3  ;;  %8479 = vmatmul.msk.f32.gmra.mxu0 %vm1605_vm4, %v3707_v36  ;;  %v3740_v3 = vld [vmem:[#allocation2 + $0x57] sm:$0x3]  ;;  %v8738_v36 = vld [vmem:[#allocation2 + $0x10f] sm:$0xff] }
 0x5ea   : > { %8460 = vmatmul.msk.f32.gmra.mxu3 %vm1605_vm4, %v4244_v4  ;;  %v3839_v23 = vrot.slane %v3740_v3, 1  ;;  %v4015_v29 = vrot.slane %v3740_v3, 2  ;;  %v12342_v3 = vpop.f32.mrf.mxu3 }
 0x5ec   : > { %5056 = vrot.lane.b32.xlu0 %v4984_v6, %s8793_s15  ;;  %5076 = vrot.lane.b32.xlu2 %v5009_v21, %s8793_s15  ;;  %v3840_v5 = vsel %vm649_vm2, %v3837_v49, %v3839_v23  ;;  %v4016_v33 = vsel %vm826_vm3, %v4013_v43, %v4015_v29  ;;  %v5010_v43 = vrot.slane %v12329_v44, 2  ;;  %v12338_v6 = vrot.slane %v12331_v52, 2 }
 0x5ed   : > { %3609 = vrot.lane.b32.xlu1 %v3542_v40, %s8793_s15  ;;  %v5134_v23 = vsel %vm441_vm1, %v11973_v41, %v12278_v20  ;;  %v4716_v20 = vld [vmem:[#allocation2 + $0x1d7] sm:$0x3] }
 0x5ee   : > { %v12315_v53 = vpop.permute.xlu2 %4872  ;;  %v5045_v48 = vpop.permute.xlu0 %5044 }
 0x5ef   : > { %v3598_v19 = vpop.permute.xlu1 %3597  ;;  %v5165_v31 = vsel %vm1035_vm5, %v5133_v38, %v5045_v48  ;;  %v12346_v38 = vld [vmem:[#allocation2 + $0x187] sm:$0xff] }
 0x5f0   : > { %8514 = vmatmul.msk.f32.gmra.mxu1 %vm1605_vm4, %v5165_v31  ;;  %v3367_v1 = vrot.slane %v12346_v38, 1 }
 0x5f4   : > { %3433 = vrot.lane.b32.xlu0 %v3366_v57, %s8792_s14  ;;  %3917 = vrot.lane.b32.xlu2 %v3840_v5, %s8792_s14  ;;  %v12369_v57 = vrot.slane %v12331_v52, 1 }
 0x5f5   : > { %4093 = vrot.lane.b32.xlu1 %v4016_v33, %s8793_s15 }
 0x5f6   : > { %v4150_v50 = vpop.permute.xlu2 %4149  ;;  %v3422_v13 = vpop.permute.xlu0 %3421 }
 0x5f7   : > { %v3972_v47 = vpop.permute.xlu1 %3971  ;;  %v3676_v49 = vsel %vm441_vm1, %v8738_v36, %v3422_v13 }
 0x5f8   : > { %v4213_v4 = vsel %vm441_vm1, %v11980_v61, %v3972_v47  ;;  %v3708_v40 = vsel %vm1035_vm5, %v3676_v49, %v3598_v19  ;;  %v12350_v61 = vsel %vm826_vm3, %v5010_v43, %v12338_v6  ;;  %v4701_v19 = vld [vmem:[#allocation2 + $0x137] sm:$0x3] }
 0x5f9   : > { %v4245_v21 = vsel %vm1035_vm5, %v4213_v4, %v4148_v14  ;;  %8480 = vmatmul.msk.f32.gmra.mxu0 %vm1605_vm4, %v3708_v40  ;;  %v12356_v14 = vld [vmem:[#allocation2 + $0x18f] sm:$0xff]  ;;  %v4812_v33 = vrot.slane %v4701_v19, 1  ;;  %v4988_v43 = vrot.slane %v4701_v19, 2 }
 0x5fa   : > { %8461 = vmatmul.msk.f32.gmra.mxu3 %vm1605_vm4, %v4245_v21  ;;  %v3543_v21 = vrot.slane %v12346_v38, 2  ;;  %v3544_v40 = vrot.slane %v12356_v14, 2 }
 0x5fb   : > { %v4813_v41 = vsel %vm649_vm2, %v12042_v9, %v4812_v33  ;;  %v4989_v19 = vsel %vm826_vm3, %v12019_v22, %v4988_v43 }
 0x5fc   : > { %5058 = vrot.lane.b32.xlu2 %v12028_v35, %s8793_s15  ;;  %4882 = vrot.lane.b32.xlu0 %v12047_v7, %s8792_s14  ;;  %v3368_v35 = vrot.slane %v12356_v14, 1  ;;  %v4834_v7 = vrot.slane %v12329_v44, 1  ;;  %v3545_v33 = vsel %vm826_vm3, %v3543_v21, %v3544_v40 }
 0x5fd   : > { %5078 = vrot.lane.b32.xlu1 %v12350_v61, %s8793_s15 }
 0x5fe   : > { %v12360_v48 = vpop.permute.xlu2 %4874  ;;  %v5047_v29 = vpop.permute.xlu0 %5046  ;;  %v3369_v47 = vsel %vm649_vm2, %v3367_v1, %v3368_v35  ;;  %v12376_v13 = vsel %vm649_vm2, %v4834_v7, %v12369_v57 }
 0x5ff   : > { %v3600_v31 = vpop.permute.xlu1 %3599  ;;  %v5166_v5 = vsel %vm1035_vm5, %v5134_v23, %v5047_v29  ;;  %v5013_v23 = vrot.slane %v4716_v20, 2 }
 0x600   : > { %8515 = vmatmul.msk.f32.gmra.mxu1 %vm1605_vm4, %v5166_v5  ;;  %v12392_v5 = vpop.f32.mrf.mxu3 }
 0x604   : > { %3435 = vrot.lane.b32.xlu2 %v3369_v47, %s8792_s14  ;;  %4902 = vrot.lane.b32.xlu0 %v12376_v13, %s8792_s14 }
 0x605   : > { %4884 = vrot.lane.b32.xlu1 %v4813_v41, %s8792_s14 }
 0x606   : > { %v5071_v4 = vpop.permute.xlu2 %5070  ;;  %v3424_v49 = vpop.permute.xlu0 %3423 }
 0x607   : > { %v3974_v36 = vpop.permute.xlu1 %3973  ;;  %v3677_v9 = vsel %vm441_vm1, %v12005_v30, %v3424_v49  ;;  %v3249_v30 = vld [vmem:[#allocation2 + $0x197] sm:$0x3] }
 0x608   : > { %v4214_v1 = vsel %vm441_vm1, %v11982_v0, %v3974_v36  ;;  %v3709_v7 = vsel %vm1035_vm5, %v3677_v9, %v3600_v31  ;;  %v5014_v0 = vsel %vm826_vm3, %v12338_v6, %v5013_v23  ;;  %v5135_v31 = vsel %vm441_vm1, %v11975_v16, %v12315_v53  ;;  %v12416_v16 = vld [vmem:[#allocation2 + $0x1e7] sm:$0xff]  ;;  %v12418_v53 = vld [vmem:[#allocation2 + $0x1ef] sm:$0xff] }
 0x609   : > { %v4246_v29 = vsel %vm1035_vm5, %v4214_v1, %v4150_v50  ;;  %8481 = vmatmul.msk.f32.gmra.mxu0 %vm1605_vm4, %v3709_v7  ;;  %v3370_v22 = vrot.slane %v3249_v30, 1  ;;  %v4837_v36 = vrot.slane %v4716_v20, 1  ;;  %v3546_v23 = vrot.slane %v3249_v30, 2 }
 0x60a   : > { %8462 = vmatmul.msk.f32.gmra.mxu3 %vm1605_vm4, %v4246_v29  ;;  %v8739_v29 = vld [vmem:[#allocation2 + $0x187] sm:$0xff] }
 0x60b   : > { %v3371_v43 = vsel %vm649_vm2, %v3368_v35, %v3370_v22  ;;  %v4838_v21 = vsel %vm649_vm2, %v12369_v57, %v4837_v36  ;;  %v3547_v30 = vsel %vm826_vm3, %v3544_v40, %v3546_v23  ;;  %v4839_v36 = vrot.slane %v12416_v16, 1 }
 0x60c   : > { %5060 = vrot.lane.b32.xlu2 %v4989_v19, %s8793_s15  ;;  %3611 = vrot.lane.b32.xlu0 %v3545_v33, %s8793_s15  ;;  %v5015_v19 = vrot.slane %v12416_v16, 2  ;;  %v12425_v33 = vrot.slane %v12418_v53, 2 }
 0x60d   : > { %5080 = vrot.lane.b32.xlu1 %v5014_v0, %s8793_s15 }
 0x60e   : > { %v3912_v50 = vpop.permute.xlu2 %3911  ;;  %v5049_v41 = vpop.permute.xlu0 %5048 }
 0x60f   : > { %v3602_v47 = vpop.permute.xlu1 %3601  ;;  %v5167_v49 = vsel %vm1035_vm5, %v5135_v31, %v5049_v41  ;;  %v12429_v31 = vpop.f32.mrf.mxu3  ;;  %v5136_v41 = vsel %vm441_vm1, %v12068_v2, %v12360_v48  ;;  %v4719_v2 = vld [vmem:[#allocation2 + $0x1f7] sm:$0x3] }
 0x610   : > { %8516 = vmatmul.msk.f32.gmra.mxu1 %vm1605_vm4, %v5167_v49  ;;  %v12450_v49 = vrot.slane %v12418_v53, 1 }
 0x614   : > { %3437 = vrot.lane.b32.xlu2 %v3371_v43, %s8792_s14  ;;  %4904 = vrot.lane.b32.xlu0 %v4838_v21, %s8792_s14  ;;  %v12456_v21 = vsel %vm649_vm2, %v4839_v36, %v12450_v49 }
 0x615   : > { %4886 = vrot.lane.b32.xlu1 %v12139_v17, %s8792_s14 }
 0x616   : > { %v5053_v20 = vpop.permute.xlu2 %5052  ;;  %v3426_v9 = vpop.permute.xlu0 %3425 }
 0x617   : > { %v4895_v1 = vpop.permute.xlu1 %4894  ;;  %v3678_v7 = vsel %vm441_vm1, %v12007_v46, %v3426_v9  ;;  %v12436_v46 = vsel %vm826_vm3, %v5015_v19, %v12425_v33  ;;  %v4183_v9 = vsel %vm441_vm1, %v12116_v26, %v3912_v50  ;;  %v5018_v19 = vrot.slane %v4719_v2, 2  ;;  %v3252_v50 = vld [vmem:[#allocation2 + $0x1b7] sm:$0x3]  ;;  %v12487_v36 = vpop.f32.mrf.mxu3 }
 0x618   : > { %v5146_v35 = vsel %vm441_vm1, %v8739_v29, %v4895_v1  ;;  %v3710_v0 = vsel %vm1035_vm5, %v3678_v7, %v3602_v47 }
 0x619   : > { %v5178_v17 = vsel %vm1035_vm5, %v5146_v35, %v5071_v4  ;;  %8482 = vmatmul.msk.f32.gmra.mxu0 %vm1605_vm4, %v3710_v0  ;;  %v4704_v4 = vld [vmem:[#allocation2 + $0x157] sm:$0x3]  ;;  %v5019_v26 = vsel %vm826_vm3, %v12425_v33, %v5018_v19 }
 0x61a   : > { %8527 = vmatmul.msk.f32.vlgmr.msrb.gmra.mxu3 %vm1605_vm4, %v5178_v17  ;;  %v4817_v43 = vrot.slane %v4704_v4, 1  ;;  %v4993_v35 = vrot.slane %v4704_v4, 2 }
 0x61c   : > { %5062 = vrot.lane.b32.xlu2 %v12111_v56, %s8793_s15  ;;  %3613 = vrot.lane.b32.xlu0 %v3547_v30, %s8793_s15  ;;  %v4818_v1 = vsel %vm649_vm2, %v12130_v10, %v4817_v43  ;;  %v4994_v17 = vsel %vm826_vm3, %v12103_v34, %v4993_v35 }
 0x61d   : > { %5082 = vrot.lane.b32.xlu1 %v12436_v46, %s8793_s15 }
 0x61e   : > { %v12443_v47 = vpop.permute.xlu2 %3429  ;;  %v5051_v22 = vpop.permute.xlu0 %5050 }
 0x61f   : > { %v3604_v40 = vpop.permute.xlu1 %3603  ;;  %v5168_v56 = vsel %vm1035_vm5, %v5136_v41, %v5051_v22  ;;  %v3375_v41 = vrot.slane %v3252_v50, 1  ;;  %v12512_v19 = vpop.f32.mrf.mxu3 }
 0x620   : > { %8517 = vmatmul.msk.f32.gmra.mxu1 %vm1605_vm4, %v5168_v56 }
 0x624   : > { %3439 = vrot.lane.b32.xlu2 %v12232_v27, %s8792_s14  ;;  %4906 = vrot.lane.b32.xlu0 %v12456_v21, %s8792_s14 }
 0x625   : > { %4888 = vrot.lane.b32.xlu1 %v4818_v1, %s8792_s14 }
 0x626   : > { %v4879_v48 = vpop.permute.xlu2 %4878  ;;  %v3428_v29 = vpop.permute.xlu0 %3427 }
 0x627   : > { %v4088_v23 = vpop.permute.xlu1 %4087  ;;  %v3679_v10 = vsel %vm441_vm1, %v12091_v15, %v3428_v29  ;;  %v8740_v29 = vld [vmem:[#allocation2 + $0x18f] sm:$0xff] }
 0x628   : > { %v4215_v7 = vsel %vm1035_vm5, %v4183_v9, %v4088_v23  ;;  %v3711_v27 = vsel %vm1035_vm5, %v3679_v10, %v3604_v40  ;;  %v4842_v40 = vrot.slane %v4719_v2, 1  ;;  %v3551_v2 = vrot.slane %v3252_v50, 2 }
 0x629   : > { %8431 = vmatmul.msk.f32.vlgmr.msrb.gmra.mxu2 %vm1605_vm4, %v4215_v7  ;;  %8483 = vmatmul.msk.f32.gmra.mxu0 %vm1605_vm4, %v3711_v27  ;;  %v4707_v27 = vld [vmem:[#allocation2 + $0x177] sm:$0x3] }
 0x62a   : > { %v4843_v56 = vsel %vm649_vm2, %v12450_v49, %v4842_v40  ;;  %v4822_v40 = vrot.slane %v4707_v27, 1 }
 0x62c   : > { %5064 = vrot.lane.b32.xlu2 %v4994_v17, %s8793_s15  ;;  %3615 = vrot.lane.b32.xlu0 %v12262_v39, %s8793_s15  ;;  %v3376_v39 = vsel %vm649_vm2, %v12219_v60, %v3375_v41 }
 0x62d   : > { %5084 = vrot.lane.b32.xlu1 %v5019_v26, %s8793_s15  ;;  %v5138_v26 = vsel %vm441_vm1, %v12179_v18, %v4879_v48  ;;  %v4823_v48 = vsel %vm649_vm2, %v12224_v54, %v4822_v40 }
 0x62e   : > { %v12481_v0 = vpop.permute.xlu2 %4898  ;;  %v4877_v4 = vpop.permute.xlu0 %4876 }
 0x62f   : > { %v5073_v30 = vpop.permute.xlu1 %5072  ;;  %v5137_v34 = vsel %vm441_vm1, %v12070_v11, %v4877_v4  ;;  %v12497_v11 = vld [vmem:[#allocation2 + $0x207] sm:$0xff] }
 0x630   : > { %v5169_v22 = vsel %vm1035_vm5, %v5137_v34, %v5053_v20  ;;  %v12499_v20 = vld [vmem:[#allocation2 + $0x20f] sm:$0xff]  ;;  %v5020_v60 = vrot.slane %v12497_v11, 2 }
 0x631   : > { %8518 = vmatmul.msk.f32.gmra.mxu1 %vm1605_vm4, %v5169_v22  ;;  %v5021_v23 = vrot.slane %v12499_v20, 2 }
 0x633   : > { %v5022_v10 = vsel %vm826_vm3, %v5020_v60, %v5021_v23 }
 0x634   : > { %3441 = vrot.lane.b32.xlu2 %v3376_v39, %s8792_s14  ;;  %4908 = vrot.lane.b32.xlu0 %v4843_v56, %s8792_s14  ;;  %v12535_v39 = vpop.f32.mrf.mxu3 }
 0x635   : > { %4890 = vrot.lane.b32.xlu1 %v12236_v28, %s8792_s14  ;;  %v3552_v28 = vsel %vm826_vm3, %v12245_v32, %v3551_v2  ;;  %v4844_v32 = vrot.slane %v12497_v11, 1  ;;  %v4998_v2 = vrot.slane %v4707_v27, 2 }
 0x636   : > { %v3608_v43 = vpop.permute.xlu2 %3607  ;;  %v4897_v9 = vpop.permute.xlu0 %4896 }
 0x637   : > { %v3914_v1 = vpop.permute.xlu1 %3913  ;;  %v5147_v35 = vsel %vm441_vm1, %v8740_v29, %v4897_v9 }
 0x638   : > { %v5179_v7 = vsel %vm1035_vm5, %v5147_v35, %v5073_v30  ;;  %v4845_v30 = vrot.slane %v12499_v20, 1  ;;  %v4184_v9 = vsel %vm441_vm1, %v12118_v37, %v3914_v1  ;;  %v3255_v1 = vld [vmem:[#allocation2 + $0x1d7] sm:$0x3] }
 0x639   : > { %8528 = vmatmul.msk.f32.gmra.mxu3 %vm1605_vm4, %v5179_v7  ;;  %v4999_v7 = vsel %vm826_vm3, %v12249_v62, %v4998_v2  ;;  %v3556_v2 = vrot.slane %v3255_v1, 2 }
 0x63a   : > { %v4846_v18 = vsel %vm649_vm2, %v4844_v32, %v4845_v30 }
 0x63c   : > { %5066 = vrot.lane.b32.xlu2 %v12266_v8, %s8793_s15  ;;  %3617 = vrot.lane.b32.xlu0 %v3552_v28, %s8793_s15  ;;  %v3680_v8 = vsel %vm441_vm1, %v12093_v45, %v12443_v47  ;;  %v4722_v47 = vld [vmem:[#allocation2 + $0x217] sm:$0x3]  ;;  %v12547_v28 = vld [vmem:[#allocation2 + $0x227] sm:$0xff] }
 0x63d   : > { %5086 = vrot.lane.b32.xlu1 %v5022_v10, %s8793_s15  ;;  %v5023_v29 = vrot.slane %v4722_v47, 2  ;;  %v12549_v10 = vld [vmem:[#allocation2 + $0x22f] sm:$0xff]  ;;  %v4849_v27 = vrot.slane %v12547_v28, 1  ;;  %v4847_v32 = vrot.slane %v4722_v47, 1  ;;  %v12574_v47 = vpop.f32.mrf.mxu0 }
 0x63e   : > { %v12515_v17 = vpop.permute.xlu2 %4091  ;;  %v3606_v41 = vpop.permute.xlu0 %3605 }
 0x63f   : > { %v5055_v50 = vpop.permute.xlu1 %5054  ;;  %v3712_v34 = vsel %vm1035_vm5, %v3680_v8, %v3606_v41  ;;  %v5024_v37 = vsel %vm826_vm3, %v5021_v23, %v5023_v29  ;;  %v5148_v23 = vsel %vm441_vm1, %v12203_v58, %v12481_v0  ;;  %v5025_v0 = vrot.slane %v12547_v28, 2 }
 0x640   : > { %v5170_v4 = vsel %vm1035_vm5, %v5138_v26, %v5055_v50  ;;  %8484 = vmatmul.msk.f32.gmra.mxu0 %vm1605_vm4, %v3712_v34  ;;  %v4850_v26 = vrot.slane %v12549_v10, 1  ;;  %v3380_v50 = vrot.slane %v3255_v1, 1  ;;  %v4848_v34 = vsel %vm649_vm2, %v4845_v30, %v4847_v32 }
 0x641   : > { %8519 = vmatmul.msk.f32.gmra.mxu1 %vm1605_vm4, %v5170_v4  ;;  %v12561_v4 = vpop.f32.mrf.mxu3 }
 0x642   : > { %v4851_v41 = vsel %vm649_vm2, %v4849_v27, %v4850_v26  ;;  %v3381_v40 = vsel %vm649_vm2, %v12369_v57, %v3380_v50 }
 0x644   : > { %3443 = vrot.lane.b32.xlu2 %v12376_v13, %s8792_s14  ;;  %4910 = vrot.lane.b32.xlu0 %v4846_v18, %s8792_s14  ;;  %v5026_v18 = vrot.slane %v12549_v10, 2 }
 0x645   : > { %4892 = vrot.lane.b32.xlu1 %v4823_v48, %s8792_s14  ;;  %v12596_v32 = vpop.f32.mrf.mxu0 }
 0x646   : > { %v5077_v22 = vpop.permute.xlu2 %5076  ;;  %v4090_v54 = vpop.permute.xlu0 %4089 }
 0x647   : > { %v3432_v56 = vpop.permute.xlu1 %3431  ;;  %v4216_v13 = vsel %vm1035_vm5, %v4184_v9, %v4090_v54  ;;  %v5027_v54 = vsel %vm826_vm3, %v5025_v0, %v5026_v18 }
 0x648   : > { %v3681_v60 = vsel %vm441_vm1, %v12208_v12, %v3432_v56  ;;  %8432 = vmatmul.msk.f32.gmra.mxu2 %vm1605_vm4, %v4216_v13  ;;  %v4725_v13 = vld [vmem:[#allocation2 + $0x237] sm:$0x3] }
 0x649   : > { %v3713_v35 = vsel %vm1035_vm5, %v3681_v60, %v3608_v43 }
 0x64a   : > { %8485 = vmatmul.msk.f32.gmra.mxu0 %vm1605_vm4, %v3713_v35  ;;  %v12585_v35 = vpop.f32.mrf.mxu3 }
 0x64c   : > { %5068 = vrot.lane.b32.xlu2 %v4999_v7, %s8793_s15  ;;  %3619 = vrot.lane.b32.xlu0 %v12350_v61, %s8793_s15  ;;  %v3557_v7 = vsel %vm826_vm3, %v12338_v6, %v3556_v2 }
 0x64d   : > { %5088 = vrot.lane.b32.xlu1 %v5024_v37, %s8793_s15 }
 0x64e   : > { %v3918_v43 = vpop.permute.xlu2 %3917  ;;  %v5075_v8 = vpop.permute.xlu0 %5074 }
 0x64f   : > { %v4881_v62 = vpop.permute.xlu1 %4880  ;;  %v5180_v61 = vsel %vm1035_vm5, %v5148_v23, %v5075_v8 }
 0x650   : > { %8529 = vmatmul.msk.f32.gmra.mxu3 %vm1605_vm4, %v5180_v61  ;;  %v5139_v1 = vsel %vm441_vm1, %v12181_v63, %v4881_v62  ;;  %v5028_v63 = vrot.slane %v4725_v13, 2  ;;  %v4186_v62 = vsel %vm441_vm1, %v12275_v51, %v3918_v43 }
 0x652   : > { %v12606_v8 = vpop.f32.mrf.mxu3 }
 0x654   : > { %3445 = vrot.lane.b32.xlu2 %v3381_v40, %s8792_s14  ;;  %4912 = vrot.lane.b32.xlu0 %v4848_v34, %s8792_s14 }
 0x655   : > { %4914 = vrot.lane.b32.xlu1 %v4851_v41, %s8792_s14 }
 0x656   : > { %v5059_v48 = vpop.permute.xlu2 %5058  ;;  %v3916_v9 = vpop.permute.xlu0 %3915 }
 0x657   : > { %v4901_v56 = vpop.permute.xlu1 %4900  ;;  %v4185_v30 = vsel %vm441_vm1, %v12268_v59, %v3916_v9  ;;  %v3258_v59 = vld [vmem:[#allocation2 + $0x1f7] sm:$0x3]  ;;  %v8741_v9 = vld [vmem:[#allocation2 + $0x127] sm:$0xff] }
 0x658   : > { %v5149_v57 = vsel %vm441_vm1, %v12205_v25, %v4901_v56  ;;  %v4217_v29 = vsel %vm1035_vm5, %v4185_v30, %v12515_v17  ;;  %v3385_v50 = vrot.slane %v3258_v59, 1 }
 0x659   : > { %v5181_v60 = vsel %vm1035_vm5, %v5149_v57, %v5077_v22  ;;  %8433 = vmatmul.msk.f32.gmra.mxu2 %vm1605_vm4, %v4217_v29  ;;  %v4852_v22 = vrot.slane %v4725_v13, 1 }
 0x65a   : > { %8530 = vmatmul.msk.f32.gmra.mxu3 %vm1605_vm4, %v5181_v60  ;;  %v12624_v43 = vpop.f32.mrf.mxu3 }
 0x65b   : > { %v4853_v23 = vsel %vm649_vm2, %v4850_v26, %v4852_v22  ;;  %v3561_v26 = vrot.slane %v3258_v59, 2 }
 0x65c   : > { %5090 = vrot.lane.b32.xlu2 %v5027_v54, %s8793_s15  ;;  %3621 = vrot.lane.b32.xlu0 %v3557_v7, %s8793_s15 }
 0x65d   : > { %3623 = vrot.lane.b32.xlu1 %v12436_v46, %s8793_s15  ;;  %v3386_v46 = vsel %vm649_vm2, %v12450_v49, %v3385_v50  ;;  %v12612_v49 = vpop.f32.mrf.mxu0  ;;  %v3562_v51 = vsel %vm826_vm3, %v12425_v33, %v3561_v26  ;;  %v8742_v33 = vld [vmem:[#allocation2 + $0x12f] sm:$0xff] }
 0x65e   : > { %v3436_v17 = vpop.permute.xlu2 %3435  ;;  %v5057_v27 = vpop.permute.xlu0 %5056 }
 0x65f   : > { %v3610_v37 = vpop.permute.xlu1 %3609  ;;  %v5171_v6 = vsel %vm1035_vm5, %v5139_v1, %v5057_v27 }
 0x660   : > { %8520 = vmatmul.msk.f32.gmra.mxu1 %vm1605_vm4, %v5171_v6  ;;  %v3683_v6 = vsel %vm441_vm1, %v12346_v38, %v3436_v17 }
 0x662   : > { %v12632_v59 = vpop.f32.mrf.mxu3 }
 0x664   : > { %4916 = vrot.lane.b32.xlu2 %v4853_v23, %s8792_s14  ;;  %3447 = vrot.lane.b32.xlu0 %v12456_v21, %s8792_s14  ;;  %v5029_v21 = vsel %vm826_vm3, %v5026_v18, %v5028_v63 }
 0x665   : > { %3449 = vrot.lane.b32.xlu1 %v3386_v46, %s8792_s14  ;;  %v12628_v54 = vpop.f32.mrf.mxu0 }
 0x666   : > { %v5061_v40 = vpop.permute.xlu2 %5060  ;;  %v3434_v34 = vpop.permute.xlu0 %3433 }
 0x667   : > { %v4094_v61 = vpop.permute.xlu1 %4093  ;;  %v3682_v0 = vsel %vm441_vm1, %v12210_v42, %v3434_v34 }
 0x668   : > { %v4218_v41 = vsel %vm1035_vm5, %v4186_v62, %v4094_v61  ;;  %v3714_v56 = vsel %vm1035_vm5, %v3682_v0, %v3610_v37 }
 0x669   : > { %8434 = vmatmul.msk.f32.gmra.mxu2 %vm1605_vm4, %v4218_v41  ;;  %8486 = vmatmul.msk.f32.gmra.mxu0 %vm1605_vm4, %v3714_v56 }
 0x66a   : > { %v12646_v63 = vpop.f32.mrf.mxu3 }
 0x66c   : > { %3625 = vrot.lane.b32.xlu2 %v3562_v51, %s8793_s15  ;;  %5092 = vrot.lane.b32.xlu0 %v5029_v21, %s8793_s15 }
 0x66d   : > { %v12640_v27 = vpop.f32.mrf.mxu0 }
 0x66e   : > { %v4883_v57 = vpop.permute.xlu0 %4882  ;;  %v3438_v60 = vpop.permute.xlu2 %3437 }
 0x66f   : > { %v5079_v2 = vpop.permute.xlu1 %5078  ;;  %v5140_v30 = vsel %vm441_vm1, %v8741_v9, %v4883_v57 }
 0x670   : > { %v5172_v18 = vsel %vm1035_vm5, %v5140_v30, %v5059_v48 }
 0x671   : > { %8521 = vmatmul.msk.f32.gmra.mxu1 %vm1605_vm4, %v5172_v18 }
 0x672   : > { %v12658_v0 = vpop.f32.mrf.mxu3 }
 0x675   : > { %v12648_v62 = vpop.f32.mrf.mxu0 }
 0x676   : > { %v4903_v7 = vpop.permute.xlu0 %4902  ;;  %v5063_v48 = vpop.permute.xlu2 %5062 }
 0x677   : > { %v4885_v29 = vpop.permute.xlu1 %4884  ;;  %v5150_v22 = vsel %vm441_vm1, %v12329_v44, %v4903_v7 }
 0x678   : > { %v5141_v13 = vsel %vm441_vm1, %v8742_v33, %v4885_v29  ;;  %v5182_v1 = vsel %vm1035_vm5, %v5150_v22, %v5079_v2  ;;  %v12678_v22 = vpop.f32.mrf.mxu1 }
 0x679   : > { %v5173_v37 = vsel %vm1035_vm5, %v5141_v13, %v5061_v40  ;;  %8531 = vmatmul.msk.f32.gmra.mxu3 %vm1605_vm4, %v5182_v1 }
 0x67a   : > { %8522 = vmatmul.msk.f32.gmra.mxu1 %vm1605_vm4, %v5173_v37  ;;  %v12666_v9 = vpop.f32.mrf.mxu3 }
 0x67d   : > { %v12660_v21 = vpop.f32.mrf.mxu0 }
 0x67e   : > { %v3612_v23 = vpop.permute.xlu0 %3611  ;;  %v3440_v61 = vpop.permute.xlu2 %3439 }
 0x67f   : > { %v5081_v50 = vpop.permute.xlu1 %5080  ;;  %v3715_v46 = vsel %vm1035_vm5, %v3683_v6, %v3612_v23 }
 0x680   : > { %8487 = vmatmul.msk.f32.gmra.mxu0 %vm1605_vm4, %v3715_v46  ;;  %v12688_v46 = vpop.f32.mrf.mxu1 }
 0x685   : > { %v12673_v7 = vpop.f32.mrf.mxu0 }
 0x686   : > { %v4905_v40 = vpop.permute.xlu0 %4904  ;;  %v5065_v51 = vpop.permute.xlu2 %5064 }
 0x687   : > { %v4887_v26 = vpop.permute.xlu1 %4886  ;;  %v5151_v34 = vsel %vm441_vm1, %v12331_v52, %v4905_v40 }
 0x688   : > { %v5142_v41 = vsel %vm441_vm1, %v12091_v15, %v4887_v26  ;;  %v5183_v17 = vsel %vm1035_vm5, %v5151_v34, %v5081_v50  ;;  %v3684_v15 = vsel %vm441_vm1, %v12356_v14, %v3438_v60 }
 0x689   : > { %v5174_v38 = vsel %vm1035_vm5, %v5142_v41, %v5063_v48  ;;  %8532 = vmatmul.msk.f32.gmra.mxu3 %vm1605_vm4, %v5183_v17  ;;  %v12682_v48 = vpop.f32.mrf.mxu3 }
 0x68a   : > { %8523 = vmatmul.msk.f32.gmra.mxu1 %vm1605_vm4, %v5174_v38 }
 0x68d   : > { %v12685_v6 = vpop.f32.mrf.mxu0 }
 0x68e   : > { %v3614_v2 = vpop.permute.xlu0 %3613  ;;  %v3442_v14 = vpop.permute.xlu2 %3441 }
 0x68f   : > { %v5083_v56 = vpop.permute.xlu1 %5082  ;;  %v3716_v57 = vsel %vm1035_vm5, %v3684_v15, %v3614_v2 }
 0x690   : > { %8488 = vmatmul.msk.f32.gmra.mxu0 %vm1605_vm4, %v3716_v57 }
 0x691   : > { %v12697_v38 = vpop.f32.mrf.mxu3 }
 0x695   : > { %v12700_v17 = vpop.f32.mrf.mxu0 }
 0x696   : > { %v4907_v29 = vpop.permute.xlu0 %4906  ;;  %v5067_v23 = vpop.permute.xlu2 %5066 }
 0x697   : > { %v4889_v30 = vpop.permute.xlu1 %4888  ;;  %v5152_v33 = vsel %vm441_vm1, %v12416_v16, %v4907_v29 }
 0x698   : > { %v5143_v18 = vsel %vm441_vm1, %v12093_v45, %v4889_v30  ;;  %v5184_v60 = vsel %vm1035_vm5, %v5152_v33, %v5083_v56  ;;  %v3685_v45 = vsel %vm441_vm1, %v12203_v58, %v3440_v61  ;;  %v12702_v56 = vpop.f32.mrf.mxu1 }
 0x699   : > { %v5175_v13 = vsel %vm1035_vm5, %v5143_v18, %v5065_v51  ;;  %8533 = vmatmul.msk.f32.gmra.mxu3 %vm1605_vm4, %v5184_v60  ;;  %v3686_v51 = vsel %vm441_vm1, %v12205_v25, %v3442_v14  ;;  %v12710_v18 = vpop.f32.mrf.mxu3 }
 0x69a   : > { %8524 = vmatmul.msk.f32.gmra.mxu1 %vm1605_vm4, %v5175_v13 }
 0x69d   : > { %v12708_v30 = vpop.f32.mrf.mxu0 }
 0x69e   : > { %v3616_v1 = vpop.permute.xlu0 %3615  ;;  %v3444_v15 = vpop.permute.xlu2 %3443 }
 0x69f   : > { %v5085_v37 = vpop.permute.xlu1 %5084  ;;  %v3717_v50 = vsel %vm1035_vm5, %v3685_v45, %v3616_v1 }
 0x6a0   : > { %8489 = vmatmul.msk.f32.gmra.mxu0 %vm1605_vm4, %v3717_v50  ;;  %v12712_v29 = vpop.f32.mrf.mxu1 }
 0x6a5   : > { %v12722_v1 = vpop.f32.mrf.mxu0 }
 0x6a6   : > { %v4909_v40 = vpop.permute.xlu0 %4908  ;;  %v5069_v13 = vpop.permute.xlu2 %5068 }
 0x6a7   : > { %v4891_v26 = vpop.permute.xlu1 %4890  ;;  %v5153_v58 = vsel %vm441_vm1, %v12418_v53, %v4909_v40 }
 0x6a8   : > { %v5144_v41 = vsel %vm441_vm1, %v12208_v12, %v4891_v26  ;;  %v5185_v34 = vsel %vm1035_vm5, %v5153_v58, %v5085_v37  ;;  %v12724_v50 = vpop.f32.mrf.mxu1 }
 0x6a9   : > { %v5176_v61 = vsel %vm1035_vm5, %v5144_v41, %v5067_v23  ;;  %8534 = vmatmul.msk.f32.gmra.mxu3 %vm1605_vm4, %v5185_v34  ;;  %v12726_v23 = vpop.f32.mrf.mxu3 }
 0x6aa   : > { %8525 = vmatmul.msk.f32.gmra.mxu1 %vm1605_vm4, %v5176_v61 }
 0x6ad   : > { %v12732_v58 = vpop.f32.mrf.mxu0 }
 0x6ae   : > { %v3618_v2 = vpop.permute.xlu0 %3617  ;;  %v3446_v40 = vpop.permute.xlu2 %3445 }
 0x6af   : > { %v5087_v12 = vpop.permute.xlu1 %5086  ;;  %v3718_v57 = vsel %vm1035_vm5, %v3686_v51, %v3618_v2 }
 0x6b0   : > { %8490 = vmatmul.msk.f32.gmra.mxu0 %vm1605_vm4, %v3718_v57  ;;  %v12734_v61 = vpop.f32.mrf.mxu1 }
 0x6b1   : > { %v12736_v34 = vpop.f32.mrf.mxu3 }
 0x6b6   : > { %v4911_v37 = vpop.permute.xlu0 %4910 }
 0x6b7   : > { %v4893_v33 = vpop.permute.xlu1 %4892  ;;  %v5154_v25 = vsel %vm441_vm1, %v12497_v11, %v4911_v37  ;;  %v3688_v37 = vsel %vm441_vm1, %v12331_v52, %v3446_v40 }
 0x6b8   : > { %v5145_v60 = vsel %vm441_vm1, %v12210_v42, %v4893_v33  ;;  %v5186_v45 = vsel %vm1035_vm5, %v5154_v25, %v5087_v12  ;;  %v3687_v42 = vsel %vm441_vm1, %v12329_v44, %v3444_v15  ;;  %v12742_v44 = vpop.f32.mrf.mxu0  ;;  %v12744_v15 = vpop.f32.mrf.mxu1 }
 0x6b9   : > { %v5177_v14 = vsel %vm1035_vm5, %v5145_v60, %v5069_v13  ;;  %8535 = vmatmul.msk.f32.gmra.mxu3 %vm1605_vm4, %v5186_v45  ;;  %v5091_v33 = vpop.permute.xlu2 %5090  ;;  %v12748_v60 = vpop.f32.mrf.mxu3 }
 0x6ba   : > { %8526 = vmatmul.msk.f32.gmra.mxu1 %vm1605_vm4, %v5177_v14 }
 0x6be   : > { %v3620_v41 = vpop.permute.xlu0 %3619 }
 0x6bf   : > { %v5089_v26 = vpop.permute.xlu1 %5088  ;;  %v3719_v11 = vsel %vm1035_vm5, %v3687_v42, %v3620_v41 }
 0x6c0   : > { %8491 = vmatmul.msk.f32.gmra.mxu0 %vm1605_vm4, %v3719_v11  ;;  %v12758_v42 = vpop.f32.mrf.mxu1 }
 0x6c1   : > { %v4917_v41 = vpop.permute.xlu2 %4916 }
 0x6c6   : > { %v4913_v51 = vpop.permute.xlu0 %4912 }
 0x6c7   : > { %v4915_v12 = vpop.permute.xlu1 %4914  ;;  %v5155_v2 = vsel %vm441_vm1, %v12499_v20, %v4913_v51 }
 0x6c8   : > { %v5187_v57 = vsel %vm1035_vm5, %v5155_v2, %v5089_v26  ;;  %v5156_v13 = vsel %vm441_vm1, %v12547_v28, %v4915_v12  ;;  %v12756_v26 = vpop.f32.mrf.mxu0  ;;  %v12760_v28 = vpop.f32.mrf.mxu3 }
 0x6c9   : > { %8536 = vmatmul.msk.f32.gmra.mxu3 %vm1605_vm4, %v5187_v57  ;;  %v5188_v20 = vsel %vm1035_vm5, %v5156_v13, %v5091_v33  ;;  %15059 = vst [vmem:[#allocation4_spill] sm:$0xff] %v12760_v28  ;;  %v4373_v12 = vpop.f32.mrf.mxu2  ;;  %v12768_v57 = vpop.f32.mrf.mxu1 }
 0x6ce   : > { %v3622_v25 = vpop.permute.xlu0 %3621 }
 0x6cf   : > { %v3720_v14 = vsel %vm1035_vm5, %v3688_v37, %v3622_v25  ;;  %v3624_v45 = vpop.permute.xlu1 %3623  ;;  %v5157_v37 = vsel %vm441_vm1, %v12549_v10, %v4917_v41 }
 0x6d0   : > { %8492 = vmatmul.msk.f32.gmra.mxu0 %vm1605_vm4, %v3720_v14  ;;  %v12766_v51 = vpop.f32.mrf.mxu0  ;;  %v12770_v33 = vpop.f32.mrf.mxu3 }
 0x6d1   : > { %8537 = vmatmul.msk.f32.gmra.mxu3 %vm1605_vm4, %v5188_v20  ;;  %15060 = vst [vmem:[#allocation19_spill] sm:$0xff] %v12770_v33 }
 0x6d6   : > { %v3448_v11 = vpop.permute.xlu0 %3447 }
 0x6d7   : > { %v3689_v52 = vsel %vm441_vm1, %v12416_v16, %v3448_v11  ;;  %v3450_v2 = vpop.permute.xlu1 %3449  ;;  %v3626_v16 = vpop.permute.xlu2 %3625 }
 0x6d8   : > { %v3721_v40 = vsel %vm1035_vm5, %v3689_v52, %v3624_v45  ;;  %v3690_v13 = vsel %vm441_vm1, %v12418_v53, %v3450_v2  ;;  %v4376_v45 = vpop.f32.mrf.mxu2  ;;  %v12780_v11 = vpop.f32.mrf.mxu0 }
 0x6d9   : > { %8493 = vmatmul.msk.f32.gmra.mxu0 %vm1605_vm4, %v3721_v40  ;;  %v3722_v14 = vsel %vm1035_vm5, %v3690_v13, %v3626_v16  ;;  %v12782_v52 = vpop.f32.mrf.mxu1  ;;  %v12784_v40 = vpop.f32.mrf.mxu3  ;;  %v4583_v16 = vadd.f32 %v12574_v47, %v4373_v12 }
 0x6da   : > { %15061 = vst [vmem:[#allocation18_spill] sm:$0xff] %v12784_v40 }
 0x6de   : > { %v5093_v25 = vpop.permute.xlu0 %5092 }
 0x6df   : > { %v5189_v20 = vsel %vm1035_vm5, %v5157_v37, %v5093_v25  ;;  %v4586_v37 = vadd.f32 %v12596_v32, %v4376_v45  ;;  %v5412_v32 = vadd.f32 %v12678_v22, %v4583_v16 }
 0x6e0   : > { %8538 = vmatmul.msk.f32.gmra.mxu3 %vm1605_vm4, %v5189_v20  ;;  %v4379_v53 = vpop.f32.mrf.mxu2  ;;  %v12786_v2 = vpop.f32.mrf.mxu0 }
 0x6e1   : > { %8494 = vmatmul.msk.f32.gmra.mxu0 %vm1605_vm4, %v3722_v14  ;;  %v12788_v10 = vpop.f32.mrf.mxu1  ;;  %v12790_v41 = vpop.f32.mrf.mxu3  ;;  %v4589_v20 = vadd.f32 %v12612_v49, %v4379_v53  ;;  %v5413_v40 = vadd.f32 %v12688_v46, %v4586_v37  ;;  %v4595_v53 = vadd.f32 %v12640_v27, %v12256_v55  ;;  %v4598_v27 = vadd.f32 %v12648_v62, %v12301_v24 }
 0x6e2   : > { %15062 = vst [vmem:[#allocation5_spill] sm:$0xff] %v12790_v41  ;;  %v12806_v41 = vld [vmem:[%s14999_s6] ss:$0 sm:$0xff] }
 0x6e3   : > { %v5414_v45 = vadd.f32 %v12702_v56, %v4589_v20  ;;  %v12811_v47 = vadd.f32 %v12806_v41, %v5413_v40 }
 0x6e5   : > { %15063 = vst [vmem:[#allocation6_spill] sm:$0xff] %v12811_v47  ;;  %v12820_v46 = vadd.f32 %v12806_v41, %v5414_v45  ;;  %v5550_v22 = vmul.f32 %v12811_v47, %v12811_v47 }
 0x6e7   : > { %15065 = vst [vmem:[#allocation8_spill] sm:$0xff] %v12820_v46  ;;  %v5551_v55 = vmul.f32 %v12820_v46, %v12820_v46  ;;  %v5582_v20 = vsel %vm441_vm1, %v5550_v22, 0.0 }
 0x6e8   : > { %v12793_v13 = vpop.f32.mrf.mxu0 }
 0x6e9   : > { %v12797_v14 = vpop.f32.mrf.mxu1  ;;  %v12801_v28 = vpop.f32.mrf.mxu3  ;;  %v5584_v62 = vsel %vm441_vm1, %v5551_v55, 0.0 }
 0x6ec   : > { %v4382_v25 = vpop.f32.mrf.mxu2 }
 0x6ed   : > { %v4592_v33 = vadd.f32 %v12628_v54, %v4382_v25  ;;  %v12817_v54 = vadd.f32 %v12806_v41, %v5412_v32  ;;  %v5481_v25 = vsel %vm441_vm1, %v12811_v47, 0.0 }
 0x6ef   : > { %v5415_v49 = vadd.f32 %v12712_v29, %v4592_v33  ;;  %15064 = vst [vmem:[#allocation7_spill] sm:$0xff] %v12817_v54  ;;  %v5416_v29 = vadd.f32 %v12724_v50, %v4595_v53  ;;  %v5549_v40 = vmul.f32 %v12817_v54, %v12817_v54  ;;  %v5480_v16 = vsel %vm441_vm1, %v12817_v54, 0.0 }
 0x6f0   : > { %v12814_v12 = vpop.f32.mrf.mxu0  ;;  %v5483_v50 = vsel %vm441_vm1, %v12820_v46, 0.0  ;;  %v5417_v53 = vadd.f32 %v12734_v61, %v4598_v27 }
 0x6f1   : > { %v12824_v37 = vpop.f32.mrf.mxu1  ;;  %v12829_v56 = vadd.f32 %v12806_v41, %v5415_v49  ;;  %v12832_v33 = vpop.f32.mrf.mxu3  ;;  %v12850_v45 = vadd.f32 %v12806_v41, %v5416_v29  ;;  %v5482_v49 = vadd.f32 %v5481_v25, %v5480_v16  ;;  %v5581_v24 = vsel %vm441_vm1, %v5549_v40, 0.0 }
 0x6f2   : > { %15066 = vst [vmem:[#allocation9_spill] sm:$0xff] %v12832_v33  ;;  %v5583_v54 = vadd.f32 %v5582_v20, %v5581_v24  ;;  %v4601_v29 = vadd.f32 %v12660_v21, %v12342_v3  ;;  %v12869_v55 = vadd.f32 %v12806_v41, %v5417_v53 }
 0x6f3   : > { %v5552_v32 = vmul.f32 %v12829_v56, %v12829_v56  ;;  %v5485_v22 = vsel %vm441_vm1, %v12829_v56, 0.0  ;;  %v5484_v46 = vadd.f32 %v5483_v50, %v5482_v49  ;;  %v5553_v40 = vmul.f32 %v12850_v45, %v12850_v45 }
 0x6f4   : > { %v5585_v61 = vadd.f32 %v5584_v62, %v5583_v54  ;;  %v5418_v20 = vadd.f32 %v12744_v15, %v4601_v29  ;;  %v4604_v49 = vadd.f32 %v12673_v7, %v12392_v5  ;;  %v5487_v3 = vsel %vm441_vm1, %v12850_v45, 0.0 }
 0x6f5   : > { %v5586_v25 = vsel %vm441_vm1, %v5552_v32, 0.0  ;;  %v5486_v27 = vadd.f32 %v5485_v22, %v5484_v46  ;;  %v5588_v32 = vsel %vm441_vm1, %v5553_v40, 0.0  ;;  %v5554_v54 = vmul.f32 %v12869_v55, %v12869_v55 }
 0x6f6   : > { %v5587_v50 = vadd.f32 %v5586_v25, %v5585_v61  ;;  %v12880_v46 = vadd.f32 %v12806_v41, %v5418_v20  ;;  %v5419_v53 = vadd.f32 %v12758_v42, %v4604_v49  ;;  %v4607_v5 = vadd.f32 %v12685_v6, %v12429_v31 }
 0x6f7   : > { %v5488_v21 = vadd.f32 %v5487_v3, %v5486_v27  ;;  %v5489_v7 = vsel %vm441_vm1, %v12869_v55, 0.0  ;;  %v5590_v25 = vsel %vm441_vm1, %v5554_v54, 0.0  ;;  %v4610_v31 = vadd.f32 %v12700_v17, %v12487_v36 }
 0x6f8   : > { %v12853_v47 = vpop.f32.mrf.mxu0  ;;  %v5589_v15 = vadd.f32 %v5588_v32, %v5587_v50  ;;  %v5555_v61 = vmul.f32 %v12880_v46, %v12880_v46  ;;  %v12897_v42 = vadd.f32 %v12806_v41, %v5419_v53  ;;  %v5420_v27 = vadd.f32 %v12768_v57, %v4607_v5 }
 0x6f9   : > { %v12859_v33 = vpop.f32.mrf.mxu1  ;;  %v12864_v16 = vpop.f32.mrf.mxu3  ;;  %v5490_v29 = vadd.f32 %v5489_v7, %v5488_v21  ;;  %v5491_v6 = vsel %vm441_vm1, %v12880_v46, 0.0  ;;  %v5421_v21 = vadd.f32 %v12782_v52, %v4610_v31  ;;  %v4613_v57 = vadd.f32 %v12708_v30, %v12512_v19 }
 0x6fa   : > { %v5591_v40 = vadd.f32 %v5590_v25, %v5589_v15  ;;  %v5592_v50 = vsel %vm441_vm1, %v5555_v61, 0.0  ;;  %v5556_v49 = vmul.f32 %v12897_v42, %v12897_v42  ;;  %v12908_v3 = vadd.f32 %v12806_v41, %v5420_v27 }
 0x6fb   : > { %v5492_v20 = vadd.f32 %v5491_v6, %v5490_v29  ;;  %v5493_v36 = vsel %vm441_vm1, %v12897_v42, 0.0  ;;  %v12923_v52 = vadd.f32 %v12806_v41, %v5421_v21  ;;  %v5422_v29 = vadd.f32 %v12788_v10, %v4613_v57 }
 0x6fc   : > { %v5593_v32 = vadd.f32 %v5592_v50, %v5591_v40  ;;  %v5594_v5 = vsel %vm441_vm1, %v5556_v49, 0.0  ;;  %v5557_v7 = vmul.f32 %v12908_v3, %v12908_v3  ;;  %v4616_v30 = vadd.f32 %v12722_v1, %v12535_v39 }
 0x6fd   : > { %v5494_v53 = vadd.f32 %v5493_v36, %v5492_v20  ;;  %v5495_v25 = vsel %vm441_vm1, %v12908_v3, 0.0  ;;  %v5558_v40 = vmul.f32 %v12923_v52, %v12923_v52  ;;  %v12934_v31 = vadd.f32 %v12806_v41, %v5422_v29 }
 0x6fe   : > { %v5595_v19 = vadd.f32 %v5594_v5, %v5593_v32  ;;  %v5596_v27 = vsel %vm441_vm1, %v5557_v7, 0.0  ;;  %v5423_v6 = vadd.f32 %v12797_v14, %v4616_v30  ;;  %v4619_v10 = vadd.f32 %v12732_v58, %v12561_v4 }
 0x6ff   : > { %v5496_v61 = vadd.f32 %v5495_v25, %v5494_v53  ;;  %v5497_v39 = vsel %vm441_vm1, %v12923_v52, 0.0  ;;  %v5598_v21 = vsel %vm441_vm1, %v5558_v40, 0.0  ;;  %v5559_v32 = vmul.f32 %v12934_v31, %v12934_v31 }
 0x700   : > { %v12883_v24 = vpop.f32.mrf.mxu0  ;;  %v5597_v20 = vadd.f32 %v5596_v27, %v5595_v19  ;;  %v12947_v57 = vadd.f32 %v12806_v41, %v5423_v6  ;;  %v5424_v14 = vadd.f32 %v12824_v37, %v4619_v10  ;;  %v4622_v58 = vadd.f32 %v12742_v44, %v12585_v35 }
 0x701   : > { %v12885_v62 = vpop.f32.mrf.mxu1  ;;  %v12891_v22 = vpop.f32.mrf.mxu3  ;;  %v5498_v50 = vadd.f32 %v5497_v39, %v5496_v61  ;;  %v5499_v53 = vsel %vm441_vm1, %v12934_v31, 0.0  ;;  %v5600_v7 = vsel %vm441_vm1, %v5559_v32, 0.0  ;;  %v4625_v25 = vadd.f32 %v12756_v26, %v12606_v8 }
 0x702   : > { %v5599_v4 = vadd.f32 %v5598_v21, %v5597_v20  ;;  %v5560_v29 = vmul.f32 %v12947_v57, %v12947_v57  ;;  %v12960_v19 = vadd.f32 %v12806_v41, %v5424_v14  ;;  %v5425_v37 = vadd.f32 %v12859_v33, %v4622_v58 }
 0x703   : > { %v5500_v5 = vadd.f32 %v5499_v53, %v5498_v50  ;;  %v5501_v35 = vsel %vm441_vm1, %v12947_v57, 0.0  ;;  %v5426_v33 = vadd.f32 %v12885_v62, %v4625_v25  ;;  %v4628_v8 = vadd.f32 %v12766_v51, %v12624_v43 }
 0x704   : > { %v5601_v30 = vadd.f32 %v5600_v7, %v5599_v4  ;;  %v5602_v40 = vsel %vm441_vm1, %v5560_v29, 0.0  ;;  %v5561_v6 = vmul.f32 %v12960_v19, %v12960_v19  ;;  %v12973_v20 = vadd.f32 %v12806_v41, %v5425_v37 }
 0x705   : > { %v5502_v44 = vadd.f32 %v5501_v35, %v5500_v5  ;;  %v5503_v26 = vsel %vm441_vm1, %v12960_v19, 0.0  ;;  %v4631_v50 = vadd.f32 %v12780_v11, %v12632_v59  ;;  %v12988_v62 = vadd.f32 %v12806_v41, %v5426_v33 }
 0x706   : > { %v5603_v10 = vadd.f32 %v5602_v40, %v5601_v30  ;;  %v5604_v32 = vsel %vm441_vm1, %v5561_v6, 0.0  ;;  %v5562_v14 = vmul.f32 %v12973_v20, %v12973_v20  ;;  %v4634_v43 = vadd.f32 %v12786_v2, %v12646_v63 }
 0x707   : > { %v5504_v21 = vadd.f32 %v5503_v26, %v5502_v44  ;;  %v5505_v51 = vsel %vm441_vm1, %v12973_v20, 0.0  ;;  %v4637_v59 = vadd.f32 %v12793_v13, %v12658_v0  ;;  %v4640_v33 = vadd.f32 %v12814_v12, %v12666_v9 }
 0x708   : > { %v12915_v17 = vpop.f32.mrf.mxu0  ;;  %v5605_v58 = vadd.f32 %v5604_v32, %v5603_v10  ;;  %v5606_v29 = vsel %vm441_vm1, %v5562_v14, 0.0 }
 0x709   : > { %v12917_v54 = vpop.f32.mrf.mxu3  ;;  %v5361_v15 = vpop.f32.mrf.mxu1  ;;  %v5506_v11 = vadd.f32 %v5505_v51, %v5504_v21 }
 0x70a   : > { %v5427_v4 = vadd.f32 %v5361_v15, %v4628_v8  ;;  %v5563_v15 = vmul.f32 %v12988_v62, %v12988_v62  ;;  %v5607_v2 = vadd.f32 %v5606_v29, %v5605_v58 }
 0x70c   : > { %v13002_v37 = vadd.f32 %v12806_v41, %v5427_v4  ;;  %v5608_v35 = vsel %vm441_vm1, %v5563_v15, 0.0  ;;  %v4646_v4 = vadd.f32 %v12883_v24, %v12697_v38 }
 0x70d   : > { %v5609_v6 = vadd.f32 %v5608_v35, %v5607_v2 }
 0x70e   : > { %v5564_v44 = vmul.f32 %v13002_v37, %v13002_v37  ;;  %v5509_v10 = vsel %vm441_vm1, %v13002_v37, 0.0  ;;  %v5433_v2 = vadd.f32 %v12891_v22, %v4646_v4 }
 0x710   : > { %v12941_v1 = vpop.f32.mrf.mxu0  ;;  %v5610_v14 = vsel %vm441_vm1, %v5564_v44, 0.0  ;;  %v13066_v22 = vadd.f32 %v12806_v41, %v5433_v2 }
 0x711   : > { %v5364_v49 = vpop.f32.mrf.mxu1  ;;  %v12950_v36 = vpop.f32.mrf.mxu3  ;;  %v5611_v58 = vadd.f32 %v5610_v14, %v5609_v6  ;;  %v4652_v14 = vadd.f32 %v12941_v1, %v12726_v23 }
 0x712   : > { %v5428_v53 = vadd.f32 %v5364_v49, %v4631_v50  ;;  %v5507_v49 = vsel %vm441_vm1, %v12988_v62, 0.0  ;;  %v5570_v1 = vmul.f32 %v13066_v22, %v13066_v22 }
 0x713   : > { %v5508_v25 = vadd.f32 %v5507_v49, %v5506_v11  ;;  %v5435_v4 = vadd.f32 %v12950_v36, %v4652_v14  ;;  %v15068_v14 = vld [vmem:[#allocation19_spill] sm:$0xff] }
 0x714   : > { %v13009_v0 = vadd.f32 %v12806_v41, %v5428_v53 }
 0x715   : > { %v5510_v50 = vadd.f32 %v5509_v10, %v5508_v25 }
 0x716   : > { %v5565_v8 = vmul.f32 %v13009_v0, %v13009_v0 }
 0x718   : > { %v12967_v61 = vpop.f32.mrf.mxu0  ;;  %v5612_v51 = vsel %vm441_vm1, %v5565_v8, 0.0 }
 0x719   : > { %v5367_v27 = vpop.f32.mrf.mxu1  ;;  %v12976_v39 = vpop.f32.mrf.mxu3  ;;  %v5613_v29 = vadd.f32 %v5612_v51, %v5611_v58 }
 0x71a   : > { %v5429_v63 = vadd.f32 %v5367_v27, %v4634_v43  ;;  %v4643_v27 = vadd.f32 %v12853_v47, %v12682_v48  ;;  %v5511_v48 = vsel %vm441_vm1, %v13009_v0, 0.0 }
 0x71c   : > { %v13015_v40 = vadd.f32 %v12806_v41, %v5429_v63  ;;  %v5432_v12 = vadd.f32 %v12864_v16, %v4643_v27  ;;  %v4649_v27 = vadd.f32 %v12915_v17, %v12710_v18  ;;  %v5654_v18 = vld [vmem:[%s15004_s11 + $0x18] sm:$0xff]  ;;  %v5653_v17 = vld [vmem:[%s15004_s11 + $0x10] sm:$0xff] }
 0x71d   : > { %5670 = vmatpush.msra.mxu2 %v5654_v18 }
 0x71e   : > { %v5566_v9 = vmul.f32 %v13015_v40, %v13015_v40  ;;  %v5513_v53 = vsel %vm441_vm1, %v13015_v40, 0.0  ;;  %v13054_v63 = vadd.f32 %v12806_v41, %v5432_v12 }
 0x71f   : > { %5671 = vmatpush.msra.mxu2 %v5653_v17  ;;  %v5652_v17 = vld [vmem:[%s15004_s11 + $0x8] sm:$0xff] }
 0x720   : > { %v12996_v5 = vpop.f32.mrf.mxu0  ;;  %v5614_v16 = vsel %vm441_vm1, %v5566_v9, 0.0  ;;  %v5519_v9 = vsel %vm441_vm1, %v13054_v63, 0.0 }
 0x721   : > { %v13004_v30 = vpop.f32.mrf.mxu3  ;;  %v5615_v25 = vadd.f32 %v5614_v16, %v5613_v29  ;;  %v5622_v16 = vsel %vm441_vm1, %v5570_v1, 0.0  ;;  %5672 = vmatpush.msra.mxu2 %v5652_v17  ;;  %v15069_v1 = vld [vmem:[#allocation18_spill] sm:$0xff] }
 0x727   : > { %v5370_v7 = vpop.f32.mrf.mxu1 }
 0x728   : > { %v5430_v13 = vadd.f32 %v5370_v7, %v4637_v59  ;;  %v13028_v21 = vpop.f32.mrf.mxu0  ;;  %v5512_v7 = vadd.f32 %v5511_v48, %v5510_v50  ;;  %v5569_v50 = vmul.f32 %v13054_v63, %v13054_v63 }
 0x729   : > { %v13038_v43 = vpop.f32.mrf.mxu3 }
 0x72a   : > { %v13026_v26 = vadd.f32 %v12806_v41, %v5430_v13  ;;  %v5514_v15 = vadd.f32 %v5513_v53, %v5512_v7  ;;  %v5620_v23 = vsel %vm441_vm1, %v5569_v50, 0.0  ;;  %v5521_v53 = vsel %vm441_vm1, %v13066_v22, 0.0 }
 0x72c   : > { %v5567_v59 = vmul.f32 %v13026_v26, %v13026_v26  ;;  %v5515_v38 = vsel %vm441_vm1, %v13026_v26, 0.0 }
 0x72d   : > { %v5516_v35 = vadd.f32 %v5515_v38, %v5514_v15 }
 0x72e   : > { %v5616_v49 = vsel %vm441_vm1, %v5567_v59, 0.0 }
 0x730   : > { %v4663_v44 = vpop.f32.mrf.mxu0 }
 0x731   : > { %v5397_v10 = vpop.f32.mrf.mxu3  ;;  %v4664_v18 = vadd.f32 %v4663_v44, %v15068_v14 }
 0x737   : > { %v5373_v32 = vpop.f32.mrf.mxu1 }
 0x738   : > { %v5431_v47 = vadd.f32 %v5373_v32, %v4640_v33  ;;  %v5617_v33 = vadd.f32 %v5616_v49, %v5615_v25  ;;  %v5434_v32 = vadd.f32 %v12917_v54, %v4649_v27  ;;  %v15067_v49 = vld [vmem:[#allocation4_spill] sm:$0xff] }
 0x73a   : > { %v13046_v11 = vadd.f32 %v12806_v41, %v5431_v47  ;;  %v4655_v47 = vadd.f32 %v12967_v61, %v12736_v34  ;;  %v13085_v12 = vadd.f32 %v12806_v41, %v5434_v32  ;;  %v4658_v34 = vadd.f32 %v12996_v5, %v12748_v60 }
 0x73c   : > { %v5568_v24 = vmul.f32 %v13046_v11, %v13046_v11  ;;  %v5517_v13 = vsel %vm441_vm1, %v13046_v11, 0.0  ;;  %v5436_v59 = vadd.f32 %v12976_v39, %v4655_v47  ;;  %v5400_v7 = vpop.f32.mrf.mxu3  ;;  %v5571_v38 = vmul.f32 %v13085_v12, %v13085_v12 }
 0x73d   : > { %v5518_v8 = vadd.f32 %v5517_v13, %v5516_v35  ;;  %v4666_v51 = vpop.f32.mrf.mxu0  ;;  %v5523_v29 = vsel %vm441_vm1, %v13085_v12, 0.0  ;;  %v5437_v39 = vadd.f32 %v13004_v30, %v4658_v34  ;;  %v4661_v13 = vadd.f32 %v13028_v21, %v15067_v49 }
 0x73e   : > { %v5618_v6 = vsel %vm441_vm1, %v5568_v24, 0.0  ;;  %v13097_v24 = vadd.f32 %v12806_v41, %v5435_v4  ;;  %v13102_v15 = vadd.f32 %v12806_v41, %v5436_v59  ;;  %v5624_v5 = vsel %vm441_vm1, %v5571_v38, 0.0 }
 0x73f   : > { %v5619_v48 = vadd.f32 %v5618_v6, %v5617_v33  ;;  %v5520_v54 = vadd.f32 %v5519_v9, %v5518_v8  ;;  %v13115_v33 = vadd.f32 %v12806_v41, %v5437_v39  ;;  %v5438_v32 = vadd.f32 %v13038_v43, %v4661_v13  ;;  %v5679_v13 = vld [vmem:[%s15005_s12 + $0x8] sm:$0xff] }
 0x740   : > { %v5572_v2 = vmul.f32 %v13097_v24, %v13097_v24  ;;  %v5525_v27 = vsel %vm441_vm1, %v13097_v24, 0.0  ;;  %v5573_v6 = vmul.f32 %v13102_v15, %v13102_v15  ;;  %v5527_v9 = vsel %vm441_vm1, %v13102_v15, 0.0 }
 0x741   : > { %v5621_v58 = vadd.f32 %v5620_v23, %v5619_v48  ;;  %v5522_v61 = vadd.f32 %v5521_v53, %v5520_v54  ;;  %v5651_v48 = vld [vmem:[%s15004_s11] sm:$0xff]  ;;  %v5574_v43 = vmul.f32 %v13115_v33, %v13115_v33  ;;  %v13132_v44 = vadd.f32 %v12806_v41, %v5438_v32 }
 0x742   : > { %v5626_v50 = vsel %vm441_vm1, %v5572_v2, 0.0  ;;  %v5628_v47 = vsel %vm441_vm1, %v5573_v6, 0.0  ;;  %v5439_v23 = vadd.f32 %v5397_v10, %v4664_v18  ;;  %v4667_v4 = vadd.f32 %v4666_v51, %v15069_v1  ;;  %5673 = vmatpush.msra.mxu2 %v5651_v48 }
 0x743   : > { %v5623_v36 = vadd.f32 %v5622_v16, %v5621_v58  ;;  %v5524_v60 = vadd.f32 %v5523_v29, %v5522_v61  ;;  %v15070_v58 = vld [vmem:[#allocation5_spill] sm:$0xff]  ;;  %v5529_v34 = vsel %vm441_vm1, %v13115_v33, 0.0  ;;  %v5630_v16 = vsel %vm441_vm1, %v5574_v43, 0.0 }
 0x744   : > { %v5575_v39 = vmul.f32 %v13132_v44, %v13132_v44  ;;  %v13143_v10 = vadd.f32 %v12806_v41, %v5439_v23  ;;  %v5440_v51 = vadd.f32 %v5400_v7, %v4667_v4  ;;  %v5531_v2 = vsel %vm441_vm1, %v13132_v44, 0.0  ;;  %5697 = vmatpush.msrb.mxu2 %v5679_v13 }
 0x745   : > { %v5625_v25 = vadd.f32 %v5624_v5, %v5623_v36  ;;  %v5526_v30 = vadd.f32 %v5525_v27, %v5524_v60 }
 0x746   : > { %v5576_v7 = vmul.f32 %v13143_v10, %v13143_v10  ;;  %v13157_v27 = vadd.f32 %v12806_v41, %v5440_v51 }
 0x747   : > { %v5627_v21 = vadd.f32 %v5626_v50, %v5625_v25  ;;  %v5528_v54 = vadd.f32 %v5527_v9, %v5526_v30 }
 0x748   : > { %v5634_v18 = vsel %vm441_vm1, %v5576_v7, 0.0  ;;  %v5535_v9 = vsel %vm441_vm1, %v13157_v27, 0.0 }
 0x749   : > { %v5629_v59 = vadd.f32 %v5628_v47, %v5627_v21  ;;  %v5530_v38 = vadd.f32 %v5529_v34, %v5528_v54  ;;  %v5577_v21 = vmul.f32 %v13157_v27, %v13157_v27  ;;  %v15071_v54 = vld [vmem:[#allocation9_spill] sm:$0xff] }
 0x74b   : > { %v5631_v5 = vadd.f32 %v5630_v16, %v5629_v59  ;;  %v5532_v25 = vadd.f32 %v5531_v2, %v5530_v38 }
 0x74c   : > { %v5403_v8 = vpop.f32.mrf.mxu3 }
 0x74d   : > { %v4669_v35 = vpop.f32.mrf.mxu0 }
 0x74e   : > { %v4670_v53 = vadd.f32 %v4669_v35, %v15070_v58  ;;  %v5632_v35 = vsel %vm441_vm1, %v5575_v39, 0.0  ;;  %v5636_v58 = vsel %vm441_vm1, %v5577_v21, 0.0 }
 0x74f   : > { %v5633_v30 = vadd.f32 %v5632_v35, %v5631_v5 }
 0x750   : > { %v5441_v60 = vadd.f32 %v5403_v8, %v4670_v53  ;;  %v5533_v8 = vsel %vm441_vm1, %v13143_v10, 0.0 }
 0x751   : > { %v5534_v32 = vadd.f32 %v5533_v8, %v5532_v25  ;;  %v5635_v48 = vadd.f32 %v5634_v18, %v5633_v30 }
 0x752   : > { %v13160_v6 = vadd.f32 %v12806_v41, %v5441_v60 }
 0x753   : > { %v5536_v1 = vadd.f32 %v5535_v9, %v5534_v32 }
 0x754   : > { %v5406_v29 = vpop.f32.mrf.mxu3  ;;  %v5578_v17 = vmul.f32 %v13160_v6, %v13160_v6  ;;  %v5537_v47 = vsel %vm441_vm1, %v13160_v6, 0.0 }
 0x755   : > { %v5538_v16 = vadd.f32 %v5537_v47, %v5536_v1 }
 0x756   : > { %v4672_v61 = vpop.f32.mrf.mxu0  ;;  %v5638_v53 = vsel %vm441_vm1, %v5578_v17, 0.0 }
 0x757   : > { %v4673_v36 = vadd.f32 %v4672_v61, %v12801_v28  ;;  %v5678_v28 = vld [vmem:[%s15005_s12] sm:$0xff]  ;;  %v5637_v61 = vadd.f32 %v5636_v58, %v5635_v48  ;;  %v13197_v58 = vld [vmem:[#allocation2 + $0xf] sm:$0xff] }
 0x758   : > { %5698 = vmatpush.msrb.mxu2 %v5678_v28 }
 0x759   : > { %v5442_v49 = vadd.f32 %v5406_v29, %v4673_v36  ;;  %v5639_v39 = vadd.f32 %v5638_v53, %v5637_v61 }
 0x75b   : > { %v13165_v50 = vadd.f32 %v12806_v41, %v5442_v49 }
 0x75d   : > { %v5579_v43 = vmul.f32 %v13165_v50, %v13165_v50  ;;  %v5539_v59 = vsel %vm441_vm1, %v13165_v50, 0.0 }
 0x75e   : > { %v4675_v14 = vpop.f32.mrf.mxu0  ;;  %v5540_v29 = vadd.f32 %v5539_v59, %v5538_v16  ;;  %v5959_v59 = vrot.slane %v13197_v58, 1  ;;  %v5864_v16 = vld [vmem:[#allocation2 + $0x17] sm:$0x3] }
 0x75f   : > { %v4676_v23 = vadd.f32 %v4675_v14, %v15071_v54  ;;  %v5640_v38 = vsel %vm441_vm1, %v5579_v43, 0.0 }
 0x760   : > { %v5641_v5 = vadd.f32 %v5640_v38, %v5639_v39  ;;  %v6135_v38 = vrot.slane %v13197_v58, 2  ;;  %v6137_v39 = vrot.slane %v5864_v16, 2 }
 0x763   : > { %v5409_v4 = vpop.f32.mrf.mxu3 }
 0x764   : > { %v5443_v34 = vadd.f32 %v5409_v4, %v4676_v23  ;;  %v13195_v4 = vld [vmem:[#allocation2 + $0x7] sm:$0xff] }
 0x765   : > { %v5958_v53 = vrot.slane %v13195_v4, 1 }
 0x766   : > { %v13185_v36 = vadd.f32 %v12806_v41, %v5443_v34 }
 0x767   : > { %v5960_v34 = vsel %vm649_vm2, %v5958_v53, %v5959_v59 }
 0x768   : > { %v5541_v51 = vsel %vm441_vm1, %v13185_v36, 0.0  ;;  %v5580_v60 = vmul.f32 %v13185_v36, %v13185_v36  ;;  %6038 = vrot.lane.b32.xlu0 %v5960_v34, %s8792_s14 }
 0x769   : > { %v5542_v2 = vadd.f32 %v5541_v51, %v5540_v29 }
 0x76a   : > { %v5642_v49 = vsel %vm441_vm1, %v5580_v60, 0.0  ;;  %v6138_v60 = vsel %vm826_vm3, %v6135_v38, %v6137_v39 }
 0x76b   : > { %v5543_v13 = vrot.slane %v5542_v2, 4  ;;  %v5643_v28 = vadd.f32 %v5642_v49, %v5641_v5  ;;  %v8715_v49 = vld [vmem:[%s15000_s7] ss:$0 sm:$0xff] }
 0x76d   : > { %v5544_v25 = vadd.f32 %v5543_v13, %v5542_v2  ;;  %v5644_v35 = vrot.slane %v5643_v28, 4  ;;  %v5961_v13 = vrot.slane %v5864_v16, 1 }
 0x76f   : > { %v5545_v7 = vrot.slane %v5544_v25, 2  ;;  %v5645_v30 = vadd.f32 %v5644_v35, %v5643_v28 }
 0x770   : > { %6216 = vrot.lane.b32.xlu0 %v6138_v60, %s8793_s15 }
 0x771   : > { %v5546_v41 = vadd.f32 %v5545_v7, %v5544_v25  ;;  %v5646_v8 = vrot.slane %v5645_v30, 2  ;;  %v5962_v25 = vsel %vm649_vm2, %v5959_v59, %v5961_v13 }
 0x772   : > { %6040 = vrot.lane.b32.xlu1 %v5962_v25, %s8792_s14 }
 0x773   : > { %v5547_v32 = vrot.slane %v5546_v41, 1  ;;  %v5647_v14 = vadd.f32 %v5646_v8, %v5645_v30  ;;  %v5724_v8 = vld [vmem:[%s15001_s8] sm:$0x1] }
 0x775   : > { %v5648_v18 = vrot.slane %v5647_v14, 1  ;;  %v5548_v21 = vadd.f32 %v5547_v32, %v5546_v41 }
 0x777   : > { %v5649_v17 = vadd.f32 %v5648_v18, %v5647_v14 }
 0x779   : > { %v5650_v48 = vsel %vm2997_vm6, %v5548_v21, %v5649_v17  ;;  %v15072_v21 = vld [vmem:[#allocation7_spill] sm:$0xff] }
 0x77a   : > { %8539 = vmatmul.msk.f32.vlgmr.msra.gmra.mxu2 %vm441_vm1, %v5650_v48  ;;  %v15073_v48 = vld [vmem:[#allocation6_spill] sm:$0xff] }
 0x7fd   : > { %v5675_v9 = vpop.f32.mrf.mxu2 }
 0x7fe   : > { %8540 = vmatmul.msk.f32.vlgmr.msrb.gmra.mxu2 %vm3028_vm7, %v5675_v9 }
 0x881   : > { %v5700_v47 = vpop.f32.mrf.mxu2 }
 0x882   : > { %v5703_v43 = vmul.f32 %v5700_v47, %v5700_v47 }
 0x884   : > { %v5705_v54 = vrot.slane %v5703_v43, 7  ;;  %v15074_v43 = vld [vmem:[#allocation8_spill] sm:$0xff] }
 0x886   : > { %v5707_v23 = vsub.f32 %v5700_v47, %v5705_v54 }
 0x888   : > { %v5708_v1 = vadd.f32 1e-05, %v5707_v23 }
 0x88a   : > { %8719 = vrsqrt.f32 %v5708_v1  ;;  %vm5715_vm12 = vweird.f32 %v5708_v1 }
 0x890   : > { %v8720_v61 = vpop.eup %8719 }
 0x891   : > { %v5710_v29 = vmul.f32 %v8720_v61, %v5708_v1  ;;  %vm5716_vm11 = vweird.f32 %v8720_v61 }
 0x892   : > { %vm5717_vm13 = vmor %vm5715_vm12, %vm5716_vm11 }
 0x893   : > { %v5711_v51 = vmul.f32 %v8720_v61, %v5710_v29 }
 0x895   : > { %v5712_v5 = vmul.f32 0.5, %v5711_v51 }
 0x897   : > { %v5713_v2 = vsub.f32 1.5, %v5712_v5 }
 0x899   : > { %v5714_v28 = vmul.f32 %v8720_v61, %v5713_v2 }
 0x89b   : > { %v5718_v35 = vsel %vm5717_vm13, %v8720_v61, %v5714_v28 }
 0x89c   : > { %v5723_v7 = vmul.f32 %v8715_v49, %v5718_v35 }
 0x89e   : > { %v5726_v30 = vrot.slane %v5723_v7, 1  ;;  %v13216_v14 = vperm.slane %v5723_v7, 1 }
 0x8a0   : > { %v5728_v41 = vmul.f32 %v5726_v30, %v5700_v47  ;;  %v5731_v17 = vmul.f32 %v13216_v14, %v15072_v21  ;;  %v5732_v9 = vmul.f32 %v13216_v14, %v15073_v48  ;;  %v5733_v54 = vmul.f32 %v13216_v14, %v15074_v43  ;;  %v13274_v48 = vld [vmem:[#allocation2 + $0x22f] sm:$0xff] }
 0x8a1   : > { %v5734_v47 = vmul.f32 %v13216_v14, %v12829_v56  ;;  %v5735_v23 = vmul.f32 %v13216_v14, %v12850_v45  ;;  %v5736_v53 = vmul.f32 %v13216_v14, %v12869_v55  ;;  %v5737_v16 = vmul.f32 %v13216_v14, %v12880_v46 }
 0x8a2   : > { %v5729_v32 = vsub.f32 %v5724_v8, %v5728_v41  ;;  %v5738_v56 = vmul.f32 %v13216_v14, %v12897_v42  ;;  %v5739_v39 = vmul.f32 %v13216_v14, %v12908_v3  ;;  %v5740_v55 = vmul.f32 %v13216_v14, %v12923_v52 }
 0x8a3   : > { %v5741_v13 = vmul.f32 %v13216_v14, %v12934_v31  ;;  %v5742_v3 = vmul.f32 %v13216_v14, %v12947_v57  ;;  %v5743_v35 = vmul.f32 %v13216_v14, %v12960_v19  ;;  %v5744_v7 = vmul.f32 %v13216_v14, %v12973_v20 }
 0x8a4   : > { %v13218_v18 = vperm.slane %v5729_v32, 0  ;;  %v5745_v41 = vmul.f32 %v13216_v14, %v12988_v62  ;;  %v5746_v57 = vmul.f32 %v13216_v14, %v13002_v37  ;;  %v5747_v19 = vmul.f32 %v13216_v14, %v13009_v0  ;;  %v7374_v62 = vld [vmem:[#allocation2 + $0x227] sm:$0xff] }
 0x8a5   : > { %v5748_v20 = vmul.f32 %v13216_v14, %v13015_v40  ;;  %v5749_v37 = vmul.f32 %v13216_v14, %v13026_v26  ;;  %v5751_v40 = vmul.f32 %v13216_v14, %v13054_v63  ;;  %v5752_v63 = vmul.f32 %v13216_v14, %v13066_v22 }
 0x8a6   : > { %v5766_v1 = vadd.f32 %v13218_v18, %v5731_v17  ;;  %v5767_v59 = vadd.f32 %v13218_v18, %v5732_v9  ;;  %v5768_v34 = vadd.f32 %v13218_v18, %v5733_v54  ;;  %v5769_v61 = vadd.f32 %v13218_v18, %v5734_v47 }
 0x8a7   : > { %v5770_v29 = vadd.f32 %v13218_v18, %v5735_v23  ;;  %v5771_v45 = vadd.f32 %v13218_v18, %v5736_v53  ;;  %v5772_v51 = vadd.f32 %v13218_v18, %v5737_v16  ;;  %v5773_v5 = vadd.f32 %v13218_v18, %v5738_v56 }
 0x8a8   : > { %v5798_v60 = vmax.f32 %v5766_v1, 0.0  ;;  %v5799_v2 = vmax.f32 %v5767_v59, 0.0  ;;  %v5800_v46 = vmax.f32 %v5768_v34, 0.0  ;;  %v5801_v49 = vmax.f32 %v5769_v61, 0.0 }
 0x8a9   : > { %v5774_v42 = vadd.f32 %v13218_v18, %v5739_v39  ;;  %v5802_v28 = vmax.f32 %v5770_v29, 0.0  ;;  %v5775_v52 = vadd.f32 %v13218_v18, %v5740_v55  ;;  %v5803_v25 = vmax.f32 %v5771_v45, 0.0 }
 0x8aa   : > { %5830 = vst.msk [vmem:[#allocation2 + $0x28] sm:$0xff] %vm441_vm1, %v5798_v60  ;;  %v5776_v31 = vadd.f32 %v13218_v18, %v5741_v13  ;;  %v5804_v30 = vmax.f32 %v5772_v51, 0.0  ;;  %v5777_v8 = vadd.f32 %v13218_v18, %v5742_v3  ;;  %v5805_v32 = vmax.f32 %v5773_v5, 0.0 }
 0x8ab   : > { %5831 = vst.msk [vmem:[#allocation2 + $0x30] sm:$0xff] %vm441_vm1, %v5799_v2  ;;  %v5778_v21 = vadd.f32 %v13218_v18, %v5743_v35  ;;  %v5806_v17 = vmax.f32 %v5774_v42, 0.0  ;;  %v5750_v9 = vmul.f32 %v13216_v14, %v13046_v11  ;;  %v5779_v43 = vadd.f32 %v13218_v18, %v5744_v7 }
 0x8ac   : > { %5832 = vst.msk [vmem:[#allocation2 + $0x48] sm:$0xff] %vm441_vm1, %v5800_v46  ;;  %v5807_v0 = vmax.f32 %v5775_v52, 0.0  ;;  %v5780_v54 = vadd.f32 %v13218_v18, %v5745_v41  ;;  %v5808_v47 = vmax.f32 %v5776_v31, 0.0  ;;  %v6134_v23 = vrot.slane %v13195_v4, 2 }
 0x8ad   : > { %5833 = vst.msk [vmem:[#allocation2 + $0x50] sm:$0xff] %vm441_vm1, %v5801_v49  ;;  %v5781_v26 = vadd.f32 %v13218_v18, %v5746_v57  ;;  %v5809_v1 = vmax.f32 %v5777_v8, 0.0  ;;  %v7500_v11 = vrot.slane %v7374_v62, 1  ;;  %v15014_v53 = vrot.slane %v13274_v48, 1 }
 0x8ae   : > { %5834 = vst.msk [vmem:[#allocation2 + $0x68] sm:$0xff] %vm441_vm1, %v5802_v28  ;;  %v5782_v34 = vadd.f32 %v13218_v18, %v5747_v19  ;;  %v5810_v61 = vmax.f32 %v5778_v21, 0.0  ;;  %v6136_v16 = vsel %vm826_vm3, %v6134_v23, %v6135_v38  ;;  %v5783_v45 = vadd.f32 %v13218_v18, %v5748_v20 }
 0x8af   : > { %5835 = vst.msk [vmem:[#allocation2 + $0x70] sm:$0xff] %vm441_vm1, %v5803_v25  ;;  %v5784_v39 = vadd.f32 %v13218_v18, %v5749_v37  ;;  %v5811_v55 = vmax.f32 %v5779_v43, 0.0  ;;  %6214 = vrot.lane.b32.xlu2 %v6136_v16, %s8793_s15  ;;  %v7502_v22 = vsel %vm649_vm2, %v7500_v11, %v15014_v53  ;;  %v5812_v38 = vmax.f32 %v5780_v54, 0.0 }
 0x8b0   : > { %5836 = vst.msk [vmem:[#allocation2 + $0x88] sm:$0xff] %vm441_vm1, %v5804_v30  ;;  %7565 = vrot.lane.b32.xlu0 %v7502_v22, %s8792_s14  ;;  %v5785_v49 = vadd.f32 %v13218_v18, %v5750_v9  ;;  %v5813_v13 = vmax.f32 %v5781_v26, 0.0  ;;  %v5753_v3 = vmul.f32 %v13216_v14, %v13085_v12  ;;  %v5786_v52 = vadd.f32 %v13218_v18, %v5751_v40 }
 0x8b1   : > { %5837 = vst.msk [vmem:[#allocation2 + $0x90] sm:$0xff] %vm441_vm1, %v5805_v32  ;;  %v13290_v59 = vld [vmem:[#allocation2 + $0x27] sm:$0xff]  ;;  %v5814_v25 = vmax.f32 %v5782_v34, 0.0  ;;  %v5754_v35 = vmul.f32 %v13216_v14, %v13097_v24  ;;  %v5787_v7 = vadd.f32 %v13218_v18, %v5752_v63  ;;  %v5815_v31 = vmax.f32 %v5783_v45, 0.0 }
 0x8b2   : > { %5838 = vst.msk [vmem:[#allocation2 + $0xa8] sm:$0xff] %vm441_vm1, %v5806_v17  ;;  %v13299_v29 = vld [vmem:[#allocation2 + $0x2f] sm:$0xff]  ;;  %v13301_v56 = vld [vmem:[#allocation2 + $0x37] sm:$0x3]  ;;  %v5963_v46 = vrot.slane %v13290_v59, 1  ;;  %v5755_v12 = vmul.f32 %v13216_v14, %v13102_v15  ;;  %v5788_v41 = vadd.f32 %v13218_v18, %v5753_v3  ;;  %v5816_v57 = vmax.f32 %v5784_v39, 0.0 }
 0x8b3   : > { %5839 = vst.msk [vmem:[#allocation2 + $0xb0] sm:$0xff] %vm441_vm1, %v5807_v0  ;;  %v13310_v51 = vld [vmem:[#allocation2 + $0x47] sm:$0xff]  ;;  %v13318_v2 = vrot.slane %v13299_v29, 1  ;;  %v5966_v28 = vrot.slane %v13301_v56, 1  ;;  %v5756_v19 = vmul.f32 %v13216_v14, %v13115_v33  ;;  %v5789_v15 = vadd.f32 %v13218_v18, %v5754_v35 }
 0x8b4   : > { %5840 = vst.msk [vmem:[#allocation2 + $0xc8] sm:$0xff] %vm441_vm1, %v5808_v47  ;;  %v13314_v60 = vld [vmem:[#allocation2 + $0x4f] sm:$0xff]  ;;  %v5968_v5 = vrot.slane %v13310_v51, 1  ;;  %v5817_v20 = vmax.f32 %v5785_v49, 0.0  ;;  %v5757_v17 = vmul.f32 %v13216_v14, %v13132_v44  ;;  %v5758_v62 = vmul.f32 %v13216_v14, %v13143_v10  ;;  %v13373_v40 = vld [vmem:[#allocation2 + $0x57] sm:$0x3] }
 0x8b5   : > { %5841 = vst.msk [vmem:[#allocation2 + $0xd0] sm:$0xff] %vm441_vm1, %v5809_v1  ;;  %v13324_v42 = vrot.slane %v13314_v60, 1  ;;  %v13347_v24 = vsel %vm649_vm2, %v5963_v46, %v13318_v2  ;;  %v5967_v21 = vsel %vm649_vm2, %v13318_v2, %v5966_v28  ;;  %v5790_v37 = vadd.f32 %v13218_v18, %v5755_v12  ;;  %v13380_v23 = vld [vmem:[#allocation2 + $0x67] sm:$0xff] }
 0x8b6   : > { %5842 = vst.msk [vmem:[#allocation2 + $0xe8] sm:$0xff] %vm441_vm1, %v5810_v61  ;;  %v13349_v8 = vld [vmem:[#allocation2 + $0x6f] sm:$0xff]  ;;  %v13351_v32 = vld [vmem:[#allocation2 + $0x77] sm:$0x3]  ;;  %v5818_v9 = vmax.f32 %v5786_v52, 0.0  ;;  %v5791_v33 = vadd.f32 %v13218_v18, %v5756_v19  ;;  %v5819_v43 = vmax.f32 %v5787_v7, 0.0  ;;  %v5759_v10 = vmul.f32 %v13216_v14, %v13157_v27 }
 0x8b7   : > { %5843 = vst.msk [vmem:[#allocation2 + $0xf0] sm:$0xff] %vm441_vm1, %v5811_v55  ;;  %v13337_v30 = vsel %vm649_vm2, %v5968_v5, %v13324_v42  ;;  %6042 = vrot.lane.b32.xlu2 %v13347_v24, %s8792_s14  ;;  %v13370_v0 = vrot.slane %v13349_v8, 1  ;;  %v5976_v44 = vrot.slane %v13351_v32, 1  ;;  %v5792_v54 = vadd.f32 %v13218_v18, %v5757_v17 }
 0x8b8   : > { %5844 = vst.msk [vmem:[#allocation2 + $0x108] sm:$0xff] %vm441_vm1, %v5812_v38  ;;  %6046 = vrot.lane.b32.xlu1 %v13337_v30, %s8792_s14  ;;  %v5820_v47 = vmax.f32 %v5788_v41, 0.0  ;;  %6044 = vrot.lane.b32.xlu0 %v5967_v21, %s8792_s14  ;;  %v5760_v26 = vmul.f32 %v13216_v14, %v13160_v6  ;;  %v5761_v1 = vmul.f32 %v13216_v14, %v13165_v50  ;;  %v5821_v63 = vmax.f32 %v5789_v15, 0.0  ;;  %v13420_v52 = vld [vmem:[#allocation2 + $0x8f] sm:$0xff]  ;;  %v13427_v7 = vld [vmem:[#allocation2 + $0x97] sm:$0x3] }
 0x8b9   : > { %5845 = vst.msk [vmem:[#allocation2 + $0x110] sm:$0xff] %vm441_vm1, %v5813_v13  ;;  %v5793_v11 = vadd.f32 %v13218_v18, %v5758_v62  ;;  %v5762_v27 = vmul.f32 %v13216_v14, %v13185_v36  ;;  %v5794_v34 = vadd.f32 %v13218_v18, %v5759_v10  ;;  %v5822_v61 = vmax.f32 %v5790_v37, 0.0  ;;  %v13401_v14 = vld [vmem:[#allocation2 + $0xa7] sm:$0xff] }
 0x8ba   : > { %5846 = vst.msk [vmem:[#allocation2 + $0x128] sm:$0xff] %vm441_vm1, %v5814_v25  ;;  %v5971_v16 = vrot.slane %v13373_v40, 1  ;;  %v5795_v6 = vadd.f32 %v13218_v18, %v5760_v26  ;;  %v5823_v45 = vmax.f32 %v5791_v33, 0.0  ;;  %v5977_v50 = vsel %vm649_vm2, %v13370_v0, %v5976_v44  ;;  %v13403_v22 = vld [vmem:[#allocation2 + $0xaf] sm:$0xff]  ;;  %v13422_v25 = vld [vmem:[#allocation2 + $0x87] sm:$0xff] }
 0x8bb   : > { %5847 = vst.msk [vmem:[#allocation2 + $0x130] sm:$0xff] %vm441_vm1, %v5815_v31  ;;  %v5973_v39 = vrot.slane %v13380_v23, 1  ;;  %v5796_v55 = vadd.f32 %v13218_v18, %v5761_v1  ;;  %v5824_v36 = vmax.f32 %v5792_v54, 0.0  ;;  %v5797_v38 = vadd.f32 %v13218_v18, %v5762_v27  ;;  %v13464_v33 = vld [vmem:[#allocation2 + $0xc7] sm:$0xff] }
 0x8bc   : > { %5848 = vst.msk [vmem:[#allocation2 + $0x148] sm:$0xff] %vm441_vm1, %v5816_v57  ;;  %v5825_v5 = vmax.f32 %v5793_v11, 0.0  ;;  %v5826_v46 = vmax.f32 %v5794_v34, 0.0  ;;  %v5972_v49 = vsel %vm649_vm2, %v13324_v42, %v5971_v16  ;;  %v5827_v13 = vmax.f32 %v5795_v6, 0.0  ;;  %v13444_v15 = vld [vmem:[#allocation2 + $0xcf] sm:$0xff] }
 0x8bd   : > { %5849 = vst.msk [vmem:[#allocation2 + $0x150] sm:$0xff] %vm441_vm1, %v5817_v20  ;;  %v13413_v28 = vsel %vm649_vm2, %v5973_v39, %v13370_v0  ;;  %v5983_v18 = vrot.slane %v13401_v14, 1  ;;  %v13418_v3 = vrot.slane %v13403_v22, 1  ;;  %v5828_v35 = vmax.f32 %v5796_v55, 0.0  ;;  %v13446_v20 = vld [vmem:[#allocation2 + $0xd7] sm:$0x3] }
 0x8be   : > { %5850 = vst.msk [vmem:[#allocation2 + $0x168] sm:$0xff] %vm441_vm1, %v5818_v9  ;;  %v5829_v31 = vmax.f32 %v5797_v38, 0.0  ;;  %v13432_v12 = vrot.slane %v13420_v52, 1  ;;  %v5978_v41 = vrot.slane %v13422_v25, 1  ;;  %v5981_v19 = vrot.slane %v13427_v7, 1  ;;  %v13484_v27 = vld [vmem:[#allocation2 + $0xef] sm:$0xff] }
 0x8bf   : > { %5851 = vst.msk [vmem:[#allocation2 + $0x170] sm:$0xff] %vm441_vm1, %v5819_v43  ;;  %6048 = vrot.lane.b32.xlu2 %v5972_v49, %s8792_s14  ;;  %v13438_v57 = vsel %vm649_vm2, %v5983_v18, %v13418_v3  ;;  %v13458_v62 = vrot.slane %v13444_v15, 1  ;;  %v5991_v37 = vrot.slane %v13446_v20, 1  ;;  %v13461_v9 = vld [vmem:[#allocation2 + $0xb7] sm:$0x3]  ;;  %v5988_v10 = vrot.slane %v13464_v33, 1 }
 0x8c0   : > { %5852 = vst.msk [vmem:[#allocation2 + $0x188] sm:$0xff] %vm441_vm1, %v5820_v47  ;;  %6052 = vrot.lane.b32.xlu1 %v5977_v50, %s8792_s14  ;;  %6050 = vrot.lane.b32.xlu0 %v13413_v28, %s8792_s14  ;;  %v13451_v21 = vsel %vm649_vm2, %v5978_v41, %v13432_v12  ;;  %v5982_v17 = vsel %vm649_vm2, %v13432_v12, %v5981_v19  ;;  %v5986_v43 = vrot.slane %v13461_v9, 1  ;;  %v13471_v54 = vld [vmem:[#allocation2 + $0x107] sm:$0xff]  ;;  %v13473_v47 = vld [vmem:[#allocation2 + $0x10f] sm:$0xff]  ;;  %v13493_v16 = vrot.slane %v13484_v27, 1 }
 0x8c1   : > { %5853 = vst.msk [vmem:[#allocation2 + $0x190] sm:$0xff] %vm441_vm1, %v5821_v63  ;;  %v5992_v44 = vsel %vm649_vm2, %v13458_v62, %v5991_v37  ;;  %v13479_v1 = vsel %vm649_vm2, %v5988_v10, %v13458_v62  ;;  %v5998_v11 = vrot.slane %v13471_v54, 1  ;;  %v5999_v63 = vrot.slane %v13473_v47, 1  ;;  %v13486_v34 = vld [vmem:[#allocation2 + $0xe7] sm:$0xff]  ;;  %v13509_v49 = vld [vmem:[#allocation2 + $0x117] sm:$0x3] }
 0x8c2   : > { %5854 = vst.msk [vmem:[#allocation2 + $0x1a8] sm:$0xff] %vm441_vm1, %v5822_v61  ;;  %v5987_v26 = vsel %vm649_vm2, %v13418_v3, %v5986_v43  ;;  %v13490_v61 = vld [vmem:[#allocation2 + $0xf7] sm:$0x3]  ;;  %v15016_v6 = vrot.slane %v13486_v34, 1  ;;  %v5890_v39 = vld [vmem:[#allocation2 + $0x12f] sm:$0xff]  ;;  %v6001_v18 = vrot.slane %v13509_v49, 1 }
 0x8c3   : > { %5855 = vst.msk [vmem:[#allocation2 + $0x1b0] sm:$0xff] %vm441_vm1, %v5823_v45  ;;  %v6000_v45 = vsel %vm649_vm2, %v5998_v11, %v5999_v63  ;;  %v5996_v50 = vrot.slane %v13490_v61, 1  ;;  %v5891_v55 = vld [vmem:[#allocation2 + $0x137] sm:$0x3] }
 0x8c4   : > { %5856 = vst.msk [vmem:[#allocation2 + $0x1c8] sm:$0xff] %vm441_vm1, %v5824_v36  ;;  %v13503_v36 = vsel %vm649_vm2, %v15016_v6, %v13493_v16  ;;  %v5893_v10 = vld [vmem:[#allocation2 + $0x14f] sm:$0xff]  ;;  %v5894_v11 = vld [vmem:[#allocation2 + $0x157] sm:$0x3] }
 0x8c5   : > { %5857 = vst.msk [vmem:[#allocation2 + $0x1d0] sm:$0xff] %vm441_vm1, %v5825_v5  ;;  %v5997_v38 = vsel %vm649_vm2, %v13493_v16, %v5996_v50  ;;  %v6004_v5 = vrot.slane %v5890_v39, 1  ;;  %v5895_v41 = vld [vmem:[#allocation2 + $0x167] sm:$0xff]  ;;  %v6384_v50 = vld [vmem:[%s15002_s9 + $0x50] sm:$0xff] }
 0x8c6   : > { %5858 = vst.msk [vmem:[#allocation2 + $0x1e8] sm:$0xff] %vm441_vm1, %v5826_v46  ;;  %v6006_v46 = vrot.slane %v5891_v55, 1  ;;  %v5896_v19 = vld [vmem:[#allocation2 + $0x16f] sm:$0xff]  ;;  %v6013_v43 = vrot.slane %v5895_v41, 1  ;;  %v5897_v41 = vld [vmem:[#allocation2 + $0x177] sm:$0x3] }
 0x8c7   : > { %5859 = vst.msk [vmem:[#allocation2 + $0x1f0] sm:$0xff] %vm441_vm1, %v5827_v13  ;;  %6054 = vrot.lane.b32.xlu2 %v13451_v21, %s8792_s14  ;;  %v5889_v13 = vld [vmem:[#allocation2 + $0x127] sm:$0xff] }
 0x8c8   : > { %5860 = vst.msk [vmem:[#allocation2 + $0x208] sm:$0xff] %vm441_vm1, %v5828_v35  ;;  %6058 = vrot.lane.b32.xlu1 %v13438_v57, %s8792_s14  ;;  %6056 = vrot.lane.b32.xlu0 %v5982_v17, %s8792_s14  ;;  %v6007_v35 = vsel %vm649_vm2, %v6004_v5, %v6006_v46  ;;  %v6002_v17 = vsel %vm649_vm2, %v5999_v63, %v6001_v18  ;;  %v6009_v63 = vrot.slane %v5893_v10, 1  ;;  %v5900_v46 = vld [vmem:[#allocation2 + $0x197] sm:$0x3] }
 0x8c9   : > { %5861 = vst.msk [vmem:[#allocation2 + $0x210] sm:$0xff] %vm441_vm1, %v5829_v31  ;;  %v6003_v31 = vrot.slane %v5889_v13, 1 }
 0x8cb   : > { %v6005_v37 = vsel %vm649_vm2, %v6003_v31, %v6004_v5  ;;  %v5899_v5 = vld [vmem:[#allocation2 + $0x18f] sm:$0xff]  ;;  %v6021_v31 = vrot.slane %v5900_v46, 1 }
 0x8cc   : > { %v5902_v46 = vld [vmem:[#allocation2 + $0x1af] sm:$0xff] }
 0x8cf   : > { %6060 = vrot.lane.b32.xlu2 %v5987_v26, %s8792_s14  ;;  %v5892_v26 = vld [vmem:[#allocation2 + $0x147] sm:$0xff] }
 0x8d0   : > { %6064 = vrot.lane.b32.xlu1 %v5992_v44, %s8792_s14  ;;  %6062 = vrot.lane.b32.xlu0 %v13479_v1, %s8792_s14  ;;  %v6014_v44 = vrot.slane %v5896_v19, 1  ;;  %v6008_v39 = vrot.slane %v5892_v26, 1  ;;  %v5898_v19 = vld [vmem:[#allocation2 + $0x187] sm:$0xff] }
 0x8d1   : > { %v6018_v26 = vrot.slane %v5898_v19, 1 }
 0x8d2   : > { %v6015_v55 = vsel %vm649_vm2, %v6013_v43, %v6014_v44  ;;  %v6010_v13 = vsel %vm649_vm2, %v6008_v39, %v6009_v63  ;;  %v6016_v43 = vrot.slane %v5897_v41, 1  ;;  %v6024_v41 = vrot.slane %v5902_v46, 1 }
 0x8d4   : > { %v6017_v39 = vsel %vm649_vm2, %v6014_v44, %v6016_v43  ;;  %v6378_v44 = vld [vmem:[%s15002_s9 + $0x20] sm:$0xff]  ;;  %v5908_v43 = vld [vmem:[#allocation2 + $0x1ef] sm:$0xff] }
 0x8d7   : > { %6066 = vrot.lane.b32.xlu2 %v13503_v36, %s8792_s14 }
 0x8d8   : > { %6070 = vrot.lane.b32.xlu1 %v6000_v45, %s8792_s14  ;;  %6068 = vrot.lane.b32.xlu0 %v5997_v38, %s8792_s14  ;;  %v6385_v45 = vld [vmem:[%s15002_s9 + $0x58] sm:$0xff]  ;;  %v6011_v38 = vrot.slane %v5894_v11, 1 }
 0x8d9   : > { %7220 = vmatpush.msra.mxu2 %v6385_v45  ;;  %v6381_v11 = vld [vmem:[%s15002_s9 + $0x38] sm:$0xff]  ;;  %v5904_v45 = vld [vmem:[#allocation2 + $0x1c7] sm:$0xff] }
 0x8da   : > { %v6012_v18 = vsel %vm649_vm2, %v6009_v63, %v6011_v38  ;;  %v6380_v63 = vld [vmem:[%s15002_s9 + $0x30] sm:$0xff]  ;;  %v6028_v38 = vrot.slane %v5904_v45, 1 }
 0x8db   : > { %7221 = vmatpush.msra.mxu2 %v6384_v50  ;;  %v5905_v50 = vld [vmem:[#allocation2 + $0x1cf] sm:$0xff] }
 0x8df   : > { %6072 = vrot.lane.b32.xlu2 %v6002_v17, %s8792_s14  ;;  %v6383_v17 = vld [vmem:[%s15002_s9 + $0x48] sm:$0xff] }
 0x8e0   : > { %6076 = vrot.lane.b32.xlu1 %v6007_v35, %s8792_s14  ;;  %6074 = vrot.lane.b32.xlu0 %v6005_v37, %s8792_s14  ;;  %v6019_v35 = vrot.slane %v5899_v5, 1  ;;  %v6382_v37 = vld [vmem:[%s15002_s9 + $0x40] sm:$0xff]  ;;  %v6029_v5 = vrot.slane %v5905_v50, 1  ;;  %v6034_v50 = vrot.slane %v5908_v43, 1  ;;  %v13586_v43 = vrot.slane %v13314_v60, 2 }
 0x8e1   : > { %7222 = vmatpush.msra.mxu2 %v6383_v17 }
 0x8e2   : > { %v6022_v10 = vsel %vm649_vm2, %v6019_v35, %v6021_v31  ;;  %v6379_v31 = vld [vmem:[%s15002_s9 + $0x28] sm:$0xff] }
 0x8e3   : > { %7223 = vmatpush.msra.mxu2 %v6382_v37  ;;  %v6377_v37 = vld [vmem:[%s15002_s9 + $0x18] sm:$0xff] }
 0x8e5   : > { %7224 = vmatpush.msra.mxu2 %v6381_v11 }
 0x8e7   : > { %6078 = vrot.lane.b32.xlu2 %v6010_v13, %s8792_s14  ;;  %v5901_v13 = vld [vmem:[#allocation2 + $0x1a7] sm:$0xff]  ;;  %7225 = vmatpush.msra.mxu2 %v6380_v63 }
 0x8e8   : > { %6082 = vrot.lane.b32.xlu1 %v6015_v55, %s8792_s14  ;;  %6080 = vrot.lane.b32.xlu0 %v6012_v18, %s8792_s14  ;;  %v6020_v55 = vsel %vm649_vm2, %v6018_v26, %v6019_v35  ;;  %v5903_v18 = vld [vmem:[#allocation2 + $0x1b7] sm:$0x3]  ;;  %v6023_v19 = vrot.slane %v5901_v13, 1  ;;  %v6030_v35 = vsel %vm649_vm2, %v6028_v38, %v6029_v5  ;;  %v6375_v38 = vld [vmem:[%s15002_s9 + $0x8] sm:$0xff]  ;;  %v6374_v13 = vld [vmem:[%s15002_s9] sm:$0xff] }
 0x8e9   : > { %7226 = vmatpush.msra.mxu2 %v6379_v31  ;;  %v6026_v17 = vrot.slane %v5903_v18, 1  ;;  %v6376_v26 = vld [vmem:[%s15002_s9 + $0x10] sm:$0xff] }
 0x8ea   : > { %v6025_v11 = vsel %vm649_vm2, %v6023_v19, %v6024_v41 }
 0x8eb   : > { %7227 = vmatpush.msra.mxu2 %v6378_v44  ;;  %v6027_v45 = vsel %vm649_vm2, %v6024_v41, %v6026_v17  ;;  %v6139_v44 = vrot.slane %v13290_v59, 2  ;;  %v6142_v17 = vrot.slane %v13301_v56, 2 }
 0x8ed   : > { %7228 = vmatpush.msra.mxu2 %v6377_v37  ;;  %v6144_v37 = vrot.slane %v13310_v51, 2 }
 0x8ef   : > { %6084 = vrot.lane.b32.xlu2 %v6017_v39, %s8792_s14  ;;  %v5906_v39 = vld [vmem:[#allocation2 + $0x1d7] sm:$0x3]  ;;  %7229 = vmatpush.msra.mxu2 %v6376_v26  ;;  %v6039_v26 = vpop.permute.xlu0 %6038 }
 0x8f0   : > { %6088 = vrot.lane.b32.xlu1 %v6022_v10, %s8792_s14  ;;  %6086 = vrot.lane.b32.xlu0 %v6020_v55, %s8792_s14  ;;  %v5909_v10 = vld [vmem:[#allocation2 + $0x1f7] sm:$0x3]  ;;  %v5907_v55 = vld [vmem:[#allocation2 + $0x1e7] sm:$0xff]  ;;  %v6031_v46 = vrot.slane %v5906_v39, 1  ;;  %v13610_v39 = vrot.slane %v13349_v8, 2 }
 0x8f1   : > { %v6036_v63 = vrot.slane %v5909_v10, 1  ;;  %7230 = vmatpush.msra.mxu2 %v6375_v38  ;;  %v6033_v31 = vrot.slane %v5907_v55, 1  ;;  %v8628_v10 = vld [vmem:[%s15002_s9 + $0x118] sm:$0xff]  ;;  %v6149_v55 = vrot.slane %v13380_v23, 2 }
 0x8f2   : > { %v6032_v41 = vsel %vm649_vm2, %v6029_v5, %v6031_v46  ;;  %7954 = vmatpush.msra.mxu0 %v8628_v10  ;;  %v6041_v46 = vpop.permute.xlu1 %6040  ;;  %v13640_v10 = vrot.slane %v13403_v22, 2  ;;  %v6162_v22 = vrot.slane %v13461_v9, 2 }
 0x8f3   : > { %v6037_v18 = vsel %vm649_vm2, %v6034_v50, %v6036_v63  ;;  %7231 = vmatpush.msra.mxu2 %v6374_v13  ;;  %v6035_v19 = vsel %vm649_vm2, %v6033_v31, %v6034_v50  ;;  %v6310_v50 = vsel %vm441_vm1, %v13195_v4, %v6039_v26  ;;  %v6152_v13 = vrot.slane %v13351_v32, 2 }
 0x8f4   : > { %v6311_v4 = vsel %vm441_vm1, %v13197_v58, %v6041_v46  ;;  %v6154_v32 = vrot.slane %v13422_v25, 2  ;;  %v8627_v46 = vld [vmem:[%s15002_s9 + $0x110] sm:$0xff] }
 0x8f5   : > { %v6153_v31 = vsel %vm826_vm3, %v13610_v39, %v6152_v13  ;;  %7955 = vmatpush.msra.mxu0 %v8627_v46  ;;  %v13682_v13 = vrot.slane %v13484_v27, 2 }
 0x8f7   : > { %6090 = vrot.lane.b32.xlu2 %v6025_v11, %s8792_s14  ;;  %v13601_v11 = vsel %vm826_vm3, %v6144_v37, %v13586_v43  ;;  %v6159_v37 = vrot.slane %v13401_v14, 2 }
 0x8f8   : > { %6094 = vrot.lane.b32.xlu1 %v6030_v35, %s8792_s14  ;;  %6092 = vrot.lane.b32.xlu0 %v6027_v45, %s8792_s14  ;;  %v13580_v35 = vrot.slane %v13299_v29, 2  ;;  %v6147_v45 = vrot.slane %v13373_v40, 2 }
 0x8fa   : > { %v13590_v5 = vsel %vm826_vm3, %v6139_v44, %v13580_v35  ;;  %v6143_v56 = vsel %vm826_vm3, %v13580_v35, %v6142_v17  ;;  %v6148_v40 = vsel %vm826_vm3, %v13586_v43, %v6147_v45  ;;  %v6157_v17 = vrot.slane %v13427_v7, 2 }
 0x8fb   : > { %v13653_v7 = vsel %vm826_vm3, %v6159_v37, %v13640_v10  ;;  %v6177_v37 = vrot.slane %v13509_v49, 2 }
 0x8ff   : > { %6096 = vrot.lane.b32.xlu2 %v6032_v41, %s8792_s14  ;;  %v13631_v41 = vrot.slane %v13420_v52, 2 }
 0x900   : > { %6100 = vrot.lane.b32.xlu1 %v6037_v18, %s8792_s14  ;;  %6098 = vrot.lane.b32.xlu0 %v6035_v19, %s8792_s14  ;;  %v13623_v18 = vsel %vm826_vm3, %v6149_v55, %v13610_v39  ;;  %v6217_v19 = vpop.permute.xlu0 %6216  ;;  %v6167_v55 = vrot.slane %v13446_v20, 2  ;;  %v15015_v20 = vrot.slane %v13486_v34, 2 }
 0x901   : > { %v6343_v58 = vsel %vm1035_vm5, %v6311_v4, %v6217_v19  ;;  %v13644_v26 = vsel %vm826_vm3, %v6154_v32, %v13631_v41  ;;  %v6174_v32 = vrot.slane %v13471_v54, 2  ;;  %v6175_v19 = vrot.slane %v13473_v47, 2 }
 0x907   : > { %6220 = vrot.lane.b32.xlu2 %v6143_v56, %s8793_s15  ;;  %v6158_v56 = vsel %vm826_vm3, %v13631_v41, %v6157_v17 }
 0x908   : > { %6218 = vrot.lane.b32.xlu1 %v13590_v5, %s8793_s15  ;;  %6222 = vrot.lane.b32.xlu0 %v13601_v11, %s8793_s15 }
 0x909   : > { %v6215_v63 = vpop.permute.xlu2 %6214 }
 0x90a   : > { %v6342_v38 = vsel %vm1035_vm5, %v6310_v50, %v6215_v63  ;;  %v13662_v50 = vrot.slane %v13444_v15, 2  ;;  %v6164_v63 = vrot.slane %v13464_v33, 2 }
 0x90b   : > { %8585 = vmatmul.msk.f32.vlgmr.msra.gmra.mxu2 %vm1605_vm4, %v6342_v38  ;;  %v6163_v38 = vsel %vm826_vm3, %v13640_v10, %v6162_v22  ;;  %v6388_v22 = vld [vmem:[#allocation2 + $0x37] sm:$0x3] }
 0x90c   : > { %v13674_v9 = vsel %vm826_vm3, %v6164_v63, %v13662_v50  ;;  %v6168_v15 = vsel %vm826_vm3, %v13662_v50, %v6167_v55  ;;  %v6178_v55 = vsel %vm826_vm3, %v6175_v19, %v6177_v37 }
 0x90f   : > { %6226 = vrot.lane.b32.xlu2 %v13623_v18, %s8793_s15 }
 0x910   : > { %6224 = vrot.lane.b32.xlu1 %v6148_v40, %s8793_s15  ;;  %6228 = vrot.lane.b32.xlu0 %v6153_v31, %s8793_s15  ;;  %v6172_v31 = vrot.slane %v13490_v61, 2  ;;  %v6176_v61 = vsel %vm826_vm3, %v6174_v32, %v6175_v19 }
 0x911   : > { %v13635_v44 = vpop.permute.xlu2 %6042 }
 0x912   : > { %v6173_v27 = vsel %vm826_vm3, %v13682_v13, %v6172_v31 }
 0x913   : > { %8586 = vmatmul.msk.f32.gmra.mxu2 %vm1605_vm4, %v6343_v58  ;;  %v13696_v58 = vsel %vm826_vm3, %v15015_v20, %v13682_v13 }
 0x917   : > { %6232 = vrot.lane.b32.xlu2 %v6158_v56, %s8793_s15  ;;  %v8626_v56 = vld [vmem:[%s15002_s9 + $0x108] sm:$0xff] }
 0x918   : > { %6230 = vrot.lane.b32.xlu1 %v13644_v26, %s8793_s15  ;;  %6234 = vrot.lane.b32.xlu0 %v13653_v7, %s8793_s15 }
 0x919   : > { %v13659_v45 = vpop.permute.xlu2 %6048  ;;  %7956 = vmatpush.msra.mxu0 %v8626_v56 }
 0x91f   : > { %6238 = vrot.lane.b32.xlu2 %v13674_v9, %s8793_s15 }
 0x920   : > { %6236 = vrot.lane.b32.xlu1 %v6163_v38, %s8793_s15  ;;  %6240 = vrot.lane.b32.xlu0 %v6168_v15, %s8793_s15  ;;  %v6485_v38 = vrot.slane %v6388_v22, 1  ;;  %v6661_v15 = vrot.slane %v6388_v22, 2 }
 0x921   : > { %v13685_v40 = vpop.permute.xlu2 %6054 }
 0x922   : > { %v13687_v4 = vpop.permute.xlu0 %7565  ;;  %v6662_v32 = vsel %vm826_vm3, %v13580_v35, %v6661_v15  ;;  %v6391_v35 = vld [vmem:[#allocation2 + $0x57] sm:$0x3]  ;;  %v8625_v15 = vld [vmem:[%s15002_s9 + $0x100] sm:$0xff] }
 0x923   : > { %15075 = vst [vmem:[#allocation10_spill] sm:$0xff] %v13687_v4  ;;  %7957 = vmatpush.msra.mxu0 %v8625_v15 }
 0x927   : > { %6244 = vrot.lane.b32.xlu2 %v6173_v27, %s8793_s15 }
 0x928   : > { %6242 = vrot.lane.b32.xlu1 %v13696_v58, %s8793_s15  ;;  %6246 = vrot.lane.b32.xlu0 %v6176_v61, %s8793_s15 }
 0x929   : > { %v13707_v54 = vpop.permute.xlu2 %6060 }
 0x92a   : > { %v13702_v17 = vpop.permute.xlu1 %6046  ;;  %v13709_v47 = vpop.permute.xlu0 %6044 }
 0x92f   : > { %6738 = vrot.lane.b32.xlu2 %v13590_v5, %s8793_s15  ;;  %v7331_v5 = vld [vmem:[#allocation2 + $0x57] sm:$0x3] }
 0x930   : > { %6562 = vrot.lane.b32.xlu1 %v13347_v24, %s8792_s14  ;;  %6248 = vrot.lane.b32.xlu0 %v6178_v55, %s8793_s15  ;;  %v6486_v24 = vsel %vm649_vm2, %v13318_v2, %v6485_v38  ;;  %v7428_v61 = vrot.slane %v7331_v5, 1  ;;  %v7604_v55 = vrot.slane %v7331_v5, 2  ;;  %v6490_v38 = vrot.slane %v6391_v35, 1 }
 0x931   : > { %v13723_v49 = vpop.permute.xlu2 %6066 }
 0x932   : > { %v13717_v63 = vpop.permute.xlu1 %6052  ;;  %v13725_v46 = vpop.permute.xlu0 %6050  ;;  %v7429_v37 = vsel %vm649_vm2, %v13324_v42, %v7428_v61 }
 0x937   : > { %7505 = vrot.lane.b32.xlu2 %v13337_v30, %s8792_s14 }
 0x938   : > { %6564 = vrot.lane.b32.xlu1 %v6486_v24, %s8792_s14  ;;  %6740 = vrot.lane.b32.xlu0 %v6662_v32, %s8793_s15  ;;  %v6491_v32 = vsel %vm649_vm2, %v13324_v42, %v6490_v38  ;;  %v7334_v42 = vld [vmem:[#allocation2 + $0x77] sm:$0x3] }
 0x939   : > { %v13737_v19 = vpop.permute.xlu2 %6072 }
 0x93a   : > { %v13730_v31 = vpop.permute.xlu1 %6058  ;;  %v13739_v27 = vpop.permute.xlu0 %6056 }
 0x93f   : > { %6566 = vrot.lane.b32.xlu2 %v13337_v30, %s8792_s14  ;;  %v7605_v30 = vsel %vm826_vm3, %v13586_v43, %v7604_v55 }
 0x940   : > { %7681 = vrot.lane.b32.xlu1 %v13601_v11, %s8793_s15  ;;  %7507 = vrot.lane.b32.xlu0 %v7429_v37, %s8792_s14  ;;  %v6666_v37 = vrot.slane %v6391_v35, 2 }
 0x941   : > { %v13750_v56 = vpop.permute.xlu2 %6078 }
 0x942   : > { %v13743_v2 = vpop.permute.xlu1 %6064  ;;  %v13752_v22 = vpop.permute.xlu0 %6062 }
 0x947   : > { %7683 = vrot.lane.b32.xlu2 %v7605_v30, %s8793_s15  ;;  %v7433_v30 = vrot.slane %v7334_v42, 1 }
 0x948   : > { %6742 = vrot.lane.b32.xlu1 %v13601_v11, %s8793_s15  ;;  %6568 = vrot.lane.b32.xlu0 %v6491_v32, %s8792_s14  ;;  %v6667_v11 = vsel %vm826_vm3, %v13586_v43, %v6666_v37  ;;  %v7609_v32 = vrot.slane %v7334_v42, 2  ;;  %v6394_v37 = vld [vmem:[#allocation2 + $0x77] sm:$0x3] }
 0x949   : > { %v13767_v5 = vpop.permute.xlu2 %6084  ;;  %v7434_v35 = vsel %vm649_vm2, %v13370_v0, %v7433_v30  ;;  %v6495_v20 = vrot.slane %v6394_v37, 1  ;;  %v8624_v30 = vld [vmem:[%s15002_s9 + $0xf8] sm:$0xff] }
 0x94a   : > { %v13761_v24 = vpop.permute.xlu1 %6070  ;;  %v13769_v61 = vpop.permute.xlu0 %6068  ;;  %7958 = vmatpush.msra.mxu0 %v8624_v30 }
 0x94b   : > { %v6496_v42 = vsel %vm649_vm2, %v13370_v0, %v6495_v20 }
 0x94f   : > { %6744 = vrot.lane.b32.xlu2 %v6667_v11, %s8793_s15 }
 0x950   : > { %7509 = vrot.lane.b32.xlu1 %v13413_v28, %s8792_s14  ;;  %7685 = vrot.lane.b32.xlu0 %v13623_v18, %s8793_s15 }
 0x951   : > { %v13780_v38 = vpop.permute.xlu2 %6090 }
 0x952   : > { %v13775_v55 = vpop.permute.xlu1 %6076  ;;  %v13782_v15 = vpop.permute.xlu0 %6074 }
 0x957   : > { %7511 = vrot.lane.b32.xlu2 %v7434_v35, %s8792_s14 }
 0x958   : > { %6570 = vrot.lane.b32.xlu1 %v13413_v28, %s8792_s14  ;;  %6746 = vrot.lane.b32.xlu0 %v13623_v18, %s8793_s15  ;;  %v7610_v28 = vsel %vm826_vm3, %v13610_v39, %v7609_v32  ;;  %v6671_v18 = vrot.slane %v6394_v37, 2 }
 0x959   : > { %v13793_v11 = vpop.permute.xlu2 %6096 }
 0x95a   : > { %v13788_v43 = vpop.permute.xlu1 %6082  ;;  %15076 = vst [vmem:[#allocation11_spill] sm:$0xff] %v13793_v11  ;;  %v13795_v53 = vpop.permute.xlu0 %6080  ;;  %v6672_v4 = vsel %vm826_vm3, %v13610_v39, %v6671_v18  ;;  %v8551_v18 = vld [vmem:[%s15002_s9 + $0xb0] sm:$0xff] }
 0x95b   : > { %v6397_v11 = vld [vmem:[#allocation2 + $0x97] sm:$0x3] }
 0x95f   : > { %6572 = vrot.lane.b32.xlu2 %v6496_v42, %s8792_s14 }
 0x960   : > { %7687 = vrot.lane.b32.xlu1 %v7610_v28, %s8793_s15  ;;  %7513 = vrot.lane.b32.xlu0 %v13451_v21, %s8792_s14  ;;  %v7337_v28 = vld [vmem:[#allocation2 + $0x97] sm:$0x3] }
 0x961   : > { %v6221_v6 = vpop.permute.xlu2 %6220  ;;  %v7438_v0 = vrot.slane %v7337_v28, 1  ;;  %v7614_v42 = vrot.slane %v7337_v28, 2 }
 0x962   : > { %v13805_v35 = vpop.permute.xlu1 %6088  ;;  %v13810_v32 = vpop.permute.xlu0 %6086 }
 0x963   : > { %v7439_v39 = vsel %vm649_vm2, %v13432_v12, %v7438_v0  ;;  %v7615_v0 = vsel %vm826_vm3, %v13631_v41, %v7614_v42  ;;  %v8548_v42 = vld [vmem:[%s15002_s9 + $0x98] sm:$0xff] }
 0x967   : > { %7689 = vrot.lane.b32.xlu2 %v13644_v26, %s8793_s15 }
 0x968   : > { %6748 = vrot.lane.b32.xlu1 %v6672_v4, %s8793_s15  ;;  %6574 = vrot.lane.b32.xlu0 %v13451_v21, %s8792_s14  ;;  %v8552_v4 = vld [vmem:[%s15002_s9 + $0xb8] sm:$0xff]  ;;  %v8623_v21 = vld [vmem:[%s15002_s9 + $0xf0] sm:$0xff] }
 0x969   : > { %v13821_v20 = vpop.permute.xlu2 %6226  ;;  %7011 = vmatpush.msra.mxu3 %v8552_v4  ;;  %7959 = vmatpush.msra.mxu0 %v8623_v21  ;;  %v6676_v21 = vrot.slane %v6397_v11, 2 }
 0x96a   : > { %v13815_v30 = vpop.permute.xlu1 %6094  ;;  %v13823_v37 = vpop.permute.xlu0 %6092 }
 0x96b   : > { %15077 = vst [vmem:[#allocation12_spill] sm:$0xff] %v13815_v30  ;;  %7012 = vmatpush.msra.mxu3 %v8551_v18  ;;  %v6500_v30 = vrot.slane %v6397_v11, 1  ;;  %v6677_v11 = vsel %vm826_vm3, %v13631_v41, %v6676_v21  ;;  %v8545_v41 = vld [vmem:[%s15002_s9 + $0x80] sm:$0xff]  ;;  %v8544_v21 = vld [vmem:[%s15002_s9 + $0x78] sm:$0xff] }
 0x96c   : > { %15078 = vst [vmem:[#allocation13_spill] sm:$0xff] %v13823_v37  ;;  %v8550_v37 = vld [vmem:[%s15002_s9 + $0xa8] sm:$0xff] }
 0x96d   : > { %7013 = vmatpush.msra.mxu3 %v8550_v37  ;;  %v6501_v18 = vsel %vm649_vm2, %v13432_v12, %v6500_v30  ;;  %v6312_v37 = vsel %vm441_vm1, %v13290_v59, %v13635_v44  ;;  %v8547_v12 = vld [vmem:[%s15002_s9 + $0x90] sm:$0xff]  ;;  %v8546_v59 = vld [vmem:[%s15002_s9 + $0x88] sm:$0xff] }
 0x96f   : > { %6750 = vrot.lane.b32.xlu2 %v13644_v26, %s8793_s15  ;;  %v8549_v26 = vld [vmem:[%s15002_s9 + $0xa0] sm:$0xff] }
 0x970   : > { %7515 = vrot.lane.b32.xlu1 %v7439_v39, %s8792_s14  ;;  %7691 = vrot.lane.b32.xlu0 %v7615_v0, %s8793_s15 }
 0x971   : > { %v13847_v39 = vpop.permute.xlu2 %6232  ;;  %7014 = vmatpush.msra.mxu3 %v8549_v26 }
 0x972   : > { %v13837_v28 = vpop.permute.xlu1 %6100  ;;  %v13849_v4 = vpop.permute.xlu0 %6098 }
 0x973   : > { %7015 = vmatpush.msra.mxu3 %v8548_v42 }
 0x975   : > { %7016 = vmatpush.msra.mxu3 %v8547_v12  ;;  %v8543_v12 = vld [vmem:[%s15002_s9 + $0x70] sm:$0xff] }
 0x977   : > { %7517 = vrot.lane.b32.xlu2 %v13438_v57, %s8792_s14  ;;  %7017 = vmatpush.msra.mxu3 %v8546_v59  ;;  %v6400_v59 = vld [vmem:[#allocation2 + $0xb7] sm:$0x3] }
 0x978   : > { %6576 = vrot.lane.b32.xlu1 %v6501_v18, %s8792_s14  ;;  %6752 = vrot.lane.b32.xlu0 %v6677_v11, %s8793_s15  ;;  %v7340_v18 = vld [vmem:[#allocation2 + $0xb7] sm:$0x3] }
 0x979   : > { %v13876_v44 = vpop.permute.xlu2 %6238  ;;  %v7443_v42 = vrot.slane %v7340_v18, 1  ;;  %7018 = vmatpush.msra.mxu3 %v8545_v41  ;;  %v7619_v41 = vrot.slane %v7340_v18, 2 }
 0x97a   : > { %v6219_v0 = vpop.permute.xlu1 %6218  ;;  %v6223_v26 = vpop.permute.xlu0 %6222 }
 0x97b   : > { %v6344_v30 = vsel %vm1035_vm5, %v6312_v37, %v6219_v0  ;;  %v6313_v37 = vsel %vm441_vm1, %v13299_v29, %v13709_v47  ;;  %7019 = vmatpush.msra.mxu3 %v8544_v21  ;;  %v8542_v29 = vld [vmem:[%s15002_s9 + $0x68] sm:$0xff]  ;;  %v6314_v21 = vsel %vm441_vm1, %v13310_v51, %v13702_v17  ;;  %v7620_v18 = vsel %vm826_vm3, %v13640_v10, %v7619_v41  ;;  %v8621_v17 = vld [vmem:[%s15002_s9 + $0xe0] sm:$0xff] }
 0x97c   : > { %8587 = vmatmul.msk.f32.gmra.mxu2 %vm1605_vm4, %v6344_v30  ;;  %v6345_v11 = vsel %vm1035_vm5, %v6313_v37, %v6221_v6  ;;  %v7444_v30 = vsel %vm649_vm2, %v13418_v3, %v7443_v42  ;;  %v6505_v37 = vrot.slane %v6400_v59, 1  ;;  %v8622_v42 = vld [vmem:[%s15002_s9 + $0xe8] sm:$0xff]  ;;  %v6681_v51 = vrot.slane %v6400_v59, 2 }
 0x97d   : > { %7020 = vmatpush.msra.mxu3 %v8543_v12  ;;  %7960 = vmatpush.msra.mxu0 %v8622_v42  ;;  %v7343_v42 = vld [vmem:[#allocation2 + $0xd7] sm:$0x3] }
 0x97e   : > { %v6682_v41 = vsel %vm826_vm3, %v13640_v10, %v6681_v51 }
 0x97f   : > { %6578 = vrot.lane.b32.xlu2 %v13438_v57, %s8792_s14  ;;  %7021 = vmatpush.msra.mxu3 %v8542_v29  ;;  %v8541_v57 = vld [vmem:[%s15002_s9 + $0x60] sm:$0xff] }
 0x980   : > { %7693 = vrot.lane.b32.xlu1 %v13653_v7, %s8793_s15  ;;  %7519 = vrot.lane.b32.xlu0 %v7444_v30, %s8792_s14  ;;  %v6506_v30 = vsel %vm649_vm2, %v13418_v3, %v6505_v37  ;;  %v8620_v3 = vld [vmem:[%s15002_s9 + $0xd8] sm:$0xff]  ;;  %v8619_v37 = vld [vmem:[%s15002_s9 + $0xd0] sm:$0xff] }
 0x981   : > { %v13902_v47 = vpop.permute.xlu2 %6244  ;;  %7022 = vmatpush.msra.mxu3 %v8541_v57  ;;  %7961 = vmatpush.msra.mxu0 %v8621_v17  ;;  %v7624_v17 = vrot.slane %v7343_v42, 2 }
 0x982   : > { %v6225_v0 = vpop.permute.xlu1 %6224  ;;  %v6229_v6 = vpop.permute.xlu0 %6228 }
 0x983   : > { %7962 = vmatpush.msra.mxu0 %v8620_v3  ;;  %v6403_v3 = vld [vmem:[#allocation2 + $0xd7] sm:$0x3] }
 0x984   : > { %8588 = vmatmul.msk.f32.gmra.mxu2 %vm1605_vm4, %v6345_v11  ;;  %v6346_v11 = vsel %vm1035_vm5, %v6314_v21, %v6223_v26  ;;  %v6315_v26 = vsel %vm441_vm1, %v13314_v60, %v13659_v45  ;;  %v8618_v60 = vld [vmem:[%s15002_s9 + $0xc8] sm:$0xff]  ;;  %v7448_v21 = vrot.slane %v7343_v42, 1 }
 0x985   : > { %v6347_v57 = vsel %vm1035_vm5, %v6315_v26, %v6225_v0  ;;  %7963 = vmatpush.msra.mxu0 %v8619_v37  ;;  %v8617_v0 = vld [vmem:[%s15002_s9 + $0xc0] sm:$0xff]  ;;  %v7625_v26 = vsel %vm826_vm3, %v13662_v50, %v7624_v17 }
 0x987   : > { %7695 = vrot.lane.b32.xlu2 %v7620_v18, %s8793_s15  ;;  %7964 = vmatpush.msra.mxu0 %v8618_v60  ;;  %v6316_v18 = vsel %vm441_vm1, %v13380_v23, %v13725_v46  ;;  %v6510_v46 = vrot.slane %v6403_v3, 1  ;;  %v6686_v60 = vrot.slane %v6403_v3, 2 }
 0x988   : > { %6754 = vrot.lane.b32.xlu1 %v13653_v7, %s8793_s15  ;;  %6580 = vrot.lane.b32.xlu0 %v6506_v30, %s8792_s14  ;;  %v6348_v51 = vsel %vm1035_vm5, %v6316_v18, %v13821_v20  ;;  %v6317_v20 = vsel %vm441_vm1, %v13349_v8, %v13717_v63  ;;  %v13994_v8 = vld [vmem:[#allocation2 + $0xef] sm:$0xff] }
 0x989   : > { %v6739_v7 = vpop.permute.xlu2 %6738  ;;  %7965 = vmatpush.msra.mxu0 %v8617_v0  ;;  %v6349_v37 = vsel %vm1035_vm5, %v6317_v20, %v6229_v6  ;;  %v6513_v6 = vrot.slane %v13994_v8, 1  ;;  %v6687_v0 = vsel %vm826_vm3, %v13662_v50, %v6686_v60  ;;  %v8744_v50 = vld [vmem:[#allocation2 + $0x2f] sm:$0xff] }
 0x98a   : > { %v13917_v12 = vpop.permute.xlu1 %6230  ;;  %v13925_v29 = vpop.permute.xlu0 %6234 }
 0x98c   : > { %8589 = vmatmul.msk.f32.gmra.mxu2 %vm1605_vm4, %v6346_v11  ;;  %v7449_v11 = vsel %vm649_vm2, %v13458_v62, %v7448_v21 }
 0x98f   : > { %6756 = vrot.lane.b32.xlu2 %v6682_v41, %s8793_s15  ;;  %v6511_v41 = vsel %vm649_vm2, %v13458_v62, %v6510_v46 }
 0x990   : > { %7521 = vrot.lane.b32.xlu1 %v13479_v1, %s8792_s14  ;;  %7697 = vrot.lane.b32.xlu0 %v13674_v9, %s8793_s15 }
 0x991   : > { %v13953_v10 = vpop.permute.xlu2 %7505 }
 0x992   : > { %v13940_v59 = vpop.permute.xlu1 %6236  ;;  %v13955_v45 = vpop.permute.xlu0 %6240 }
 0x994   : > { %8590 = vmatmul.msk.f32.gmra.mxu2 %vm1605_vm4, %v6347_v57  ;;  %v8743_v57 = vld [vmem:[#allocation2 + $0x27] sm:$0xff] }
 0x997   : > { %7523 = vrot.lane.b32.xlu2 %v7449_v11, %s8792_s14 }
 0x998   : > { %6582 = vrot.lane.b32.xlu1 %v13479_v1, %s8792_s14  ;;  %6758 = vrot.lane.b32.xlu0 %v13674_v9, %s8793_s15 }
 0x999   : > { %v13975_v1 = vpop.permute.xlu2 %6566 }
 0x99a   : > { %v13967_v30 = vpop.permute.xlu1 %6242  ;;  %v13977_v23 = vpop.permute.xlu0 %6246 }
 0x99c   : > { %8591 = vmatmul.msk.f32.gmra.mxu2 %vm1605_vm4, %v6348_v51  ;;  %v15079_v51 = vrot.slane %v13486_v34, 1 }
 0x99e   : > { %v6514_v17 = vsel %vm649_vm2, %v15079_v51, %v6513_v6  ;;  %v8746_v51 = vld [vmem:[#allocation2 + $0x4f] sm:$0xff] }
 0x99f   : > { %6584 = vrot.lane.b32.xlu2 %v6511_v41, %s8792_s14 }
 0x9a0   : > { %7699 = vrot.lane.b32.xlu1 %v7625_v26, %s8793_s15  ;;  %7525 = vrot.lane.b32.xlu0 %v13503_v36, %s8792_s14  ;;  %v7346_v36 = vld [vmem:[#allocation2 + $0xf7] sm:$0x3]  ;;  %v6689_v26 = vrot.slane %v13994_v8, 2 }
 0x9a1   : > { %v13996_v63 = vpop.permute.xlu2 %7683  ;;  %v7453_v3 = vrot.slane %v7346_v36, 1  ;;  %v7629_v20 = vrot.slane %v7346_v36, 2 }
 0x9a2   : > { %v6563_v9 = vpop.permute.xlu1 %6562  ;;  %v13999_v62 = vpop.permute.xlu0 %6248 }
 0x9a3   : > { %v6834_v42 = vsel %vm441_vm1, %v8743_v57, %v6563_v9  ;;  %v7454_v41 = vsel %vm649_vm2, %v13493_v16, %v7453_v3  ;;  %v6319_v9 = vsel %vm441_vm1, %v13420_v52, %v13739_v27  ;;  %v14038_v27 = vld [vmem:[#allocation2 + $0x107] sm:$0xff] }
 0x9a4   : > { %v6866_v21 = vsel %vm1035_vm5, %v6834_v42, %v6739_v7  ;;  %8592 = vmatmul.msk.f32.gmra.mxu2 %vm1605_vm4, %v6349_v37  ;;  %v6318_v7 = vsel %vm441_vm1, %v13422_v25, %v13685_v40  ;;  %v8745_v37 = vld [vmem:[#allocation2 + $0x47] sm:$0xff]  ;;  %v15080_v42 = vrot.slane %v13486_v34, 2  ;;  %v6351_v16 = vsel %vm1035_vm5, %v6319_v9, %v13847_v39 }
 0x9a5   : > { %8553 = vmatmul.msk.f32.vlgmr.msra.gmra.mxu3 %vm1605_vm4, %v6866_v21  ;;  %v6350_v11 = vsel %vm1035_vm5, %v6318_v7, %v13917_v12  ;;  %v7777_v57 = vsel %vm441_vm1, %v8745_v37, %v13953_v10  ;;  %v14040_v7 = vld [vmem:[#allocation2 + $0x10f] sm:$0xff]  ;;  %v6836_v3 = vsel %vm441_vm1, %v8745_v37, %v13975_v1 }
 0x9a6   : > { %v6690_v60 = vsel %vm826_vm3, %v15080_v42, %v6689_v26  ;;  %v14076_v42 = vld [vmem:[#allocation2 + $0xaf] sm:$0xff] }
 0x9a7   : > { %7701 = vrot.lane.b32.xlu2 %v13696_v58, %s8793_s15  ;;  %v6406_v58 = vld [vmem:[#allocation2 + $0xf7] sm:$0x3] }
 0x9a8   : > { %6760 = vrot.lane.b32.xlu1 %v6687_v0, %s8793_s15  ;;  %6586 = vrot.lane.b32.xlu0 %v6514_v17, %s8792_s14  ;;  %v7630_v0 = vsel %vm826_vm3, %v13682_v13, %v7629_v20  ;;  %v6515_v52 = vrot.slane %v6406_v58, 1  ;;  %v6691_v10 = vrot.slane %v6406_v58, 2  ;;  %v7455_v13 = vrot.slane %v14038_v27, 1  ;;  %v7349_v58 = vld [vmem:[#allocation2 + $0x117] sm:$0x3] }
 0x9a9   : > { %v6745_v25 = vpop.permute.xlu2 %6744  ;;  %v7631_v20 = vrot.slane %v14038_v27, 2  ;;  %v7458_v9 = vrot.slane %v7349_v58, 1 }
 0x9aa   : > { %v6565_v18 = vpop.permute.xlu1 %6564  ;;  %v6741_v40 = vpop.permute.xlu0 %6740 }
 0x9ab   : > { %v6835_v46 = vsel %vm441_vm1, %v8744_v50, %v6565_v18  ;;  %v7456_v18 = vrot.slane %v14040_v7, 1  ;;  %v6692_v50 = vsel %vm826_vm3, %v6689_v26, %v6691_v10  ;;  %v7634_v10 = vrot.slane %v7349_v58, 2 }
 0x9ac   : > { %8593 = vmatmul.msk.f32.gmra.mxu2 %vm1605_vm4, %v6350_v11  ;;  %v6867_v12 = vsel %vm1035_vm5, %v6835_v46, %v6741_v40  ;;  %v6516_v11 = vsel %vm649_vm2, %v6513_v6, %v6515_v52  ;;  %v6409_v52 = vld [vmem:[#allocation2 + $0x117] sm:$0x3] }
 0x9ad   : > { %8554 = vmatmul.msk.f32.gmra.mxu3 %vm1605_vm4, %v6867_v12  ;;  %v7457_v46 = vsel %vm649_vm2, %v7455_v13, %v7456_v18  ;;  %v6320_v12 = vsel %vm441_vm1, %v13401_v14, %v13730_v31 }
 0x9ae   : > { %v6352_v1 = vsel %vm1035_vm5, %v6320_v12, %v13925_v29 }
 0x9af   : > { %6762 = vrot.lane.b32.xlu2 %v6690_v60, %s8793_s15  ;;  %v7459_v60 = vsel %vm649_vm2, %v7456_v18, %v7458_v9 }
 0x9b0   : > { %7527 = vrot.lane.b32.xlu1 %v7454_v41, %s8792_s14  ;;  %7703 = vrot.lane.b32.xlu0 %v7630_v0, %s8793_s15  ;;  %v7632_v41 = vrot.slane %v14040_v7, 2  ;;  %v8748_v0 = vld [vmem:[#allocation2 + $0x67] sm:$0xff] }
 0x9b1   : > { %v14044_v34 = vpop.permute.xlu2 %7511 }
 0x9b2   : > { %v7682_v21 = vpop.permute.xlu1 %7681  ;;  %v7508_v39 = vpop.permute.xlu0 %7507  ;;  %v7633_v37 = vsel %vm826_vm3, %v7631_v20, %v7632_v41 }
 0x9b3   : > { %v7809_v36 = vsel %vm1035_vm5, %v7777_v57, %v7682_v21  ;;  %v7778_v17 = vsel %vm441_vm1, %v8746_v51, %v7508_v39 }
 0x9b4   : > { %8594 = vmatmul.msk.f32.gmra.mxu2 %vm1605_vm4, %v6351_v16  ;;  %8629 = vmatmul.msk.f32.vlgmr.msra.gmra.mxu0 %vm1605_vm4, %v7809_v36  ;;  %v7810_v26 = vsel %vm1035_vm5, %v7778_v17, %v13996_v63  ;;  %v6321_v63 = vsel %vm441_vm1, %v14076_v42, %v13707_v54 }
 0x9b5   : > { %v6353_v16 = vsel %vm1035_vm5, %v6321_v63, %v13940_v59  ;;  %v14095_v59 = vld [vmem:[#allocation2 + $0x127] sm:$0xff] }
 0x9b7   : > { %7529 = vrot.lane.b32.xlu2 %v7457_v46, %s8792_s14 }
 0x9b8   : > { %6588 = vrot.lane.b32.xlu1 %v6516_v11, %s8792_s14  ;;  %6764 = vrot.lane.b32.xlu0 %v6692_v50, %s8793_s15  ;;  %v14097_v11 = vld [vmem:[#allocation2 + $0x12f] sm:$0xff] }
 0x9b9   : > { %v14069_v14 = vpop.permute.xlu2 %6572 }
 0x9ba   : > { %v6743_v40 = vpop.permute.xlu1 %6742  ;;  %v6569_v31 = vpop.permute.xlu0 %6568 }
 0x9bb   : > { %v6868_v6 = vsel %vm1035_vm5, %v6836_v3, %v6743_v40  ;;  %v6837_v29 = vsel %vm441_vm1, %v8746_v51, %v6569_v31  ;;  %v7635_v51 = vsel %vm826_vm3, %v7632_v41, %v7634_v10  ;;  %v6322_v3 = vsel %vm441_vm1, %v13464_v33, %v13752_v22  ;;  %v14144_v10 = vld [vmem:[#allocation2 + $0xe7] sm:$0xff] }
 0x9bc   : > { %8555 = vmatmul.msk.f32.gmra.mxu3 %vm1605_vm4, %v6868_v6  ;;  %8595 = vmatmul.msk.f32.gmra.mxu2 %vm1605_vm4, %v6352_v1  ;;  %v6869_v21 = vsel %vm1035_vm5, %v6837_v29, %v6745_v25  ;;  %v6520_v25 = vrot.slane %v6409_v52, 1  ;;  %v7461_v40 = vrot.slane %v14097_v11, 1  ;;  %v6354_v12 = vsel %vm1035_vm5, %v6322_v3, %v13876_v44  ;;  %v8749_v44 = vld [vmem:[#allocation2 + $0x6f] sm:$0xff] }
 0x9bd   : > { %8630 = vmatmul.msk.f32.gmra.mxu0 %vm1605_vm4, %v7810_v26  ;;  %v6696_v33 = vrot.slane %v6409_v52, 2  ;;  %v14115_v26 = vrot.slane %v14097_v11, 2  ;;  %v7780_v31 = vsel %vm441_vm1, %v8749_v44, %v14044_v34  ;;  %v14123_v29 = vld [vmem:[#allocation2 + $0xcf] sm:$0xff]  ;;  %v6839_v52 = vsel %vm441_vm1, %v8749_v44, %v14069_v14 }
 0x9be   : > { %v6521_v50 = vsel %vm649_vm2, %v7456_v18, %v6520_v25  ;;  %v7636_v18 = vrot.slane %v14095_v59, 2 }
 0x9bf   : > { %6590 = vrot.lane.b32.xlu2 %v7457_v46, %s8792_s14  ;;  %v7460_v46 = vrot.slane %v14095_v59, 1  ;;  %v6697_v9 = vsel %vm826_vm3, %v7632_v41, %v6696_v33 }
 0x9c0   : > { %7705 = vrot.lane.b32.xlu1 %v7633_v37, %s8793_s15  ;;  %7531 = vrot.lane.b32.xlu0 %v7459_v60, %s8792_s14  ;;  %v7638_v63 = vsel %vm826_vm3, %v7636_v18, %v14115_v26 }
 0x9c1   : > { %v14089_v39 = vpop.permute.xlu2 %7689  ;;  %v7462_v58 = vsel %vm649_vm2, %v7460_v46, %v7461_v40  ;;  %v14159_v46 = vld [vmem:[#allocation2 + $0x14f] sm:$0xff] }
 0x9c2   : > { %v7510_v57 = vpop.permute.xlu1 %7509  ;;  %v7686_v54 = vpop.permute.xlu0 %7685 }
 0x9c3   : > { %v7779_v36 = vsel %vm441_vm1, %v8748_v0, %v7510_v57  ;;  %v6323_v57 = vsel %vm441_vm1, %v14123_v29, %v13743_v2 }
 0x9c4   : > { %8556 = vmatmul.msk.f32.gmra.mxu3 %vm1605_vm4, %v6869_v21  ;;  %8596 = vmatmul.msk.f32.gmra.mxu2 %vm1605_vm4, %v6353_v16  ;;  %v7811_v13 = vsel %vm1035_vm5, %v7779_v36, %v7686_v54  ;;  %v7352_v21 = vld [vmem:[#allocation2 + $0x137] sm:$0x3]  ;;  %v6355_v34 = vsel %vm1035_vm5, %v6323_v57, %v13955_v45 }
 0x9c5   : > { %8631 = vmatmul.msk.f32.gmra.mxu0 %vm1605_vm4, %v7811_v13  ;;  %v7463_v16 = vrot.slane %v7352_v21, 1  ;;  %v6324_v13 = vsel %vm441_vm1, %v14144_v10, %v13723_v49 }
 0x9c6   : > { %v6356_v3 = vsel %vm1035_vm5, %v6324_v13, %v13967_v30 }
 0x9c7   : > { %7707 = vrot.lane.b32.xlu2 %v7635_v51, %s8793_s15  ;;  %v7464_v45 = vsel %vm649_vm2, %v7461_v40, %v7463_v16  ;;  %v7639_v51 = vrot.slane %v7352_v21, 2 }
 0x9c8   : > { %6766 = vrot.lane.b32.xlu1 %v7633_v37, %s8793_s15  ;;  %6592 = vrot.lane.b32.xlu0 %v6521_v50, %s8792_s14  ;;  %v14157_v50 = vld [vmem:[#allocation2 + $0x147] sm:$0xff] }
 0x9c9   : > { %v6751_v20 = vpop.permute.xlu2 %6750  ;;  %v7465_v30 = vrot.slane %v14157_v50, 1  ;;  %v7641_v21 = vrot.slane %v14157_v50, 2 }
 0x9ca   : > { %v6571_v17 = vpop.permute.xlu1 %6570  ;;  %v6747_v1 = vpop.permute.xlu0 %6746 }
 0x9cb   : > { %v6838_v6 = vsel %vm441_vm1, %v8748_v0, %v6571_v17  ;;  %v8751_v0 = vld [vmem:[#allocation2 + $0x87] sm:$0xff]  ;;  %v6412_v17 = vld [vmem:[#allocation2 + $0x137] sm:$0x3] }
 0x9cc   : > { %8597 = vmatmul.msk.f32.gmra.mxu2 %vm1605_vm4, %v6354_v12  ;;  %v6870_v22 = vsel %vm1035_vm5, %v6838_v6, %v6747_v1  ;;  %v6525_v6 = vrot.slane %v6412_v17, 1  ;;  %v14167_v1 = vrot.slane %v14159_v46, 1 }
 0x9cd   : > { %8557 = vmatmul.msk.f32.gmra.mxu3 %vm1605_vm4, %v6870_v22 }
 0x9ce   : > { %v6526_v22 = vsel %vm649_vm2, %v7461_v40, %v6525_v6  ;;  %v8754_v40 = vld [vmem:[#allocation2 + $0x8f] sm:$0xff] }
 0x9cf   : > { %6768 = vrot.lane.b32.xlu2 %v6697_v9, %s8793_s15 }
 0x9d0   : > { %7533 = vrot.lane.b32.xlu1 %v7462_v58, %s8792_s14  ;;  %7709 = vrot.lane.b32.xlu0 %v7638_v63, %s8793_s15 }
 0x9d1   : > { %v14136_v41 = vpop.permute.xlu2 %7517 }
 0x9d2   : > { %v7688_v37 = vpop.permute.xlu1 %7687  ;;  %v7514_v2 = vpop.permute.xlu0 %7513 }
 0x9d3   : > { %v7812_v60 = vsel %vm1035_vm5, %v7780_v31, %v7688_v37  ;;  %v7781_v36 = vsel %vm441_vm1, %v8751_v0, %v7514_v2  ;;  %v7467_v31 = vsel %vm649_vm2, %v7465_v30, %v14167_v1  ;;  %v6701_v37 = vrot.slane %v6412_v17, 2  ;;  %v7355_v2 = vld [vmem:[#allocation2 + $0x157] sm:$0x3] }
 0x9d4   : > { %8632 = vmatmul.msk.f32.gmra.mxu0 %vm1605_vm4, %v7812_v60  ;;  %8598 = vmatmul.msk.f32.gmra.mxu2 %vm1605_vm4, %v6355_v34  ;;  %v7813_v14 = vsel %vm1035_vm5, %v7781_v36, %v14089_v39  ;;  %v7640_v39 = vsel %vm826_vm3, %v14115_v26, %v7639_v51  ;;  %v8755_v36 = vld [vmem:[#allocation2 + $0x107] sm:$0xff] }
 0x9d5   : > { %v14210_v51 = vld [vmem:[#allocation2 + $0x127] sm:$0xff] }
 0x9d6   : > { %v6179_v17 = vrot.slane %v14210_v51, 2 }
 0x9d7   : > { %7535 = vrot.lane.b32.xlu2 %v7464_v45, %s8792_s14  ;;  %v7468_v45 = vrot.slane %v7355_v2, 1 }
 0x9d8   : > { %6594 = vrot.lane.b32.xlu1 %v7462_v58, %s8792_s14  ;;  %6770 = vrot.lane.b32.xlu0 %v7638_v63, %s8793_s15  ;;  %v14174_v58 = vld [vmem:[#allocation2 + $0xef] sm:$0xff] }
 0x9d9   : > { %v14161_v49 = vpop.permute.xlu2 %6578  ;;  %v6325_v44 = vsel %vm441_vm1, %v14174_v58, %v13769_v61 }
 0x9da   : > { %v6749_v54 = vpop.permute.xlu1 %6748  ;;  %v6575_v12 = vpop.permute.xlu0 %6574  ;;  %v6357_v57 = vsel %vm1035_vm5, %v6325_v44, %v13902_v47  ;;  %v6702_v47 = vsel %vm826_vm3, %v14115_v26, %v6701_v37  ;;  %v7644_v44 = vrot.slane %v7355_v2, 2  ;;  %v14234_v37 = vld [vmem:[#allocation2 + $0x16f] sm:$0xff] }
 0x9db   : > { %v6871_v25 = vsel %vm1035_vm5, %v6839_v52, %v6749_v54  ;;  %v6840_v33 = vsel %vm441_vm1, %v8751_v0, %v6575_v12  ;;  %v6326_v52 = vsel %vm441_vm1, %v8755_v36, %v13761_v24  ;;  %v8758_v12 = vld [vmem:[#allocation2 + $0xa7] sm:$0xff]  ;;  %v8760_v36 = vld [vmem:[#allocation2 + $0x137] sm:$0x3] }
 0x9dc   : > { %8558 = vmatmul.msk.f32.gmra.mxu3 %vm1605_vm4, %v6871_v25  ;;  %8599 = vmatmul.msk.f32.gmra.mxu2 %vm1605_vm4, %v6356_v3  ;;  %v6872_v9 = vsel %vm1035_vm5, %v6840_v33, %v6751_v20  ;;  %v14193_v20 = vrot.slane %v14159_v46, 2  ;;  %v6358_v54 = vsel %vm1035_vm5, %v6326_v52, %v13977_v23  ;;  %v14213_v3 = vld [vmem:[#allocation2 + $0x12f] sm:$0xff]  ;;  %v7469_v23 = vsel %vm649_vm2, %v14167_v1, %v7468_v45 }
 0x9dd   : > { %8633 = vmatmul.msk.f32.gmra.mxu0 %vm1605_vm4, %v7813_v14  ;;  %v6180_v24 = vrot.slane %v14213_v3, 2  ;;  %v7783_v6 = vsel %vm441_vm1, %v8758_v12, %v14136_v41  ;;  %v8759_v33 = vld [vmem:[#allocation2 + $0x10f] sm:$0xff]  ;;  %v14232_v41 = vld [vmem:[#allocation2 + $0x167] sm:$0xff]  ;;  %v6182_v52 = vrot.slane %v8760_v36, 2 }
 0x9de   : > { %v7643_v16 = vsel %vm826_vm3, %v7641_v21, %v14193_v20  ;;  %v14297_v36 = vld [vmem:[#allocation2 + $0x18f] sm:$0xff] }
 0x9df   : > { %6596 = vrot.lane.b32.xlu2 %v6526_v22, %s8792_s14  ;;  %v6181_v30 = vsel %vm826_vm3, %v6179_v17, %v6180_v24  ;;  %v6327_v22 = vsel %vm441_vm1, %v8759_v33, %v13737_v19  ;;  %v6183_v17 = vsel %vm826_vm3, %v6180_v24, %v6182_v52 }
 0x9e0   : > { %7711 = vrot.lane.b32.xlu1 %v7640_v39, %s8793_s15  ;;  %7537 = vrot.lane.b32.xlu0 %v7467_v31, %s8792_s14 }
 0x9e1   : > { %v14188_v60 = vpop.permute.xlu2 %7695 }
 0x9e2   : > { %v7516_v18 = vpop.permute.xlu1 %7515  ;;  %v7692_v61 = vpop.permute.xlu0 %7691 }
 0x9e3   : > { %v7782_v63 = vsel %vm441_vm1, %v8754_v40, %v7516_v18 }
 0x9e4   : > { %8559 = vmatmul.msk.f32.gmra.mxu3 %vm1605_vm4, %v6872_v9  ;;  %8600 = vmatmul.msk.f32.gmra.mxu2 %vm1605_vm4, %v6357_v57  ;;  %v7814_v34 = vsel %vm1035_vm5, %v7782_v63, %v7692_v61  ;;  %v6359_v9 = vsel %vm1035_vm5, %v6327_v22, %v13999_v62  ;;  %v7470_v63 = vrot.slane %v14232_v41, 1  ;;  %v14241_v61 = vrot.slane %v14234_v37, 1 }
 0x9e5   : > { %8634 = vmatmul.msk.f32.gmra.mxu0 %vm1605_vm4, %v7814_v34  ;;  %v7645_v62 = vsel %vm826_vm3, %v14193_v20, %v7644_v44  ;;  %v6842_v34 = vsel %vm441_vm1, %v8758_v12, %v14161_v49 }
 0x9e7   : > { %7713 = vrot.lane.b32.xlu2 %v7643_v16, %s8793_s15 }
 0x9e8   : > { %6772 = vrot.lane.b32.xlu1 %v6702_v47, %s8793_s15  ;;  %6598 = vrot.lane.b32.xlu0 %v7467_v31, %s8792_s14  ;;  %v6415_v31 = vld [vmem:[#allocation2 + $0x157] sm:$0x3] }
 0x9e9   : > { %v6757_v13 = vpop.permute.xlu2 %6756 }
 0x9ea   : > { %v6577_v0 = vpop.permute.xlu1 %6576  ;;  %v6753_v25 = vpop.permute.xlu0 %6752 }
 0x9eb   : > { %v6841_v26 = vsel %vm441_vm1, %v8754_v40, %v6577_v0  ;;  %v6530_v40 = vrot.slane %v6415_v31, 1 }
 0x9ec   : > { %8601 = vmatmul.msk.f32.gmra.mxu2 %vm1605_vm4, %v6358_v54  ;;  %v6873_v14 = vsel %vm1035_vm5, %v6841_v26, %v6753_v25  ;;  %v6706_v54 = vrot.slane %v6415_v31, 2  ;;  %v7646_v26 = vrot.slane %v14232_v41, 2  ;;  %v7647_v25 = vrot.slane %v14234_v37, 2  ;;  %v14281_v31 = vld [vmem:[#allocation2 + $0x14f] sm:$0xff] }
 0x9ed   : > { %8560 = vmatmul.msk.f32.gmra.mxu3 %vm1605_vm4, %v6873_v14  ;;  %v6531_v47 = vsel %vm649_vm2, %v14167_v1, %v6530_v40 }
 0x9ee   : > { %v7648_v12 = vsel %vm826_vm3, %v7646_v26, %v7647_v25 }
 0x9ef   : > { %6250 = vrot.lane.b32.xlu2 %v6181_v30, %s8793_s15  ;;  %v7358_v30 = vld [vmem:[#allocation2 + $0x177] sm:$0x3] }
 0x9f0   : > { %7539 = vrot.lane.b32.xlu1 %v7469_v23, %s8792_s14  ;;  %6774 = vrot.lane.b32.xlu0 %v7643_v16, %s8793_s15  ;;  %v7472_v16 = vsel %vm649_vm2, %v7470_v63, %v14241_v61  ;;  %v7473_v22 = vrot.slane %v7358_v30, 1 }
 0x9f1   : > { %v14236_v57 = vpop.permute.xlu2 %7523 }
 0x9f2   : > { %v7694_v39 = vpop.permute.xlu1 %7693  ;;  %v7520_v19 = vpop.permute.xlu0 %7519  ;;  %v7786_v52 = vsel %vm441_vm1, %v14123_v29, %v14236_v57 }
 0x9f3   : > { %v7815_v18 = vsel %vm1035_vm5, %v7783_v6, %v7694_v39  ;;  %v7784_v21 = vsel %vm441_vm1, %v14076_v42, %v7520_v19  ;;  %v8761_v39 = vld [vmem:[#allocation2 + $0xc7] sm:$0xff] }
 0x9f4   : > { %8635 = vmatmul.msk.f32.gmra.mxu0 %vm1605_vm4, %v7815_v18  ;;  %8602 = vmatmul.msk.f32.gmra.mxu2 %vm1605_vm4, %v6359_v9  ;;  %v7816_v49 = vsel %vm1035_vm5, %v7784_v21, %v14188_v60  ;;  %v6707_v60 = vsel %vm826_vm3, %v14193_v20, %v6706_v54  ;;  %v14278_v18 = vld [vmem:[#allocation2 + $0x147] sm:$0xff]  ;;  %v7474_v9 = vsel %vm649_vm2, %v14241_v61, %v7473_v22 }
 0x9f5   : > { %v6184_v44 = vrot.slane %v14278_v18, 2 }
 0x9f7   : > { %6600 = vrot.lane.b32.xlu2 %v6531_v47, %s8792_s14  ;;  %v7649_v47 = vrot.slane %v7358_v30, 2 }
 0x9f8   : > { %7715 = vrot.lane.b32.xlu1 %v7645_v62, %s8793_s15  ;;  %7541 = vrot.lane.b32.xlu0 %v7472_v16, %s8792_s14  ;;  %v6418_v62 = vld [vmem:[#allocation2 + $0x177] sm:$0x3] }
 0x9f9   : > { %v14260_v45 = vpop.permute.xlu2 %6584 }
 0x9fa   : > { %v6755_v2 = vpop.permute.xlu1 %6754  ;;  %v6581_v1 = vpop.permute.xlu0 %6580 }
 0x9fb   : > { %v6874_v0 = vsel %vm1035_vm5, %v6842_v34, %v6755_v2  ;;  %v6843_v14 = vsel %vm441_vm1, %v14076_v42, %v6581_v1 }
 0x9fc   : > { %8561 = vmatmul.msk.f32.gmra.mxu3 %vm1605_vm4, %v6874_v0  ;;  %8636 = vmatmul.msk.f32.gmra.mxu0 %vm1605_vm4, %v7816_v49  ;;  %v6875_v6 = vsel %vm1035_vm5, %v6843_v14, %v6757_v13  ;;  %v6185_v13 = vrot.slane %v14281_v31, 2  ;;  %v6535_v0 = vrot.slane %v6418_v62, 1  ;;  %v7650_v49 = vsel %vm826_vm3, %v7647_v25, %v7649_v47  ;;  %v14346_v47 = vld [vmem:[#allocation2 + $0x167] sm:$0xff] }
 0x9fd   : > { %v14309_v14 = vrot.slane %v14297_v36, 1 }
 0x9fe   : > { %v6186_v40 = vsel %vm826_vm3, %v6184_v44, %v6185_v13  ;;  %v6536_v54 = vsel %vm649_vm2, %v14241_v61, %v6535_v0  ;;  %v14349_v0 = vld [vmem:[#allocation2 + $0x16f] sm:$0xff] }
 0x9ff   : > { %6776 = vrot.lane.b32.xlu2 %v6707_v60, %s8793_s15 }
 0xa00   : > { %6252 = vrot.lane.b32.xlu1 %v6183_v17, %s8793_s15  ;;  %7717 = vrot.lane.b32.xlu0 %v7648_v12, %s8793_s15 }
 0xa01   : > { %v7702_v42 = vpop.permute.xlu2 %7701 }
 0xa02   : > { %v7522_v23 = vpop.permute.xlu1 %7521  ;;  %v7698_v33 = vpop.permute.xlu0 %7697 }
 0xa03   : > { %v7785_v24 = vsel %vm441_vm1, %v8761_v39, %v7522_v23  ;;  %v8764_v23 = vld [vmem:[#allocation2 + $0x157] sm:$0x3] }
 0xa04   : > { %8562 = vmatmul.msk.f32.gmra.mxu3 %vm1605_vm4, %v6875_v6  ;;  %v7817_v20 = vsel %vm1035_vm5, %v7785_v24, %v7698_v33  ;;  %v6711_v6 = vrot.slane %v6418_v62, 2 }
 0xa05   : > { %8637 = vmatmul.msk.f32.gmra.mxu0 %vm1605_vm4, %v7817_v20 }
 0xa06   : > { %v6712_v22 = vsel %vm826_vm3, %v7647_v25, %v6711_v6  ;;  %v14367_v6 = vld [vmem:[#allocation2 + $0x1af] sm:$0xff] }
 0xa07   : > { %7543 = vrot.lane.b32.xlu2 %v7474_v9, %s8792_s14  ;;  %v14329_v9 = vrot.slane %v14297_v36, 2 }
 0xa08   : > { %6602 = vrot.lane.b32.xlu1 %v7472_v16, %s8792_s14  ;;  %6254 = vrot.lane.b32.xlu0 %v6186_v40, %s8793_s15  ;;  %v14295_v16 = vld [vmem:[#allocation2 + $0x187] sm:$0xff] }
 0xa09   : > { %v6763_v21 = vpop.permute.xlu2 %6762  ;;  %v7475_v17 = vrot.slane %v14295_v16, 1  ;;  %v7651_v44 = vrot.slane %v14295_v16, 2 }
 0xa0a   : > { %v6583_v19 = vpop.permute.xlu1 %6582  ;;  %v6759_v34 = vpop.permute.xlu0 %6758 }
 0xa0b   : > { %v6844_v63 = vsel %vm441_vm1, %v8761_v39, %v6583_v19  ;;  %v7477_v61 = vsel %vm649_vm2, %v7475_v17, %v14309_v14  ;;  %v6845_v39 = vsel %vm441_vm1, %v14123_v29, %v14260_v45  ;;  %v7361_v45 = vld [vmem:[#allocation2 + $0x197] sm:$0x3]  ;;  %v7653_v40 = vsel %vm826_vm3, %v7651_v44, %v14329_v9 }
 0xa0c   : > { %v6876_v2 = vsel %vm1035_vm5, %v6844_v63, %v6759_v34  ;;  %v7478_v19 = vrot.slane %v7361_v45, 1  ;;  %v6421_v17 = vld [vmem:[#allocation2 + $0x197] sm:$0x3]  ;;  %v8131_v44 = vlaneseq }
 0xa0d   : > { %8563 = vmatmul.msk.f32.gmra.mxu3 %vm1605_vm4, %v6876_v2  ;;  %v6189_v2 = vrot.slane %v14346_v47, 2 }
 0xa0e   : > { %v7479_v34 = vsel %vm649_vm2, %v14309_v14, %v7478_v19 }
 0xa0f   : > { %7719 = vrot.lane.b32.xlu2 %v7650_v49, %s8793_s15 }
 0xa10   : > { %6778 = vrot.lane.b32.xlu1 %v7648_v12, %s8793_s15  ;;  %6604 = vrot.lane.b32.xlu0 %v6536_v54, %s8792_s14  ;;  %v6187_v12 = vrot.slane %v8764_v23, 2  ;;  %v6540_v23 = vrot.slane %v6421_v17, 1 }
 0xa11   : > { %v14313_v57 = vpop.permute.xlu2 %7529 }
 0xa12   : > { %v7700_v1 = vpop.permute.xlu1 %7699  ;;  %v7526_v60 = vpop.permute.xlu0 %7525  ;;  %v6188_v24 = vsel %vm826_vm3, %v6185_v13, %v6187_v12  ;;  %v14365_v12 = vld [vmem:[#allocation2 + $0x1a7] sm:$0xff] }
 0xa13   : > { %v7818_v26 = vsel %vm1035_vm5, %v7786_v52, %v7700_v1  ;;  %v7787_v30 = vsel %vm441_vm1, %v14144_v10, %v7526_v60  ;;  %v6190_v52 = vrot.slane %v14349_v0, 2 }
 0xa14   : > { %8638 = vmatmul.msk.f32.gmra.mxu0 %vm1605_vm4, %v7818_v26  ;;  %v7819_v29 = vsel %vm1035_vm5, %v7787_v30, %v7702_v42  ;;  %v7654_v26 = vrot.slane %v7361_v45, 2  ;;  %v6541_v45 = vsel %vm649_vm2, %v14309_v14, %v6540_v23 }
 0xa15   : > { %v6191_v54 = vsel %vm826_vm3, %v6189_v2, %v6190_v52 }
 0xa17   : > { %6256 = vrot.lane.b32.xlu2 %v6188_v24, %s8793_s15  ;;  %v7233_v24 = vpop.f32.mrf.mxu2 }
 0xa18   : > { %7545 = vrot.lane.b32.xlu1 %v7477_v61, %s8792_s14  ;;  %6780 = vrot.lane.b32.xlu0 %v6712_v22, %s8793_s15  ;;  %v7480_v22 = vrot.slane %v14365_v12, 1 }
 0xa19   : > { %v14334_v13 = vpop.permute.xlu2 %6590 }
 0xa1a   : > { %v6761_v33 = vpop.permute.xlu1 %6760  ;;  %v6587_v25 = vpop.permute.xlu0 %6586 }
 0xa1b   : > { %v6877_v20 = vsel %vm1035_vm5, %v6845_v39, %v6761_v33  ;;  %v6846_v63 = vsel %vm441_vm1, %v14144_v10, %v6587_v25  ;;  %v8767_v25 = vld [vmem:[#allocation2 + $0x177] sm:$0x3] }
 0xa1c   : > { %8564 = vmatmul.msk.f32.gmra.mxu3 %vm1605_vm4, %v6877_v20  ;;  %8639 = vmatmul.msk.f32.gmra.mxu0 %vm1605_vm4, %v7819_v29  ;;  %v6878_v42 = vsel %vm1035_vm5, %v6846_v63, %v6763_v21  ;;  %v14376_v20 = vrot.slane %v14367_v6, 1  ;;  %v6192_v19 = vrot.slane %v8767_v25, 2  ;;  %v7789_v63 = vsel %vm441_vm1, %v14038_v27, %v14313_v57 }
 0xa1e   : > { %v6193_v2 = vsel %vm826_vm3, %v6190_v52, %v6192_v19  ;;  %v14406_v52 = vrot.slane %v14367_v6, 2 }
 0xa1f   : > { %6606 = vrot.lane.b32.xlu2 %v7477_v61, %s8792_s14 }
 0xa20   : > { %7721 = vrot.lane.b32.xlu1 %v7653_v40, %s8793_s15  ;;  %7547 = vrot.lane.b32.xlu0 %v7479_v34, %s8792_s14  ;;  %v14393_v34 = vand.u32 127, %v8131_v44  ;;  %v6848_v44 = vsel %vm441_vm1, %v14038_v27, %v14334_v13 }
 0xa21   : > { %v14356_v49 = vpop.permute.xlu2 %7707 }
 0xa22   : > { %v7528_v62 = vpop.permute.xlu1 %7527  ;;  %v7704_v1 = vpop.permute.xlu0 %7703  ;;  %vm8133_vm14 = vcmp.lt.s32.totalorder %v14393_v34, 4 }
 0xa23   : > { %v7788_v10 = vsel %vm441_vm1, %v14174_v58, %v7528_v62  ;;  %v7655_v58 = vsel %vm826_vm3, %v14329_v9, %v7654_v26  ;;  %v7482_v62 = vsel %vm649_vm2, %v7480_v22, %v14376_v20 }
 0xa24   : > { %8565 = vmatmul.msk.f32.gmra.mxu3 %vm1605_vm4, %v6878_v42  ;;  %v7820_v21 = vsel %vm1035_vm5, %v7788_v10, %v7704_v1 }
 0xa25   : > { %8640 = vmatmul.msk.f32.gmra.mxu0 %vm1605_vm4, %v7820_v21  ;;  %v6716_v21 = vrot.slane %v6421_v17, 2 }
 0xa27   : > { %6782 = vrot.lane.b32.xlu2 %v7653_v40, %s8793_s15  ;;  %v14386_v40 = vld [vmem:[%s15003_s10] ss:$0 sm:$0xff]  ;;  %v6717_v23 = vsel %vm826_vm3, %v14329_v9, %v6716_v21 }
 0xa28   : > { %6258 = vrot.lane.b32.xlu1 %v6191_v54, %s8793_s15  ;;  %v7024_v61 = vpop.f32.mrf.mxu3  ;;  %7723 = vrot.lane.b32.xlu0 %v7655_v58, %s8793_s15  ;;  %v7656_v58 = vrot.slane %v14365_v12, 2 }
 0xa29   : > { %v14372_v39 = vpop.permute.xlu2 %6768 }
 0xa2a   : > { %v6589_v60 = vpop.permute.xlu1 %6588  ;;  %v6765_v33 = vpop.permute.xlu0 %6764  ;;  %v7658_v9 = vsel %vm826_vm3, %v7656_v58, %v14406_v52 }
 0xa2b   : > { %v6847_v30 = vsel %vm441_vm1, %v13994_v8, %v6589_v60  ;;  %v7234_v8 = vadd.f32 %v7233_v24, %v7024_v61  ;;  %v7236_v61 = vpop.f32.mrf.mxu2 }
 0xa2c   : > { %v6879_v29 = vsel %vm1035_vm5, %v6847_v30, %v6765_v33  ;;  %v7364_v30 = vld [vmem:[#allocation2 + $0x1b7] sm:$0x3] }
 0xa2d   : > { %8566 = vmatmul.msk.f32.gmra.mxu3 %vm1605_vm4, %v6879_v29 }
 0xa2f   : > { %7549 = vrot.lane.b32.xlu2 %v7482_v62, %s8792_s14 }
 0xa30   : > { %6608 = vrot.lane.b32.xlu1 %v6541_v45, %s8792_s14  ;;  %6260 = vrot.lane.b32.xlu0 %v6193_v2, %s8793_s15  ;;  %v7027_v26 = vpop.f32.mrf.mxu3 }
 0xa31   : > { %v7967_v14 = vpop.f32.mrf.mxu0  ;;  %v14401_v54 = vpop.permute.xlu2 %7535  ;;  %v7237_v24 = vadd.f32 %v7236_v61, %v7027_v26 }
 0xa32   : > { %v7706_v42 = vpop.permute.xlu1 %7705  ;;  %v8063_v10 = vadd.f32 %v7967_v14, %v7234_v8  ;;  %v7532_v60 = vpop.permute.xlu0 %7531  ;;  %v7483_v8 = vrot.slane %v7364_v30, 1 }
 0xa33   : > { %v7821_v1 = vsel %vm1035_vm5, %v7789_v63, %v7706_v42  ;;  %v7790_v22 = vsel %vm441_vm1, %v14040_v7, %v7532_v60  ;;  %v14439_v42 = vld [vmem:[#allocation2 + $0x187] sm:$0xff]  ;;  %v7239_v26 = vpop.f32.mrf.mxu2 }
 0xa34   : > { %8641 = vmatmul.msk.f32.gmra.mxu0 %vm1605_vm4, %v7821_v1  ;;  %v8099_v57 = vadd.f32 %v14386_v40, %v8063_v10  ;;  %v7822_v27 = vsel %vm1035_vm5, %v7790_v22, %v14356_v49  ;;  %v6194_v2 = vrot.slane %v14439_v42, 2  ;;  %v14442_v10 = vld [vmem:[#allocation2 + $0x18f] sm:$0xff]  ;;  %v7484_v49 = vsel %vm649_vm2, %v14376_v20, %v7483_v8  ;;  %v14462_v22 = vld [vmem:[#allocation2 + $0x1c7] sm:$0xff] }
 0xa36   : > { %v8134_v17 = vmax.f32 %v8099_v57, 0.0 }
 0xa37   : > { %7725 = vrot.lane.b32.xlu2 %v7658_v9, %s8793_s15 }
 0xa38   : > { %6784 = vrot.lane.b32.xlu1 %v6717_v23, %s8793_s15  ;;  %v8168_v33 = vsel %vm8133_vm14, %v8134_v17, %v8099_v57  ;;  %6610 = vrot.lane.b32.xlu0 %v7482_v62, %s8792_s14  ;;  %v6195_v62 = vrot.slane %v14442_v10, 2 }
 0xa39   : > { %8201 = vst.msk [vmem:[%s14413_s21] sm:$0xff] %vm8200_vm15, %v8168_v33  ;;  %v14436_v63 = vpop.permute.xlu2 %6596  ;;  %v6424_v33 = vld [vmem:[#allocation2 + $0x1b7] sm:$0x3] }
 0xa3a   : > { %v7970_v29 = vpop.f32.mrf.mxu0  ;;  %v6767_v45 = vpop.permute.xlu1 %6766  ;;  %v6196_v17 = vsel %vm826_vm3, %v6194_v2, %v6195_v62  ;;  %v6545_v8 = vrot.slane %v6424_v33, 1 }
 0xa3b   : > { %v8064_v25 = vadd.f32 %v7970_v29, %v7237_v24  ;;  %v6880_v19 = vsel %vm1035_vm5, %v6848_v44, %v6767_v45  ;;  %v6593_v14 = vpop.permute.xlu0 %6592  ;;  %v7659_v24 = vrot.slane %v7364_v30, 2  ;;  %v14464_v44 = vld [vmem:[#allocation2 + $0x1cf] sm:$0xff] }
 0xa3c   : > { %8567 = vmatmul.msk.f32.gmra.mxu3 %vm1605_vm4, %v6880_v19  ;;  %8642 = vmatmul.msk.f32.gmra.mxu0 %vm1605_vm4, %v7822_v27  ;;  %v6849_v57 = vsel %vm441_vm1, %v14040_v7, %v6593_v14  ;;  %v14473_v27 = vrot.slane %v14464_v44, 1  ;;  %v6546_v2 = vsel %vm649_vm2, %v14376_v20, %v6545_v8  ;;  %v6328_v20 = vsel %vm441_vm1, %v14210_v51, %v13782_v15 }
 0xa3d   : > { %v8100_v13 = vadd.f32 %v14386_v40, %v8064_v25  ;;  %v6881_v61 = vsel %vm1035_vm5, %v6849_v57, %v14372_v39  ;;  %v7660_v30 = vsel %vm826_vm3, %v14406_v52, %v7659_v24 }
 0xa3f   : > { %v8135_v1 = vmax.f32 %v8100_v13, 0.0  ;;  %v7030_v21 = vpop.f32.mrf.mxu3  ;;  %6262 = vrot.lane.b32.xlu2 %v6196_v17, %s8793_s15  ;;  %v7242_v17 = vpop.f32.mrf.mxu2 }
 0xa40   : > { %7551 = vrot.lane.b32.xlu1 %v7484_v49, %s8792_s14  ;;  %v7240_v58 = vadd.f32 %v7239_v26, %v7030_v21  ;;  %6786 = vrot.lane.b32.xlu0 %v7658_v9, %s8793_s15  ;;  %v7485_v9 = vrot.slane %v14462_v22, 1  ;;  %v8770_v49 = vld [vmem:[#allocation2 + $0x197] sm:$0x3] }
 0xa41   : > { %v8169_v60 = vsel %vm8133_vm14, %v8135_v1, %v8100_v13  ;;  %v14466_v29 = vpop.permute.xlu2 %7713  ;;  %v6197_v57 = vrot.slane %v8770_v49, 2 }
 0xa42   : > { %8202 = vst.msk [vmem:[%s14413_s21 + $0x8] sm:$0xff] %vm8200_vm15, %v8169_v60  ;;  %v7534_v23 = vpop.permute.xlu1 %7533  ;;  %v7973_v45 = vpop.f32.mrf.mxu0  ;;  %v7487_v21 = vsel %vm649_vm2, %v7485_v9, %v14473_v27 }
 0xa43   : > { %v7791_v7 = vsel %vm441_vm1, %v14095_v59, %v7534_v23  ;;  %v8065_v25 = vadd.f32 %v7973_v45, %v7240_v58  ;;  %v7710_v19 = vpop.permute.xlu0 %7709 }
 0xa44   : > { %8568 = vmatmul.msk.f32.gmra.mxu3 %vm1605_vm4, %v6881_v61  ;;  %v7823_v39 = vsel %vm1035_vm5, %v7791_v7, %v7710_v19  ;;  %v6721_v7 = vrot.slane %v6424_v33, 2  ;;  %v14499_v19 = vrot.slane %v14464_v44, 2  ;;  %v7792_v33 = vsel %vm441_vm1, %v14097_v11, %v14401_v54 }
 0xa45   : > { %v8101_v13 = vadd.f32 %v14386_v40, %v8065_v25  ;;  %8643 = vmatmul.msk.f32.gmra.mxu0 %vm1605_vm4, %v7823_v39  ;;  %v6198_v25 = vsel %vm826_vm3, %v6195_v62, %v6197_v57 }
 0xa46   : > { %v6722_v8 = vsel %vm826_vm3, %v14406_v52, %v6721_v7 }
 0xa47   : > { %v8136_v14 = vmax.f32 %v8101_v13, 0.0  ;;  %6612 = vrot.lane.b32.xlu2 %v6546_v2, %s8792_s14  ;;  %v7033_v60 = vpop.f32.mrf.mxu3  ;;  %v7245_v57 = vpop.f32.mrf.mxu2 }
 0xa48   : > { %7727 = vrot.lane.b32.xlu1 %v7660_v30, %s8793_s15  ;;  %7553 = vrot.lane.b32.xlu0 %v7487_v21, %s8792_s14  ;;  %v7243_v15 = vadd.f32 %v7242_v17, %v7033_v60 }
 0xa49   : > { %v8170_v26 = vsel %vm8133_vm14, %v8136_v14, %v8101_v13  ;;  %v6251_v23 = vpop.permute.xlu2 %6250  ;;  %v7367_v13 = vld [vmem:[#allocation2 + $0x1d7] sm:$0x3] }
 0xa4a   : > { %v6595_v1 = vpop.permute.xlu1 %6594  ;;  %8203 = vst.msk [vmem:[%s14413_s21 + $0x10] sm:$0xff] %vm8200_vm15, %v8170_v26  ;;  %v6360_v61 = vsel %vm1035_vm5, %v6328_v20, %v6251_v23  ;;  %v7488_v49 = vrot.slane %v7367_v13, 1  ;;  %v14517_v26 = vld [vmem:[#allocation2 + $0x1a7] sm:$0xff] }
 0xa4b   : > { %v6850_v58 = vsel %vm441_vm1, %v14095_v59, %v6595_v1  ;;  %v6771_v24 = vpop.permute.xlu0 %6770  ;;  %8603 = vmatmul.msk.f32.gmra.mxu2 %vm1605_vm4, %v6360_v61  ;;  %v7661_v59 = vrot.slane %v14462_v22, 2  ;;  %v6199_v60 = vrot.slane %v14517_v26, 2 }
 0xa4c   : > { %v6882_v45 = vsel %vm1035_vm5, %v6850_v58, %v6771_v24  ;;  %v14520_v58 = vld [vmem:[#allocation2 + $0x1af] sm:$0xff]  ;;  %v6851_v24 = vsel %vm441_vm1, %v14097_v11, %v14436_v63  ;;  %v7489_v7 = vsel %vm649_vm2, %v14473_v27, %v7488_v49  ;;  %v6427_v63 = vld [vmem:[#allocation2 + $0x1d7] sm:$0x3] }
 0xa4d   : > { %8569 = vmatmul.msk.f32.gmra.mxu3 %vm1605_vm4, %v6882_v45  ;;  %v7663_v30 = vsel %vm826_vm3, %v7661_v59, %v14499_v19  ;;  %v6200_v20 = vrot.slane %v14520_v58, 2 }
 0xa4f   : > { %6788 = vrot.lane.b32.xlu2 %v6722_v8, %s8793_s15  ;;  %v6201_v59 = vsel %vm826_vm3, %v6199_v60, %v6200_v20 }
 0xa50   : > { %6264 = vrot.lane.b32.xlu1 %v6198_v25, %s8793_s15  ;;  %7729 = vrot.lane.b32.xlu0 %v7663_v30, %s8793_s15  ;;  %v7036_v52 = vpop.f32.mrf.mxu3 }
 0xa51   : > { %v7976_v51 = vpop.f32.mrf.mxu0  ;;  %v14515_v54 = vpop.permute.xlu2 %6600  ;;  %v7246_v23 = vadd.f32 %v7245_v57, %v7036_v52  ;;  %v14545_v52 = vld [vmem:[#allocation2 + $0x1e7] sm:$0xff] }
 0xa52   : > { %v8066_v39 = vadd.f32 %v7976_v51, %v7243_v15  ;;  %v7712_v62 = vpop.permute.xlu1 %7711  ;;  %v7490_v60 = vrot.slane %v14545_v52, 1 }
 0xa53   : > { %v7824_v9 = vsel %vm1035_vm5, %v7792_v33, %v7712_v62  ;;  %v7538_v1 = vpop.permute.xlu0 %7537 }
 0xa54   : > { %v8102_v14 = vadd.f32 %v14386_v40, %v8066_v39  ;;  %8644 = vmatmul.msk.f32.gmra.mxu0 %vm1605_vm4, %v7824_v9  ;;  %v7793_v61 = vsel %vm441_vm1, %v14157_v50, %v7538_v1  ;;  %v7664_v39 = vrot.slane %v7367_v13, 2  ;;  %v7248_v1 = vpop.f32.mrf.mxu2 }
 0xa55   : > { %v7825_v11 = vsel %vm1035_vm5, %v7793_v61, %v14466_v29 }
 0xa56   : > { %v8137_v2 = vmax.f32 %v8102_v14, 0.0  ;;  %v7665_v57 = vsel %vm826_vm3, %v14499_v19, %v7664_v39 }
 0xa57   : > { %7555 = vrot.lane.b32.xlu2 %v7489_v7, %s8792_s14 }
 0xa58   : > { %v8171_v17 = vsel %vm8133_vm14, %v8137_v2, %v8102_v14  ;;  %6614 = vrot.lane.b32.xlu1 %v7487_v21, %s8792_s14  ;;  %6266 = vrot.lane.b32.xlu0 %v6201_v59, %s8793_s15  ;;  %v6550_v14 = vrot.slane %v6427_v63, 1  ;;  %v14547_v2 = vld [vmem:[#allocation2 + $0x1ef] sm:$0xff] }
 0xa59   : > { %8204 = vst.msk [vmem:[%s14413_s21 + $0x18] sm:$0xff] %vm8200_vm15, %v8171_v17  ;;  %v6777_v33 = vpop.permute.xlu2 %6776  ;;  %v14560_v17 = vrot.slane %v14547_v2, 1 }
 0xa5a   : > { %v7979_v45 = vpop.f32.mrf.mxu0  ;;  %v6773_v25 = vpop.permute.xlu1 %6772 }
 0xa5b   : > { %v8067_v21 = vadd.f32 %v7979_v45, %v7246_v23  ;;  %v6883_v15 = vsel %vm1035_vm5, %v6851_v24, %v6773_v25  ;;  %v6599_v8 = vpop.permute.xlu0 %6598  ;;  %v8773_v25 = vld [vmem:[#allocation2 + $0x1b7] sm:$0x3] }
 0xa5c   : > { %8570 = vmatmul.msk.f32.gmra.mxu3 %vm1605_vm4, %v6883_v15  ;;  %8645 = vmatmul.msk.f32.gmra.mxu0 %vm1605_vm4, %v7825_v11  ;;  %v6852_v24 = vsel %vm441_vm1, %v14157_v50, %v6599_v8  ;;  %v6202_v59 = vrot.slane %v8773_v25, 2  ;;  %v6726_v15 = vrot.slane %v6427_v63, 2 }
 0xa5d   : > { %v8103_v51 = vadd.f32 %v14386_v40, %v8067_v21 }
 0xa5e   : > { %v6203_v8 = vsel %vm826_vm3, %v6200_v20, %v6202_v59  ;;  %v7370_v20 = vld [vmem:[#allocation2 + $0x1f7] sm:$0x3] }
 0xa5f   : > { %v8138_v62 = vmax.f32 %v8103_v51, 0.0  ;;  %v7039_v9 = vpop.f32.mrf.mxu3  ;;  %7731 = vrot.lane.b32.xlu2 %v7665_v57, %s8793_s15  ;;  %v6853_v57 = vsel %vm441_vm1, %v14159_v46, %v14515_v54 }
 0xa60   : > { %6790 = vrot.lane.b32.xlu1 %v7663_v30, %s8793_s15  ;;  %v7249_v49 = vadd.f32 %v7248_v1, %v7039_v9  ;;  %v6551_v30 = vsel %vm649_vm2, %v14473_v27, %v6550_v14  ;;  %v7492_v27 = vsel %vm649_vm2, %v7490_v60, %v14560_v17  ;;  %v7666_v9 = vrot.slane %v14545_v52, 2 }
 0xa61   : > { %v8172_v29 = vsel %vm8133_vm14, %v8138_v62, %v8103_v51  ;;  %6616 = vrot.lane.b32.xlu0 %v6551_v30, %s8792_s14  ;;  %v14563_v23 = vpop.permute.xlu2 %7543  ;;  %v6727_v62 = vsel %vm826_vm3, %v14499_v19, %v6726_v15  ;;  %v14582_v14 = vrot.slane %v14547_v2, 2  ;;  %v6885_v30 = vsel %vm1035_vm5, %v6853_v57, %v6777_v33  ;;  %v14605_v33 = vld [vmem:[#allocation2 + $0x1c7] sm:$0xff]  ;;  %v14608_v15 = vld [vmem:[#allocation2 + $0x1cf] sm:$0xff] }
 0xa62   : > { %8205 = vst.msk [vmem:[%s14413_s21 + $0x20] sm:$0xff] %vm8200_vm15, %v8172_v29  ;;  %v7540_v13 = vpop.permute.xlu1 %7539  ;;  %v7982_v61 = vpop.f32.mrf.mxu0 }
 0xa63   : > { %v8068_v7 = vadd.f32 %v7982_v61, %v7249_v49  ;;  %v6775_v45 = vpop.permute.xlu0 %6774  ;;  %v7794_v50 = vsel %vm441_vm1, %v14159_v46, %v7540_v13  ;;  %v7251_v49 = vpop.f32.mrf.mxu2  ;;  %v7668_v60 = vsel %vm826_vm3, %v7666_v9, %v14582_v14  ;;  %v7493_v61 = vrot.slane %v7370_v20, 1 }
 0xa64   : > { %v6884_v21 = vsel %vm1035_vm5, %v6852_v24, %v6775_v45  ;;  %v6329_v45 = vsel %vm441_vm1, %v14213_v3, %v13775_v55  ;;  %v7669_v9 = vrot.slane %v7370_v20, 2  ;;  %v14627_v20 = vld [vmem:[#allocation2 + $0x207] sm:$0xff] }
 0xa65   : > { %v8104_v11 = vadd.f32 %v14386_v40, %v8068_v7  ;;  %8571 = vmatmul.msk.f32.gmra.mxu3 %vm1605_vm4, %v6884_v21  ;;  %v7494_v46 = vsel %vm649_vm2, %v14560_v17, %v7493_v61  ;;  %v6204_v21 = vrot.slane %v14605_v33, 2 }
 0xa67   : > { %v8139_v51 = vmax.f32 %v8104_v11, 0.0  ;;  %6268 = vrot.lane.b32.xlu2 %v6203_v8, %s8793_s15  ;;  %v7042_v29 = vpop.f32.mrf.mxu3 }
 0xa68   : > { %7557 = vrot.lane.b32.xlu1 %v7492_v27, %s8792_s14  ;;  %v7252_v24 = vadd.f32 %v7251_v49, %v7042_v29  ;;  %v6430_v49 = vld [vmem:[#allocation2 + $0x1f7] sm:$0x3] }
 0xa69   : > { %v8173_v1 = vsel %vm8133_vm14, %v8139_v51, %v8104_v11  ;;  %6792 = vrot.lane.b32.xlu0 %v6727_v62, %s8793_s15  ;;  %v7720_v19 = vpop.permute.xlu2 %7719  ;;  %v6205_v11 = vrot.slane %v14608_v15, 2 }
 0xa6a   : > { %v7716_v39 = vpop.permute.xlu1 %7715  ;;  %8206 = vst.msk [vmem:[%s14413_s21 + $0x28] sm:$0xff] %vm8200_vm15, %v8173_v1 }
 0xa6b   : > { %v7826_v63 = vsel %vm1035_vm5, %v7794_v50, %v7716_v39  ;;  %v7542_v13 = vpop.permute.xlu0 %7541  ;;  %v7254_v39 = vpop.f32.mrf.mxu2 }
 0xa6c   : > { %8646 = vmatmul.msk.f32.gmra.mxu0 %vm1605_vm4, %v7826_v63  ;;  %v6206_v63 = vsel %vm826_vm3, %v6204_v21, %v6205_v11 }
 0xa6d   : > { %8572 = vmatmul.msk.f32.gmra.mxu3 %vm1605_vm4, %v6885_v30  ;;  %v7670_v30 = vsel %vm826_vm3, %v14582_v14, %v7669_v9 }
 0xa6f   : > { %6618 = vrot.lane.b32.xlu2 %v7492_v27, %s8792_s14  ;;  %v7795_v27 = vsel %vm441_vm1, %v14232_v41, %v7542_v13 }
 0xa70   : > { %7733 = vrot.lane.b32.xlu1 %v7668_v60, %s8793_s15  ;;  %v7045_v50 = vpop.f32.mrf.mxu3 }
 0xa71   : > { %v7985_v7 = vpop.f32.mrf.mxu0  ;;  %7559 = vrot.lane.b32.xlu0 %v7494_v46, %s8792_s14  ;;  %v6257_v3 = vpop.permute.xlu2 %6256  ;;  %v7255_v29 = vadd.f32 %v7254_v39, %v7045_v50 }
 0xa72   : > { %v8069_v25 = vadd.f32 %v7985_v7, %v7252_v24  ;;  %v6253_v59 = vpop.permute.xlu1 %6252  ;;  %v14629_v24 = vld [vmem:[#allocation2 + $0x20f] sm:$0xff]  ;;  %v6555_v7 = vrot.slane %v6430_v49, 1 }
 0xa73   : > { %v6361_v54 = vsel %vm1035_vm5, %v6329_v45, %v6253_v59  ;;  %v7718_v8 = vpop.permute.xlu0 %7717  ;;  %v6330_v59 = vsel %vm441_vm1, %v14278_v18, %v13750_v56  ;;  %v14643_v21 = vrot.slane %v14629_v24, 1  ;;  %v7257_v18 = vpop.f32.mrf.mxu2 }
 0xa74   : > { %v8105_v55 = vadd.f32 %v14386_v40, %v8069_v25  ;;  %8604 = vmatmul.msk.f32.gmra.mxu2 %vm1605_vm4, %v6361_v54  ;;  %v7827_v62 = vsel %vm1035_vm5, %v7795_v27, %v7718_v8  ;;  %v7495_v54 = vrot.slane %v14627_v20, 1  ;;  %v8776_v8 = vld [vmem:[#allocation2 + $0x1d7] sm:$0x3]  ;;  %v6556_v56 = vsel %vm649_vm2, %v14560_v17, %v6555_v7 }
 0xa75   : > { %8647 = vmatmul.msk.f32.gmra.mxu0 %vm1605_vm4, %v7827_v62  ;;  %v6207_v39 = vrot.slane %v8776_v8, 2  ;;  %v7671_v7 = vrot.slane %v14627_v20, 2  ;;  %v14690_v8 = vld [vmem:[#allocation2 + $0x1e7] sm:$0xff] }
 0xa76   : > { %v8140_v51 = vmax.f32 %v8105_v55, 0.0 }
 0xa77   : > { %6794 = vrot.lane.b32.xlu2 %v7668_v60, %s8793_s15  ;;  %v7796_v60 = vsel %vm441_vm1, %v14234_v37, %v14563_v23  ;;  %v6208_v17 = vsel %vm826_vm3, %v6205_v11, %v6207_v39  ;;  %v6209_v39 = vrot.slane %v14690_v8, 2 }
 0xa78   : > { %v8174_v1 = vsel %vm8133_vm14, %v8140_v51, %v8105_v55  ;;  %6270 = vrot.lane.b32.xlu1 %v6206_v63, %s8793_s15  ;;  %v7828_v55 = vsel %vm1035_vm5, %v7796_v60, %v7720_v19  ;;  %v7497_v63 = vsel %vm649_vm2, %v7495_v54, %v14643_v21 }
 0xa79   : > { %8207 = vst.msk [vmem:[%s14413_s21 + $0x30] sm:$0xff] %vm8200_vm15, %v8174_v1  ;;  %v7988_v57 = vpop.f32.mrf.mxu0  ;;  %7735 = vrot.lane.b32.xlu0 %v7670_v30, %s8793_s15  ;;  %v14633_v25 = vpop.permute.xlu2 %6606 }
 0xa7a   : > { %v6603_v13 = vpop.permute.xlu1 %6602  ;;  %v8070_v61 = vadd.f32 %v7988_v57, %v7255_v29  ;;  %v6731_v29 = vrot.slane %v6430_v49, 2 }
 0xa7b   : > { %v6255_v46 = vpop.permute.xlu0 %6254  ;;  %v6854_v19 = vsel %vm441_vm1, %v14232_v41, %v6603_v13  ;;  %v6331_v41 = vsel %vm441_vm1, %v14281_v31, %v13795_v53  ;;  %v7373_v53 = vld [vmem:[#allocation2 + $0x217] sm:$0x3] }
 0xa7c   : > { %v8106_v45 = vadd.f32 %v14386_v40, %v8070_v61  ;;  %v6362_v50 = vsel %vm1035_vm5, %v6330_v59, %v6255_v46  ;;  %v6363_v11 = vsel %vm1035_vm5, %v6331_v41, %v6257_v3  ;;  %v6732_v49 = vsel %vm826_vm3, %v14582_v14, %v6731_v29 }
 0xa7d   : > { %8605 = vmatmul.msk.f32.gmra.mxu2 %vm1605_vm4, %v6362_v50  ;;  %8648 = vmatmul.msk.f32.gmra.mxu0 %vm1605_vm4, %v7828_v55  ;;  %v7498_v55 = vrot.slane %v7373_v53, 1 }
 0xa7e   : > { %v8141_v27 = vmax.f32 %v8106_v45, 0.0 }
 0xa7f   : > { %v7048_v51 = vpop.f32.mrf.mxu3  ;;  %7561 = vrot.lane.b32.xlu2 %v7497_v63, %s8792_s14 }
 0xa80   : > { %v8175_v23 = vsel %vm8133_vm14, %v8141_v27, %v8106_v45  ;;  %6620 = vrot.lane.b32.xlu1 %v6556_v56, %s8792_s14  ;;  %v7258_v62 = vadd.f32 %v7257_v18, %v7048_v51  ;;  %v14670_v45 = vrot.slane %v14629_v24, 2  ;;  %v7260_v27 = vpop.f32.mrf.mxu2  ;;  %v14693_v56 = vld [vmem:[#allocation2 + $0x1ef] sm:$0xff] }
 0xa81   : > { %8208 = vst.msk [vmem:[%s14413_s21 + $0x38] sm:$0xff] %vm8200_vm15, %v8175_v23  ;;  %6272 = vrot.lane.b32.xlu0 %v6208_v17, %s8793_s15  ;;  %v6783_v57 = vpop.permute.xlu2 %6782  ;;  %v6210_v18 = vrot.slane %v14693_v56, 2 }
 0xa82   : > { %v6779_v9 = vpop.permute.xlu1 %6778  ;;  %v7991_v30 = vpop.f32.mrf.mxu0  ;;  %v7673_v60 = vsel %vm826_vm3, %v7671_v7, %v14670_v45  ;;  %v14709_v7 = vld [vmem:[#allocation2 + $0x227] sm:$0xff] }
 0xa83   : > { %v6886_v1 = vsel %vm1035_vm5, %v6854_v19, %v6779_v9  ;;  %v8071_v13 = vadd.f32 %v7991_v30, %v7258_v62  ;;  %v6605_v61 = vpop.permute.xlu0 %6604  ;;  %v7499_v62 = vsel %vm649_vm2, %v14643_v21, %v7498_v55  ;;  %v6211_v9 = vsel %vm826_vm3, %v6209_v39, %v6210_v18  ;;  %v6433_v30 = vld [vmem:[#allocation2 + $0x217] sm:$0x3] }
 0xa84   : > { %8573 = vmatmul.msk.f32.gmra.mxu3 %vm1605_vm4, %v6886_v1  ;;  %v6855_v50 = vsel %vm441_vm1, %v14234_v37, %v6605_v61 }
 0xa85   : > { %v8107_v59 = vadd.f32 %v14386_v40, %v8071_v13  ;;  %8606 = vmatmul.msk.f32.gmra.mxu2 %vm1605_vm4, %v6363_v11  ;;  %v7674_v13 = vrot.slane %v7373_v53, 2  ;;  %v7676_v11 = vrot.slane %v14709_v7, 2 }
 0xa87   : > { %v8142_v31 = vmax.f32 %v8107_v59, 0.0  ;;  %7737 = vrot.lane.b32.xlu2 %v7673_v60, %s8793_s15  ;;  %v7051_v54 = vpop.f32.mrf.mxu3 }
 0xa88   : > { %6796 = vrot.lane.b32.xlu1 %v6732_v49, %s8793_s15  ;;  %v7261_v19 = vadd.f32 %v7260_v27, %v7051_v54  ;;  %v6560_v54 = vrot.slane %v6433_v30, 1  ;;  %v7263_v55 = vpop.f32.mrf.mxu2 }
 0xa89   : > { %v8176_v3 = vsel %vm8133_vm14, %v8142_v31, %v8107_v59  ;;  %6622 = vrot.lane.b32.xlu0 %v7497_v63, %s8792_s14  ;;  %v14686_v14 = vpop.permute.xlu2 %7549  ;;  %v14712_v59 = vld [vmem:[#allocation2 + $0x22f] sm:$0xff]  ;;  %v6856_v31 = vsel %vm441_vm1, %v14295_v16, %v14633_v25  ;;  %v6332_v25 = vsel %vm441_vm1, %v14346_v47, %v13788_v43 }
 0xa8a   : > { %v7546_v46 = vpop.permute.xlu1 %7545  ;;  %8209 = vst.msk [vmem:[%s14413_s21 + $0x40] sm:$0xff] %vm8200_vm15, %v8176_v3  ;;  %v7677_v49 = vrot.slane %v14712_v59, 2  ;;  %v6888_v53 = vsel %vm1035_vm5, %v6856_v31, %v6783_v57  ;;  %v6561_v57 = vsel %vm649_vm2, %v14643_v21, %v6560_v54 }
 0xa8b   : > { %v6781_v51 = vpop.permute.xlu0 %6780  ;;  %v7797_v63 = vsel %vm441_vm1, %v14295_v16, %v7546_v46 }
 0xa8c   : > { %v6887_v23 = vsel %vm1035_vm5, %v6855_v50, %v6781_v51  ;;  %v7675_v50 = vsel %vm826_vm3, %v14670_v45, %v7674_v13  ;;  %v7678_v16 = vsel %vm826_vm3, %v7676_v11, %v7677_v49  ;;  %v7376_v13 = vld [vmem:[#allocation2 + $0x237] sm:$0x3] }
 0xa8d   : > { %8574 = vmatmul.msk.f32.gmra.mxu3 %vm1605_vm4, %v6887_v23  ;;  %v7503_v54 = vrot.slane %v7376_v13, 1 }
 0xa8f   : > { %6274 = vrot.lane.b32.xlu2 %v6211_v9, %s8793_s15 }
 0xa90   : > { %7563 = vrot.lane.b32.xlu1 %v7499_v62, %s8792_s14  ;;  %v7266_v31 = vpop.f32.mrf.mxu2 }
 0xa91   : > { %v7994_v37 = vpop.f32.mrf.mxu0  ;;  %6798 = vrot.lane.b32.xlu0 %v7673_v60, %s8793_s15  ;;  %v7726_v61 = vpop.permute.xlu2 %7725 }
 0xa92   : > { %v8072_v17 = vadd.f32 %v7994_v37, %v7261_v19  ;;  %v7722_v1 = vpop.permute.xlu1 %7721  ;;  %v7054_v60 = vpop.f32.mrf.mxu3  ;;  %v8781_v37 = vld [vmem:[#allocation2 + $0x1f7] sm:$0x3] }
 0xa93   : > { %v7829_v29 = vsel %vm1035_vm5, %v7797_v63, %v7722_v1  ;;  %v7548_v3 = vpop.permute.xlu0 %7547  ;;  %v7264_v51 = vadd.f32 %v7263_v55, %v7054_v60  ;;  %v6212_v63 = vrot.slane %v8781_v37, 2  ;;  %v7679_v55 = vrot.slane %v7376_v13, 2 }
 0xa94   : > { %v8108_v41 = vadd.f32 %v14386_v40, %v8072_v17  ;;  %8649 = vmatmul.msk.f32.gmra.mxu0 %vm1605_vm4, %v7829_v29  ;;  %v7798_v47 = vsel %vm441_vm1, %v14297_v36, %v7548_v3  ;;  %v6736_v17 = vrot.slane %v6433_v30, 2 }
 0xa95   : > { %8575 = vmatmul.msk.f32.gmra.mxu3 %vm1605_vm4, %v6888_v53  ;;  %v6213_v11 = vsel %vm826_vm3, %v6210_v18, %v6212_v63  ;;  %v6333_v18 = vsel %vm441_vm1, %v14349_v0, %v13767_v5  ;;  %v7680_v5 = vsel %vm826_vm3, %v7677_v49, %v7679_v55 }
 0xa96   : > { %v8143_v46 = vmax.f32 %v8108_v41, 0.0  ;;  %v6737_v30 = vsel %vm826_vm3, %v14670_v45, %v6736_v17 }
 0xa97   : > { %6624 = vrot.lane.b32.xlu2 %v6561_v57, %s8792_s14 }
 0xa98   : > { %v8177_v27 = vsel %vm8133_vm14, %v8143_v46, %v8108_v41  ;;  %7739 = vrot.lane.b32.xlu1 %v7675_v50, %s8793_s15  ;;  %v7799_v50 = vsel %vm441_vm1, %v14365_v12, %v14686_v14  ;;  %v7269_v37 = vpop.f32.mrf.mxu2 }
 0xa99   : > { %8210 = vst.msk [vmem:[%s14413_s21 + $0x48] sm:$0xff] %vm8200_vm15, %v8177_v27  ;;  %v7997_v39 = vpop.f32.mrf.mxu0  ;;  %7741 = vrot.lane.b32.xlu0 %v7678_v16, %s8793_s15  ;;  %v6263_v43 = vpop.permute.xlu2 %6262  ;;  %v7831_v57 = vsel %vm1035_vm5, %v7799_v50, %v7726_v61 }
 0xa9a   : > { %v6259_v23 = vpop.permute.xlu1 %6258  ;;  %v8073_v19 = vadd.f32 %v7997_v39, %v7264_v51 }
 0xa9b   : > { %v6364_v62 = vsel %vm1035_vm5, %v6332_v25, %v6259_v23  ;;  %v7724_v21 = vpop.permute.xlu0 %7723  ;;  %v15081_v25 = vrot.slane %v13274_v48, 1 }
 0xa9c   : > { %8607 = vmatmul.msk.f32.gmra.mxu2 %vm1605_vm4, %v6364_v62  ;;  %v8109_v9 = vadd.f32 %v14386_v40, %v8073_v19  ;;  %v7830_v29 = vsel %vm1035_vm5, %v7798_v47, %v7724_v21 }
 0xa9d   : > { %8650 = vmatmul.msk.f32.gmra.mxu0 %vm1605_vm4, %v7830_v29  ;;  %v7504_v45 = vsel %vm649_vm2, %v15081_v25, %v7503_v54 }
 0xa9e   : > { %v8144_v1 = vmax.f32 %v8109_v9, 0.0 }
 0xa9f   : > { %v7057_v41 = vpop.f32.mrf.mxu3  ;;  %6800 = vrot.lane.b32.xlu2 %v6737_v30, %s8793_s15 }
 0xaa0   : > { %v8178_v60 = vsel %vm8133_vm14, %v8144_v1, %v8109_v9  ;;  %6276 = vrot.lane.b32.xlu1 %v6213_v11, %s8793_s15  ;;  %v7267_v46 = vadd.f32 %v7266_v31, %v7057_v41 }
 0xaa1   : > { %8211 = vst.msk [vmem:[%s14413_s21 + $0x50] sm:$0xff] %vm8200_vm15, %v8178_v60  ;;  %v6613_v53 = vpop.permute.xlu2 %6612 }
 0xaa2   : > { %v6609_v3 = vpop.permute.xlu1 %6608  ;;  %v8000_v27 = vpop.f32.mrf.mxu0  ;;  %v6859_v50 = vsel %vm441_vm1, %v14367_v6, %v6613_v53 }
 0xaa3   : > { %v8074_v51 = vadd.f32 %v8000_v27, %v7267_v46  ;;  %v6261_v16 = vpop.permute.xlu0 %6260  ;;  %v6857_v48 = vsel %vm441_vm1, %v14297_v36, %v6609_v3  ;;  %v6334_v36 = vsel %vm441_vm1, %v14439_v42, %v13810_v32  ;;  %v7272_v32 = vpop.f32.mrf.mxu2 }
 0xaa4   : > { %v6365_v39 = vsel %vm1035_vm5, %v6333_v18, %v6261_v16  ;;  %v6366_v9 = vsel %vm1035_vm5, %v6334_v36, %v6263_v43 }
 0xaa5   : > { %v8110_v23 = vadd.f32 %v14386_v40, %v8074_v51  ;;  %8608 = vmatmul.msk.f32.gmra.mxu2 %vm1605_vm4, %v6365_v39  ;;  %8651 = vmatmul.msk.f32.gmra.mxu0 %vm1605_vm4, %v7831_v57 }
 0xaa7   : > { %v8145_v0 = vmax.f32 %v8110_v23, 0.0  ;;  %7743 = vrot.lane.b32.xlu2 %v7680_v5, %s8793_s15  ;;  %v7060_v62 = vpop.f32.mrf.mxu3 }
 0xaa8   : > { %7567 = vrot.lane.b32.xlu1 %v7504_v45, %s8792_s14  ;;  %v7270_v47 = vadd.f32 %v7269_v37, %v7060_v62 }
 0xaa9   : > { %v8179_v19 = vsel %vm8133_vm14, %v8145_v0, %v8110_v23  ;;  %v6789_v49 = vpop.permute.xlu2 %6788  ;;  %v6335_v23 = vsel %vm441_vm1, %v14442_v10, %v13805_v35 }
 0xaaa   : > { %v6785_v14 = vpop.permute.xlu1 %6784  ;;  %8212 = vst.msk [vmem:[%s14413_s21 + $0x58] sm:$0xff] %vm8200_vm15, %v8179_v19  ;;  %v6891_v16 = vsel %vm1035_vm5, %v6859_v50, %v6789_v49 }
 0xaab   : > { %v6889_v61 = vsel %vm1035_vm5, %v6857_v48, %v6785_v14  ;;  %v6611_v63 = vpop.permute.xlu0 %6610  ;;  %v7275_v57 = vpop.f32.mrf.mxu2 }
 0xaac   : > { %8576 = vmatmul.msk.f32.gmra.mxu3 %vm1605_vm4, %v6889_v61  ;;  %v6858_v13 = vsel %vm441_vm1, %v14365_v12, %v6611_v63  ;;  %v6336_v63 = vsel %vm441_vm1, %v14517_v26, %v13780_v38 }
 0xaad   : > { %8609 = vmatmul.msk.f32.gmra.mxu2 %vm1605_vm4, %v6366_v9 }
 0xab0   : > { %v7063_v11 = vpop.f32.mrf.mxu3 }
 0xab1   : > { %v8003_v21 = vpop.f32.mrf.mxu0  ;;  %v7556_v41 = vpop.permute.xlu2 %7555  ;;  %v7273_v46 = vadd.f32 %v7272_v32, %v7063_v11  ;;  %v15082_v32 = vld [vmem:[#allocation13_spill] sm:$0xff] }
 0xab2   : > { %v8075_v17 = vadd.f32 %v8003_v21, %v7270_v47  ;;  %v7552_v1 = vpop.permute.xlu1 %7551  ;;  %v7802_v47 = vsel %vm441_vm1, %v14464_v44, %v7556_v41 }
 0xab3   : > { %v6787_v60 = vpop.permute.xlu0 %6786  ;;  %v7800_v30 = vsel %vm441_vm1, %v14367_v6, %v7552_v1  ;;  %v7278_v9 = vpop.f32.mrf.mxu2 }
 0xab4   : > { %v8111_v29 = vadd.f32 %v14386_v40, %v8075_v17  ;;  %v6890_v42 = vsel %vm1035_vm5, %v6858_v13, %v6787_v60 }
 0xab5   : > { %8577 = vmatmul.msk.f32.gmra.mxu3 %vm1605_vm4, %v6890_v42  ;;  %v6337_v42 = vsel %vm441_vm1, %v14520_v58, %v15082_v32 }
 0xab6   : > { %v8146_v31 = vmax.f32 %v8111_v29, 0.0 }
 0xab8   : > { %v8180_v43 = vsel %vm8133_vm14, %v8146_v31, %v8111_v29 }
 0xab9   : > { %8213 = vst.msk [vmem:[%s14413_s21 + $0x60] sm:$0xff] %vm8200_vm15, %v8180_v43  ;;  %v8006_v3 = vpop.f32.mrf.mxu0  ;;  %v7732_v18 = vpop.permute.xlu2 %7731 }
 0xaba   : > { %v7728_v12 = vpop.permute.xlu1 %7727  ;;  %v8076_v54 = vadd.f32 %v8006_v3, %v7273_v46  ;;  %v7834_v17 = vsel %vm1035_vm5, %v7802_v47, %v7732_v18 }
 0xabb   : > { %v7832_v55 = vsel %vm1035_vm5, %v7800_v30, %v7728_v12  ;;  %v7554_v51 = vpop.permute.xlu0 %7553  ;;  %v7281_v12 = vpop.f32.mrf.mxu2 }
 0xabc   : > { %8652 = vmatmul.msk.f32.gmra.mxu0 %vm1605_vm4, %v7832_v55  ;;  %v8112_v27 = vadd.f32 %v14386_v40, %v8076_v54  ;;  %v7801_v14 = vsel %vm441_vm1, %v14462_v22, %v7554_v51 }
 0xabd   : > { %8578 = vmatmul.msk.f32.gmra.mxu3 %vm1605_vm4, %v6891_v16 }
 0xabe   : > { %v8147_v25 = vmax.f32 %v8112_v27, 0.0 }
 0xabf   : > { %v7066_v45 = vpop.f32.mrf.mxu3 }
 0xac0   : > { %v8181_v39 = vsel %vm8133_vm14, %v8147_v25, %v8112_v27  ;;  %v7276_v5 = vadd.f32 %v7275_v57, %v7066_v45 }
 0xac1   : > { %8214 = vst.msk [vmem:[%s14413_s21 + $0x68] sm:$0xff] %vm8200_vm15, %v8181_v39  ;;  %v6269_v48 = vpop.permute.xlu2 %6268 }
 0xac2   : > { %v6265_v6 = vpop.permute.xlu1 %6264  ;;  %v8009_v0 = vpop.f32.mrf.mxu0  ;;  %v6369_v3 = vsel %vm1035_vm5, %v6337_v42, %v6269_v48 }
 0xac3   : > { %v6367_v53 = vsel %vm1035_vm5, %v6335_v23, %v6265_v6  ;;  %v8077_v61 = vadd.f32 %v8009_v0, %v7276_v5  ;;  %v7730_v19 = vpop.permute.xlu0 %7729  ;;  %v7284_v0 = vpop.f32.mrf.mxu2 }
 0xac4   : > { %8610 = vmatmul.msk.f32.gmra.mxu2 %vm1605_vm4, %v6367_v53  ;;  %v7833_v62 = vsel %vm1035_vm5, %v7801_v14, %v7730_v19 }
 0xac5   : > { %v8113_v35 = vadd.f32 %v14386_v40, %v8077_v61  ;;  %8653 = vmatmul.msk.f32.gmra.mxu0 %vm1605_vm4, %v7833_v62  ;;  %v15083_v62 = vld [vmem:[#allocation12_spill] sm:$0xff] }
 0xac7   : > { %v8148_v10 = vmax.f32 %v8113_v35, 0.0  ;;  %v7069_v36 = vpop.f32.mrf.mxu3 }
 0xac8   : > { %v7279_v13 = vadd.f32 %v7278_v9, %v7069_v36 }
 0xac9   : > { %v8182_v49 = vsel %vm8133_vm14, %v8148_v10, %v8113_v35  ;;  %v6619_v1 = vpop.permute.xlu2 %6618  ;;  %v6338_v35 = vsel %vm441_vm1, %v14605_v33, %v15083_v62 }
 0xaca   : > { %v6615_v37 = vpop.permute.xlu1 %6614  ;;  %8215 = vst.msk [vmem:[%s14413_s21 + $0x70] sm:$0xff] %vm8200_vm15, %v8182_v49  ;;  %v6862_v53 = vsel %vm441_vm1, %v14545_v52, %v6619_v1 }
 0xacb   : > { %v6267_v21 = vpop.permute.xlu0 %6266  ;;  %v6860_v38 = vsel %vm441_vm1, %v14462_v22, %v6615_v37 }
 0xacc   : > { %v6368_v29 = vsel %vm1035_vm5, %v6336_v63, %v6267_v21 }
 0xacd   : > { %8611 = vmatmul.msk.f32.gmra.mxu2 %vm1605_vm4, %v6368_v29  ;;  %8654 = vmatmul.msk.f32.gmra.mxu0 %vm1605_vm4, %v7834_v17 }
 0xace   : > { %v7287_v21 = vpop.f32.mrf.mxu2 }
 0xad0   : > { %v7072_v43 = vpop.f32.mrf.mxu3 }
 0xad1   : > { %v8012_v11 = vpop.f32.mrf.mxu0  ;;  %v7282_v54 = vadd.f32 %v7281_v12, %v7072_v43  ;;  %v6795_v55 = vpop.permute.xlu2 %6794 }
 0xad2   : > { %v8078_v26 = vadd.f32 %v8012_v11, %v7279_v13  ;;  %v6791_v31 = vpop.permute.xlu1 %6790  ;;  %v6894_v14 = vsel %vm1035_vm5, %v6862_v53, %v6795_v55  ;;  %v15084_v11 = vld [vmem:[#allocation11_spill] sm:$0xff] }
 0xad3   : > { %v6892_v41 = vsel %vm1035_vm5, %v6860_v38, %v6791_v31  ;;  %v6617_v30 = vpop.permute.xlu0 %6616  ;;  %v6339_v38 = vsel %vm441_vm1, %v14608_v15, %v15084_v11 }
 0xad4   : > { %v8114_v60 = vadd.f32 %v14386_v40, %v8078_v26  ;;  %8579 = vmatmul.msk.f32.gmra.mxu3 %vm1605_vm4, %v6892_v41  ;;  %v6861_v51 = vsel %vm441_vm1, %v14464_v44, %v6617_v30 }
 0xad5   : > { %8612 = vmatmul.msk.f32.gmra.mxu2 %vm1605_vm4, %v6369_v3 }
 0xad6   : > { %v8149_v46 = vmax.f32 %v8114_v60, 0.0 }
 0xad8   : > { %v8183_v22 = vsel %vm8133_vm14, %v8149_v46, %v8114_v60  ;;  %v14881_v46 = vld [vmem:[%s15003_s10] ss:$0 sm:$0xff] }
 0xad9   : > { %8216 = vst.msk [vmem:[%s14413_s21 + $0x78] sm:$0xff] %vm8200_vm15, %v8183_v22  ;;  %v8015_v27 = vpop.f32.mrf.mxu0  ;;  %v7562_v6 = vpop.permute.xlu2 %7561 }
 0xada   : > { %v7558_v18 = vpop.permute.xlu1 %7557  ;;  %v8079_v50 = vadd.f32 %v8015_v27, %v7282_v54  ;;  %v7805_v26 = vsel %vm441_vm1, %v14627_v20, %v7562_v6 }
 0xadb   : > { %v6793_v16 = vpop.permute.xlu0 %6792  ;;  %v7803_v39 = vsel %vm441_vm1, %v14545_v52, %v7558_v18 }
 0xadc   : > { %v8115_v58 = vadd.f32 %v14386_v40, %v8079_v50  ;;  %v6893_v45 = vsel %vm1035_vm5, %v6861_v51, %v6793_v16  ;;  %v6340_v50 = vsel %vm441_vm1, %v14690_v8, %v13849_v4 }
 0xadd   : > { %8580 = vmatmul.msk.f32.gmra.mxu3 %vm1605_vm4, %v6893_v45 }
 0xade   : > { %v8150_v25 = vmax.f32 %v8115_v58, 0.0 }
 0xadf   : > { %v7075_v44 = vpop.f32.mrf.mxu3 }
 0xae0   : > { %v8184_v57 = vsel %vm8133_vm14, %v8150_v25, %v8115_v58  ;;  %v7285_v61 = vadd.f32 %v7284_v0, %v7075_v44 }
 0xae1   : > { %8217 = vst.msk [vmem:[%s14413_s21 + $0x80] sm:$0xff] %vm8200_vm15, %v8184_v57  ;;  %v7738_v52 = vpop.permute.xlu2 %7737 }
 0xae2   : > { %v7734_v23 = vpop.permute.xlu1 %7733  ;;  %v7837_v60 = vsel %vm1035_vm5, %v7805_v26, %v7738_v52 }
 0xae3   : > { %v7835_v5 = vsel %vm1035_vm5, %v7803_v39, %v7734_v23  ;;  %v7560_v48 = vpop.permute.xlu0 %7559 }
 0xae4   : > { %8655 = vmatmul.msk.f32.gmra.mxu0 %vm1605_vm4, %v7835_v5  ;;  %v7804_v63 = vsel %vm441_vm1, %v14547_v2, %v7560_v48 }
 0xae5   : > { %8581 = vmatmul.msk.f32.gmra.mxu3 %vm1605_vm4, %v6894_v14 }
 0xae8   : > { %v7078_v17 = vpop.f32.mrf.mxu3 }
 0xae9   : > { %v8018_v19 = vpop.f32.mrf.mxu0  ;;  %v7288_v29 = vadd.f32 %v7287_v21, %v7078_v17  ;;  %v6275_v43 = vpop.permute.xlu2 %6274 }
 0xaea   : > { %v8080_v10 = vadd.f32 %v8018_v19, %v7285_v61  ;;  %v6271_v37 = vpop.permute.xlu1 %6270 }
 0xaeb   : > { %v6370_v49 = vsel %vm1035_vm5, %v6338_v35, %v6271_v37  ;;  %v7736_v47 = vpop.permute.xlu0 %7735 }
 0xaec   : > { %v8116_v36 = vadd.f32 %v14386_v40, %v8080_v10  ;;  %8613 = vmatmul.msk.f32.gmra.mxu2 %vm1605_vm4, %v6370_v49  ;;  %v7836_v1 = vsel %vm1035_vm5, %v7804_v63, %v7736_v47  ;;  %v15085_v10 = vld [vmem:[#allocation10_spill] sm:$0xff]  ;;  %v6341_v49 = vsel %vm441_vm1, %v14693_v56, %v13837_v28 }
 0xaed   : > { %8656 = vmatmul.msk.f32.gmra.mxu0 %vm1605_vm4, %v7836_v1  ;;  %v7807_v37 = vsel %vm441_vm1, %v14709_v7, %v15085_v10 }
 0xaee   : > { %v8151_v9 = vmax.f32 %v8116_v36, 0.0 }
 0xaf0   : > { %v8185_v33 = vsel %vm8133_vm14, %v8151_v9, %v8116_v36  ;;  %v7081_v15 = vpop.f32.mrf.mxu3 }
 0xaf1   : > { %8218 = vst.msk [vmem:[%s14413_s21 + $0x88] sm:$0xff] %vm8200_vm15, %v8185_v33  ;;  %v6625_v25 = vpop.permute.xlu2 %6624 }
 0xaf2   : > { %v6621_v40 = vpop.permute.xlu1 %6620  ;;  %v8021_v13 = vpop.f32.mrf.mxu0  ;;  %v6865_v14 = vsel %vm441_vm1, %v14629_v24, %v6625_v25 }
 0xaf3   : > { %v8081_v31 = vadd.f32 %v8021_v13, %v7288_v29  ;;  %v6273_v41 = vpop.permute.xlu0 %6272  ;;  %v6863_v22 = vsel %vm441_vm1, %v14547_v2, %v6621_v40  ;;  %v6372_v2 = vsel %vm1035_vm5, %v6340_v50, %v6275_v43 }
 0xaf4   : > { %v6371_v32 = vsel %vm1035_vm5, %v6339_v38, %v6273_v41 }
 0xaf5   : > { %v8117_v30 = vadd.f32 %v14881_v46, %v8081_v31  ;;  %8614 = vmatmul.msk.f32.gmra.mxu2 %vm1605_vm4, %v6371_v32  ;;  %8657 = vmatmul.msk.f32.gmra.mxu0 %vm1605_vm4, %v7837_v60 }
 0xaf7   : > { %v7290_v42 = vpop.f32.mrf.mxu2  ;;  %v8152_v3 = vmax.f32 %v8117_v30, 0.0 }
 0xaf8   : > { %v7291_v12 = vadd.f32 %v7290_v42, %v7081_v15 }
 0xaf9   : > { %v8186_v55 = vsel %vm8133_vm14, %v8152_v3, %v8117_v30  ;;  %v6801_v44 = vpop.permute.xlu2 %6800 }
 0xafa   : > { %v6797_v54 = vpop.permute.xlu1 %6796  ;;  %8219 = vst.msk [vmem:[%s14413_s21 + $0x90] sm:$0xff] %vm8200_vm15, %v8186_v55  ;;  %v8024_v18 = vpop.f32.mrf.mxu0 }
 0xafb   : > { %v6895_v27 = vsel %vm1035_vm5, %v6863_v22, %v6797_v54  ;;  %v8082_v58 = vadd.f32 %v8024_v18, %v7291_v12  ;;  %v6623_v51 = vpop.permute.xlu0 %6622 }
 0xafc   : > { %8582 = vmatmul.msk.f32.gmra.mxu3 %vm1605_vm4, %v6895_v27  ;;  %v6864_v23 = vsel %vm441_vm1, %v14627_v20, %v6623_v51  ;;  %v6897_v20 = vsel %vm1035_vm5, %v6865_v14, %v6801_v44 }
 0xafd   : > { %v8118_v16 = vadd.f32 %v14881_v46, %v8082_v58  ;;  %8615 = vmatmul.msk.f32.gmra.mxu2 %vm1605_vm4, %v6372_v2 }
 0xaff   : > { %v8153_v45 = vmax.f32 %v8118_v16, 0.0 }
 0xb00   : > { %v7293_v48 = vpop.f32.mrf.mxu2 }
 0xb01   : > { %v8187_v39 = vsel %vm8133_vm14, %v8153_v45, %v8118_v16  ;;  %v7744_v28 = vpop.permute.xlu2 %7743 }
 0xb02   : > { %v7564_v57 = vpop.permute.xlu1 %7563  ;;  %8220 = vst.msk [vmem:[%s14413_s21 + $0x98] sm:$0xff] %vm8200_vm15, %v8187_v39 }
 0xb03   : > { %v6799_v4 = vpop.permute.xlu0 %6798  ;;  %v7806_v5 = vsel %vm441_vm1, %v14629_v24, %v7564_v57 }
 0xb04   : > { %v6896_v8 = vsel %vm1035_vm5, %v6864_v23, %v6799_v4 }
 0xb05   : > { %8583 = vmatmul.msk.f32.gmra.mxu3 %vm1605_vm4, %v6896_v8 }
 0xb07   : > { %v7084_v0 = vpop.f32.mrf.mxu3 }
 0xb08   : > { %v7294_v61 = vadd.f32 %v7293_v48, %v7084_v0  ;;  %v7296_v47 = vpop.f32.mrf.mxu2 }
 0xb0a   : > { %v7740_v6 = vpop.permute.xlu1 %7739 }
 0xb0b   : > { %v7838_v53 = vsel %vm1035_vm5, %v7806_v5, %v7740_v6  ;;  %v7742_v19 = vpop.permute.xlu0 %7741 }
 0xb0c   : > { %8658 = vmatmul.msk.f32.gmra.mxu0 %vm1605_vm4, %v7838_v53  ;;  %v7839_v24 = vsel %vm1035_vm5, %v7807_v37, %v7742_v19 }
 0xb0d   : > { %8584 = vmatmul.msk.f32.gmra.mxu3 %vm1605_vm4, %v6897_v20 }
 0xb10   : > { %v7087_v21 = vpop.f32.mrf.mxu3 }
 0xb11   : > { %v8027_v62 = vpop.f32.mrf.mxu0  ;;  %v7297_v17 = vadd.f32 %v7296_v47, %v7087_v21 }
 0xb12   : > { %v8083_v35 = vadd.f32 %v8027_v62, %v7294_v61  ;;  %v6277_v36 = vpop.permute.xlu1 %6276 }
 0xb13   : > { %v6373_v63 = vsel %vm1035_vm5, %v6341_v49, %v6277_v36 }
 0xb14   : > { %v8119_v52 = vadd.f32 %v14881_v46, %v8083_v35  ;;  %8616 = vmatmul.msk.f32.gmra.mxu2 %vm1605_vm4, %v6373_v63  ;;  %8659 = vmatmul.msk.f32.gmra.mxu0 %vm1605_vm4, %v7839_v24 }
 0xb16   : > { %v8154_v9 = vmax.f32 %v8119_v52, 0.0 }
 0xb18   : > { %v8188_v7 = vsel %vm8133_vm14, %v8154_v9, %v8119_v52  ;;  %v7090_v38 = vpop.f32.mrf.mxu3 }
 0xb19   : > { %8221 = vst.msk [vmem:[%s14413_s21 + $0xa0] sm:$0xff] %vm8200_vm15, %v8188_v7 }
 0xb1a   : > { %v7568_v56 = vpop.permute.xlu1 %7567  ;;  %v8030_v33 = vpop.f32.mrf.mxu0 }
 0xb1b   : > { %v7808_v1 = vsel %vm441_vm1, %v14712_v59, %v7568_v56  ;;  %v8084_v29 = vadd.f32 %v8030_v33, %v7297_v17 }
 0xb1c   : > { %v7840_v40 = vsel %vm1035_vm5, %v7808_v1, %v7744_v28 }
 0xb1d   : > { %8660 = vmatmul.msk.f32.gmra.mxu0 %vm1605_vm4, %v7840_v40  ;;  %v8120_v11 = vadd.f32 %v14881_v46, %v8084_v29 }
 0xb1f   : > { %v7299_v13 = vpop.f32.mrf.mxu2  ;;  %v8155_v26 = vmax.f32 %v8120_v11, 0.0 }
 0xb20   : > { %v7300_v31 = vadd.f32 %v7299_v13, %v7090_v38 }
 0xb21   : > { %v8189_v41 = vsel %vm8133_vm14, %v8155_v26, %v8120_v11 }
 0xb22   : > { %8222 = vst.msk [vmem:[%s14413_s21 + $0xa8] sm:$0xff] %vm8200_vm15, %v8189_v41  ;;  %v8033_v60 = vpop.f32.mrf.mxu0 }
 0xb23   : > { %v8085_v59 = vadd.f32 %v8033_v60, %v7300_v31 }
 0xb25   : > { %v8121_v32 = vadd.f32 %v14881_v46, %v8085_v59 }
 0xb27   : > { %v8156_v42 = vmax.f32 %v8121_v32, 0.0 }
 0xb28   : > { %v7302_v30 = vpop.f32.mrf.mxu2 }
 0xb29   : > { %v8190_v43 = vsel %vm8133_vm14, %v8156_v42, %v8121_v32 }
 0xb2a   : > { %8223 = vst.msk [vmem:[%s14413_s21 + $0xb0] sm:$0xff] %vm8200_vm15, %v8190_v43 }
 0xb2f   : > { %v7093_v15 = vpop.f32.mrf.mxu3 }
 0xb30   : > { %v7303_v3 = vadd.f32 %v7302_v30, %v7093_v15  ;;  %v7305_v27 = vpop.f32.mrf.mxu2 }
 0xb38   : > { %v7096_v18 = vpop.f32.mrf.mxu3 }
 0xb39   : > { %v8036_v12 = vpop.f32.mrf.mxu0  ;;  %v7306_v58 = vadd.f32 %v7305_v27, %v7096_v18 }
 0xb3a   : > { %v8086_v22 = vadd.f32 %v8036_v12, %v7303_v3 }
 0xb3c   : > { %v8122_v54 = vadd.f32 %v14881_v46, %v8086_v22 }
 0xb3e   : > { %v8157_v55 = vmax.f32 %v8122_v54, 0.0 }
 0xb40   : > { %v8191_v50 = vsel %vm8133_vm14, %v8157_v55, %v8122_v54  ;;  %v7099_v45 = vpop.f32.mrf.mxu3 }
 0xb41   : > { %8224 = vst.msk [vmem:[%s14413_s21 + $0xb8] sm:$0xff] %vm8200_vm15, %v8191_v50 }
 0xb42   : > { %v8039_v51 = vpop.f32.mrf.mxu0 }
 0xb43   : > { %v8087_v2 = vadd.f32 %v8039_v51, %v7306_v58 }
 0xb45   : > { %v8123_v25 = vadd.f32 %v14881_v46, %v8087_v2 }
 0xb47   : > { %v7308_v16 = vpop.f32.mrf.mxu2  ;;  %v8158_v57 = vmax.f32 %v8123_v25, 0.0 }
 0xb48   : > { %v7309_v39 = vadd.f32 %v7308_v16, %v7099_v45 }
 0xb49   : > { %v8192_v23 = vsel %vm8133_vm14, %v8158_v57, %v8123_v25 }
 0xb4a   : > { %8225 = vst.msk [vmem:[%s14413_s21 + $0xc0] sm:$0xff] %vm8200_vm15, %v8192_v23  ;;  %v8042_v4 = vpop.f32.mrf.mxu0 }
 0xb4b   : > { %v8088_v8 = vadd.f32 %v8042_v4, %v7309_v39 }
 0xb4d   : > { %v8124_v5 = vadd.f32 %v14881_v46, %v8088_v8 }
 0xb4f   : > { %v8159_v6 = vmax.f32 %v8124_v5, 0.0 }
 0xb50   : > { %v7311_v53 = vpop.f32.mrf.mxu2 }
 0xb51   : > { %v8193_v44 = vsel %vm8133_vm14, %v8159_v6, %v8124_v5 }
 0xb52   : > { %8226 = vst.msk [vmem:[%s14413_s21 + $0xc8] sm:$0xff] %vm8200_vm15, %v8193_v44 }
 0xb57   : > { %v7102_v48 = vpop.f32.mrf.mxu3 }
 0xb58   : > { %v7312_v0 = vadd.f32 %v7311_v53, %v7102_v48  ;;  %v7314_v62 = vpop.f32.mrf.mxu2 }
 0xb60   : > { %v7105_v35 = vpop.f32.mrf.mxu3 }
 0xb61   : > { %v8045_v14 = vpop.f32.mrf.mxu0  ;;  %v7315_v37 = vadd.f32 %v7314_v62, %v7105_v35 }
 0xb62   : > { %v8089_v20 = vadd.f32 %v8045_v14, %v7312_v0 }
 0xb64   : > { %v8125_v61 = vadd.f32 %v14881_v46, %v8089_v20 }
 0xb66   : > { %v8160_v19 = vmax.f32 %v8125_v61, 0.0 }
 0xb68   : > { %v8194_v10 = vsel %vm8133_vm14, %v8160_v19, %v8125_v61  ;;  %v7108_v63 = vpop.f32.mrf.mxu3 }
 0xb69   : > { %8227 = vst.msk [vmem:[%s14413_s21 + $0xd0] sm:$0xff] %vm8200_vm15, %v8194_v10 }
 0xb6a   : > { %v8048_v49 = vpop.f32.mrf.mxu0 }
 0xb6b   : > { %v8090_v36 = vadd.f32 %v8048_v49, %v7315_v37 }
 0xb6d   : > { %v8126_v52 = vadd.f32 %v14881_v46, %v8090_v36 }
 0xb6f   : > { %v7317_v24 = vpop.f32.mrf.mxu2  ;;  %v8161_v9 = vmax.f32 %v8126_v52, 0.0 }
 0xb70   : > { %v7318_v47 = vadd.f32 %v7317_v24, %v7108_v63 }
 0xb71   : > { %v8195_v21 = vsel %vm8133_vm14, %v8161_v9, %v8126_v52 }
 0xb72   : > { %8228 = vst.msk [vmem:[%s14413_s21 + $0xd8] sm:$0xff] %vm8200_vm15, %v8195_v21  ;;  %v8051_v7 = vpop.f32.mrf.mxu0 }
 0xb73   : > { %v8091_v28 = vadd.f32 %v8051_v7, %v7318_v47 }
 0xb75   : > { %v8127_v56 = vadd.f32 %v14881_v46, %v8091_v28 }
 0xb77   : > { %v8162_v17 = vmax.f32 %v8127_v56, 0.0 }
 0xb78   : > { %v7320_v40 = vpop.f32.mrf.mxu2 }
 0xb79   : > { %v8196_v1 = vsel %vm8133_vm14, %v8162_v17, %v8127_v56 }
 0xb7a   : > { %8229 = vst.msk [vmem:[%s14413_s21 + $0xe0] sm:$0xff] %vm8200_vm15, %v8196_v1 }
 0xb7f   : > { %v7111_v33 = vpop.f32.mrf.mxu3 }
 0xb80   : > { %v7321_v29 = vadd.f32 %v7320_v40, %v7111_v33  ;;  %v7323_v41 = vpop.f32.mrf.mxu2 }
 0xb88   : > { %v7114_v26 = vpop.f32.mrf.mxu3 }
 0xb89   : > { %v8054_v13 = vpop.f32.mrf.mxu0  ;;  %v7324_v60 = vadd.f32 %v7323_v41, %v7114_v26 }
 0xb8a   : > { %v8092_v11 = vadd.f32 %v8054_v13, %v7321_v29 }
 0xb8c   : > { %v8128_v38 = vadd.f32 %v14881_v46, %v8092_v11 }
 0xb8e   : > { %v8163_v31 = vmax.f32 %v8128_v38, 0.0 }
 0xb90   : > { %v8197_v59 = vsel %vm8133_vm14, %v8163_v31, %v8128_v38  ;;  %v7117_v15 = vpop.f32.mrf.mxu3 }
 0xb91   : > { %8230 = vst.msk [vmem:[%s14413_s21 + $0xe8] sm:$0xff] %vm8200_vm15, %v8197_v59  ;;  %v8057_v32 = vpop.f32.mrf.mxu0 }
 0xb92   : > { %v8093_v42 = vadd.f32 %v8057_v32, %v7324_v60 }
 0xb94   : > { %v8129_v43 = vadd.f32 %v14881_v46, %v8093_v42 }
 0xb96   : > { %v8164_v30 = vmax.f32 %v8129_v43, 0.0 }
 0xb97   : > { %v7326_v3 = vpop.f32.mrf.mxu2 }
 0xb98   : > { %v8198_v12 = vsel %vm8133_vm14, %v8164_v30, %v8129_v43  ;;  %v7327_v22 = vadd.f32 %v7326_v3, %v7117_v15 }
 0xb99   : > { %8231 = vst.msk [vmem:[%s14413_s21 + $0xf0] sm:$0xff] %vm8200_vm15, %v8198_v12 }
 0xb9a   : > { %v8060_v54 = vpop.f32.mrf.mxu0 }
 0xb9b   : > { %v8094_v55 = vadd.f32 %v8060_v54, %v7327_v22 }
 0xb9d   : > { %v8130_v27 = vadd.f32 %v14881_v46, %v8094_v55 }
 0xb9f   : > { %v8165_v18 = vmax.f32 %v8130_v27, 0.0 }
 0xba1   : > { %v8199_v50 = vsel %vm8133_vm14, %v8165_v18, %v8130_v27 }
 0xba2   : > { %8232 = vst.msk [vmem:[%s14413_s21 + $0xf8] sm:$0xff] %vm8200_vm15, %v8199_v50 }
 0xba3 PF: > { %s23_s25 = sadd.s32 1, %s8789_s25  }
 0xba4   : > { %p20_p4 = scmp.ge.s32.totalorder %s23_s25, 4  }
 0xba6   :  { %22 = sbr.rel (!%p20_p4) target bundleno = 1 (0x1), region = 111 }

</bundles_post_ra>
